<compile_context>
chip_gen: v7x
topology: tpu7x:2x2x1
jax: 0.10.0
libtpu: 0.0.40
codegen_flags: <defaults>
</compile_context>

<pallas_src>
import jax
import jax.numpy as jnp
from jax.experimental import pallas as pl
from jax.experimental.pallas import tpu as pltpu

D_IN = 1024        # fixed by nn.Linear(1024, 512)
MLP_DIM = 512      # default mlp_dim
N_CLASSES = 2      # default n_classes
TEMP_T = 1.0
TEMP_S = 1.0

TILE_CAP = 1024                     # max patch rows per grid step
VMEM_LIMIT_BYTES = 48 * 1024 * 1024  # generation-safe scoped VMEM (v7x phys = 64 MiB)


# ---------------------------------------------------------------------------
# Fused kernel:
#   grid axis 0 streams patch tiles (reduction axis, "arbitrary").
#   Per step : x tile cast to bf16 in-kernel; emb = ReLU(x @ W1 + b1) (f32 acc on
#              the MXU); VPU-only partial sum into a resident (8, 512) f32 scratch.
#              Only the LAST tile can contain ragged/out-of-bounds rows, so the
#              row < n_valid select is gated to that step.
#   Last step: final sublane reduce + /n -> student cls feature (mean-pool encoder
#              stand-in), predictor linear (lane-dense (2,512) weight), and
#              soft-target CE loss against the teacher feature, gated by a
#              scalar-prefetch has_teacher flag.
# ---------------------------------------------------------------------------
def _mhim_kernel(scal_ref, x_ref, w1_ref, b1_ref, wp_ref, bp_ref, t_ref,
                 logit_ref, loss_ref, acc_ref):
    i = pl.program_id(0)
    nsteps = pl.num_programs(0)
    tile_n = x_ref.shape[0]

    @pl.when(i == 0)
    def _():
        acc_ref[...] = jnp.zeros_like(acc_ref)

    # patch_to_emb: ReLU(x @ W1 + b1). x is cast to bf16 in-kernel (cheap VPU cast,
    # hidden under the MXU; avoids a separate wrapper-side HBM cast pass). Dropout
    # is identity (eval mode).
    x_bf = x_ref[...].astype(jnp.bfloat16)
    emb = jnp.dot(x_bf, w1_ref[...], preferred_element_type=jnp.float32)
    emb = jnp.maximum(emb + b1_ref[...], 0.0)

    # VPU-only partial reduction: (tile_n, 512) -> (8, 512); the cross-sublane
    # reduction to (1, 512) is paid once, in the finalize block.
    @pl.when(i < nsteps - 1)
    def _():
        acc_ref[...] += jnp.sum(emb.reshape(tile_n // 8, 8, MLP_DIM), axis=0)

    @pl.when(i == nsteps - 1)
    def _():
        # Only the last tile can be ragged (cdiv grid, no explicit padding): mask
        # out-of-bounds rows with a select (garbage/NaN in those rows is safe).
        n_valid = scal_ref[0]
        row = jax.lax.broadcasted_iota(jnp.int32, (tile_n, 1), 0) + i * tile_n
        emb_m = jnp.where(row < n_valid, emb, 0.0)
        acc_ref[...] += jnp.sum(emb_m.reshape(tile_n // 8, 8, MLP_DIM), axis=0)

        n_f = n_valid.astype(jnp.float32)
        # encoder stand-in: mean-pool over valid patches -> student cls feature
        cls = jnp.sum(acc_ref[...], axis=0, keepdims=True) / n_f       # (1, 512)

        # predictor: logits = cls @ Wp^T + bp   (Wp stored (n_classes, 512)).
        # Kept as a single tiny MXU dot in the once-per-call epilogue; the VPU
        # alternative needs a (n_classes,) -> (1, n_classes) relayout of sub-tile
        # data, not worth the lowering risk for ~0 gain.
        logits = jax.lax.dot_general(
            cls, wp_ref[...],
            dimension_numbers=(((1,), (1,)), ((), ())),
            preferred_element_type=jnp.float32) + bp_ref[...]
        logit_ref[...] = logits

        has_teacher = scal_ref[1]

        @pl.when(has_teacher == 1)
        def _():
            # SoftTargetCrossEntropy_v2(student_cls_feat, teacher_cls_feat)
            t = t_ref[...] * (1.0 / TEMP_T)
            t = t - jnp.max(t, axis=-1, keepdims=True)
            t_exp = jnp.exp(t)
            t_sm = t_exp / jnp.sum(t_exp, axis=-1, keepdims=True)

            s = cls * (1.0 / TEMP_S)
            s = s - jnp.max(s, axis=-1, keepdims=True)
            log_z = jnp.log(jnp.sum(jnp.exp(s), axis=-1, keepdims=True))
            log_sm = s - log_z

            loss_ref[...] = jnp.sum(-t_sm * log_sm, axis=-1, keepdims=True)

        @pl.when(has_teacher == 0)
        def _():
            loss_ref[...] = jnp.zeros_like(loss_ref)


def _pick_tile(ps, cap=TILE_CAP):
    """Split the patch axis into the fewest <=cap-row tiles of (near-)equal size,
    each a multiple of 8 sublanes (required by the (n//8, 8, 512) partial-sum
    reshape). Keeps padded MXU work negligible (matters most on v5e)."""
    nsteps = -(-ps // cap)
    tile = -(-ps // nsteps)
    tile = ((tile + 7) // 8) * 8
    return min(tile, cap)


def _mhim_pallas(scalars, x, w1_bf, b1, wp, bp, teacher, *, tile_n):
    ps = x.shape[0]
    grid_n = (ps + tile_n - 1) // tile_n

    flops = 2 * ps * D_IN * MLP_DIM + 2 * MLP_DIM * N_CLASSES
    bytes_accessed = (ps * D_IN * x.dtype.itemsize
                      + D_IN * MLP_DIM * w1_bf.dtype.itemsize
                      + (3 * MLP_DIM + 3 * N_CLASSES + 1) * 4)

    return pl.pallas_call(
        _mhim_kernel,
        out_shape=(
            jax.ShapeDtypeStruct((1, N_CLASSES), jnp.float32),
            jax.ShapeDtypeStruct((1, 1), jnp.float32),
        ),
        grid_spec=pltpu.PrefetchScalarGridSpec(
            num_scalar_prefetch=1,                       # [n_valid, has_teacher]
            grid=(grid_n,),
            in_specs=[
                pl.BlockSpec((tile_n, D_IN), lambda i, s: (i, 0)),       # x tile (ragged edge OK)
                pl.BlockSpec((D_IN, MLP_DIM), lambda i, s: (0, 0)),      # W1 (resident, fetched once)
                pl.BlockSpec((1, MLP_DIM), lambda i, s: (0, 0)),         # b1
                pl.BlockSpec((N_CLASSES, MLP_DIM), lambda i, s: (0, 0)), # Wp
                pl.BlockSpec((1, N_CLASSES), lambda i, s: (0, 0)),       # bp
                pl.BlockSpec((1, MLP_DIM), lambda i, s: (0, 0)),         # teacher
            ],
            out_specs=(
                pl.BlockSpec((1, N_CLASSES), lambda i, s: (0, 0)),       # logits
                pl.BlockSpec((1, 1), lambda i, s: (0, 0)),               # loss
            ),
            scratch_shapes=[pltpu.VMEM((8, MLP_DIM), jnp.float32)],
        ),
        compiler_params=pltpu.CompilerParams(
            dimension_semantics=("arbitrary",),
            vmem_limit_bytes=VMEM_LIMIT_BYTES),
        cost_estimate=pl.CostEstimate(
            flops=flops,
            transcendentals=4 * MLP_DIM,
            bytes_accessed=bytes_accessed),
    )(scalars, x, w1_bf, b1, wp, bp, teacher)


# ---------------------------------------------------------------------------
# MHIM.forward wrapper
# ---------------------------------------------------------------------------
def mhim_forward(x, params, teacher_cls_feat=None, *, tile_cap=TILE_CAP):
    """x: (1, N, 1024).  Returns (student_logit, cls_loss, ps, len_keep)."""
    assert x.shape[0] == 1 and x.shape[2] == D_IN
    ps = x.shape[1]
    assert ps >= 1, "empty bag: ps must be >= 1"
    # get_mask with attn=None and all mask ratios == 0 -> (len_keep=ps, mask_ids=None)
    len_keep = ps

    tile_n = _pick_tile(ps, tile_cap)
    assert tile_n % 8 == 0  # required by the (tile_n//8, 8, 512) partial-sum reshape

    # x streams into the kernel at its native dtype (cast to bf16 in-kernel) with a
    # cdiv grid -> no wrapper-side cast or pad pass over HBM. W1 is expected bf16
    # at rest (init_params pre-casts once); fall back to a cast if given f32.
    x2 = x[0]
    w1_bf = params["w1"]
    if w1_bf.dtype != jnp.bfloat16:
        w1_bf = w1_bf.astype(jnp.bfloat16)

    has_teacher = teacher_cls_feat is not None
    if has_teacher:
        teacher = teacher_cls_feat.astype(jnp.float32).reshape(1, MLP_DIM)
    else:
        teacher = jnp.zeros((1, MLP_DIM), jnp.float32)
    scalars = jnp.array([ps, 1 if has_teacher else 0], jnp.int32)

    logits, loss = _mhim_pallas(
        scalars, x2, w1_bf, params["b1"], params["wp"], params["bp"], teacher,
        tile_n=tile_n)
    cls_loss = loss[0, 0]
    return logits, cls_loss, ps, len_keep


def init_params(key):
    """Deterministic xavier-normal Linear weights, zero biases (initialize_weights).
    W1 is pre-cast to bf16 once here (MXU input dtype) to avoid per-forward casts."""
    k1, k2 = jax.random.split(key)
    std1 = (2.0 / (D_IN + MLP_DIM)) ** 0.5
    stdp = (2.0 / (MLP_DIM + N_CLASSES)) ** 0.5
    return {
        "w1": (jax.random.normal(k1, (D_IN, MLP_DIM), jnp.float32) * std1
               ).astype(jnp.bfloat16),
        "b1": jnp.zeros((1, MLP_DIM), jnp.float32),
        # lane-dense (out_features, in_features) layout for the tiny predictor
        "wp": jax.random.normal(k2, (N_CLASSES, MLP_DIM), jnp.float32) * stdp,
        "bp": jnp.zeros((1, N_CLASSES), jnp.float32),
    }


def _reference(x, params, teacher_cls_feat):
    """Pure-JAX reference with the same bf16 rounding of the matmul inputs."""
    xb = x[0].astype(jnp.bfloat16).astype(jnp.float32)
    wb = params["w1"].astype(jnp.float32)
    emb = jnp.maximum(xb @ wb + params["b1"], 0.0)
    cls = jnp.mean(emb, axis=0, keepdims=True)
    ref_logits = cls @ params["wp"].T + params["bp"]
    if teacher_cls_feat is None:
        return ref_logits, jnp.float32(0.0)
    t_sm = jax.nn.softmax(teacher_cls_feat / TEMP_T, axis=-1)
    log_sm = jax.nn.log_softmax(cls / TEMP_S, axis=-1)
    ref_loss = jnp.mean(jnp.sum(-t_sm * log_sm, axis=-1))
    return ref_logits, ref_loss


if __name__ == "__main__":
    key = jax.random.PRNGKey(0)
    kx, kx2, kt, kp = jax.random.split(key, 4)
    params = init_params(kp)
    teacher_cls_feat = jax.random.normal(kt, (1, MLP_DIM), jnp.float32)

    # --- case 1: single-tile path (ps <= tile cap), with teacher ---------------
    N1 = 600
    x1 = jax.random.normal(kx, (1, N1, D_IN), jnp.float32)
    logits, cls_loss, ps, len_keep = mhim_forward(x1, params, teacher_cls_feat)
    jax.block_until_ready((logits, cls_loss))

    ref_logits, ref_loss = _reference(x1, params, teacher_cls_feat)
    assert logits.shape == (1, N_CLASSES)
    assert ps == N1 and len_keep == N1
    assert bool(jnp.isfinite(logits).all()) and bool(jnp.isfinite(cls_loss))
    assert bool(jnp.allclose(logits, ref_logits, rtol=2e-2, atol=2e-2))
    assert bool(jnp.allclose(cls_loss, ref_loss, rtol=2e-2, atol=2e-2))

    # --- case 2: multi-tile path with a ragged last block, with teacher --------
    N2 = 1300
    x2 = jax.random.normal(kx2, (1, N2, D_IN), jnp.float32)
    logits2, cls_loss2, ps2, len_keep2 = mhim_forward(x2, params, teacher_cls_feat)
    jax.block_until_ready((logits2, cls_loss2))

    ref_logits2, ref_loss2 = _reference(x2, params, teacher_cls_feat)
    assert ps2 == N2 and len_keep2 == N2
    assert bool(jnp.isfinite(logits2).all()) and bool(jnp.isfinite(cls_loss2))
    assert bool(jnp.allclose(logits2, ref_logits2, rtol=2e-2, atol=2e-2))
    assert bool(jnp.allclose(cls_loss2, ref_loss2, rtol=2e-2, atol=2e-2))

    # --- case 3: no-teacher path (loss gated off inside the kernel) ------------
    logits3, cls_loss3, _, _ = mhim_forward(x1, params, None)
    jax.block_until_ready((logits3, cls_loss3))
    assert bool(jnp.allclose(cls_loss3, 0.0))
    assert bool(jnp.allclose(logits3, ref_logits, rtol=2e-2, atol=2e-2))

    print("KERNEL_OK")
</pallas_src>

<mosaic_0001>
module attributes {stable_mosaic.version = 11 : i64} {
  func.func @_mhim_kernel(%arg0: i32, %arg1: memref<2xi32, #tpu.memory_space<smem>>, %arg2: memref<600x1024xf32, #tpu.memory_space<vmem>>, %arg3: memref<1024x512xbf16, #tpu.memory_space<vmem>>, %arg4: memref<1x512xf32, #tpu.memory_space<vmem>>, %arg5: memref<2x512xf32, #tpu.memory_space<vmem>>, %arg6: memref<1x2xf32, #tpu.memory_space<vmem>>, %arg7: memref<1x512xf32, #tpu.memory_space<vmem>>, %arg8: memref<1x2xf32, #tpu.memory_space<vmem>>, %arg9: memref<1x1xf32, #tpu.memory_space<vmem>>, %arg10: memref<8x512xf32, #tpu.memory_space<vmem>>) attributes {dimension_semantics = [#tpu.dimension_semantics<arbitrary>], iteration_bounds = array<i64: 1>, scalar_prefetch = 1 : i64, scratch_operands = 1 : i64, tpu.core_type = #tpu.core_type<tc>, window_params = [{transform_indices = @transform_0, window_bounds = array<i64: 600, 1024>}, {pipeline_mode = #tpu.pipeline_mode<synchronous>, transform_indices = @transform_1, window_bounds = array<i64: 1024, 512>}, {pipeline_mode = #tpu.pipeline_mode<synchronous>, transform_indices = @transform_2, window_bounds = array<i64: 1, 512>}, {pipeline_mode = #tpu.pipeline_mode<synchronous>, transform_indices = @transform_3, window_bounds = array<i64: 2, 512>}, {pipeline_mode = #tpu.pipeline_mode<synchronous>, transform_indices = @transform_4, window_bounds = array<i64: 1, 2>}, {pipeline_mode = #tpu.pipeline_mode<synchronous>, transform_indices = @transform_5, window_bounds = array<i64: 1, 512>}, {pipeline_mode = #tpu.pipeline_mode<synchronous>, transform_indices = @transform_6, window_bounds = array<i64: 1, 2>}, {pipeline_mode = #tpu.pipeline_mode<synchronous>, transform_indices = @transform_7, window_bounds = array<i64: 1, 1>}]} {
    %c0_i32 = arith.constant 0 : i32
    %0 = arith.cmpi eq, %arg0, %c0_i32 : i32
    %1 = arith.extui %0 : i1 to i32
    %c0_i32_0 = arith.constant 0 : i32
    %2 = arith.cmpi ne, %1, %c0_i32_0 : i32
    scf.if %2 {
      %cst_11 = arith.constant 0.000000e+00 : f32
      %18 = vector.broadcast %cst_11 : f32 to vector<8x512xf32>
      %c0_12 = arith.constant 0 : index
      %c0_13 = arith.constant 0 : index
      %19 = vector.load %arg10[%c0_12, %c0_13] : memref<8x512xf32, #tpu.memory_space<vmem>>, vector<8x512xf32>
      tpu.vector_store %arg10[%c0_12, %c0_13], %18 {strides = array<i32>} : memref<8x512xf32, #tpu.memory_space<vmem>>, vector<8x512xf32>,
    } else {
    }
    %c0 = arith.constant 0 : index
    %c0_1 = arith.constant 0 : index
    %3 = vector.load %arg2[%c0, %c0_1] : memref<600x1024xf32, #tpu.memory_space<vmem>>, vector<600x1024xf32>
    %4 = arith.truncf %3 : vector<600x1024xf32> to vector<600x1024xbf16>
    %c0_2 = arith.constant 0 : index
    %c0_3 = arith.constant 0 : index
    %5 = vector.load %arg3[%c0_2, %c0_3] : memref<1024x512xbf16, #tpu.memory_space<vmem>>, vector<1024x512xbf16>
    %cst = arith.constant dense<0.000000e+00> : vector<600x512xf32>
    %6 = tpu.matmul %4, %5, %cst {dimension_numbers = #tpu.dot_dimension_numbers<[1], [0], [0], [1], [0, 0, 1, 1], [], []>} : vector<600x1024xbf16>, vector<1024x512xbf16>, vector<600x512xf32> -> vector<600x512xf32>
    %c0_4 = arith.constant 0 : index
    %c0_5 = arith.constant 0 : index
    %7 = vector.load %arg4[%c0_4, %c0_5] : memref<1x512xf32, #tpu.memory_space<vmem>>, vector<1x512xf32>
    %8 = vector.broadcast %7 : vector<1x512xf32> to vector<600x512xf32>
    %9 = arith.addf %6, %8 : vector<600x512xf32>
    %cst_6 = arith.constant 0.000000e+00 : f32
    %10 = vector.broadcast %cst_6 : f32 to vector<600x512xf32>
    %11 = arith.maximumf %9, %10 : vector<600x512xf32>
    %c0_i32_7 = arith.constant 0 : i32
    %12 = arith.cmpi slt, %arg0, %c0_i32_7 : i32
    %13 = arith.extui %12 : i1 to i32
    %c0_i32_8 = arith.constant 0 : i32
    %14 = arith.cmpi ne, %13, %c0_i32_8 : i32
    scf.if %14 {
      %c0_11 = arith.constant 0 : index
      %c0_12 = arith.constant 0 : index
      %18 = vector.load %arg10[%c0_11, %c0_12] : memref<8x512xf32, #tpu.memory_space<vmem>>, vector<8x512xf32>
      %19 = vector.shape_cast %11 : vector<600x512xf32> to vector<75x8x512xf32>
      %cst_13 = arith.constant dense<0.000000e+00> : vector<8x512xf32>
      %20 = vector.multi_reduction <add>, %19, %cst_13 [0] : vector<75x8x512xf32> to vector<8x512xf32>
      %21 = arith.addf %18, %20 : vector<8x512xf32>
      %c0_14 = arith.constant 0 : index
      %c0_15 = arith.constant 0 : index
      %22 = vector.load %arg10[%c0_14, %c0_15] : memref<8x512xf32, #tpu.memory_space<vmem>>, vector<8x512xf32>
      tpu.vector_store %arg10[%c0_14, %c0_15], %21 {strides = array<i32>} : memref<8x512xf32, #tpu.memory_space<vmem>>, vector<8x512xf32>,
    } else {
    }
    %c0_i32_9 = arith.constant 0 : i32
    %15 = arith.cmpi eq, %arg0, %c0_i32_9 : i32
    %16 = arith.extui %15 : i1 to i32
    %c0_i32_10 = arith.constant 0 : i32
    %17 = arith.cmpi ne, %16, %c0_i32_10 : i32
    scf.if %17 {
      %c0_11 = arith.constant 0 : index
      %18 = memref.load %arg1[%c0_11] : memref<2xi32, #tpu.memory_space<smem>>
      %19 = tpu.iota {dimensions = array<i32: 0>} : vector<600x1xi32>
      %c600_i32 = arith.constant 600 : i32
      %20 = arith.muli %arg0, %c600_i32 : i32
      %21 = vector.broadcast %20 : i32 to vector<600x1xi32>
      %22 = arith.addi %19, %21 : vector<600x1xi32>
      %23 = vector.broadcast %18 : i32 to vector<600x1xi32>
      %24 = arith.cmpi slt, %22, %23 : vector<600x1xi32>
      %cst_12 = arith.constant 0.000000e+00 : f32
      %25 = vector.shape_cast %24 : vector<600x1xi1> to vector<600x1xi1>
      %26 = vector.broadcast %25 : vector<600x1xi1> to vector<600x512xi1>
      %27 = vector.broadcast %cst_12 : f32 to vector<600x512xf32>
      %28 = arith.select %26, %11, %27 : vector<600x512xi1>, vector<600x512xf32>
      %c0_13 = arith.constant 0 : index
      %c0_14 = arith.constant 0 : index
      %29 = vector.load %arg10[%c0_13, %c0_14] : memref<8x512xf32, #tpu.memory_space<vmem>>, vector<8x512xf32>
      %30 = vector.shape_cast %28 : vector<600x512xf32> to vector<75x8x512xf32>
      %cst_15 = arith.constant dense<0.000000e+00> : vector<8x512xf32>
      %31 = vector.multi_reduction <add>, %30, %cst_15 [0] : vector<75x8x512xf32> to vector<8x512xf32>
      %32 = arith.addf %29, %31 : vector<8x512xf32>
      %c0_16 = arith.constant 0 : index
      %c0_17 = arith.constant 0 : index
      %33 = vector.load %arg10[%c0_16, %c0_17] : memref<8x512xf32, #tpu.memory_space<vmem>>, vector<8x512xf32>
      tpu.vector_store %arg10[%c0_16, %c0_17], %32 {strides = array<i32>} : memref<8x512xf32, #tpu.memory_space<vmem>>, vector<8x512xf32>,
      %34 = arith.sitofp %18 : i32 to f32
      %c0_18 = arith.constant 0 : index
      %c0_19 = arith.constant 0 : index
      %35 = vector.load %arg10[%c0_18, %c0_19] : memref<8x512xf32, #tpu.memory_space<vmem>>, vector<8x512xf32>
      %cst_20 = arith.constant dense<0.000000e+00> : vector<512xf32>
      %36 = vector.multi_reduction <add>, %35, %cst_20 [0] : vector<8x512xf32> to vector<512xf32>
      %37 = vector.shape_cast %36 : vector<512xf32> to vector<1x512xf32>
      %38 = vector.broadcast %34 : f32 to vector<1x512xf32>
      %39 = arith.divf %37, %38 : vector<1x512xf32>
      %c0_21 = arith.constant 0 : index
      %c0_22 = arith.constant 0 : index
      %40 = vector.load %arg5[%c0_21, %c0_22] : memref<2x512xf32, #tpu.memory_space<vmem>>, vector<2x512xf32>
      %cst_23 = arith.constant dense<0.000000e+00> : vector<1x2xf32>
      %41 = tpu.matmul %39, %40, %cst_23 {dimension_numbers = #tpu.dot_dimension_numbers<[1], [1], [0], [0], [0, 0, 1, 0], [], []>} : vector<1x512xf32>, vector<2x512xf32>, vector<1x2xf32> -> vector<1x2xf32>
      %c0_24 = arith.constant 0 : index
      %c0_25 = arith.constant 0 : index
      %42 = vector.load %arg6[%c0_24, %c0_25] : memref<1x2xf32, #tpu.memory_space<vmem>>, vector<1x2xf32>
      %43 = arith.addf %41, %42 : vector<1x2xf32>
      %c0_26 = arith.constant 0 : index
      %c0_27 = arith.constant 0 : index
      %44 = vector.load %arg8[%c0_26, %c0_27] : memref<1x2xf32, #tpu.memory_space<vmem>>, vector<1x2xf32>
      tpu.vector_store %arg8[%c0_26, %c0_27], %43 {strides = array<i32>} : memref<1x2xf32, #tpu.memory_space<vmem>>, vector<1x2xf32>,
      %c1 = arith.constant 1 : index
      %45 = memref.load %arg1[%c1] : memref<2xi32, #tpu.memory_space<smem>>
      %c1_i32 = arith.constant 1 : i32
      %46 = arith.cmpi eq, %45, %c1_i32 : i32
      %47 = arith.extui %46 : i1 to i32
      %c0_i32_28 = arith.constant 0 : i32
      %48 = arith.cmpi ne, %47, %c0_i32_28 : i32
      scf.if %48 {
        %c0_31 = arith.constant 0 : index
        %c0_32 = arith.constant 0 : index
        %52 = vector.load %arg7[%c0_31, %c0_32] : memref<1x512xf32, #tpu.memory_space<vmem>>, vector<1x512xf32>
        %cst_33 = arith.constant 1.000000e+00 : f32
        %53 = vector.broadcast %cst_33 : f32 to vector<1x512xf32>
        %54 = arith.mulf %52, %53 : vector<1x512xf32>
        %cst_34 = arith.constant dense<0xFF800000> : vector<1xf32>
        %55 = vector.multi_reduction <maximumf>, %54, %cst_34 [1] : vector<1x512xf32> to vector<1xf32>
        %56 = vector.shape_cast %55 : vector<1xf32> to vector<1x1xf32>
        %57 = vector.broadcast %56 : vector<1x1xf32> to vector<1x512xf32>
        %58 = arith.subf %54, %57 : vector<1x512xf32>
        %59 = math.exp %58 : vector<1x512xf32>
        %cst_35 = arith.constant dense<0.000000e+00> : vector<1xf32>
        %60 = vector.multi_reduction <add>, %59, %cst_35 [1] : vector<1x512xf32> to vector<1xf32>
        %61 = vector.shape_cast %60 : vector<1xf32> to vector<1x1xf32>
        %62 = vector.broadcast %61 : vector<1x1xf32> to vector<1x512xf32>
        %63 = arith.divf %59, %62 : vector<1x512xf32>
        %cst_36 = arith.constant 1.000000e+00 : f32
        %64 = vector.broadcast %cst_36 : f32 to vector<1x512xf32>
        %65 = arith.mulf %39, %64 : vector<1x512xf32>
        %cst_37 = arith.constant dense<0xFF800000> : vector<1xf32>
        %66 = vector.multi_reduction <maximumf>, %65, %cst_37 [1] : vector<1x512xf32> to vector<1xf32>
        %67 = vector.shape_cast %66 : vector<1xf32> to vector<1x1xf32>
        %68 = vector.broadcast %67 : vector<1x1xf32> to vector<1x512xf32>
        %69 = arith.subf %65, %68 : vector<1x512xf32>
        %70 = math.exp %69 : vector<1x512xf32>
        %cst_38 = arith.constant dense<0.000000e+00> : vector<1xf32>
        %71 = vector.multi_reduction <add>, %70, %cst_38 [1] : vector<1x512xf32> to vector<1xf32>
        %72 = vector.shape_cast %71 : vector<1xf32> to vector<1x1xf32>
        %73 = math.log %72 : vector<1x1xf32>
        %74 = vector.broadcast %73 : vector<1x1xf32> to vector<1x512xf32>
        %75 = arith.subf %69, %74 : vector<1x512xf32>
        %cst_39 = arith.constant 0.000000e+00 : f32
        %76 = vector.broadcast %cst_39 : f32 to vector<1x512xf32>
        %77 = arith.subf %76, %63 : vector<1x512xf32>
        %78 = arith.mulf %77, %75 : vector<1x512xf32>
        %cst_40 = arith.constant dense<0.000000e+00> : vector<1xf32>
        %79 = vector.multi_reduction <add>, %78, %cst_40 [1] : vector<1x512xf32> to vector<1xf32>
        %80 = vector.shape_cast %79 : vector<1xf32> to vector<1x1xf32>
        %c0_41 = arith.constant 0 : index
        %c0_42 = arith.constant 0 : index
        %81 = vector.load %arg9[%c0_41, %c0_42] : memref<1x1xf32, #tpu.memory_space<vmem>>, vector<1x1xf32>
        tpu.vector_store %arg9[%c0_41, %c0_42], %80 {strides = array<i32>} : memref<1x1xf32, #tpu.memory_space<vmem>>, vector<1x1xf32>,
      } else {
      }
      %c0_i32_29 = arith.constant 0 : i32
      %49 = arith.cmpi eq, %45, %c0_i32_29 : i32
      %50 = arith.extui %49 : i1 to i32
      %c0_i32_30 = arith.constant 0 : i32
      %51 = arith.cmpi ne, %50, %c0_i32_30 : i32
      scf.if %51 {
        %cst_31 = arith.constant 0.000000e+00 : f32
        %52 = vector.broadcast %cst_31 : f32 to vector<1x1xf32>
        %c0_32 = arith.constant 0 : index
        %c0_33 = arith.constant 0 : index
        %53 = vector.load %arg9[%c0_32, %c0_33] : memref<1x1xf32, #tpu.memory_space<vmem>>, vector<1x1xf32>
        tpu.vector_store %arg9[%c0_32, %c0_33], %52 {strides = array<i32>} : memref<1x1xf32, #tpu.memory_space<vmem>>, vector<1x1xf32>,
      } else {
      }
    } else {
    }
    return
  }
  func.func @transform_0(%arg0: i32, %arg1: memref<2xi32, #tpu.memory_space<smem>>) -> (i32, i32) {
    %c0_i32 = arith.constant 0 : i32
    %c0_i32_0 = arith.constant 0 : i32
    return %arg0, %c0_i32 : i32, i32
  }
  func.func @transform_1(%arg0: i32, %arg1: memref<2xi32, #tpu.memory_space<smem>>) -> (i32, i32) {
    %c0_i32 = arith.constant 0 : i32
    %c0_i32_0 = arith.constant 0 : i32
    %c0_i32_1 = arith.constant 0 : i32
    return %c0_i32, %c0_i32_0 : i32, i32
  }
  func.func @transform_2(%arg0: i32, %arg1: memref<2xi32, #tpu.memory_space<smem>>) -> (i32, i32) {
    %c0_i32 = arith.constant 0 : i32
    %c0_i32_0 = arith.constant 0 : i32
    %c0_i32_1 = arith.constant 0 : i32
    return %c0_i32, %c0_i32_0 : i32, i32
  }
  func.func @transform_3(%arg0: i32, %arg1: memref<2xi32, #tpu.memory_space<smem>>) -> (i32, i32) {
    %c0_i32 = arith.constant 0 : i32
    %c0_i32_0 = arith.constant 0 : i32
    %c0_i32_1 = arith.constant 0 : i32
    return %c0_i32, %c0_i32_0 : i32, i32
  }
  func.func @transform_4(%arg0: i32, %arg1: memref<2xi32, #tpu.memory_space<smem>>) -> (i32, i32) {
    %c0_i32 = arith.constant 0 : i32
    %c0_i32_0 = arith.constant 0 : i32
    %c0_i32_1 = arith.constant 0 : i32
    return %c0_i32, %c0_i32_0 : i32, i32
  }
  func.func @transform_5(%arg0: i32, %arg1: memref<2xi32, #tpu.memory_space<smem>>) -> (i32, i32) {
    %c0_i32 = arith.constant 0 : i32
    %c0_i32_0 = arith.constant 0 : i32
    %c0_i32_1 = arith.constant 0 : i32
    return %c0_i32, %c0_i32_0 : i32, i32
  }
  func.func @transform_6(%arg0: i32, %arg1: memref<2xi32, #tpu.memory_space<smem>>) -> (i32, i32) {
    %c0_i32 = arith.constant 0 : i32
    %c0_i32_0 = arith.constant 0 : i32
    %c0_i32_1 = arith.constant 0 : i32
    return %c0_i32, %c0_i32_0 : i32, i32
  }
  func.func @transform_7(%arg0: i32, %arg1: memref<2xi32, #tpu.memory_space<smem>>) -> (i32, i32) {
    %c0_i32 = arith.constant 0 : i32
    %c0_i32_0 = arith.constant 0 : i32
    %c0_i32_1 = arith.constant 0 : i32
    return %c0_i32, %c0_i32_0 : i32, i32
  }
}

</mosaic_0001>

<bundles_post_ra>
// kernel: tpu_custom_call.1
= control target key start
LH: loop header
LB: loop body
LE: loop exit
PB: predicated region body
PF: predicated region fallthrough
CT: control target
= control target key end

     0   :  { %s11766_s0 = inlined_call_operand.hbm [shape: s32[2], index: 0, kind: input, shape index: {}]   ;;  %s11767_s1 = inlined_call_operand.hbm [shape: f32[600,1024], index: 1, kind: input, shape index: {}]   ;;  %s11768_s2 = inlined_call_operand.hbm [shape: bf16[1024,512], index: 2, kind: input, shape index: {}]   ;;  %s11769_s3 = inlined_call_operand.hbm [shape: f32[1,512], index: 3, kind: input, shape index: {}]   ;;  %s11770_s4 = inlined_call_operand.hbm [shape: f32[2,512], index: 4, kind: input, shape index: {}]   ;;  %s11771_s5 = inlined_call_operand.hbm [shape: f32[1,2], index: 5, kind: input, shape index: {}]   ;;  %s11772_s6 = inlined_call_operand.hbm [shape: f32[1,512], index: 6, kind: input, shape index: {}]   ;;  %s11773_s7 = inlined_call_operand.hbm [shape: f32[1,2], index: 7, kind: output, shape index: {0}]   ;;  %s11774_s8 = inlined_call_operand.hbm [shape: f32[1,1], index: 8, kind: output, shape index: {1}]  }
   0x1   :  { %s9771_s29 = scalar_lea.hbm %s11766_s0, 16 }
   0x2   :  { %p9772_p0 = scmp.ne.s32.totalorder %s11766_s0, %s9771_s29  ;;  %p9775_p1 = scmp.lt.u32.totalorder %s9771_s29, %s11766_s0 }
   0x4   :  { %p9777_p2 = pnand %p9775_p1, %p9772_p0 }
   0x6   :  { %9780 = shalt.err (!%p9777_p2)  }
   0x7   :  { %s9971_s12 = smov [#allocation4]  }
   0x8   :  { %15 = dma.hbm_to_smem %s11766_s0, 16, %s9971_s12, [#allocation3] }
   0x9   :  { %9957 = dma.done.wait [#allocation3], 16 }
   0xa   :  { %9958 = vsyncadd [#allocation3], 4294967280 }
   0xb   :  { %17 = sfence }
   0xc   :  { %18 = vsyncpa [#allocation6], 0 }
   0xd   :  { %19 = vsyncpa [#allocation9], 0 }
   0xe   :  { %20 = vsyncpa [#allocation12], 0 }
   0xf   :  { %21 = vsyncpa [#allocation15], 0 }
  0x10   :  { %22 = vsyncpa [#allocation7], 0 }
  0x11   :  { %23 = vsyncpa [#allocation18], 0  ;;  %s9972_s15 = smov [#allocation8]   ;;  %s9781_s19 = scalar_lea.hbm %s11768_s2, 32768 }
  0x12   :  { %s41_s16 = sshll.u32 %s9972_s15, 4  ;;  %p9782_p3 = scmp.ne.s32.totalorder %s11768_s2, %s9781_s19  ;;  %s42_s16 = int_to_ptr.vmem [resolvable:$true] %s41_s16 }
  0x13   :  { %p9785_p4 = scmp.lt.u32.totalorder %s9781_s19, %s11768_s2 }
  0x15   :  { %p9787_p5 = pnand %p9785_p4, %p9782_p3 }
  0x17   :  { %9790 = shalt.err (!%p9787_p5)
}
  0x18   :  { %s9791_s23 = scalar_lea.vmem %s42_s16, 32768  ;;  %p9796_p7 = scmp.lt.s32.totalorder %s42_s16, %s42_s16 }
  0x19   :  { %p9792_p6 = scmp.ne.s32.totalorder %s42_s16, %s9791_s23  ;;  %p9797_p8 = scmp.lt.s32.totalorder %s9791_s23, %s9791_s23 }
  0x1b   :  { %p9798_p9 = por %p9797_p8, %p9796_p7 }
  0x1d   :  { %p9799_p10 = pnand %p9798_p9, %p9792_p6 }
  0x1f   :  { %9802 = shalt.err (!%p9799_p10)
}
  0x20   :  { %s9973_s24 = smov 256   ;;  %s9974_s25 = smov 16  }
  0x21   :  { %47 = dma.hbm_to_vmem [thread:$0]  %s11768_s2, 32768, %s42_s16, [#allocation9], %s9973_s24, %s9973_s24, %s9974_s25  }
  0x22   :  { %s9975_s28 = smov [#allocation11]   ;;  %s9976_s30 = smov [#allocation5]  }
  0x23   :  { %s64_s29 = sshll.u32 %s9975_s28, 4  ;;  %s29_s9 = sshll.u32 %s9976_s30, 4  ;;  %s65_s29 = int_to_ptr.vmem [resolvable:$true] %s64_s29  ;;  %s30_s9 = int_to_ptr.vmem [resolvable:$true] %s29_s9 }
  0x24   :  { %s9803_s12 = scalar_lea.hbm %s11770_s4, 128 }
  0x25   :  { %p9804_p11 = scmp.ne.s32.totalorder %s11770_s4, %s9803_s12  ;;  %p9807_p12 = scmp.lt.u32.totalorder %s9803_s12, %s11770_s4 }
  0x27   :  { %p9809_p13 = pnand %p9807_p12, %p9804_p11 }
  0x29   :  { %9812 = shalt.err (!%p9809_p13)
}
  0x2a   :  { %s9813_s2 = scalar_lea.vmem %s65_s29, 128  ;;  %p9818_p1 = scmp.lt.s32.totalorder %s65_s29, %s65_s29 }
  0x2b   :  { %p9814_p0 = scmp.ne.s32.totalorder %s65_s29, %s9813_s2  ;;  %p9819_p2 = scmp.lt.s32.totalorder %s9813_s2, %s9813_s2 }
  0x2d   :  { %p9820_p3 = por %p9819_p2, %p9818_p1 }
  0x2f   :  { %p9821_p4 = pnand %p9820_p3, %p9814_p0 }
  0x31   :  { %9824 = shalt.err (!%p9821_p4)
}
  0x32   :  { %67 = dma.hbm_to_vmem [thread:$0]  %s11770_s4, 128, %s65_s29, [#allocation12]  }
  0x33   :  { %s9825_s21 = scalar_lea.hbm %s11767_s1, 76800 }
  0x34   :  { %p9826_p5 = scmp.ne.s32.totalorder %s11767_s1, %s9825_s21  ;;  %p9829_p6 = scmp.lt.u32.totalorder %s9825_s21, %s11767_s1 }
  0x36   :  { %p9831_p7 = pnand %p9829_p6, %p9826_p5 }
  0x38   :  { %9834 = shalt.err (!%p9831_p7)
}
  0x39   :  { %s9835_s25 = scalar_lea.vmem %s30_s9, 76800  ;;  %p9840_p9 = scmp.lt.s32.totalorder %s30_s9, %s30_s9 }
  0x3a   :  { %p9836_p8 = scmp.ne.s32.totalorder %s30_s9, %s9835_s25  ;;  %p9841_p10 = scmp.lt.s32.totalorder %s9835_s25, %s9835_s25 }
  0x3c   :  { %p9842_p11 = por %p9841_p10, %p9840_p9 }
  0x3e   :  { %p9843_p12 = pnand %p9842_p11, %p9836_p8 }
  0x40   :  { %9846 = shalt.err (!%p9843_p12)
}
  0x41   :  { %s9977_s4 = smov 1024   ;;  %s9978_s26 = smov 64  }
  0x42   :  { %35 = dma.hbm_to_vmem [thread:$0]  %s11767_s1, 76800, %s30_s9, [#allocation6], %s9977_s4, %s9977_s4, %s9978_s26  }
  0x43   :  { %s9979_s29 = smov [#allocation10]   ;;  %s9980_s10 = smov [#allocation13]  }
  0x44   :  { %s54_s30 = sshll.u32 %s9979_s29, 4  ;;  %s74_s11 = sshll.u32 %s9980_s10, 4  ;;  %s55_s30 = int_to_ptr.vmem [resolvable:$true] %s54_s30  ;;  %s75_s11 = int_to_ptr.vmem [resolvable:$true] %s74_s11 }
  0x45   :  { %s9847_s14 = scalar_lea.hbm %s11769_s3, 64 }
  0x46   :  { %p9848_p13 = scmp.ne.s32.totalorder %s11769_s3, %s9847_s14  ;;  %p9851_p0 = scmp.lt.u32.totalorder %s9847_s14, %s11769_s3 }
  0x48   :  { %p9853_p1 = pnand %p9851_p0, %p9848_p13 }
  0x4a   :  { %9856 = shalt.err (!%p9853_p1)
}
  0x4b   :  { %s9857_s1 = scalar_lea.vmem %s55_s30, 64  ;;  %p9862_p3 = scmp.lt.s32.totalorder %s55_s30, %s55_s30 }
  0x4c   :  { %p9858_p2 = scmp.ne.s32.totalorder %s55_s30, %s9857_s1  ;;  %p9863_p4 = scmp.lt.s32.totalorder %s9857_s1, %s9857_s1 }
  0x4e   :  { %p9864_p5 = por %p9863_p4, %p9862_p3 }
  0x50   :  { %p9865_p6 = pnand %p9864_p5, %p9858_p2 }
  0x52   :  { %9868 = shalt.err (!%p9865_p6)
}
  0x53   :  { %57 = dma.hbm_to_vmem [thread:$0]  %s11769_s3, 64, %s55_s30, [#allocation9]  }
  0x54   :  { %s9869_s21 = scalar_lea.hbm %s11771_s5, 16 }
  0x55   :  { %p9870_p7 = scmp.ne.s32.totalorder %s11771_s5, %s9869_s21  ;;  %p9873_p8 = scmp.lt.u32.totalorder %s9869_s21, %s11771_s5 }
  0x57   :  { %p9875_p9 = pnand %p9873_p8, %p9870_p7 }
  0x59   :  { %9878 = shalt.err (!%p9875_p9)
}
  0x5a   :  { %s9879_s25 = scalar_lea.vmem %s75_s11, 16  ;;  %s9883_s4 = scalar_lea.vmem %s75_s11, 32 }
  0x5b   :  { %p9880_p10 = scmp.ne.s32.totalorder %s75_s11, %s9879_s25  ;;  %p9884_p11 = scmp.lt.s32.totalorder %s75_s11, %s75_s11 }
  0x5c   :  { %p9885_p12 = scmp.lt.s32.totalorder %s9883_s4, %s9879_s25 }
  0x5e   :  { %p9886_p13 = por %p9885_p12, %p9884_p11 }
  0x60   :  { %p9887_p0 = pnand %p9886_p13, %p9880_p10 }
  0x62   :  { %9890 = shalt.err (!%p9887_p0)
}
  0x63   :  { %77 = dma.hbm_to_vmem [thread:$0]  %s11771_s5, 16, %s75_s11, [#allocation12]  }
  0x64   :  { %s9981_s27 = smov [#allocation14]   ;;  %s9891_s10 = scalar_lea.hbm %s11772_s6, 64 }
  0x65   :  { %s84_s28 = sshll.u32 %s9981_s27, 4  ;;  %p9892_p1 = scmp.ne.s32.totalorder %s11772_s6, %s9891_s10  ;;  %s85_s28 = int_to_ptr.vmem [resolvable:$true] %s84_s28 }
  0x66   :  { %p9895_p2 = scmp.lt.u32.totalorder %s9891_s10, %s11772_s6 }
  0x68   :  { %p9897_p3 = pnand %p9895_p2, %p9892_p1 }
  0x6a   :  { %9900 = shalt.err (!%p9897_p3)
}
  0x6b   :  { %s9901_s17 = scalar_lea.vmem %s85_s28, 64  ;;  %p9906_p5 = scmp.lt.s32.totalorder %s85_s28, %s85_s28 }
  0x6c   :  { %p9902_p4 = scmp.ne.s32.totalorder %s85_s28, %s9901_s17  ;;  %p9907_p6 = scmp.lt.s32.totalorder %s9901_s17, %s9901_s17 }
  0x6e   :  { %p9908_p7 = por %p9907_p6, %p9906_p5 }
  0x70   :  { %p9909_p8 = pnand %p9908_p7, %p9902_p4 }
  0x72   :  { %9912 = shalt.err (!%p9909_p8)
}
  0x73   :  { %87 = dma.hbm_to_vmem [thread:$0]  %s11772_s6, 64, %s85_s28, [#allocation15]  }
  0x74   :  { %9959 = dma.done.wait [#allocation6], 76800  }
  0x75   :  { %9960 = vsyncadd [#allocation6], 4294890496 }
  0x76   :  { %9961 = dma.done.wait [#allocation9], 32832  }
  0x77   :  { %9962 = vsyncadd [#allocation9], 4294934464 }
  0x78   :  { %9963 = dma.done.wait [#allocation12], 144  }
  0x79   :  { %9964 = vsyncadd [#allocation12], 4294967152 }
  0x7a   :  { %9965 = dma.done.wait [#allocation15], 64  }
  0x7b   :  { %9966 = vsyncadd [#allocation15], 4294967232  ;;  %s10116_s2 = sld [smem:[#allocation4 + $0x1]]  ;;  %v9370_v0 = vld [vmem:[#allocation8 + $0x4] ss:$16 sps:$4 sm:$0xff]   ;;  %v115_v46 = vld [vmem:[#allocation5 + $0x8] sm:$0xff] }
  0x7c   :  { %v9372_v1 = vld [vmem:[#allocation8 + $0xc] ss:$16 sps:$4 sm:$0xff]   ;;  %2576 = vmatprep.subr.bf16.mxu0 %v9370_v0  ;;  %v9374_v2 = vld [vmem:[#allocation8] ss:$16 sps:$4 sm:$0xff]   ;;  %v9375_v3 = vld [vmem:[#allocation8 + $0x8] ss:$16 sps:$4 sm:$0xff]  }
  0x7d   :  { %4220 = vmatprep.subr.bf16.mxu1 %v9372_v1  ;;  %v9376_v4 = vld [vmem:[#allocation8 + $0x24] ss:$16 sps:$4 sm:$0xff]   ;;  %2577 = vmatpush1.bf16.msra.mxu0 %v9374_v2  ;;  %v9378_v5 = vld [vmem:[#allocation8 + $0x2c] ss:$16 sps:$4 sm:$0xff]   ;;  %v9380_v6 = vld [vmem:[#allocation8 + $0x20] ss:$16 sps:$4 sm:$0xff]  }
  0x7e   :  { %4221 = vmatpush1.bf16.msra.mxu1 %v9375_v3  ;;  %2578 = vmatprep.subr.bf16.mxu0 %v9376_v4  ;;  %v9381_v7 = vld [vmem:[#allocation8 + $0x28] ss:$16 sps:$4 sm:$0xff]   ;;  %v9382_v8 = vld [vmem:[#allocation8 + $0x44] ss:$16 sps:$4 sm:$0xff]   ;;  %v9384_v9 = vld [vmem:[#allocation8 + $0x4c] ss:$16 sps:$4 sm:$0xff]  }
  0x7f   :  { %4222 = vmatprep.subr.bf16.mxu1 %v9378_v5  ;;  %v9386_v10 = vld [vmem:[#allocation8 + $0x40] ss:$16 sps:$4 sm:$0xff]   ;;  %v9387_v11 = vld [vmem:[#allocation8 + $0x48] ss:$16 sps:$4 sm:$0xff]   ;;  %v9388_v12 = vld [vmem:[#allocation8 + $0x64] ss:$16 sps:$4 sm:$0xff]  }
  0x80   :  { %v9390_v13 = vld [vmem:[#allocation8 + $0x6c] ss:$16 sps:$4 sm:$0xff]   ;;  %v9392_v14 = vld [vmem:[#allocation8 + $0x60] ss:$16 sps:$4 sm:$0xff]   ;;  %v9393_v15 = vld [vmem:[#allocation8 + $0x68] ss:$16 sps:$4 sm:$0xff]  }
  0x81   :  { %2579 = vmatpush1.bf16.msra.mxu0 %v9380_v6  ;;  %v9394_v16 = vld [vmem:[#allocation8 + $0x84] ss:$16 sps:$4 sm:$0xff]   ;;  %v9396_v17 = vld [vmem:[#allocation8 + $0x8c] ss:$16 sps:$4 sm:$0xff]   ;;  %v9398_v18 = vld [vmem:[#allocation8 + $0x80] ss:$16 sps:$4 sm:$0xff]  }
  0x82   :  { %4223 = vmatpush1.bf16.msra.mxu1 %v9381_v7  ;;  %2580 = vmatprep.subr.bf16.mxu0 %v9382_v8  ;;  %v9399_v19 = vld [vmem:[#allocation8 + $0x88] ss:$16 sps:$4 sm:$0xff]   ;;  %v9400_v20 = vld [vmem:[#allocation8 + $0xa4] ss:$16 sps:$4 sm:$0xff]   ;;  %v9402_v21 = vld [vmem:[#allocation8 + $0xac] ss:$16 sps:$4 sm:$0xff]  }
  0x83   :  { %4224 = vmatprep.subr.bf16.mxu1 %v9384_v9  ;;  %v9404_v22 = vld [vmem:[#allocation8 + $0xa0] ss:$16 sps:$4 sm:$0xff]   ;;  %v9405_v23 = vld [vmem:[#allocation8 + $0xa8] ss:$16 sps:$4 sm:$0xff]   ;;  %v9406_v24 = vld [vmem:[#allocation8 + $0xc4] ss:$16 sps:$4 sm:$0xff]  }
  0x84   :  { %v9408_v25 = vld [vmem:[#allocation8 + $0xcc] ss:$16 sps:$4 sm:$0xff]   ;;  %v9410_v26 = vld [vmem:[#allocation8 + $0xc0] ss:$16 sps:$4 sm:$0xff]   ;;  %v9411_v27 = vld [vmem:[#allocation8 + $0xc8] ss:$16 sps:$4 sm:$0xff]  }
  0x85   :  { %2581 = vmatpush1.bf16.msra.mxu0 %v9386_v10  ;;  %v9412_v28 = vld [vmem:[#allocation8 + $0xe4] ss:$16 sps:$4 sm:$0xff]   ;;  %v9414_v29 = vld [vmem:[#allocation8 + $0xec] ss:$16 sps:$4 sm:$0xff]   ;;  %v9416_v30 = vld [vmem:[#allocation8 + $0xe0] ss:$16 sps:$4 sm:$0xff]  }
  0x86   :  { %4225 = vmatpush1.bf16.msra.mxu1 %v9387_v11  ;;  %2582 = vmatprep.subr.bf16.mxu0 %v9388_v12  ;;  %v9417_v31 = vld [vmem:[#allocation8 + $0xe8] ss:$16 sps:$4 sm:$0xff]   ;;  %v9418_v32 = vld [vmem:[#allocation8 + $0x104] ss:$16 sps:$4 sm:$0xff]   ;;  %v9420_v33 = vld [vmem:[#allocation8 + $0x10c] ss:$16 sps:$4 sm:$0xff]  }
  0x87   :  { %4226 = vmatprep.subr.bf16.mxu1 %v9390_v13  ;;  %v9422_v34 = vld [vmem:[#allocation8 + $0x100] ss:$16 sps:$4 sm:$0xff]   ;;  %v9423_v35 = vld [vmem:[#allocation8 + $0x108] ss:$16 sps:$4 sm:$0xff]   ;;  %v9424_v36 = vld [vmem:[#allocation8 + $0x124] ss:$16 sps:$4 sm:$0xff]  }
  0x88   :  { %v9426_v37 = vld [vmem:[#allocation8 + $0x12c] ss:$16 sps:$4 sm:$0xff]   ;;  %v9428_v38 = vld [vmem:[#allocation8 + $0x120] ss:$16 sps:$4 sm:$0xff]   ;;  %v9429_v39 = vld [vmem:[#allocation8 + $0x128] ss:$16 sps:$4 sm:$0xff]  }
  0x89   :  { %2583 = vmatpush1.bf16.msra.mxu0 %v9392_v14  ;;  %v9430_v40 = vld [vmem:[#allocation8 + $0x144] ss:$16 sps:$4 sm:$0xff]   ;;  %v9432_v41 = vld [vmem:[#allocation8 + $0x14c] ss:$16 sps:$4 sm:$0xff]   ;;  %v9434_v42 = vld [vmem:[#allocation8 + $0x140] ss:$16 sps:$4 sm:$0xff]  }
  0x8a   :  { %4227 = vmatpush1.bf16.msra.mxu1 %v9393_v15  ;;  %2584 = vmatprep.subr.bf16.mxu0 %v9394_v16  ;;  %v9435_v43 = vld [vmem:[#allocation8 + $0x148] ss:$16 sps:$4 sm:$0xff]   ;;  %v9436_v44 = vld [vmem:[#allocation8 + $0x164] ss:$16 sps:$4 sm:$0xff]   ;;  %v9438_v45 = vld [vmem:[#allocation8 + $0x16c] ss:$16 sps:$4 sm:$0xff]  }
  0x8b   :  { %4228 = vmatprep.subr.bf16.mxu1 %v9396_v17  ;;  %v9440_v47 = vld [vmem:[#allocation8 + $0x160] ss:$16 sps:$4 sm:$0xff]   ;;  %v9441_v48 = vld [vmem:[#allocation8 + $0x168] ss:$16 sps:$4 sm:$0xff]   ;;  %v9442_v50 = vld [vmem:[#allocation8 + $0x184] ss:$16 sps:$4 sm:$0xff]  }
  0x8c   :  { %v123_v49 = vld [vmem:[#allocation5 + $0x48] sm:$0xff]  ;;  %v9446_v53 = vld [vmem:[#allocation8 + $0x180] ss:$16 sps:$4 sm:$0xff]   ;;  %v9448_v55 = vld [vmem:[#allocation8 + $0x1a4] ss:$16 sps:$4 sm:$0xff]   ;;  %s10121_s6 = sld [smem:[#allocation4]] }
  0x8d   :  { %2585 = vmatpush1.bf16.msra.mxu0 %v9398_v18  ;;  %v715_v51 = vpack.c.bf16 %v123_v49, %v115_v46  ;;  %v9444_v52 = vld [vmem:[#allocation8 + $0x18c] ss:$16 sps:$4 sm:$0xff]   ;;  %v9447_v54 = vld [vmem:[#allocation8 + $0x188] ss:$16 sps:$4 sm:$0xff]   ;;  %v9452_v57 = vld [vmem:[#allocation8 + $0x1a0] ss:$16 sps:$4 sm:$0xff]  }
  0x8e   :  { %4229 = vmatpush1.bf16.msra.mxu1 %v9399_v19  ;;  %2586 = vmatprep.subr.bf16.mxu0 %v9400_v20  ;;  %v9450_v56 = vld [vmem:[#allocation8 + $0x1ac] ss:$16 sps:$4 sm:$0xff]   ;;  %v9453_v58 = vld [vmem:[#allocation8 + $0x1a8] ss:$16 sps:$4 sm:$0xff]   ;;  %v9454_v59 = vld [vmem:[#allocation8 + $0x1c4] ss:$16 sps:$4 sm:$0xff]  }
  0x8f   :  { %4230 = vmatprep.subr.bf16.mxu1 %v9402_v21  ;;  %2608 = vmatprep.mubr.bf16.mxu0 %v715_v51  ;;  %v9456_v60 = vld [vmem:[#allocation8 + $0x1cc] ss:$16 sps:$4 sm:$0xff]   ;;  %v9458_v61 = vld [vmem:[#allocation8 + $0x1c0] ss:$16 sps:$4 sm:$0xff]   ;;  %v9459_v62 = vld [vmem:[#allocation8 + $0x1c8] ss:$16 sps:$4 sm:$0xff]  }
  0x90   :  { %4252 = vmatprep.mubr.bf16.mxu1 %v715_v51  ;;  %v9460_v63 = vld [vmem:[#allocation8 + $0x1e4] ss:$16 sps:$4 sm:$0xff]   ;;  %v9462_v0 = vld [vmem:[#allocation8 + $0x1ec] ss:$16 sps:$4 sm:$0xff]   ;;  %v9464_v1 = vld [vmem:[#allocation8 + $0x1e0] ss:$16 sps:$4 sm:$0xff]  }
  0x91   :  { %2587 = vmatpush1.bf16.msra.mxu0 %v9404_v22  ;;  %v9465_v2 = vld [vmem:[#allocation8 + $0x1e8] ss:$16 sps:$4 sm:$0xff]   ;;  %v114_v3 = vld [vmem:[#allocation5] sm:$0xff]  ;;  %v9471_v6 = vld [vmem:[#allocation8 + $0x20c] ss:$16 sps:$4 sm:$0xff]   ;;  %p8138_p9 = scmp.ne.s32.totalorder %s10116_s2, 1 }
  0x92   :  { %4231 = vmatpush1.bf16.msra.mxu1 %v9405_v23  ;;  %2588 = vmatprep.subr.bf16.mxu0 %v9406_v24  ;;  %v122_v4 = vld [vmem:[#allocation5 + $0x40] sm:$0xff]  ;;  %v131_v7 = vld [vmem:[#allocation5 + $0x88] sm:$0xff]  ;;  %s7467_s16 = scvt.s32.f32 %s10121_s6 }
  0x93   :  { %4232 = vmatprep.subr.bf16.mxu1 %v9408_v25  ;;  %v9468_v5 = vld [vmem:[#allocation8 + $0x204] ss:$16 sps:$4 sm:$0xff]   ;;  %v139_v8 = vld [vmem:[#allocation5 + $0xc8] sm:$0xff]  ;;  %v714_v9 = vpack.c.bf16 %v122_v4, %v114_v3  ;;  %v9466_v10 = vld [vmem:[#allocation8 + $0x200] ss:$16 sps:$4 sm:$0xff]  }
  0x94   :  { %v9469_v11 = vld [vmem:[#allocation8 + $0x208] ss:$16 sps:$4 sm:$0xff]   ;;  %v723_v12 = vpack.c.bf16 %v139_v8, %v131_v7  ;;  %v130_v13 = vld [vmem:[#allocation5 + $0x80] sm:$0xff]  ;;  %v9477_v16 = vld [vmem:[#allocation8 + $0x22c] ss:$16 sps:$4 sm:$0xff]  }
  0x95   :  { %2589 = vmatpush1.bf16.msra.mxu0 %v9410_v26  ;;  %v138_v14 = vld [vmem:[#allocation5 + $0xc0] sm:$0xff]  ;;  %v147_v17 = vld [vmem:[#allocation5 + $0x108] sm:$0xff] }
  0x96   :  { %4233 = vmatpush1.bf16.msra.mxu1 %v9411_v27  ;;  %2590 = vmatprep.subr.bf16.mxu0 %v9412_v28  ;;  %v9474_v15 = vld [vmem:[#allocation8 + $0x224] ss:$16 sps:$4 sm:$0xff]   ;;  %v9472_v18 = vld [vmem:[#allocation8 + $0x220] ss:$16 sps:$4 sm:$0xff]   ;;  %v9475_v19 = vld [vmem:[#allocation8 + $0x228] ss:$16 sps:$4 sm:$0xff]   ;;  %v722_v23 = vpack.c.bf16 %v138_v14, %v130_v13 }
  0x97   :  { %4234 = vmatprep.subr.bf16.mxu1 %v9414_v29  ;;  %v155_v20 = vld [vmem:[#allocation5 + $0x148] sm:$0xff]  ;;  %v9480_v21 = vld [vmem:[#allocation8 + $0x244] ss:$16 sps:$4 sm:$0xff]   ;;  %v9478_v25 = vld [vmem:[#allocation8 + $0x240] ss:$16 sps:$4 sm:$0xff]  }
  0x98   :  { %v9483_v22 = vld [vmem:[#allocation8 + $0x24c] ss:$16 sps:$4 sm:$0xff]   ;;  %v731_v24 = vpack.c.bf16 %v155_v20, %v147_v17  ;;  %v9481_v26 = vld [vmem:[#allocation8 + $0x248] ss:$16 sps:$4 sm:$0xff]   ;;  %v9486_v27 = vld [vmem:[#allocation8 + $0x264] ss:$16 sps:$4 sm:$0xff]  }
  0x99   :  { %2591 = vmatpush1.bf16.msra.mxu0 %v9416_v30  ;;  %v9489_v28 = vld [vmem:[#allocation8 + $0x26c] ss:$16 sps:$4 sm:$0xff]   ;;  %v146_v29 = vld [vmem:[#allocation5 + $0x100] sm:$0xff]  ;;  %v9517_v3 = vld [vmem:[#allocation8 + $0x308] ss:$16 sps:$4 sm:$0xff]  }
  0x9a   :  { %4235 = vmatpush1.bf16.msra.mxu1 %v9417_v31  ;;  %2592 = vmatprep.subr.bf16.mxu0 %v9418_v32  ;;  %v154_v30 = vld [vmem:[#allocation5 + $0x140] sm:$0xff]  ;;  %v163_v31 = vld [vmem:[#allocation5 + $0x188] sm:$0xff] }
  0x9b   :  { %4236 = vmatprep.subr.bf16.mxu1 %v9420_v33  ;;  %v171_v32 = vld [vmem:[#allocation5 + $0x1c8] sm:$0xff]  ;;  %v9484_v33 = vld [vmem:[#allocation8 + $0x260] ss:$16 sps:$4 sm:$0xff]   ;;  %v9504_v49 = vld [vmem:[#allocation8 + $0x2c4] ss:$16 sps:$4 sm:$0xff]  }
  0x9c   :  { %v187_v46 = vld [vmem:[#allocation5 + $0x248] sm:$0xff]  ;;  %v210_v14 = vld [vmem:[#allocation5 + $0x300] sm:$0xff] }
  0x9d   :  { %2593 = vmatpush1.bf16.msra.mxu0 %v9422_v34  ;;  %v9487_v34 = vld [vmem:[#allocation8 + $0x268] ss:$16 sps:$4 sm:$0xff]  }
  0x9e   :  { %4237 = vmatpush1.bf16.msra.mxu1 %v9423_v35  ;;  %2594 = vmatprep.subr.bf16.mxu0 %v9424_v36  ;;  %v9492_v35 = vld [vmem:[#allocation8 + $0x284] ss:$16 sps:$4 sm:$0xff]   ;;  %v9495_v36 = vld [vmem:[#allocation8 + $0x28c] ss:$16 sps:$4 sm:$0xff]   ;;  %v9523_v13 = vld [vmem:[#allocation8 + $0x328] ss:$16 sps:$4 sm:$0xff]  }
  0x9f   :  { %4238 = vmatprep.subr.bf16.mxu1 %v9426_v37  ;;  %v730_v37 = vpack.c.bf16 %v154_v30, %v146_v29  ;;  %v211_v7 = vld [vmem:[#allocation5 + $0x308] sm:$0xff]  ;;  %v9528_v29 = vld [vmem:[#allocation8 + $0x344] ss:$16 sps:$4 sm:$0xff]  }
  0xa0   :  { %v219_v8 = vld [vmem:[#allocation5 + $0x348] sm:$0xff]  ;;  %v250_v30 = vld [vmem:[#allocation5 + $0x440] sm:$0xff] }
  0xa1   :  { %2595 = vmatpush1.bf16.msra.mxu0 %v9428_v38  ;;  %v739_v38 = vpack.c.bf16 %v171_v32, %v163_v31  ;;  %v227_v17 = vld [vmem:[#allocation5 + $0x388] sm:$0xff] }
  0xa2   :  { %4239 = vmatpush1.bf16.msra.mxu1 %v9429_v39  ;;  %2596 = vmatprep.subr.bf16.mxu0 %v9430_v40  ;;  %v9490_v39 = vld [vmem:[#allocation8 + $0x280] ss:$16 sps:$4 sm:$0xff]   ;;  %v9493_v40 = vld [vmem:[#allocation8 + $0x288] ss:$16 sps:$4 sm:$0xff]  }
  0xa3   :  { %4240 = vmatprep.subr.bf16.mxu1 %v9432_v41  ;;  %v9498_v41 = vld [vmem:[#allocation8 + $0x2a4] ss:$16 sps:$4 sm:$0xff]   ;;  %v259_v31 = vld [vmem:[#allocation5 + $0x488] sm:$0xff] }
  0xa4   :  { %v267_v32 = vld [vmem:[#allocation5 + $0x4c8] sm:$0xff] }
  0xa5   :  { %2597 = vmatpush1.bf16.msra.mxu0 %v9434_v42  ;;  %v9501_v42 = vld [vmem:[#allocation8 + $0x2ac] ss:$16 sps:$4 sm:$0xff]  }
  0xa6   :  { %4241 = vmatpush1.bf16.msra.mxu1 %v9435_v43  ;;  %2598 = vmatprep.subr.bf16.mxu0 %v9436_v44  ;;  %v162_v43 = vld [vmem:[#allocation5 + $0x180] sm:$0xff] }
  0xa7   :  { %4242 = vmatprep.subr.bf16.mxu1 %v9438_v45  ;;  %v170_v44 = vld [vmem:[#allocation5 + $0x1c0] sm:$0xff]  ;;  %v179_v45 = vld [vmem:[#allocation5 + $0x208] sm:$0xff] }
  0xa8   :  { %v738_v51 = vpack.c.bf16 %v170_v44, %v162_v43  ;;  %v274_v43 = vld [vmem:[#allocation5 + $0x500] sm:$0xff] }
  0xa9   :  { %2599 = vmatpush1.bf16.msra.mxu0 %v9440_v47  ;;  %v9496_v47 = vld [vmem:[#allocation8 + $0x2a0] ss:$16 sps:$4 sm:$0xff]  }
  0xaa   :  { %4243 = vmatpush1.bf16.msra.mxu1 %v9441_v48  ;;  %2600 = vmatprep.subr.bf16.mxu0 %v9442_v50  ;;  %v9499_v48 = vld [vmem:[#allocation8 + $0x2a8] ss:$16 sps:$4 sm:$0xff]   ;;  %v9507_v50 = vld [vmem:[#allocation8 + $0x2cc] ss:$16 sps:$4 sm:$0xff]   ;;  %v282_v44 = vld [vmem:[#allocation5 + $0x540] sm:$0xff] }
  0xab   :  { %4244 = vmatprep.subr.bf16.mxu1 %v9444_v52  ;;  %v747_v52 = vpack.c.bf16 %v187_v46, %v179_v45  ;;  %v291_v45 = vld [vmem:[#allocation5 + $0x588] sm:$0xff] }
  0xac   :  { %v299_v46 = vld [vmem:[#allocation5 + $0x5c8] sm:$0xff] }
  0xad   :  { %2601 = vmatpush1.bf16.msra.mxu0 %v9446_v53  ;;  %v9502_v53 = vld [vmem:[#allocation8 + $0x2c0] ss:$16 sps:$4 sm:$0xff]  }
  0xae   :  { %4245 = vmatpush1.bf16.msra.mxu1 %v9447_v54  ;;  %2602 = vmatprep.subr.bf16.mxu0 %v9448_v55  ;;  %v9505_v54 = vld [vmem:[#allocation8 + $0x2c8] ss:$16 sps:$4 sm:$0xff]   ;;  %v9510_v55 = vld [vmem:[#allocation8 + $0x2e4] ss:$16 sps:$4 sm:$0xff]  }
  0xaf   :  { %4246 = vmatprep.subr.bf16.mxu1 %v9450_v56  ;;  %v9513_v56 = vld [vmem:[#allocation8 + $0x2ec] ss:$16 sps:$4 sm:$0xff]  }
  0xb1   :  { %2603 = vmatpush1.bf16.msra.mxu0 %v9452_v57  ;;  %v178_v57 = vld [vmem:[#allocation5 + $0x200] sm:$0xff] }
  0xb2   :  { %4247 = vmatpush1.bf16.msra.mxu1 %v9453_v58  ;;  %2604 = vmatprep.subr.bf16.mxu0 %v9454_v59  ;;  %v186_v58 = vld [vmem:[#allocation5 + $0x240] sm:$0xff]  ;;  %v195_v59 = vld [vmem:[#allocation5 + $0x288] sm:$0xff] }
  0xb3   :  { %4248 = vmatprep.subr.bf16.mxu1 %v9456_v60  ;;  %v203_v60 = vld [vmem:[#allocation5 + $0x2c8] sm:$0xff] }
  0xb4   :  { %v755_v4 = vpack.c.bf16 %v203_v60, %v195_v59  ;;  %v306_v59 = vld [vmem:[#allocation5 + $0x600] sm:$0xff] }
  0xb5   :  { %2605 = vmatpush1.bf16.msra.mxu0 %v9458_v61  ;;  %v9508_v61 = vld [vmem:[#allocation8 + $0x2e0] ss:$16 sps:$4 sm:$0xff]  }
  0xb6   :  { %4249 = vmatpush1.bf16.msra.mxu1 %v9459_v62  ;;  %2606 = vmatprep.subr.bf16.mxu0 %v9460_v63  ;;  %v9511_v62 = vld [vmem:[#allocation8 + $0x2e8] ss:$16 sps:$4 sm:$0xff]   ;;  %v9516_v63 = vld [vmem:[#allocation8 + $0x304] ss:$16 sps:$4 sm:$0xff]  }
  0xb7   :  { %4250 = vmatprep.subr.bf16.mxu1 %v9462_v0  ;;  %v9519_v0 = vld [vmem:[#allocation8 + $0x30c] ss:$16 sps:$4 sm:$0xff]   ;;  %v314_v60 = vld [vmem:[#allocation5 + $0x640] sm:$0xff] }
  0xb9   :  { %2607 = vmatpush1.bf16.msra.mxu0 %v9464_v1  ;;  %v746_v1 = vpack.c.bf16 %v186_v58, %v178_v57 }
  0xba   :  { %4251 = vmatpush1.bf16.msra.mxu1 %v9465_v2  ;;  %2987 = vmatprep.subr.bf16.mxu0 %v9468_v5  ;;  %v9514_v2 = vld [vmem:[#allocation8 + $0x300] ss:$16 sps:$4 sm:$0xff]  }
  0xbb   :  { %4631 = vmatprep.subr.bf16.mxu1 %v9471_v6  ;;  %v194_v5 = vld [vmem:[#allocation5 + $0x280] sm:$0xff] }
  0xbc   :  { %2609 = vmatmul.mubr.bf16.vlgmr.msra.gmra.mrb[0].mxu0 %v714_v9  ;;  %v202_v6 = vld [vmem:[#allocation5 + $0x2c0] sm:$0xff] }
  0xbd   :  { %4253 = vmatmul.mubr.bf16.vlgmr.msra.gmra.mrb[0].mxu1 %v714_v9  ;;  %2988 = vmatpush1.bf16.msra.mxu0 %v9466_v10  ;;  %v754_v9 = vpack.c.bf16 %v202_v6, %v194_v5  ;;  %v763_v10 = vpack.c.bf16 %v219_v8, %v211_v7  ;;  %v330_v5 = vld [vmem:[#allocation5 + $0x6c0] sm:$0xff]  ;;  %v9543_v6 = vld [vmem:[#allocation8 + $0x38c] ss:$16 sps:$4 sm:$0xff]  }
  0xbe   :  { %4632 = vmatpush1.bf16.msra.mxu1 %v9469_v11  ;;  %2618 = vmatprep.mubr.bf16.mxu0 %v723_v12  ;;  %v9520_v11 = vld [vmem:[#allocation8 + $0x320] ss:$16 sps:$4 sm:$0xff]   ;;  %v339_v7 = vld [vmem:[#allocation5 + $0x708] sm:$0xff] }
  0xbf   :  { %4262 = vmatprep.mubr.bf16.mxu1 %v723_v12  ;;  %2989 = vmatprep.subr.bf16.mxu0 %v9474_v15  ;;  %v9522_v12 = vld [vmem:[#allocation8 + $0x324] ss:$16 sps:$4 sm:$0xff]   ;;  %v347_v8 = vld [vmem:[#allocation5 + $0x748] sm:$0xff] }
  0xc0   :  { %4633 = vmatprep.subr.bf16.mxu1 %v9477_v16  ;;  %v218_v15 = vld [vmem:[#allocation5 + $0x340] sm:$0xff]  ;;  %v9525_v16 = vld [vmem:[#allocation8 + $0x32c] ss:$16 sps:$4 sm:$0xff]  }
  0xc1   :  { %2990 = vmatpush1.bf16.msra.mxu0 %v9472_v18  ;;  %v235_v18 = vld [vmem:[#allocation5 + $0x3c8] sm:$0xff] }
  0xc2   :  { %4634 = vmatpush1.bf16.msra.mxu1 %v9475_v19  ;;  %2991 = vmatprep.subr.bf16.mxu0 %v9480_v21  ;;  %v762_v19 = vpack.c.bf16 %v218_v15, %v210_v14  ;;  %v771_v20 = vpack.c.bf16 %v235_v18, %v227_v17  ;;  %v226_v21 = vld [vmem:[#allocation5 + $0x380] sm:$0xff]  ;;  %v363_v14 = vld [vmem:[#allocation5 + $0x7c8] sm:$0xff] }
  0xc3   :  { %4635 = vmatprep.subr.bf16.mxu1 %v9483_v22  ;;  %v234_v22 = vld [vmem:[#allocation5 + $0x3c0] sm:$0xff] }
  0xc4   :  { %2619 = vmatmul.mubr.bf16.gmra.mrb[4].mxu0 %v722_v23  ;;  %v354_v17 = vld [vmem:[#allocation5 + $0x780] sm:$0xff] }
  0xc5   :  { %4263 = vmatmul.mubr.bf16.gmra.mrb[4].mxu1 %v722_v23  ;;  %2628 = vmatprep.mubr.bf16.mxu0 %v731_v24  ;;  %v243_v23 = vld [vmem:[#allocation5 + $0x408] sm:$0xff]  ;;  %v362_v18 = vld [vmem:[#allocation5 + $0x7c0] sm:$0xff] }
  0xc6   :  { %4272 = vmatprep.mubr.bf16.mxu1 %v731_v24  ;;  %2992 = vmatpush1.bf16.msra.mxu0 %v9478_v25  ;;  %v251_v24 = vld [vmem:[#allocation5 + $0x448] sm:$0xff]  ;;  %v770_v25 = vpack.c.bf16 %v234_v22, %v226_v21 }
  0xc7   :  { %4636 = vmatpush1.bf16.msra.mxu1 %v9481_v26  ;;  %2993 = vmatprep.subr.bf16.mxu0 %v9486_v27  ;;  %v779_v26 = vpack.c.bf16 %v251_v24, %v243_v23  ;;  %v242_v27 = vld [vmem:[#allocation5 + $0x400] sm:$0xff]  ;;  %v371_v21 = vld [vmem:[#allocation5 + $0x808] sm:$0xff]  ;;  %v834_v23 = vpack.c.bf16 %v362_v18, %v354_v17 }
  0xc8   :  { %4637 = vmatprep.subr.bf16.mxu1 %v9489_v28  ;;  %v9526_v28 = vld [vmem:[#allocation8 + $0x340] ss:$16 sps:$4 sm:$0xff]   ;;  %v379_v22 = vld [vmem:[#allocation5 + $0x848] sm:$0xff] }
  0xc9   :  { %v843_v24 = vpack.c.bf16 %v379_v22, %v371_v21  ;;  %v499_v17 = vld [vmem:[#allocation5 + $0xc08] sm:$0xff]  ;;  %v498_v21 = vld [vmem:[#allocation5 + $0xc00] sm:$0xff] }
  0xca   :  { %2994 = vmatpush1.bf16.msra.mxu0 %v9484_v33  ;;  %v778_v33 = vpack.c.bf16 %v250_v30, %v242_v27  ;;  %v370_v27 = vld [vmem:[#allocation5 + $0x800] sm:$0xff]  ;;  %v395_v30 = vld [vmem:[#allocation5 + $0x8c8] sm:$0xff] }
  0xcb   :  { %4638 = vmatpush1.bf16.msra.mxu1 %v9487_v34  ;;  %2995 = vmatprep.subr.bf16.mxu0 %v9492_v35  ;;  %v787_v34 = vpack.c.bf16 %v267_v32, %v259_v31  ;;  %v258_v35 = vld [vmem:[#allocation5 + $0x480] sm:$0xff]  ;;  %v507_v18 = vld [vmem:[#allocation5 + $0xc48] sm:$0xff] }
  0xcc   :  { %4639 = vmatprep.subr.bf16.mxu1 %v9495_v36  ;;  %2629 = vmatmul.mubr.bf16.gmra.mrb[8].mxu0 %v730_v37  ;;  %v9529_v36 = vld [vmem:[#allocation8 + $0x348] ss:$16 sps:$4 sm:$0xff]   ;;  %v506_v22 = vld [vmem:[#allocation5 + $0xc40] sm:$0xff] }
  0xcd   :  { %4273 = vmatmul.mubr.bf16.gmra.mrb[8].mxu1 %v730_v37  ;;  %2638 = vmatprep.mubr.bf16.mxu0 %v739_v38  ;;  %v9531_v37 = vld [vmem:[#allocation8 + $0x34c] ss:$16 sps:$4 sm:$0xff]  }
  0xce   :  { %4282 = vmatprep.mubr.bf16.mxu1 %v739_v38  ;;  %2996 = vmatpush1.bf16.msra.mxu0 %v9490_v39  ;;  %v266_v38 = vld [vmem:[#allocation5 + $0x4c0] sm:$0xff]  ;;  %v275_v39 = vld [vmem:[#allocation5 + $0x508] sm:$0xff] }
  0xcf   :  { %4640 = vmatpush1.bf16.msra.mxu1 %v9493_v40  ;;  %2997 = vmatprep.subr.bf16.mxu0 %v9498_v41  ;;  %v283_v40 = vld [vmem:[#allocation5 + $0x548] sm:$0xff]  ;;  %v786_v41 = vpack.c.bf16 %v266_v38, %v258_v35 }
  0xd0   :  { %4641 = vmatprep.subr.bf16.mxu1 %v9501_v42  ;;  %v795_v42 = vpack.c.bf16 %v283_v40, %v275_v39  ;;  %v403_v35 = vld [vmem:[#allocation5 + $0x908] sm:$0xff]  ;;  %v9550_v39 = vld [vmem:[#allocation8 + $0x3c0] ss:$16 sps:$4 sm:$0xff]   ;;  %v9552_v40 = vld [vmem:[#allocation8 + $0x3c4] ss:$16 sps:$4 sm:$0xff]  }
  0xd2   :  { %2998 = vmatpush1.bf16.msra.mxu0 %v9496_v47  ;;  %v794_v47 = vpack.c.bf16 %v282_v44, %v274_v43  ;;  %v410_v43 = vld [vmem:[#allocation5 + $0x940] sm:$0xff]  ;;  %v9555_v44 = vld [vmem:[#allocation8 + $0x3cc] ss:$16 sps:$4 sm:$0xff]  }
  0xd3   :  { %4642 = vmatpush1.bf16.msra.mxu1 %v9499_v48  ;;  %2999 = vmatprep.subr.bf16.mxu0 %v9504_v49  ;;  %v803_v48 = vpack.c.bf16 %v299_v46, %v291_v45  ;;  %v9532_v49 = vld [vmem:[#allocation8 + $0x360] ss:$16 sps:$4 sm:$0xff]   ;;  %v419_v45 = vld [vmem:[#allocation5 + $0x988] sm:$0xff] }
  0xd4   :  { %4643 = vmatprep.subr.bf16.mxu1 %v9507_v50  ;;  %2639 = vmatmul.mubr.bf16.gmra.mrb[12].mxu0 %v738_v51  ;;  %v9534_v50 = vld [vmem:[#allocation8 + $0x364] ss:$16 sps:$4 sm:$0xff]   ;;  %v427_v46 = vld [vmem:[#allocation5 + $0x9c8] sm:$0xff] }
  0xd5   :  { %4283 = vmatmul.mubr.bf16.gmra.mrb[12].mxu1 %v738_v51  ;;  %2648 = vmatprep.mubr.bf16.mxu0 %v747_v52  ;;  %v9535_v51 = vld [vmem:[#allocation8 + $0x368] ss:$16 sps:$4 sm:$0xff]  }
  0xd6   :  { %4292 = vmatprep.mubr.bf16.mxu1 %v747_v52  ;;  %3000 = vmatpush1.bf16.msra.mxu0 %v9502_v53  ;;  %v290_v52 = vld [vmem:[#allocation5 + $0x580] sm:$0xff] }
  0xd7   :  { %4644 = vmatpush1.bf16.msra.mxu1 %v9505_v54  ;;  %3001 = vmatprep.subr.bf16.mxu0 %v9510_v55  ;;  %v298_v53 = vld [vmem:[#allocation5 + $0x5c0] sm:$0xff]  ;;  %v9537_v54 = vld [vmem:[#allocation8 + $0x36c] ss:$16 sps:$4 sm:$0xff]  }
  0xd8   :  { %4645 = vmatprep.subr.bf16.mxu1 %v9513_v56  ;;  %v307_v55 = vld [vmem:[#allocation5 + $0x608] sm:$0xff]  ;;  %v802_v57 = vpack.c.bf16 %v298_v53, %v290_v52 }
  0xd9   :  { %v315_v56 = vld [vmem:[#allocation5 + $0x648] sm:$0xff] }
  0xda   :  { %3002 = vmatpush1.bf16.msra.mxu0 %v9508_v61  ;;  %v811_v58 = vpack.c.bf16 %v315_v56, %v307_v55  ;;  %v323_v61 = vld [vmem:[#allocation5 + $0x688] sm:$0xff]  ;;  %v434_v55 = vld [vmem:[#allocation5 + $0xa00] sm:$0xff] }
  0xdb   :  { %4646 = vmatpush1.bf16.msra.mxu1 %v9511_v62  ;;  %3003 = vmatprep.subr.bf16.mxu0 %v9516_v63  ;;  %v331_v62 = vld [vmem:[#allocation5 + $0x6c8] sm:$0xff]  ;;  %v810_v63 = vpack.c.bf16 %v314_v60, %v306_v59  ;;  %v9556_v56 = vld [vmem:[#allocation8 + $0x3e0] ss:$16 sps:$4 sm:$0xff]  }
  0xdc   :  { %4647 = vmatprep.subr.bf16.mxu1 %v9519_v0  ;;  %2649 = vmatmul.mubr.bf16.gmra.mrb[16].mxu0 %v746_v1  ;;  %v819_v0 = vpack.c.bf16 %v331_v62, %v323_v61  ;;  %v443_v52 = vld [vmem:[#allocation5 + $0xa48] sm:$0xff] }
  0xdd   :  { %4293 = vmatmul.mubr.bf16.gmra.mrb[16].mxu1 %v746_v1  ;;  %2658 = vmatprep.mubr.bf16.mxu0 %v755_v4  ;;  %v9538_v1 = vld [vmem:[#allocation8 + $0x380] ss:$16 sps:$4 sm:$0xff]   ;;  %v9559_v59 = vld [vmem:[#allocation8 + $0x3e8] ss:$16 sps:$4 sm:$0xff]   ;;  %v9561_v60 = vld [vmem:[#allocation8 + $0x3ec] ss:$16 sps:$4 sm:$0xff]  }
  0xde   :  { %4302 = vmatprep.mubr.bf16.mxu1 %v755_v4  ;;  %3004 = vmatpush1.bf16.msra.mxu0 %v9514_v2  ;;  %v9540_v2 = vld [vmem:[#allocation8 + $0x384] ss:$16 sps:$4 sm:$0xff]   ;;  %v451_v61 = vld [vmem:[#allocation5 + $0xa88] sm:$0xff] }
  0xdf   :  { %4648 = vmatpush1.bf16.msra.mxu1 %v9517_v3  ;;  %3005 = vmatprep.subr.bf16.mxu0 %v9522_v12  ;;  %v9541_v3 = vld [vmem:[#allocation8 + $0x388] ss:$16 sps:$4 sm:$0xff]   ;;  %v322_v4 = vld [vmem:[#allocation5 + $0x680] sm:$0xff] }
  0xe0   :  { %4649 = vmatprep.subr.bf16.mxu1 %v9525_v16  ;;  %v346_v12 = vld [vmem:[#allocation5 + $0x740] sm:$0xff]  ;;  %v459_v62 = vld [vmem:[#allocation5 + $0xac8] sm:$0xff] }
  0xe2   :  { %3006 = vmatpush1.bf16.msra.mxu0 %v9520_v11  ;;  %v338_v11 = vld [vmem:[#allocation5 + $0x700] sm:$0xff] }
  0xe3   :  { %4650 = vmatpush1.bf16.msra.mxu1 %v9523_v13  ;;  %3007 = vmatprep.subr.bf16.mxu0 %v9528_v29  ;;  %v355_v13 = vld [vmem:[#allocation5 + $0x788] sm:$0xff]  ;;  %v826_v15 = vpack.c.bf16 %v346_v12, %v338_v11 }
  0xe4   :  { %2659 = vmatmul.mubr.bf16.gmra.mrb[20].mxu0 %v754_v9  ;;  %4651 = vmatprep.subr.bf16.mxu1 %v9531_v37  ;;  %v835_v16 = vpack.c.bf16 %v363_v14, %v355_v13  ;;  %v387_v29 = vld [vmem:[#allocation5 + $0x888] sm:$0xff]  ;;  %v9564_v13 = vld [vmem:[#allocation8 + $0x404] ss:$16 sps:$4 sm:$0xff]  }
  0xe5   :  { %4303 = vmatmul.mubr.bf16.gmra.mrb[20].mxu1 %v754_v9  ;;  %2668 = vmatprep.mubr.bf16.mxu0 %v763_v10  ;;  %v818_v9 = vpack.c.bf16 %v330_v5, %v322_v4  ;;  %v851_v32 = vpack.c.bf16 %v395_v30, %v387_v29  ;;  %v475_v4 = vld [vmem:[#allocation5 + $0xb48] sm:$0xff]  ;;  %v482_v14 = vld [vmem:[#allocation5 + $0xb80] sm:$0xff] }
  0xe6   :  { %4312 = vmatprep.mubr.bf16.mxu1 %v763_v10  ;;  %3008 = vmatpush1.bf16.msra.mxu0 %v9526_v28  ;;  %v827_v10 = vpack.c.bf16 %v347_v8, %v339_v7  ;;  %v378_v28 = vld [vmem:[#allocation5 + $0x840] sm:$0xff]  ;;  %v531_v29 = vld [vmem:[#allocation5 + $0xd08] sm:$0xff] }
  0xe7   :  { %4652 = vmatpush1.bf16.msra.mxu1 %v9529_v36  ;;  %3009 = vmatprep.subr.bf16.mxu0 %v9534_v50  ;;  %v842_v31 = vpack.c.bf16 %v378_v28, %v370_v27  ;;  %v411_v36 = vld [vmem:[#allocation5 + $0x948] sm:$0xff]  ;;  %v426_v50 = vld [vmem:[#allocation5 + $0x9c0] sm:$0xff] }
  0xe8   :  { %4653 = vmatprep.subr.bf16.mxu1 %v9537_v54  ;;  %v859_v38 = vpack.c.bf16 %v411_v36, %v403_v35  ;;  %v466_v7 = vld [vmem:[#allocation5 + $0xb00] sm:$0xff]  ;;  %v539_v30 = vld [vmem:[#allocation5 + $0xd48] sm:$0xff] }
  0xe9   :  { %v474_v8 = vld [vmem:[#allocation5 + $0xb40] sm:$0xff]  ;;  %v547_v35 = vld [vmem:[#allocation5 + $0xd88] sm:$0xff] }
  0xea   :  { %3010 = vmatpush1.bf16.msra.mxu0 %v9532_v49  ;;  %v418_v49 = vld [vmem:[#allocation5 + $0x980] sm:$0xff]  ;;  %v890_v11 = vpack.c.bf16 %v474_v8, %v466_v7  ;;  %v555_v36 = vld [vmem:[#allocation5 + $0xdc8] sm:$0xff] }
  0xeb   :  { %4654 = vmatpush1.bf16.msra.mxu1 %v9535_v51  ;;  %3011 = vmatprep.subr.bf16.mxu0 %v9540_v2  ;;  %v435_v51 = vld [vmem:[#allocation5 + $0xa08] sm:$0xff]  ;;  %v866_v53 = vpack.c.bf16 %v426_v50, %v418_v49  ;;  %v458_v2 = vld [vmem:[#allocation5 + $0xac0] sm:$0xff] }
  0xec   :  { %2669 = vmatmul.mubr.bf16.gmra.mrb[24].mxu0 %v762_v19  ;;  %4655 = vmatprep.subr.bf16.mxu1 %v9543_v6  ;;  %v875_v54 = vpack.c.bf16 %v443_v52, %v435_v51  ;;  %v514_v27 = vld [vmem:[#allocation5 + $0xc80] sm:$0xff]  ;;  %v643_v7 = vld [vmem:[#allocation5 + $0x1088] sm:$0xff] }
  0xed   :  { %4313 = vmatmul.mubr.bf16.gmra.mrb[24].mxu1 %v762_v19  ;;  %2678 = vmatprep.mubr.bf16.mxu0 %v771_v20  ;;  %v9544_v19 = vld [vmem:[#allocation8 + $0x3a0] ss:$16 sps:$4 sm:$0xff]   ;;  %v651_v8 = vld [vmem:[#allocation5 + $0x10c8] sm:$0xff] }
  0xee   :  { %4322 = vmatprep.mubr.bf16.mxu1 %v771_v20  ;;  %3012 = vmatpush1.bf16.msra.mxu0 %v9538_v1  ;;  %v9546_v20 = vld [vmem:[#allocation8 + $0x3a4] ss:$16 sps:$4 sm:$0xff]  }
  0xef   :  { %4656 = vmatpush1.bf16.msra.mxu1 %v9541_v3  ;;  %3013 = vmatprep.subr.bf16.mxu0 %v9546_v20  ;;  %v450_v1 = vld [vmem:[#allocation5 + $0xa80] sm:$0xff]  ;;  %v467_v3 = vld [vmem:[#allocation5 + $0xb08] sm:$0xff]  ;;  %v907_v20 = vpack.c.bf16 %v507_v18, %v499_v17 }
  0xf0   :  { %v882_v5 = vpack.c.bf16 %v458_v2, %v450_v1  ;;  %v891_v6 = vpack.c.bf16 %v475_v4, %v467_v3  ;;  %v522_v28 = vld [vmem:[#allocation5 + $0xcc0] sm:$0xff]  ;;  %v627_v1 = vld [vmem:[#allocation5 + $0x1008] sm:$0xff] }
  0xf1   :  { %v578_v51 = vld [vmem:[#allocation5 + $0xe80] sm:$0xff]  ;;  %v635_v2 = vld [vmem:[#allocation5 + $0x1048] sm:$0xff] }
  0xf2   :  { %3014 = vmatpush1.bf16.msra.mxu0 %v9544_v19  ;;  %v586_v52 = vld [vmem:[#allocation5 + $0xec0] sm:$0xff]  ;;  %v971_v4 = vpack.c.bf16 %v635_v2, %v627_v1  ;;  %v165_v1 = vld [vmem:[#allocation5 + $0x198] sm:$0xff] }
  0xf3   :  { %3015 = vmatprep.subr.bf16.mxu0 %v9552_v40  ;;  %v554_v40 = vld [vmem:[#allocation5 + $0xdc0] sm:$0xff]  ;;  %v173_v2 = vld [vmem:[#allocation5 + $0x1d8] sm:$0xff] }
  0xf4   :  { %2679 = vmatmul.mubr.bf16.gmra.mrb[28].mxu0 %v770_v25  ;;  %v658_v17 = vld [vmem:[#allocation5 + $0x1100] sm:$0xff] }
  0xf5   :  { %4323 = vmatmul.mubr.bf16.gmra.mrb[28].mxu1 %v770_v25  ;;  %2688 = vmatprep.mubr.bf16.mxu0 %v779_v26  ;;  %v9547_v25 = vld [vmem:[#allocation8 + $0x3a8] ss:$16 sps:$4 sm:$0xff]   ;;  %v666_v18 = vld [vmem:[#allocation5 + $0x1140] sm:$0xff] }
  0xf6   :  { %4332 = vmatprep.mubr.bf16.mxu1 %v779_v26  ;;  %v9549_v26 = vld [vmem:[#allocation8 + $0x3ac] ss:$16 sps:$4 sm:$0xff]   ;;  %3016 = vmatpush1.bf16.msra.mxu0 %v9550_v39  ;;  %v546_v39 = vld [vmem:[#allocation5 + $0xd80] sm:$0xff] }
  0xf7   :  { %4657 = vmatprep.subr.bf16.mxu1 %v9549_v26 }
  0xf8   :  { %4658 = vmatpush1.bf16.msra.mxu1 %v9547_v25  ;;  %v906_v25 = vpack.c.bf16 %v506_v22, %v498_v21  ;;  %v986_v21 = vpack.c.bf16 %v666_v18, %v658_v17  ;;  %v9592_v17 = vld [vmem:[#allocation8 + $0x4a0] ss:$16 sps:$4 sm:$0xff]   ;;  %v9595_v18 = vld [vmem:[#allocation8 + $0x4a8] ss:$16 sps:$4 sm:$0xff]  }
  0xf9   :  { %4659 = vmatprep.subr.bf16.mxu1 %v9555_v44 }
  0xfc   :  { %2689 = vmatmul.mubr.bf16.gmra.mrb[32].mxu0 %v778_v33 }
  0xfd   :  { %4333 = vmatmul.mubr.bf16.gmra.mrb[32].mxu1 %v778_v33  ;;  %2698 = vmatprep.mubr.bf16.mxu0 %v787_v34  ;;  %v386_v33 = vld [vmem:[#allocation5 + $0x880] sm:$0xff] }
  0xfe   :  { %4342 = vmatprep.mubr.bf16.mxu1 %v787_v34  ;;  %v394_v34 = vld [vmem:[#allocation5 + $0x8c0] sm:$0xff] }
  0xff   :  { %v850_v37 = vpack.c.bf16 %v394_v34, %v386_v33  ;;  %v530_v33 = vld [vmem:[#allocation5 + $0xd00] sm:$0xff] }
 0x100   :  { %v538_v34 = vld [vmem:[#allocation5 + $0xd40] sm:$0xff] }
 0x104   :  { %2699 = vmatmul.mubr.bf16.gmra.mrb[36].mxu0 %v786_v41 }
 0x105   :  { %4343 = vmatmul.mubr.bf16.gmra.mrb[36].mxu1 %v786_v41  ;;  %2708 = vmatprep.mubr.bf16.mxu0 %v795_v42  ;;  %v9553_v41 = vld [vmem:[#allocation8 + $0x3c8] ss:$16 sps:$4 sm:$0xff]  }
 0x106   :  { %4352 = vmatprep.mubr.bf16.mxu1 %v795_v42  ;;  %v402_v42 = vld [vmem:[#allocation5 + $0x900] sm:$0xff]  ;;  %4660 = vmatpush1.bf16.msra.mxu1 %v9553_v41  ;;  %v563_v41 = vld [vmem:[#allocation5 + $0xe08] sm:$0xff] }
 0x107   :  { %4661 = vmatprep.subr.bf16.mxu1 %v9561_v60  ;;  %v619_v60 = vld [vmem:[#allocation5 + $0xfc8] sm:$0xff] }
 0x10a   :  { %4662 = vmatpush1.bf16.msra.mxu1 %v9559_v59  ;;  %v611_v59 = vld [vmem:[#allocation5 + $0xf88] sm:$0xff] }
 0x10c   :  { %2709 = vmatmul.mubr.bf16.gmra.mrb[40].mxu0 %v794_v47 }
 0x10d   :  { %4353 = vmatmul.mubr.bf16.gmra.mrb[40].mxu1 %v794_v47  ;;  %2718 = vmatprep.mubr.bf16.mxu0 %v803_v48  ;;  %v858_v47 = vpack.c.bf16 %v410_v43, %v402_v42  ;;  %v571_v42 = vld [vmem:[#allocation5 + $0xe48] sm:$0xff]  ;;  %v930_v43 = vpack.c.bf16 %v554_v40, %v546_v39  ;;  %v116_v39 = vld [vmem:[#allocation5 + $0x10] sm:$0xff] }
 0x10e   :  { %4362 = vmatprep.mubr.bf16.mxu1 %v803_v48  ;;  %v867_v48 = vpack.c.bf16 %v427_v46, %v419_v45  ;;  %v939_v44 = vpack.c.bf16 %v571_v42, %v563_v41  ;;  %v562_v45 = vld [vmem:[#allocation5 + $0xe00] sm:$0xff]  ;;  %v124_v40 = vld [vmem:[#allocation5 + $0x50] sm:$0xff]  ;;  %v133_v41 = vld [vmem:[#allocation5 + $0x98] sm:$0xff] }
 0x10f   :  { %v570_v46 = vld [vmem:[#allocation5 + $0xe40] sm:$0xff]  ;;  %v141_v42 = vld [vmem:[#allocation5 + $0xd8] sm:$0xff] }
 0x110   :  { %v938_v49 = vpack.c.bf16 %v570_v46, %v562_v45  ;;  %v9565_v45 = vld [vmem:[#allocation8 + $0x408] ss:$16 sps:$4 sm:$0xff]   ;;  %v725_v46 = vpack.c.bf16 %v141_v42, %v133_v41 }
 0x111   :  { %v213_v41 = vld [vmem:[#allocation5 + $0x318] sm:$0xff] }
 0x112   :  { %v221_v42 = vld [vmem:[#allocation5 + $0x358] sm:$0xff] }
 0x114   :  { %2719 = vmatmul.mubr.bf16.gmra.mrb[44].mxu0 %v802_v57 }
 0x115   :  { %4363 = vmatmul.mubr.bf16.gmra.mrb[44].mxu1 %v802_v57  ;;  %2728 = vmatprep.mubr.bf16.mxu0 %v811_v58  ;;  %v9558_v57 = vld [vmem:[#allocation8 + $0x3e4] ss:$16 sps:$4 sm:$0xff]  }
 0x116   :  { %4372 = vmatprep.mubr.bf16.mxu1 %v811_v58  ;;  %v442_v58 = vld [vmem:[#allocation5 + $0xa40] sm:$0xff]  ;;  %3017 = vmatprep.subr.bf16.mxu0 %v9558_v57 }
 0x117   :  { %3018 = vmatpush1.bf16.msra.mxu0 %v9556_v56  ;;  %v594_v57 = vld [vmem:[#allocation5 + $0xf00] sm:$0xff] }
 0x118   :  { %3398 = vmatprep.subr.bf16.mxu0 %v9564_v13  ;;  %v659_v13 = vld [vmem:[#allocation5 + $0x1108] sm:$0xff] }
 0x11c   :  { %2729 = vmatmul.mubr.bf16.gmra.mrb[48].mxu0 %v810_v63 }
 0x11d   :  { %4373 = vmatmul.mubr.bf16.gmra.mrb[48].mxu1 %v810_v63  ;;  %2738 = vmatprep.mubr.bf16.mxu0 %v819_v0  ;;  %v874_v63 = vpack.c.bf16 %v442_v58, %v434_v55  ;;  %v946_v55 = vpack.c.bf16 %v586_v52, %v578_v51  ;;  %v602_v58 = vld [vmem:[#allocation5 + $0xf40] sm:$0xff]  ;;  %v149_v51 = vld [vmem:[#allocation5 + $0x118] sm:$0xff] }
 0x11e   :  { %4382 = vmatprep.mubr.bf16.mxu1 %v819_v0  ;;  %v883_v0 = vpack.c.bf16 %v459_v62, %v451_v61  ;;  %v954_v61 = vpack.c.bf16 %v602_v58, %v594_v57  ;;  %v963_v62 = vpack.c.bf16 %v619_v60, %v611_v59  ;;  %v9568_v52 = vld [vmem:[#allocation8 + $0x420] ss:$16 sps:$4 sm:$0xff]   ;;  %v9577_v60 = vld [vmem:[#allocation8 + $0x448] ss:$16 sps:$4 sm:$0xff]  }
 0x11f   :  { %v9574_v59 = vld [vmem:[#allocation8 + $0x440] ss:$16 sps:$4 sm:$0xff]  }
 0x124   :  { %2739 = vmatmul.mubr.bf16.gmra.mrb[52].mxu0 %v818_v9 }
 0x125   :  { %4383 = vmatmul.mubr.bf16.gmra.mrb[52].mxu1 %v818_v9  ;;  %2748 = vmatprep.mubr.bf16.mxu0 %v827_v10  ;;  %v483_v9 = vld [vmem:[#allocation5 + $0xb88] sm:$0xff] }
 0x126   :  { %4392 = vmatprep.mubr.bf16.mxu1 %v827_v10  ;;  %v491_v10 = vld [vmem:[#allocation5 + $0xbc8] sm:$0xff] }
 0x127   :  { %v899_v12 = vpack.c.bf16 %v491_v10, %v483_v9  ;;  %v979_v10 = vpack.c.bf16 %v651_v8, %v643_v7  ;;  %v741_v8 = vpack.c.bf16 %v173_v2, %v165_v1  ;;  %v261_v1 = vld [vmem:[#allocation5 + $0x498] sm:$0xff] }
 0x128   :  { %v269_v2 = vld [vmem:[#allocation5 + $0x4d8] sm:$0xff] }
 0x12c   :  { %2749 = vmatmul.mubr.bf16.gmra.mrb[56].mxu0 %v826_v15 }
 0x12d   :  { %4393 = vmatmul.mubr.bf16.gmra.mrb[56].mxu1 %v826_v15  ;;  %2758 = vmatprep.mubr.bf16.mxu0 %v835_v16  ;;  %v490_v15 = vld [vmem:[#allocation5 + $0xbc0] sm:$0xff] }
 0x12e   :  { %4402 = vmatprep.mubr.bf16.mxu1 %v835_v16  ;;  %v9567_v16 = vld [vmem:[#allocation8 + $0x40c] ss:$16 sps:$4 sm:$0xff]   ;;  %v898_v19 = vpack.c.bf16 %v490_v15, %v482_v14 }
 0x12f   :  { %5042 = vmatprep.subr.bf16.mxu1 %v9567_v16  ;;  %v667_v14 = vld [vmem:[#allocation5 + $0x1148] sm:$0xff] }
 0x130   :  { %v987_v16 = vpack.c.bf16 %v667_v14, %v659_v13  ;;  %v164_v13 = vld [vmem:[#allocation5 + $0x190] sm:$0xff] }
 0x131   :  { %v172_v14 = vld [vmem:[#allocation5 + $0x1d0] sm:$0xff] }
 0x134   :  { %2759 = vmatmul.mubr.bf16.gmra.mrb[60].mxu0 %v834_v23 }
 0x135   :  { %4403 = vmatmul.mubr.bf16.gmra.mrb[60].mxu1 %v834_v23  ;;  %2768 = vmatprep.mubr.bf16.mxu0 %v843_v24  ;;  %v515_v23 = vld [vmem:[#allocation5 + $0xc88] sm:$0xff] }
 0x136   :  { %4412 = vmatprep.mubr.bf16.mxu1 %v843_v24  ;;  %v523_v24 = vld [vmem:[#allocation5 + $0xcc8] sm:$0xff] }
 0x137   :  { %v915_v26 = vpack.c.bf16 %v523_v24, %v515_v23  ;;  %v674_v23 = vld [vmem:[#allocation5 + $0x1180] sm:$0xff] }
 0x138   :  { %v682_v24 = vld [vmem:[#allocation5 + $0x11c0] sm:$0xff] }
 0x13c   :  { %2769 = vmatmul.mubr.bf16.gmra.mrb[64].mxu0 %v842_v31 }
 0x13d   :  { %4413 = vmatmul.mubr.bf16.gmra.mrb[64].mxu1 %v842_v31  ;;  %2778 = vmatprep.mubr.bf16.mxu0 %v851_v32  ;;  %v914_v31 = vpack.c.bf16 %v522_v28, %v514_v27  ;;  %v994_v27 = vpack.c.bf16 %v682_v24, %v674_v23  ;;  %v9598_v23 = vld [vmem:[#allocation8 + $0x4c0] ss:$16 sps:$4 sm:$0xff]   ;;  %v9601_v24 = vld [vmem:[#allocation8 + $0x4c8] ss:$16 sps:$4 sm:$0xff]  }
 0x13e   :  { %4422 = vmatprep.mubr.bf16.mxu1 %v851_v32  ;;  %v923_v32 = vpack.c.bf16 %v539_v30, %v531_v29  ;;  %v690_v29 = vld [vmem:[#allocation5 + $0x1200] sm:$0xff] }
 0x13f   :  { %v698_v30 = vld [vmem:[#allocation5 + $0x1240] sm:$0xff] }
 0x144   :  { %2779 = vmatmul.mubr.bf16.gmra.mrb[68].mxu0 %v850_v37 }
 0x145   :  { %4423 = vmatmul.mubr.bf16.gmra.mrb[68].mxu1 %v850_v37  ;;  %2788 = vmatprep.mubr.bf16.mxu0 %v859_v38  ;;  %v922_v37 = vpack.c.bf16 %v538_v34, %v530_v33  ;;  %v706_v34 = vld [vmem:[#allocation5 + $0x1280] sm:$0xff] }
 0x146   :  { %4432 = vmatprep.mubr.bf16.mxu1 %v859_v38  ;;  %v931_v38 = vpack.c.bf16 %v555_v36, %v547_v35  ;;  %v117_v35 = vld [vmem:[#allocation5 + $0x18] sm:$0xff] }
 0x147   :  { %v125_v36 = vld [vmem:[#allocation5 + $0x58] sm:$0xff] }
 0x14c   :  { %2789 = vmatmul.mubr.bf16.gmra.mrb[72].mxu0 %v858_v47 }
 0x14d   :  { %4433 = vmatmul.mubr.bf16.gmra.mrb[72].mxu1 %v858_v47  ;;  %2798 = vmatprep.mubr.bf16.mxu0 %v867_v48  ;;  %v579_v47 = vld [vmem:[#allocation5 + $0xe88] sm:$0xff] }
 0x14e   :  { %4442 = vmatprep.mubr.bf16.mxu1 %v867_v48  ;;  %v587_v48 = vld [vmem:[#allocation5 + $0xec8] sm:$0xff] }
 0x14f   :  { %v947_v50 = vpack.c.bf16 %v587_v48, %v579_v47  ;;  %v9570_v47 = vld [vmem:[#allocation8 + $0x424] ss:$16 sps:$4 sm:$0xff]   ;;  %v9573_v48 = vld [vmem:[#allocation8 + $0x42c] ss:$16 sps:$4 sm:$0xff]  }
 0x154   :  { %2799 = vmatmul.mubr.bf16.gmra.mrb[76].mxu0 %v866_v53 }
 0x155   :  { %4443 = vmatmul.mubr.bf16.gmra.mrb[76].mxu1 %v866_v53  ;;  %2808 = vmatprep.mubr.bf16.mxu0 %v875_v54  ;;  %v595_v53 = vld [vmem:[#allocation5 + $0xf08] sm:$0xff] }
 0x156   :  { %4452 = vmatprep.mubr.bf16.mxu1 %v875_v54  ;;  %v603_v54 = vld [vmem:[#allocation5 + $0xf48] sm:$0xff] }
 0x157   :  { %v955_v56 = vpack.c.bf16 %v603_v54, %v595_v53  ;;  %v9571_v53 = vld [vmem:[#allocation8 + $0x428] ss:$16 sps:$4 sm:$0xff]  }
 0x158   :  { %v157_v54 = vld [vmem:[#allocation5 + $0x158] sm:$0xff] }
 0x159   :  { %v733_v58 = vpack.c.bf16 %v157_v54, %v149_v51  ;;  %v229_v51 = vld [vmem:[#allocation5 + $0x398] sm:$0xff] }
 0x15c   :  { %2809 = vmatmul.mubr.bf16.gmra.mrb[80].mxu0 %v874_v63 }
 0x15d   :  { %4453 = vmatmul.mubr.bf16.gmra.mrb[80].mxu1 %v874_v63  ;;  %2818 = vmatprep.mubr.bf16.mxu0 %v883_v0  ;;  %v610_v63 = vld [vmem:[#allocation5 + $0xf80] sm:$0xff] }
 0x15e   :  { %4462 = vmatprep.mubr.bf16.mxu1 %v883_v0  ;;  %v618_v0 = vld [vmem:[#allocation5 + $0xfc0] sm:$0xff] }
 0x15f   :  { %v962_v3 = vpack.c.bf16 %v618_v0, %v610_v63  ;;  %v148_v63 = vld [vmem:[#allocation5 + $0x110] sm:$0xff] }
 0x160   :  { %v156_v0 = vld [vmem:[#allocation5 + $0x150] sm:$0xff] }
 0x161   :  { %v732_v7 = vpack.c.bf16 %v156_v0, %v148_v63  ;;  %v244_v63 = vld [vmem:[#allocation5 + $0x410] sm:$0xff] }
 0x162   :  { %v252_v0 = vld [vmem:[#allocation5 + $0x450] sm:$0xff] }
 0x164   :  { %2819 = vmatmul.mubr.bf16.gmra.mrb[84].mxu0 %v882_v5 }
 0x165   :  { %4463 = vmatmul.mubr.bf16.gmra.mrb[84].mxu1 %v882_v5  ;;  %2828 = vmatprep.mubr.bf16.mxu0 %v891_v6  ;;  %v626_v5 = vld [vmem:[#allocation5 + $0x1000] sm:$0xff] }
 0x166   :  { %4472 = vmatprep.mubr.bf16.mxu1 %v891_v6  ;;  %v634_v6 = vld [vmem:[#allocation5 + $0x1040] sm:$0xff] }
 0x167   :  { %v970_v9 = vpack.c.bf16 %v634_v6, %v626_v5  ;;  %v9588_v5 = vld [vmem:[#allocation8 + $0x484] ss:$16 sps:$4 sm:$0xff]   ;;  %v9591_v6 = vld [vmem:[#allocation8 + $0x48c] ss:$16 sps:$4 sm:$0xff]  }
 0x16c   :  { %2829 = vmatmul.mubr.bf16.gmra.mrb[88].mxu0 %v890_v11 }
 0x16d   :  { %4473 = vmatmul.mubr.bf16.gmra.mrb[88].mxu1 %v890_v11  ;;  %2838 = vmatprep.mubr.bf16.mxu0 %v899_v12  ;;  %v642_v11 = vld [vmem:[#allocation5 + $0x1080] sm:$0xff] }
 0x16e   :  { %4482 = vmatprep.mubr.bf16.mxu1 %v899_v12  ;;  %v650_v12 = vld [vmem:[#allocation5 + $0x10c0] sm:$0xff] }
 0x16f   :  { %v978_v15 = vpack.c.bf16 %v650_v12, %v642_v11  ;;  %v9594_v11 = vld [vmem:[#allocation8 + $0x4a4] ss:$16 sps:$4 sm:$0xff]   ;;  %v9597_v12 = vld [vmem:[#allocation8 + $0x4ac] ss:$16 sps:$4 sm:$0xff]  }
 0x174   :  { %2839 = vmatmul.mubr.bf16.gmra.mrb[92].mxu0 %v898_v19 }
 0x175   :  { %4483 = vmatmul.mubr.bf16.gmra.mrb[92].mxu1 %v898_v19  ;;  %2848 = vmatprep.mubr.bf16.mxu0 %v907_v20  ;;  %v675_v19 = vld [vmem:[#allocation5 + $0x1188] sm:$0xff] }
 0x176   :  { %4492 = vmatprep.mubr.bf16.mxu1 %v907_v20  ;;  %v683_v20 = vld [vmem:[#allocation5 + $0x11c8] sm:$0xff] }
 0x177   :  { %v995_v22 = vpack.c.bf16 %v683_v20, %v675_v19  ;;  %v9600_v19 = vld [vmem:[#allocation8 + $0x4c4] ss:$16 sps:$4 sm:$0xff]   ;;  %v9603_v20 = vld [vmem:[#allocation8 + $0x4cc] ss:$16 sps:$4 sm:$0xff]  }
 0x17c   :  { %2849 = vmatmul.mubr.bf16.gmra.mrb[96].mxu0 %v906_v25 }
 0x17d   :  { %4493 = vmatmul.mubr.bf16.gmra.mrb[96].mxu1 %v906_v25  ;;  %2858 = vmatprep.mubr.bf16.mxu0 %v915_v26  ;;  %v691_v25 = vld [vmem:[#allocation5 + $0x1208] sm:$0xff] }
 0x17e   :  { %4502 = vmatprep.mubr.bf16.mxu1 %v915_v26  ;;  %v699_v26 = vld [vmem:[#allocation5 + $0x1248] sm:$0xff] }
 0x17f   :  { %v1003_v28 = vpack.c.bf16 %v699_v26, %v691_v25  ;;  %v9606_v25 = vld [vmem:[#allocation8 + $0x4e4] ss:$16 sps:$4 sm:$0xff]   ;;  %v9609_v26 = vld [vmem:[#allocation8 + $0x4ec] ss:$16 sps:$4 sm:$0xff]  }
 0x184   :  { %2859 = vmatmul.mubr.bf16.gmra.mrb[100].mxu0 %v914_v31 }
 0x185   :  { %4503 = vmatmul.mubr.bf16.gmra.mrb[100].mxu1 %v914_v31  ;;  %2868 = vmatprep.mubr.bf16.mxu0 %v923_v32  ;;  %v707_v31 = vld [vmem:[#allocation5 + $0x1288] sm:$0xff] }
 0x186   :  { %4512 = vmatprep.mubr.bf16.mxu1 %v923_v32  ;;  %v1002_v32 = vpack.c.bf16 %v698_v30, %v690_v29  ;;  %v1011_v33 = vpack.c.bf16 %v707_v31, %v707_v31  ;;  %v197_v29 = vld [vmem:[#allocation5 + $0x298] sm:$0xff]  ;;  %v9604_v31 = vld [vmem:[#allocation8 + $0x4e0] ss:$16 sps:$4 sm:$0xff]  }
 0x187   :  { %v205_v30 = vld [vmem:[#allocation5 + $0x2d8] sm:$0xff] }
 0x18c   :  { %2869 = vmatmul.mubr.bf16.gmra.mrb[104].mxu0 %v922_v37 }
 0x18d   :  { %4513 = vmatmul.mubr.bf16.gmra.mrb[104].mxu1 %v922_v37  ;;  %2878 = vmatprep.mubr.bf16.mxu0 %v931_v38  ;;  %v1010_v37 = vpack.c.bf16 %v706_v34, %v706_v34  ;;  %v9615_v34 = vld [vmem:[#allocation8 + $0x50c] ss:$16 sps:$4 sm:$0xff]  }
 0x18e   :  { %4522 = vmatprep.mubr.bf16.mxu1 %v931_v38  ;;  %v717_v38 = vpack.c.bf16 %v125_v36, %v117_v35  ;;  %v757_v36 = vpack.c.bf16 %v205_v30, %v197_v29  ;;  %v308_v29 = vld [vmem:[#allocation5 + $0x610] sm:$0xff] }
 0x18f   :  { %v316_v30 = vld [vmem:[#allocation5 + $0x650] sm:$0xff] }
 0x194   :  { %2879 = vmatmul.mubr.bf16.gmra.mrb[108].mxu0 %v930_v43 }
 0x195   :  { %4523 = vmatmul.mubr.bf16.gmra.mrb[108].mxu1 %v930_v43  ;;  %2888 = vmatprep.mubr.bf16.mxu0 %v939_v44  ;;  %v716_v43 = vpack.c.bf16 %v124_v40, %v116_v39  ;;  %v196_v39 = vld [vmem:[#allocation5 + $0x290] sm:$0xff] }
 0x196   :  { %4532 = vmatprep.mubr.bf16.mxu1 %v939_v44  ;;  %v9562_v44 = vld [vmem:[#allocation8 + $0x400] ss:$16 sps:$4 sm:$0xff]  }
 0x197   :  { %v204_v40 = vld [vmem:[#allocation5 + $0x2d0] sm:$0xff] }
 0x19c   :  { %2889 = vmatmul.mubr.bf16.gmra.mrb[112].mxu0 %v938_v49 }
 0x19d   :  { %4533 = vmatmul.mubr.bf16.gmra.mrb[112].mxu1 %v938_v49  ;;  %2898 = vmatprep.mubr.bf16.mxu0 %v947_v50  ;;  %v132_v49 = vld [vmem:[#allocation5 + $0x90] sm:$0xff] }
 0x19e   :  { %4542 = vmatprep.mubr.bf16.mxu1 %v947_v50  ;;  %v140_v50 = vld [vmem:[#allocation5 + $0xd0] sm:$0xff] }
 0x19f   :  { %v724_v57 = vpack.c.bf16 %v140_v50, %v132_v49  ;;  %v220_v49 = vld [vmem:[#allocation5 + $0x350] sm:$0xff]  ;;  %v9621_v50 = vld [vmem:[#allocation8 + $0x52c] ss:$16 sps:$4 sm:$0xff]  }
 0x1a4   :  { %2899 = vmatmul.mubr.bf16.gmra.mrb[116].mxu0 %v946_v55 }
 0x1a5   :  { %4543 = vmatmul.mubr.bf16.gmra.mrb[116].mxu1 %v946_v55  ;;  %2908 = vmatprep.mubr.bf16.mxu0 %v955_v56  ;;  %v9576_v55 = vld [vmem:[#allocation8 + $0x444] ss:$16 sps:$4 sm:$0xff]  }
 0x1a6   :  { %4552 = vmatprep.mubr.bf16.mxu1 %v955_v56  ;;  %v9579_v56 = vld [vmem:[#allocation8 + $0x44c] ss:$16 sps:$4 sm:$0xff]  }
 0x1ac   :  { %2909 = vmatmul.mubr.bf16.gmra.mrb[120].mxu0 %v954_v61 }
 0x1ad   :  { %4553 = vmatmul.mubr.bf16.gmra.mrb[120].mxu1 %v954_v61  ;;  %2918 = vmatprep.mubr.bf16.mxu0 %v963_v62  ;;  %v9582_v61 = vld [vmem:[#allocation8 + $0x464] ss:$16 sps:$4 sm:$0xff]  }
 0x1ae   :  { %4562 = vmatprep.mubr.bf16.mxu1 %v963_v62  ;;  %v9585_v62 = vld [vmem:[#allocation8 + $0x46c] ss:$16 sps:$4 sm:$0xff]  }
 0x1b4   :  { %2919 = vmatmul.mubr.bf16.gmra.mrb[124].mxu0 %v962_v3 }
 0x1b5   :  { %4563 = vmatmul.mubr.bf16.gmra.mrb[124].mxu1 %v962_v3  ;;  %2928 = vmatprep.mubr.bf16.mxu0 %v971_v4  ;;  %v9580_v3 = vld [vmem:[#allocation8 + $0x460] ss:$16 sps:$4 sm:$0xff]  }
 0x1b6   :  { %4572 = vmatprep.mubr.bf16.mxu1 %v971_v4  ;;  %v9583_v4 = vld [vmem:[#allocation8 + $0x468] ss:$16 sps:$4 sm:$0xff]  }
 0x1bc   :  { %2929 = vmatmul.mubr.bf16.gmra.mrb[128].mxu0 %v970_v9 }
 0x1bd   :  { %4573 = vmatmul.mubr.bf16.gmra.mrb[128].mxu1 %v970_v9  ;;  %2938 = vmatprep.mubr.bf16.mxu0 %v979_v10  ;;  %v9586_v9 = vld [vmem:[#allocation8 + $0x480] ss:$16 sps:$4 sm:$0xff]  }
 0x1be   :  { %4582 = vmatprep.mubr.bf16.mxu1 %v979_v10  ;;  %v9589_v10 = vld [vmem:[#allocation8 + $0x488] ss:$16 sps:$4 sm:$0xff]  }
 0x1c4   :  { %2939 = vmatmul.mubr.bf16.gmra.mrb[132].mxu0 %v978_v15 }
 0x1c5   :  { %4583 = vmatmul.mubr.bf16.gmra.mrb[132].mxu1 %v978_v15  ;;  %2948 = vmatprep.mubr.bf16.mxu0 %v987_v16  ;;  %v181_v15 = vld [vmem:[#allocation5 + $0x218] sm:$0xff] }
 0x1c6   :  { %4592 = vmatprep.mubr.bf16.mxu1 %v987_v16  ;;  %v189_v16 = vld [vmem:[#allocation5 + $0x258] sm:$0xff] }
 0x1cc   :  { %2949 = vmatmul.mubr.bf16.gmra.mrb[136].mxu0 %v986_v21 }
 0x1cd   :  { %4593 = vmatmul.mubr.bf16.gmra.mrb[136].mxu1 %v986_v21  ;;  %2958 = vmatprep.mubr.bf16.mxu0 %v995_v22  ;;  %v740_v21 = vpack.c.bf16 %v172_v14, %v164_v13  ;;  %v276_v13 = vld [vmem:[#allocation5 + $0x510] sm:$0xff] }
 0x1ce   :  { %4602 = vmatprep.mubr.bf16.mxu1 %v995_v22  ;;  %v749_v22 = vpack.c.bf16 %v189_v16, %v181_v15  ;;  %v284_v14 = vld [vmem:[#allocation5 + $0x550] sm:$0xff]  ;;  %v293_v15 = vld [vmem:[#allocation5 + $0x598] sm:$0xff] }
 0x1cf   :  { %v301_v16 = vld [vmem:[#allocation5 + $0x5d8] sm:$0xff] }
 0x1d4   :  { %2959 = vmatmul.mubr.bf16.gmra.mrb[140].mxu0 %v994_v27 }
 0x1d5   :  { %4603 = vmatmul.mubr.bf16.gmra.mrb[140].mxu1 %v994_v27  ;;  %2968 = vmatprep.mubr.bf16.mxu0 %v1003_v28  ;;  %v180_v27 = vld [vmem:[#allocation5 + $0x210] sm:$0xff] }
 0x1d6   :  { %4612 = vmatprep.mubr.bf16.mxu1 %v1003_v28  ;;  %v188_v28 = vld [vmem:[#allocation5 + $0x250] sm:$0xff] }
 0x1d7   :  { %v748_v35 = vpack.c.bf16 %v188_v28, %v180_v27 }
 0x1dc   :  { %2969 = vmatmul.mubr.bf16.gmra.mrb[144].mxu0 %v1002_v32 }
 0x1dd   :  { %4613 = vmatmul.mubr.bf16.gmra.mrb[144].mxu1 %v1002_v32  ;;  %2978 = vmatprep.mubr.bf16.mxu0 %v1011_v33  ;;  %v9607_v32 = vld [vmem:[#allocation8 + $0x4e8] ss:$16 sps:$4 sm:$0xff]  }
 0x1de   :  { %4622 = vmatprep.mubr.bf16.mxu1 %v1011_v33  ;;  %v9612_v33 = vld [vmem:[#allocation8 + $0x504] ss:$16 sps:$4 sm:$0xff]  }
 0x1e4   :  { %2979 = vmatmul.mubr.bf16.gmra.mrb[148].mxu0 %v1010_v37 }
 0x1e5   :  { %4623 = vmatmul.mubr.bf16.gmra.mrb[148].mxu1 %v1010_v37  ;;  %3019 = vmatprep.mubr.bf16.mxu0 %v717_v38  ;;  %v9610_v37 = vld [vmem:[#allocation8 + $0x500] ss:$16 sps:$4 sm:$0xff]  }
 0x1e6   :  { %4663 = vmatprep.mubr.bf16.mxu1 %v717_v38  ;;  %v9613_v38 = vld [vmem:[#allocation8 + $0x508] ss:$16 sps:$4 sm:$0xff]  }
 0x1ec   :  { %3020 = vmatmul.mubr.bf16.vlgmr.msra.gmra.mrb[0].mxu0 %v716_v43 }
 0x1ed   :  { %4664 = vmatmul.mubr.bf16.vlgmr.msra.gmra.mrb[0].mxu1 %v716_v43  ;;  %3399 = vmatpush1.bf16.msra.mxu0 %v9562_v44  ;;  %v756_v43 = vpack.c.bf16 %v204_v40, %v196_v39  ;;  %v765_v44 = vpack.c.bf16 %v221_v42, %v213_v41  ;;  %v332_v39 = vld [vmem:[#allocation5 + $0x6d0] sm:$0xff]  ;;  %v9639_v40 = vld [vmem:[#allocation8 + $0x58c] ss:$16 sps:$4 sm:$0xff]  }
 0x1ee   :  { %5043 = vmatpush1.bf16.msra.mxu1 %v9565_v45  ;;  %3029 = vmatprep.mubr.bf16.mxu0 %v725_v46  ;;  %v9616_v45 = vld [vmem:[#allocation8 + $0x520] ss:$16 sps:$4 sm:$0xff]   ;;  %v341_v41 = vld [vmem:[#allocation5 + $0x718] sm:$0xff] }
 0x1ef   :  { %4673 = vmatprep.mubr.bf16.mxu1 %v725_v46  ;;  %3400 = vmatprep.subr.bf16.mxu0 %v9570_v47  ;;  %v9618_v46 = vld [vmem:[#allocation8 + $0x524] ss:$16 sps:$4 sm:$0xff]   ;;  %v9619_v47 = vld [vmem:[#allocation8 + $0x528] ss:$16 sps:$4 sm:$0xff]  }
 0x1f0   :  { %5044 = vmatprep.subr.bf16.mxu1 %v9573_v48  ;;  %v212_v48 = vld [vmem:[#allocation5 + $0x310] sm:$0xff]  ;;  %v349_v42 = vld [vmem:[#allocation5 + $0x758] sm:$0xff] }
 0x1f1   :  { %3401 = vmatpush1.bf16.msra.mxu0 %v9568_v52  ;;  %v237_v52 = vld [vmem:[#allocation5 + $0x3d8] sm:$0xff] }
 0x1f2   :  { %5045 = vmatpush1.bf16.msra.mxu1 %v9571_v53  ;;  %3402 = vmatprep.subr.bf16.mxu0 %v9576_v55  ;;  %v764_v53 = vpack.c.bf16 %v220_v49, %v212_v48  ;;  %v773_v54 = vpack.c.bf16 %v237_v52, %v229_v51  ;;  %v228_v55 = vld [vmem:[#allocation5 + $0x390] sm:$0xff]  ;;  %v365_v48 = vld [vmem:[#allocation5 + $0x7d8] sm:$0xff] }
 0x1f3   :  { %5046 = vmatprep.subr.bf16.mxu1 %v9579_v56  ;;  %v236_v56 = vld [vmem:[#allocation5 + $0x3d0] sm:$0xff] }
 0x1f4   :  { %3030 = vmatmul.mubr.bf16.gmra.mrb[4].mxu0 %v724_v57  ;;  %v356_v51 = vld [vmem:[#allocation5 + $0x790] sm:$0xff] }
 0x1f5   :  { %4674 = vmatmul.mubr.bf16.gmra.mrb[4].mxu1 %v724_v57  ;;  %3039 = vmatprep.mubr.bf16.mxu0 %v733_v58  ;;  %v245_v57 = vld [vmem:[#allocation5 + $0x418] sm:$0xff]  ;;  %v364_v52 = vld [vmem:[#allocation5 + $0x7d0] sm:$0xff] }
 0x1f6   :  { %4683 = vmatprep.mubr.bf16.mxu1 %v733_v58  ;;  %3403 = vmatpush1.bf16.msra.mxu0 %v9574_v59  ;;  %v253_v58 = vld [vmem:[#allocation5 + $0x458] sm:$0xff]  ;;  %v772_v59 = vpack.c.bf16 %v236_v56, %v228_v55 }
 0x1f7   :  { %5047 = vmatpush1.bf16.msra.mxu1 %v9577_v60  ;;  %3404 = vmatprep.subr.bf16.mxu0 %v9582_v61  ;;  %v781_v60 = vpack.c.bf16 %v253_v58, %v245_v57  ;;  %v9622_v61 = vld [vmem:[#allocation8 + $0x540] ss:$16 sps:$4 sm:$0xff]   ;;  %v373_v55 = vld [vmem:[#allocation5 + $0x818] sm:$0xff]  ;;  %v836_v57 = vpack.c.bf16 %v364_v52, %v356_v51 }
 0x1f8   :  { %5048 = vmatprep.subr.bf16.mxu1 %v9585_v62  ;;  %v9624_v62 = vld [vmem:[#allocation8 + $0x544] ss:$16 sps:$4 sm:$0xff]   ;;  %v381_v56 = vld [vmem:[#allocation5 + $0x858] sm:$0xff] }
 0x1f9   :  { %v845_v58 = vpack.c.bf16 %v381_v56, %v373_v55  ;;  %v501_v51 = vld [vmem:[#allocation5 + $0xc18] sm:$0xff]  ;;  %v500_v55 = vld [vmem:[#allocation5 + $0xc10] sm:$0xff] }
 0x1fa   :  { %3405 = vmatpush1.bf16.msra.mxu0 %v9580_v3  ;;  %v780_v3 = vpack.c.bf16 %v252_v0, %v244_v63  ;;  %v389_v63 = vld [vmem:[#allocation5 + $0x898] sm:$0xff]  ;;  %v508_v56 = vld [vmem:[#allocation5 + $0xc50] sm:$0xff] }
 0x1fb   :  { %5049 = vmatpush1.bf16.msra.mxu1 %v9583_v4  ;;  %3406 = vmatprep.subr.bf16.mxu0 %v9588_v5  ;;  %v789_v4 = vpack.c.bf16 %v269_v2, %v261_v1  ;;  %v9625_v5 = vld [vmem:[#allocation8 + $0x548] ss:$16 sps:$4 sm:$0xff]  }
 0x1fc   :  { %5050 = vmatprep.subr.bf16.mxu1 %v9591_v6  ;;  %3040 = vmatmul.mubr.bf16.gmra.mrb[8].mxu0 %v732_v7  ;;  %v9627_v6 = vld [vmem:[#allocation8 + $0x54c] ss:$16 sps:$4 sm:$0xff]  }
 0x1fd   :  { %4684 = vmatmul.mubr.bf16.gmra.mrb[8].mxu1 %v732_v7  ;;  %3049 = vmatprep.mubr.bf16.mxu0 %v741_v8  ;;  %v260_v7 = vld [vmem:[#allocation5 + $0x490] sm:$0xff]  ;;  %v397_v0 = vld [vmem:[#allocation5 + $0x8d8] sm:$0xff] }
 0x1fe   :  { %4693 = vmatprep.mubr.bf16.mxu1 %v741_v8  ;;  %3407 = vmatpush1.bf16.msra.mxu0 %v9586_v9  ;;  %v268_v8 = vld [vmem:[#allocation5 + $0x4d0] sm:$0xff]  ;;  %v277_v9 = vld [vmem:[#allocation5 + $0x518] sm:$0xff]  ;;  %v853_v2 = vpack.c.bf16 %v397_v0, %v389_v63 }
 0x1ff   :  { %5051 = vmatpush1.bf16.msra.mxu1 %v9589_v10  ;;  %3408 = vmatprep.subr.bf16.mxu0 %v9594_v11  ;;  %v285_v10 = vld [vmem:[#allocation5 + $0x558] sm:$0xff]  ;;  %v788_v11 = vpack.c.bf16 %v268_v8, %v260_v7 }
 0x200   :  { %5052 = vmatprep.subr.bf16.mxu1 %v9597_v12  ;;  %v797_v12 = vpack.c.bf16 %v285_v10, %v277_v9  ;;  %v9646_v9 = vld [vmem:[#allocation8 + $0x5c0] ss:$16 sps:$4 sm:$0xff]   ;;  %v9648_v10 = vld [vmem:[#allocation8 + $0x5c4] ss:$16 sps:$4 sm:$0xff]   ;;  %v509_v52 = vld [vmem:[#allocation5 + $0xc58] sm:$0xff] }
 0x201   :  { %v533_v63 = vld [vmem:[#allocation5 + $0xd18] sm:$0xff] }
 0x202   :  { %3409 = vmatpush1.bf16.msra.mxu0 %v9592_v17  ;;  %v796_v17 = vpack.c.bf16 %v284_v14, %v276_v13  ;;  %v412_v13 = vld [vmem:[#allocation5 + $0x950] sm:$0xff]  ;;  %v9651_v14 = vld [vmem:[#allocation8 + $0x5cc] ss:$16 sps:$4 sm:$0xff]  }
 0x203   :  { %5053 = vmatpush1.bf16.msra.mxu1 %v9595_v18  ;;  %3410 = vmatprep.subr.bf16.mxu0 %v9600_v19  ;;  %v805_v18 = vpack.c.bf16 %v301_v16, %v293_v15  ;;  %v9628_v19 = vld [vmem:[#allocation8 + $0x560] ss:$16 sps:$4 sm:$0xff]   ;;  %v421_v15 = vld [vmem:[#allocation5 + $0x998] sm:$0xff] }
 0x204   :  { %5054 = vmatprep.subr.bf16.mxu1 %v9603_v20  ;;  %3050 = vmatmul.mubr.bf16.gmra.mrb[12].mxu0 %v740_v21  ;;  %v9630_v20 = vld [vmem:[#allocation8 + $0x564] ss:$16 sps:$4 sm:$0xff]   ;;  %v429_v16 = vld [vmem:[#allocation5 + $0x9d8] sm:$0xff] }
 0x205   :  { %4694 = vmatmul.mubr.bf16.gmra.mrb[12].mxu1 %v740_v21  ;;  %3059 = vmatprep.mubr.bf16.mxu0 %v749_v22  ;;  %v9631_v21 = vld [vmem:[#allocation8 + $0x568] ss:$16 sps:$4 sm:$0xff]  }
 0x206   :  { %4703 = vmatprep.mubr.bf16.mxu1 %v749_v22  ;;  %3411 = vmatpush1.bf16.msra.mxu0 %v9598_v23  ;;  %v292_v22 = vld [vmem:[#allocation5 + $0x590] sm:$0xff]  ;;  %v541_v0 = vld [vmem:[#allocation5 + $0xd58] sm:$0xff] }
 0x207   :  { %5055 = vmatpush1.bf16.msra.mxu1 %v9601_v24  ;;  %3412 = vmatprep.subr.bf16.mxu0 %v9606_v25  ;;  %v300_v23 = vld [vmem:[#allocation5 + $0x5d0] sm:$0xff]  ;;  %v9633_v24 = vld [vmem:[#allocation8 + $0x56c] ss:$16 sps:$4 sm:$0xff]  }
 0x208   :  { %5056 = vmatprep.subr.bf16.mxu1 %v9609_v26  ;;  %v309_v25 = vld [vmem:[#allocation5 + $0x618] sm:$0xff]  ;;  %v804_v27 = vpack.c.bf16 %v300_v23, %v292_v22 }
 0x209   :  { %v317_v26 = vld [vmem:[#allocation5 + $0x658] sm:$0xff] }
 0x20a   :  { %3413 = vmatpush1.bf16.msra.mxu0 %v9604_v31  ;;  %v813_v28 = vpack.c.bf16 %v317_v26, %v309_v25  ;;  %v325_v31 = vld [vmem:[#allocation5 + $0x698] sm:$0xff]  ;;  %v436_v25 = vld [vmem:[#allocation5 + $0xa10] sm:$0xff] }
 0x20b   :  { %5057 = vmatpush1.bf16.msra.mxu1 %v9607_v32  ;;  %3414 = vmatprep.subr.bf16.mxu0 %v9612_v33  ;;  %v333_v32 = vld [vmem:[#allocation5 + $0x6d8] sm:$0xff]  ;;  %v812_v33 = vpack.c.bf16 %v316_v30, %v308_v29  ;;  %v9652_v26 = vld [vmem:[#allocation8 + $0x5e0] ss:$16 sps:$4 sm:$0xff]  }
 0x20c   :  { %5058 = vmatprep.subr.bf16.mxu1 %v9615_v34  ;;  %3060 = vmatmul.mubr.bf16.gmra.mrb[16].mxu0 %v748_v35  ;;  %v821_v34 = vpack.c.bf16 %v333_v32, %v325_v31  ;;  %v445_v22 = vld [vmem:[#allocation5 + $0xa58] sm:$0xff] }
 0x20d   :  { %4704 = vmatmul.mubr.bf16.gmra.mrb[16].mxu1 %v748_v35  ;;  %3069 = vmatprep.mubr.bf16.mxu0 %v757_v36  ;;  %v9634_v35 = vld [vmem:[#allocation8 + $0x580] ss:$16 sps:$4 sm:$0xff]   ;;  %v9655_v29 = vld [vmem:[#allocation8 + $0x5e8] ss:$16 sps:$4 sm:$0xff]   ;;  %v9657_v30 = vld [vmem:[#allocation8 + $0x5ec] ss:$16 sps:$4 sm:$0xff]  }
 0x20e   :  { %4713 = vmatprep.mubr.bf16.mxu1 %v757_v36  ;;  %3415 = vmatpush1.bf16.msra.mxu0 %v9610_v37  ;;  %v9636_v36 = vld [vmem:[#allocation8 + $0x584] ss:$16 sps:$4 sm:$0xff]   ;;  %v9637_v37 = vld [vmem:[#allocation8 + $0x588] ss:$16 sps:$4 sm:$0xff]  }
 0x20f   :  { %5059 = vmatpush1.bf16.msra.mxu1 %v9613_v38  ;;  %3416 = vmatprep.subr.bf16.mxu0 %v9618_v46  ;;  %v324_v38 = vld [vmem:[#allocation5 + $0x690] sm:$0xff]  ;;  %v453_v31 = vld [vmem:[#allocation5 + $0xa98] sm:$0xff] }
 0x210   :  { %5060 = vmatprep.subr.bf16.mxu1 %v9621_v50  ;;  %v348_v46 = vld [vmem:[#allocation5 + $0x750] sm:$0xff]  ;;  %v461_v32 = vld [vmem:[#allocation5 + $0xad8] sm:$0xff] }
 0x212   :  { %3417 = vmatpush1.bf16.msra.mxu0 %v9616_v45  ;;  %v340_v45 = vld [vmem:[#allocation5 + $0x710] sm:$0xff] }
 0x213   :  { %5061 = vmatpush1.bf16.msra.mxu1 %v9619_v47  ;;  %3418 = vmatprep.subr.bf16.mxu0 %v9624_v62  ;;  %v357_v47 = vld [vmem:[#allocation5 + $0x798] sm:$0xff]  ;;  %v828_v49 = vpack.c.bf16 %v348_v46, %v340_v45  ;;  %v380_v62 = vld [vmem:[#allocation5 + $0x850] sm:$0xff] }
 0x214   :  { %3070 = vmatmul.mubr.bf16.gmra.mrb[20].mxu0 %v756_v43  ;;  %5062 = vmatprep.subr.bf16.mxu1 %v9627_v6  ;;  %v837_v50 = vpack.c.bf16 %v365_v48, %v357_v47  ;;  %v413_v6 = vld [vmem:[#allocation5 + $0x958] sm:$0xff]  ;;  %v9660_v47 = vld [vmem:[#allocation8 + $0x604] ss:$16 sps:$4 sm:$0xff]  }
 0x215   :  { %4714 = vmatmul.mubr.bf16.gmra.mrb[20].mxu1 %v756_v43  ;;  %3079 = vmatprep.mubr.bf16.mxu0 %v765_v44  ;;  %v820_v43 = vpack.c.bf16 %v332_v39, %v324_v38  ;;  %v477_v38 = vld [vmem:[#allocation5 + $0xb58] sm:$0xff]  ;;  %v484_v48 = vld [vmem:[#allocation5 + $0xb90] sm:$0xff] }
 0x216   :  { %4723 = vmatprep.mubr.bf16.mxu1 %v765_v44  ;;  %3419 = vmatpush1.bf16.msra.mxu0 %v9622_v61  ;;  %v829_v44 = vpack.c.bf16 %v349_v42, %v341_v41  ;;  %v372_v61 = vld [vmem:[#allocation5 + $0x810] sm:$0xff] }
 0x217   :  { %5063 = vmatpush1.bf16.msra.mxu1 %v9625_v5  ;;  %3420 = vmatprep.subr.bf16.mxu0 %v9630_v20  ;;  %v844_v1 = vpack.c.bf16 %v380_v62, %v372_v61  ;;  %v405_v5 = vld [vmem:[#allocation5 + $0x918] sm:$0xff]  ;;  %v428_v20 = vld [vmem:[#allocation5 + $0x9d0] sm:$0xff] }
 0x218   :  { %5064 = vmatprep.subr.bf16.mxu1 %v9633_v24  ;;  %v861_v8 = vpack.c.bf16 %v413_v6, %v405_v5  ;;  %v468_v41 = vld [vmem:[#allocation5 + $0xb10] sm:$0xff]  ;;  %v549_v5 = vld [vmem:[#allocation5 + $0xd98] sm:$0xff] }
 0x219   :  { %v476_v42 = vld [vmem:[#allocation5 + $0xb50] sm:$0xff]  ;;  %v557_v6 = vld [vmem:[#allocation5 + $0xdd8] sm:$0xff] }
 0x21a   :  { %3421 = vmatpush1.bf16.msra.mxu0 %v9628_v19  ;;  %v420_v19 = vld [vmem:[#allocation5 + $0x990] sm:$0xff]  ;;  %v892_v45 = vpack.c.bf16 %v476_v42, %v468_v41  ;;  %v645_v41 = vld [vmem:[#allocation5 + $0x1098] sm:$0xff] }
 0x21b   :  { %5065 = vmatpush1.bf16.msra.mxu1 %v9631_v21  ;;  %3422 = vmatprep.subr.bf16.mxu0 %v9636_v36  ;;  %v437_v21 = vld [vmem:[#allocation5 + $0xa18] sm:$0xff]  ;;  %v868_v23 = vpack.c.bf16 %v428_v20, %v420_v19  ;;  %v460_v36 = vld [vmem:[#allocation5 + $0xad0] sm:$0xff] }
 0x21c   :  { %3080 = vmatmul.mubr.bf16.gmra.mrb[24].mxu0 %v764_v53  ;;  %5066 = vmatprep.subr.bf16.mxu1 %v9639_v40  ;;  %v877_v24 = vpack.c.bf16 %v445_v22, %v437_v21  ;;  %v516_v61 = vld [vmem:[#allocation5 + $0xc90] sm:$0xff]  ;;  %v653_v42 = vld [vmem:[#allocation5 + $0x10d8] sm:$0xff] }
 0x21d   :  { %4724 = vmatmul.mubr.bf16.gmra.mrb[24].mxu1 %v764_v53  ;;  %3089 = vmatprep.mubr.bf16.mxu0 %v773_v54  ;;  %v9640_v53 = vld [vmem:[#allocation8 + $0x5a0] ss:$16 sps:$4 sm:$0xff]  }
 0x21e   :  { %4733 = vmatprep.mubr.bf16.mxu1 %v773_v54  ;;  %3423 = vmatpush1.bf16.msra.mxu0 %v9634_v35  ;;  %v9642_v54 = vld [vmem:[#allocation8 + $0x5a4] ss:$16 sps:$4 sm:$0xff]  }
 0x21f   :  { %5067 = vmatpush1.bf16.msra.mxu1 %v9637_v37  ;;  %3424 = vmatprep.subr.bf16.mxu0 %v9642_v54  ;;  %v452_v35 = vld [vmem:[#allocation5 + $0xa90] sm:$0xff]  ;;  %v469_v37 = vld [vmem:[#allocation5 + $0xb18] sm:$0xff]  ;;  %v909_v54 = vpack.c.bf16 %v509_v52, %v501_v51 }
 0x220   :  { %v884_v39 = vpack.c.bf16 %v460_v36, %v452_v35  ;;  %v893_v40 = vpack.c.bf16 %v477_v38, %v469_v37  ;;  %v524_v62 = vld [vmem:[#allocation5 + $0xcd0] sm:$0xff]  ;;  %v629_v35 = vld [vmem:[#allocation5 + $0x1018] sm:$0xff] }
 0x221   :  { %v580_v21 = vld [vmem:[#allocation5 + $0xe90] sm:$0xff]  ;;  %v637_v36 = vld [vmem:[#allocation5 + $0x1058] sm:$0xff] }
 0x222   :  { %3425 = vmatpush1.bf16.msra.mxu0 %v9640_v53  ;;  %v588_v22 = vld [vmem:[#allocation5 + $0xed0] sm:$0xff]  ;;  %v973_v38 = vpack.c.bf16 %v637_v36, %v629_v35  ;;  %v167_v35 = vld [vmem:[#allocation5 + $0x1a8] sm:$0xff] }
 0x223   :  { %3426 = vmatprep.subr.bf16.mxu0 %v9648_v10  ;;  %v556_v10 = vld [vmem:[#allocation5 + $0xdd0] sm:$0xff]  ;;  %v175_v36 = vld [vmem:[#allocation5 + $0x1e8] sm:$0xff] }
 0x224   :  { %3090 = vmatmul.mubr.bf16.gmra.mrb[28].mxu0 %v772_v59  ;;  %v660_v51 = vld [vmem:[#allocation5 + $0x1110] sm:$0xff] }
 0x225   :  { %4734 = vmatmul.mubr.bf16.gmra.mrb[28].mxu1 %v772_v59  ;;  %3099 = vmatprep.mubr.bf16.mxu0 %v781_v60  ;;  %v9643_v59 = vld [vmem:[#allocation8 + $0x5a8] ss:$16 sps:$4 sm:$0xff]   ;;  %v668_v52 = vld [vmem:[#allocation5 + $0x1150] sm:$0xff] }
 0x226   :  { %4743 = vmatprep.mubr.bf16.mxu1 %v781_v60  ;;  %v9645_v60 = vld [vmem:[#allocation8 + $0x5ac] ss:$16 sps:$4 sm:$0xff]   ;;  %3427 = vmatpush1.bf16.msra.mxu0 %v9646_v9  ;;  %v548_v9 = vld [vmem:[#allocation5 + $0xd90] sm:$0xff] }
 0x227   :  { %5068 = vmatprep.subr.bf16.mxu1 %v9645_v60 }
 0x228   :  { %5069 = vmatpush1.bf16.msra.mxu1 %v9643_v59  ;;  %v908_v59 = vpack.c.bf16 %v508_v56, %v500_v55  ;;  %v988_v55 = vpack.c.bf16 %v668_v52, %v660_v51  ;;  %v9688_v51 = vld [vmem:[#allocation8 + $0x6a0] ss:$16 sps:$4 sm:$0xff]   ;;  %v9691_v52 = vld [vmem:[#allocation8 + $0x6a8] ss:$16 sps:$4 sm:$0xff]  }
 0x229   :  { %5070 = vmatprep.subr.bf16.mxu1 %v9651_v14 }
 0x22c   :  { %3100 = vmatmul.mubr.bf16.gmra.mrb[32].mxu0 %v780_v3 }
 0x22d   :  { %4744 = vmatmul.mubr.bf16.gmra.mrb[32].mxu1 %v780_v3  ;;  %3109 = vmatprep.mubr.bf16.mxu0 %v789_v4  ;;  %v388_v3 = vld [vmem:[#allocation5 + $0x890] sm:$0xff] }
 0x22e   :  { %4753 = vmatprep.mubr.bf16.mxu1 %v789_v4  ;;  %v396_v4 = vld [vmem:[#allocation5 + $0x8d0] sm:$0xff] }
 0x22f   :  { %v852_v7 = vpack.c.bf16 %v396_v4, %v388_v3  ;;  %v532_v3 = vld [vmem:[#allocation5 + $0xd10] sm:$0xff] }
 0x230   :  { %v540_v4 = vld [vmem:[#allocation5 + $0xd50] sm:$0xff] }
 0x234   :  { %3110 = vmatmul.mubr.bf16.gmra.mrb[36].mxu0 %v788_v11 }
 0x235   :  { %4754 = vmatmul.mubr.bf16.gmra.mrb[36].mxu1 %v788_v11  ;;  %3119 = vmatprep.mubr.bf16.mxu0 %v797_v12  ;;  %v9649_v11 = vld [vmem:[#allocation8 + $0x5c8] ss:$16 sps:$4 sm:$0xff]  }
 0x236   :  { %4763 = vmatprep.mubr.bf16.mxu1 %v797_v12  ;;  %v404_v12 = vld [vmem:[#allocation5 + $0x910] sm:$0xff]  ;;  %5071 = vmatpush1.bf16.msra.mxu1 %v9649_v11  ;;  %v565_v11 = vld [vmem:[#allocation5 + $0xe18] sm:$0xff] }
 0x237   :  { %5072 = vmatprep.subr.bf16.mxu1 %v9657_v30  ;;  %v621_v30 = vld [vmem:[#allocation5 + $0xfd8] sm:$0xff] }
 0x23a   :  { %5073 = vmatpush1.bf16.msra.mxu1 %v9655_v29  ;;  %v613_v29 = vld [vmem:[#allocation5 + $0xf98] sm:$0xff] }
 0x23c   :  { %3120 = vmatmul.mubr.bf16.gmra.mrb[40].mxu0 %v796_v17 }
 0x23d   :  { %4764 = vmatmul.mubr.bf16.gmra.mrb[40].mxu1 %v796_v17  ;;  %3129 = vmatprep.mubr.bf16.mxu0 %v805_v18  ;;  %v860_v17 = vpack.c.bf16 %v412_v13, %v404_v12  ;;  %v573_v12 = vld [vmem:[#allocation5 + $0xe58] sm:$0xff]  ;;  %v932_v13 = vpack.c.bf16 %v556_v10, %v548_v9  ;;  %v118_v9 = vld [vmem:[#allocation5 + $0x20] sm:$0xff] }
 0x23e   :  { %4773 = vmatprep.mubr.bf16.mxu1 %v805_v18  ;;  %v869_v18 = vpack.c.bf16 %v429_v16, %v421_v15  ;;  %v941_v14 = vpack.c.bf16 %v573_v12, %v565_v11  ;;  %v564_v15 = vld [vmem:[#allocation5 + $0xe10] sm:$0xff]  ;;  %v126_v10 = vld [vmem:[#allocation5 + $0x60] sm:$0xff]  ;;  %v135_v11 = vld [vmem:[#allocation5 + $0xa8] sm:$0xff] }
 0x23f   :  { %v572_v16 = vld [vmem:[#allocation5 + $0xe50] sm:$0xff]  ;;  %v143_v12 = vld [vmem:[#allocation5 + $0xe8] sm:$0xff] }
 0x240   :  { %v940_v19 = vpack.c.bf16 %v572_v16, %v564_v15  ;;  %v9661_v15 = vld [vmem:[#allocation8 + $0x608] ss:$16 sps:$4 sm:$0xff]   ;;  %v727_v16 = vpack.c.bf16 %v143_v12, %v135_v11 }
 0x241   :  { %v215_v11 = vld [vmem:[#allocation5 + $0x328] sm:$0xff] }
 0x242   :  { %v223_v12 = vld [vmem:[#allocation5 + $0x368] sm:$0xff] }
 0x244   :  { %3130 = vmatmul.mubr.bf16.gmra.mrb[44].mxu0 %v804_v27 }
 0x245   :  { %4774 = vmatmul.mubr.bf16.gmra.mrb[44].mxu1 %v804_v27  ;;  %3139 = vmatprep.mubr.bf16.mxu0 %v813_v28  ;;  %v9654_v27 = vld [vmem:[#allocation8 + $0x5e4] ss:$16 sps:$4 sm:$0xff]  }
 0x246   :  { %4783 = vmatprep.mubr.bf16.mxu1 %v813_v28  ;;  %v444_v28 = vld [vmem:[#allocation5 + $0xa50] sm:$0xff]  ;;  %3428 = vmatprep.subr.bf16.mxu0 %v9654_v27 }
 0x247   :  { %3429 = vmatpush1.bf16.msra.mxu0 %v9652_v26  ;;  %v596_v27 = vld [vmem:[#allocation5 + $0xf10] sm:$0xff] }
 0x248   :  { %3809 = vmatprep.subr.bf16.mxu0 %v9660_v47  ;;  %v661_v47 = vld [vmem:[#allocation5 + $0x1118] sm:$0xff] }
 0x24c   :  { %3140 = vmatmul.mubr.bf16.gmra.mrb[48].mxu0 %v812_v33 }
 0x24d   :  { %4784 = vmatmul.mubr.bf16.gmra.mrb[48].mxu1 %v812_v33  ;;  %3149 = vmatprep.mubr.bf16.mxu0 %v821_v34  ;;  %v876_v33 = vpack.c.bf16 %v444_v28, %v436_v25  ;;  %v948_v25 = vpack.c.bf16 %v588_v22, %v580_v21  ;;  %v604_v28 = vld [vmem:[#allocation5 + $0xf50] sm:$0xff]  ;;  %v151_v21 = vld [vmem:[#allocation5 + $0x128] sm:$0xff] }
 0x24e   :  { %4793 = vmatprep.mubr.bf16.mxu1 %v821_v34  ;;  %v885_v34 = vpack.c.bf16 %v461_v32, %v453_v31  ;;  %v956_v31 = vpack.c.bf16 %v604_v28, %v596_v27  ;;  %v965_v32 = vpack.c.bf16 %v621_v30, %v613_v29  ;;  %v9664_v22 = vld [vmem:[#allocation8 + $0x620] ss:$16 sps:$4 sm:$0xff]   ;;  %v9673_v30 = vld [vmem:[#allocation8 + $0x648] ss:$16 sps:$4 sm:$0xff]  }
 0x24f   :  { %v9670_v29 = vld [vmem:[#allocation8 + $0x640] ss:$16 sps:$4 sm:$0xff]  }
 0x254   :  { %3150 = vmatmul.mubr.bf16.gmra.mrb[52].mxu0 %v820_v43 }
 0x255   :  { %4794 = vmatmul.mubr.bf16.gmra.mrb[52].mxu1 %v820_v43  ;;  %3159 = vmatprep.mubr.bf16.mxu0 %v829_v44  ;;  %v485_v43 = vld [vmem:[#allocation5 + $0xb98] sm:$0xff] }
 0x256   :  { %4803 = vmatprep.mubr.bf16.mxu1 %v829_v44  ;;  %v493_v44 = vld [vmem:[#allocation5 + $0xbd8] sm:$0xff] }
 0x257   :  { %v901_v46 = vpack.c.bf16 %v493_v44, %v485_v43  ;;  %v981_v44 = vpack.c.bf16 %v653_v42, %v645_v41  ;;  %v743_v42 = vpack.c.bf16 %v175_v36, %v167_v35  ;;  %v263_v35 = vld [vmem:[#allocation5 + $0x4a8] sm:$0xff] }
 0x258   :  { %v271_v36 = vld [vmem:[#allocation5 + $0x4e8] sm:$0xff] }
 0x25c   :  { %3160 = vmatmul.mubr.bf16.gmra.mrb[56].mxu0 %v828_v49 }
 0x25d   :  { %4804 = vmatmul.mubr.bf16.gmra.mrb[56].mxu1 %v828_v49  ;;  %3169 = vmatprep.mubr.bf16.mxu0 %v837_v50  ;;  %v492_v49 = vld [vmem:[#allocation5 + $0xbd0] sm:$0xff] }
 0x25e   :  { %4813 = vmatprep.mubr.bf16.mxu1 %v837_v50  ;;  %v9663_v50 = vld [vmem:[#allocation8 + $0x60c] ss:$16 sps:$4 sm:$0xff]   ;;  %v900_v53 = vpack.c.bf16 %v492_v49, %v484_v48 }
 0x25f   :  { %5453 = vmatprep.subr.bf16.mxu1 %v9663_v50  ;;  %v669_v48 = vld [vmem:[#allocation5 + $0x1158] sm:$0xff] }
 0x260   :  { %v989_v50 = vpack.c.bf16 %v669_v48, %v661_v47  ;;  %v166_v47 = vld [vmem:[#allocation5 + $0x1a0] sm:$0xff] }
 0x261   :  { %v174_v48 = vld [vmem:[#allocation5 + $0x1e0] sm:$0xff] }
 0x264   :  { %3170 = vmatmul.mubr.bf16.gmra.mrb[60].mxu0 %v836_v57 }
 0x265   :  { %4814 = vmatmul.mubr.bf16.gmra.mrb[60].mxu1 %v836_v57  ;;  %3179 = vmatprep.mubr.bf16.mxu0 %v845_v58  ;;  %v517_v57 = vld [vmem:[#allocation5 + $0xc98] sm:$0xff] }
 0x266   :  { %4823 = vmatprep.mubr.bf16.mxu1 %v845_v58  ;;  %v525_v58 = vld [vmem:[#allocation5 + $0xcd8] sm:$0xff] }
 0x267   :  { %v917_v60 = vpack.c.bf16 %v525_v58, %v517_v57  ;;  %v676_v57 = vld [vmem:[#allocation5 + $0x1190] sm:$0xff] }
 0x268   :  { %v684_v58 = vld [vmem:[#allocation5 + $0x11d0] sm:$0xff] }
 0x26c   :  { %3180 = vmatmul.mubr.bf16.gmra.mrb[64].mxu0 %v844_v1 }
 0x26d   :  { %4824 = vmatmul.mubr.bf16.gmra.mrb[64].mxu1 %v844_v1  ;;  %3189 = vmatprep.mubr.bf16.mxu0 %v853_v2  ;;  %v916_v1 = vpack.c.bf16 %v524_v62, %v516_v61  ;;  %v996_v61 = vpack.c.bf16 %v684_v58, %v676_v57  ;;  %v9694_v57 = vld [vmem:[#allocation8 + $0x6c0] ss:$16 sps:$4 sm:$0xff]   ;;  %v9697_v58 = vld [vmem:[#allocation8 + $0x6c8] ss:$16 sps:$4 sm:$0xff]  }
 0x26e   :  { %4833 = vmatprep.mubr.bf16.mxu1 %v853_v2  ;;  %v925_v2 = vpack.c.bf16 %v541_v0, %v533_v63  ;;  %v692_v63 = vld [vmem:[#allocation5 + $0x1210] sm:$0xff] }
 0x26f   :  { %v700_v0 = vld [vmem:[#allocation5 + $0x1250] sm:$0xff] }
 0x274   :  { %3190 = vmatmul.mubr.bf16.gmra.mrb[68].mxu0 %v852_v7 }
 0x275   :  { %4834 = vmatmul.mubr.bf16.gmra.mrb[68].mxu1 %v852_v7  ;;  %3199 = vmatprep.mubr.bf16.mxu0 %v861_v8  ;;  %v924_v7 = vpack.c.bf16 %v540_v4, %v532_v3  ;;  %v708_v4 = vld [vmem:[#allocation5 + $0x1290] sm:$0xff] }
 0x276   :  { %4843 = vmatprep.mubr.bf16.mxu1 %v861_v8  ;;  %v933_v8 = vpack.c.bf16 %v557_v6, %v549_v5  ;;  %v119_v5 = vld [vmem:[#allocation5 + $0x28] sm:$0xff] }
 0x277   :  { %v127_v6 = vld [vmem:[#allocation5 + $0x68] sm:$0xff] }
 0x27c   :  { %3200 = vmatmul.mubr.bf16.gmra.mrb[72].mxu0 %v860_v17 }
 0x27d   :  { %4844 = vmatmul.mubr.bf16.gmra.mrb[72].mxu1 %v860_v17  ;;  %3209 = vmatprep.mubr.bf16.mxu0 %v869_v18  ;;  %v581_v17 = vld [vmem:[#allocation5 + $0xe98] sm:$0xff] }
 0x27e   :  { %4853 = vmatprep.mubr.bf16.mxu1 %v869_v18  ;;  %v589_v18 = vld [vmem:[#allocation5 + $0xed8] sm:$0xff] }
 0x27f   :  { %v949_v20 = vpack.c.bf16 %v589_v18, %v581_v17  ;;  %v9666_v17 = vld [vmem:[#allocation8 + $0x624] ss:$16 sps:$4 sm:$0xff]   ;;  %v9669_v18 = vld [vmem:[#allocation8 + $0x62c] ss:$16 sps:$4 sm:$0xff]  }
 0x284   :  { %3210 = vmatmul.mubr.bf16.gmra.mrb[76].mxu0 %v868_v23 }
 0x285   :  { %4854 = vmatmul.mubr.bf16.gmra.mrb[76].mxu1 %v868_v23  ;;  %3219 = vmatprep.mubr.bf16.mxu0 %v877_v24  ;;  %v597_v23 = vld [vmem:[#allocation5 + $0xf18] sm:$0xff] }
 0x286   :  { %4863 = vmatprep.mubr.bf16.mxu1 %v877_v24  ;;  %v605_v24 = vld [vmem:[#allocation5 + $0xf58] sm:$0xff] }
 0x287   :  { %v957_v26 = vpack.c.bf16 %v605_v24, %v597_v23  ;;  %v9667_v23 = vld [vmem:[#allocation8 + $0x628] ss:$16 sps:$4 sm:$0xff]  }
 0x288   :  { %v159_v24 = vld [vmem:[#allocation5 + $0x168] sm:$0xff] }
 0x289   :  { %v735_v28 = vpack.c.bf16 %v159_v24, %v151_v21  ;;  %v231_v21 = vld [vmem:[#allocation5 + $0x3a8] sm:$0xff] }
 0x28c   :  { %3220 = vmatmul.mubr.bf16.gmra.mrb[80].mxu0 %v876_v33 }
 0x28d   :  { %4864 = vmatmul.mubr.bf16.gmra.mrb[80].mxu1 %v876_v33  ;;  %3229 = vmatprep.mubr.bf16.mxu0 %v885_v34  ;;  %v612_v33 = vld [vmem:[#allocation5 + $0xf90] sm:$0xff] }
 0x28e   :  { %4873 = vmatprep.mubr.bf16.mxu1 %v885_v34  ;;  %v620_v34 = vld [vmem:[#allocation5 + $0xfd0] sm:$0xff] }
 0x28f   :  { %v964_v37 = vpack.c.bf16 %v620_v34, %v612_v33  ;;  %v150_v33 = vld [vmem:[#allocation5 + $0x120] sm:$0xff] }
 0x290   :  { %v158_v34 = vld [vmem:[#allocation5 + $0x160] sm:$0xff] }
 0x291   :  { %v734_v41 = vpack.c.bf16 %v158_v34, %v150_v33  ;;  %v246_v33 = vld [vmem:[#allocation5 + $0x420] sm:$0xff] }
 0x292   :  { %v254_v34 = vld [vmem:[#allocation5 + $0x460] sm:$0xff] }
 0x294   :  { %3230 = vmatmul.mubr.bf16.gmra.mrb[84].mxu0 %v884_v39 }
 0x295   :  { %4874 = vmatmul.mubr.bf16.gmra.mrb[84].mxu1 %v884_v39  ;;  %3239 = vmatprep.mubr.bf16.mxu0 %v893_v40  ;;  %v628_v39 = vld [vmem:[#allocation5 + $0x1010] sm:$0xff] }
 0x296   :  { %4883 = vmatprep.mubr.bf16.mxu1 %v893_v40  ;;  %v636_v40 = vld [vmem:[#allocation5 + $0x1050] sm:$0xff] }
 0x297   :  { %v972_v43 = vpack.c.bf16 %v636_v40, %v628_v39  ;;  %v9684_v39 = vld [vmem:[#allocation8 + $0x684] ss:$16 sps:$4 sm:$0xff]   ;;  %v9687_v40 = vld [vmem:[#allocation8 + $0x68c] ss:$16 sps:$4 sm:$0xff]  }
 0x29c   :  { %3240 = vmatmul.mubr.bf16.gmra.mrb[88].mxu0 %v892_v45 }
 0x29d   :  { %4884 = vmatmul.mubr.bf16.gmra.mrb[88].mxu1 %v892_v45  ;;  %3249 = vmatprep.mubr.bf16.mxu0 %v901_v46  ;;  %v644_v45 = vld [vmem:[#allocation5 + $0x1090] sm:$0xff] }
 0x29e   :  { %4893 = vmatprep.mubr.bf16.mxu1 %v901_v46  ;;  %v652_v46 = vld [vmem:[#allocation5 + $0x10d0] sm:$0xff] }
 0x29f   :  { %v980_v49 = vpack.c.bf16 %v652_v46, %v644_v45  ;;  %v9690_v45 = vld [vmem:[#allocation8 + $0x6a4] ss:$16 sps:$4 sm:$0xff]   ;;  %v9693_v46 = vld [vmem:[#allocation8 + $0x6ac] ss:$16 sps:$4 sm:$0xff]  }
 0x2a4   :  { %3250 = vmatmul.mubr.bf16.gmra.mrb[92].mxu0 %v900_v53 }
 0x2a5   :  { %4894 = vmatmul.mubr.bf16.gmra.mrb[92].mxu1 %v900_v53  ;;  %3259 = vmatprep.mubr.bf16.mxu0 %v909_v54  ;;  %v677_v53 = vld [vmem:[#allocation5 + $0x1198] sm:$0xff] }
 0x2a6   :  { %4903 = vmatprep.mubr.bf16.mxu1 %v909_v54  ;;  %v685_v54 = vld [vmem:[#allocation5 + $0x11d8] sm:$0xff] }
 0x2a7   :  { %v997_v56 = vpack.c.bf16 %v685_v54, %v677_v53  ;;  %v9696_v53 = vld [vmem:[#allocation8 + $0x6c4] ss:$16 sps:$4 sm:$0xff]   ;;  %v9699_v54 = vld [vmem:[#allocation8 + $0x6cc] ss:$16 sps:$4 sm:$0xff]  }
 0x2ac   :  { %3260 = vmatmul.mubr.bf16.gmra.mrb[96].mxu0 %v908_v59 }
 0x2ad   :  { %4904 = vmatmul.mubr.bf16.gmra.mrb[96].mxu1 %v908_v59  ;;  %3269 = vmatprep.mubr.bf16.mxu0 %v917_v60  ;;  %v693_v59 = vld [vmem:[#allocation5 + $0x1218] sm:$0xff] }
 0x2ae   :  { %4913 = vmatprep.mubr.bf16.mxu1 %v917_v60  ;;  %v701_v60 = vld [vmem:[#allocation5 + $0x1258] sm:$0xff] }
 0x2af   :  { %v1005_v62 = vpack.c.bf16 %v701_v60, %v693_v59  ;;  %v9702_v59 = vld [vmem:[#allocation8 + $0x6e4] ss:$16 sps:$4 sm:$0xff]   ;;  %v9705_v60 = vld [vmem:[#allocation8 + $0x6ec] ss:$16 sps:$4 sm:$0xff]  }
 0x2b4   :  { %3270 = vmatmul.mubr.bf16.gmra.mrb[100].mxu0 %v916_v1 }
 0x2b5   :  { %4914 = vmatmul.mubr.bf16.gmra.mrb[100].mxu1 %v916_v1  ;;  %3279 = vmatprep.mubr.bf16.mxu0 %v925_v2  ;;  %v709_v1 = vld [vmem:[#allocation5 + $0x1298] sm:$0xff] }
 0x2b6   :  { %4923 = vmatprep.mubr.bf16.mxu1 %v925_v2  ;;  %v1004_v2 = vpack.c.bf16 %v700_v0, %v692_v63  ;;  %v1013_v3 = vpack.c.bf16 %v709_v1, %v709_v1  ;;  %v199_v63 = vld [vmem:[#allocation5 + $0x2a8] sm:$0xff]  ;;  %v9700_v1 = vld [vmem:[#allocation8 + $0x6e0] ss:$16 sps:$4 sm:$0xff]  }
 0x2b7   :  { %v207_v0 = vld [vmem:[#allocation5 + $0x2e8] sm:$0xff] }
 0x2bc   :  { %3280 = vmatmul.mubr.bf16.gmra.mrb[104].mxu0 %v924_v7 }
 0x2bd   :  { %4924 = vmatmul.mubr.bf16.gmra.mrb[104].mxu1 %v924_v7  ;;  %3289 = vmatprep.mubr.bf16.mxu0 %v933_v8  ;;  %v1012_v7 = vpack.c.bf16 %v708_v4, %v708_v4  ;;  %v9711_v4 = vld [vmem:[#allocation8 + $0x70c] ss:$16 sps:$4 sm:$0xff]  }
 0x2be   :  { %4933 = vmatprep.mubr.bf16.mxu1 %v933_v8  ;;  %v719_v8 = vpack.c.bf16 %v127_v6, %v119_v5  ;;  %v759_v6 = vpack.c.bf16 %v207_v0, %v199_v63  ;;  %v310_v63 = vld [vmem:[#allocation5 + $0x620] sm:$0xff] }
 0x2bf   :  { %v318_v0 = vld [vmem:[#allocation5 + $0x660] sm:$0xff] }
 0x2c4   :  { %3290 = vmatmul.mubr.bf16.gmra.mrb[108].mxu0 %v932_v13 }
 0x2c5   :  { %4934 = vmatmul.mubr.bf16.gmra.mrb[108].mxu1 %v932_v13  ;;  %3299 = vmatprep.mubr.bf16.mxu0 %v941_v14  ;;  %v718_v13 = vpack.c.bf16 %v126_v10, %v118_v9  ;;  %v198_v9 = vld [vmem:[#allocation5 + $0x2a0] sm:$0xff] }
 0x2c6   :  { %4943 = vmatprep.mubr.bf16.mxu1 %v941_v14  ;;  %v9658_v14 = vld [vmem:[#allocation8 + $0x600] ss:$16 sps:$4 sm:$0xff]  }
 0x2c7   :  { %v206_v10 = vld [vmem:[#allocation5 + $0x2e0] sm:$0xff] }
 0x2cc   :  { %3300 = vmatmul.mubr.bf16.gmra.mrb[112].mxu0 %v940_v19 }
 0x2cd   :  { %4944 = vmatmul.mubr.bf16.gmra.mrb[112].mxu1 %v940_v19  ;;  %3309 = vmatprep.mubr.bf16.mxu0 %v949_v20  ;;  %v134_v19 = vld [vmem:[#allocation5 + $0xa0] sm:$0xff] }
 0x2ce   :  { %4953 = vmatprep.mubr.bf16.mxu1 %v949_v20  ;;  %v142_v20 = vld [vmem:[#allocation5 + $0xe0] sm:$0xff] }
 0x2cf   :  { %v726_v27 = vpack.c.bf16 %v142_v20, %v134_v19  ;;  %v222_v19 = vld [vmem:[#allocation5 + $0x360] sm:$0xff]  ;;  %v9717_v20 = vld [vmem:[#allocation8 + $0x72c] ss:$16 sps:$4 sm:$0xff]  }
 0x2d4   :  { %3310 = vmatmul.mubr.bf16.gmra.mrb[116].mxu0 %v948_v25 }
 0x2d5   :  { %4954 = vmatmul.mubr.bf16.gmra.mrb[116].mxu1 %v948_v25  ;;  %3319 = vmatprep.mubr.bf16.mxu0 %v957_v26  ;;  %v9672_v25 = vld [vmem:[#allocation8 + $0x644] ss:$16 sps:$4 sm:$0xff]  }
 0x2d6   :  { %4963 = vmatprep.mubr.bf16.mxu1 %v957_v26  ;;  %v9675_v26 = vld [vmem:[#allocation8 + $0x64c] ss:$16 sps:$4 sm:$0xff]  }
 0x2dc   :  { %3320 = vmatmul.mubr.bf16.gmra.mrb[120].mxu0 %v956_v31 }
 0x2dd   :  { %4964 = vmatmul.mubr.bf16.gmra.mrb[120].mxu1 %v956_v31  ;;  %3329 = vmatprep.mubr.bf16.mxu0 %v965_v32  ;;  %v9678_v31 = vld [vmem:[#allocation8 + $0x664] ss:$16 sps:$4 sm:$0xff]  }
 0x2de   :  { %4973 = vmatprep.mubr.bf16.mxu1 %v965_v32  ;;  %v9681_v32 = vld [vmem:[#allocation8 + $0x66c] ss:$16 sps:$4 sm:$0xff]  }
 0x2e4   :  { %3330 = vmatmul.mubr.bf16.gmra.mrb[124].mxu0 %v964_v37 }
 0x2e5   :  { %4974 = vmatmul.mubr.bf16.gmra.mrb[124].mxu1 %v964_v37  ;;  %3339 = vmatprep.mubr.bf16.mxu0 %v973_v38  ;;  %v9676_v37 = vld [vmem:[#allocation8 + $0x660] ss:$16 sps:$4 sm:$0xff]  }
 0x2e6   :  { %4983 = vmatprep.mubr.bf16.mxu1 %v973_v38  ;;  %v9679_v38 = vld [vmem:[#allocation8 + $0x668] ss:$16 sps:$4 sm:$0xff]  }
 0x2ec   :  { %3340 = vmatmul.mubr.bf16.gmra.mrb[128].mxu0 %v972_v43 }
 0x2ed   :  { %4984 = vmatmul.mubr.bf16.gmra.mrb[128].mxu1 %v972_v43  ;;  %3349 = vmatprep.mubr.bf16.mxu0 %v981_v44  ;;  %v9682_v43 = vld [vmem:[#allocation8 + $0x680] ss:$16 sps:$4 sm:$0xff]  }
 0x2ee   :  { %4993 = vmatprep.mubr.bf16.mxu1 %v981_v44  ;;  %v9685_v44 = vld [vmem:[#allocation8 + $0x688] ss:$16 sps:$4 sm:$0xff]  }
 0x2f4   :  { %3350 = vmatmul.mubr.bf16.gmra.mrb[132].mxu0 %v980_v49 }
 0x2f5   :  { %4994 = vmatmul.mubr.bf16.gmra.mrb[132].mxu1 %v980_v49  ;;  %3359 = vmatprep.mubr.bf16.mxu0 %v989_v50  ;;  %v183_v49 = vld [vmem:[#allocation5 + $0x228] sm:$0xff] }
 0x2f6   :  { %5003 = vmatprep.mubr.bf16.mxu1 %v989_v50  ;;  %v191_v50 = vld [vmem:[#allocation5 + $0x268] sm:$0xff] }
 0x2fc   :  { %3360 = vmatmul.mubr.bf16.gmra.mrb[136].mxu0 %v988_v55 }
 0x2fd   :  { %5004 = vmatmul.mubr.bf16.gmra.mrb[136].mxu1 %v988_v55  ;;  %3369 = vmatprep.mubr.bf16.mxu0 %v997_v56  ;;  %v742_v55 = vpack.c.bf16 %v174_v48, %v166_v47  ;;  %v278_v47 = vld [vmem:[#allocation5 + $0x520] sm:$0xff] }
 0x2fe   :  { %5013 = vmatprep.mubr.bf16.mxu1 %v997_v56  ;;  %v751_v56 = vpack.c.bf16 %v191_v50, %v183_v49  ;;  %v286_v48 = vld [vmem:[#allocation5 + $0x560] sm:$0xff]  ;;  %v295_v49 = vld [vmem:[#allocation5 + $0x5a8] sm:$0xff] }
 0x2ff   :  { %v303_v50 = vld [vmem:[#allocation5 + $0x5e8] sm:$0xff] }
 0x304   :  { %3370 = vmatmul.mubr.bf16.gmra.mrb[140].mxu0 %v996_v61 }
 0x305   :  { %5014 = vmatmul.mubr.bf16.gmra.mrb[140].mxu1 %v996_v61  ;;  %3379 = vmatprep.mubr.bf16.mxu0 %v1005_v62  ;;  %v182_v61 = vld [vmem:[#allocation5 + $0x220] sm:$0xff] }
 0x306   :  { %5023 = vmatprep.mubr.bf16.mxu1 %v1005_v62  ;;  %v190_v62 = vld [vmem:[#allocation5 + $0x260] sm:$0xff] }
 0x307   :  { %v750_v5 = vpack.c.bf16 %v190_v62, %v182_v61 }
 0x30c   :  { %3380 = vmatmul.mubr.bf16.gmra.mrb[144].mxu0 %v1004_v2 }
 0x30d   :  { %5024 = vmatmul.mubr.bf16.gmra.mrb[144].mxu1 %v1004_v2  ;;  %3389 = vmatprep.mubr.bf16.mxu0 %v1013_v3  ;;  %v9703_v2 = vld [vmem:[#allocation8 + $0x6e8] ss:$16 sps:$4 sm:$0xff]  }
 0x30e   :  { %5033 = vmatprep.mubr.bf16.mxu1 %v1013_v3  ;;  %v9708_v3 = vld [vmem:[#allocation8 + $0x704] ss:$16 sps:$4 sm:$0xff]  }
 0x314   :  { %3390 = vmatmul.mubr.bf16.gmra.mrb[148].mxu0 %v1012_v7 }
 0x315   :  { %5034 = vmatmul.mubr.bf16.gmra.mrb[148].mxu1 %v1012_v7  ;;  %3430 = vmatprep.mubr.bf16.mxu0 %v719_v8  ;;  %v9706_v7 = vld [vmem:[#allocation8 + $0x700] ss:$16 sps:$4 sm:$0xff]  }
 0x316   :  { %5074 = vmatprep.mubr.bf16.mxu1 %v719_v8  ;;  %v9709_v8 = vld [vmem:[#allocation8 + $0x708] ss:$16 sps:$4 sm:$0xff]  }
 0x31c   :  { %3431 = vmatmul.mubr.bf16.vlgmr.msra.gmra.mrb[0].mxu0 %v718_v13 }
 0x31d   :  { %5075 = vmatmul.mubr.bf16.vlgmr.msra.gmra.mrb[0].mxu1 %v718_v13  ;;  %3810 = vmatpush1.bf16.msra.mxu0 %v9658_v14  ;;  %v758_v13 = vpack.c.bf16 %v206_v10, %v198_v9  ;;  %v767_v14 = vpack.c.bf16 %v223_v12, %v215_v11  ;;  %v334_v9 = vld [vmem:[#allocation5 + $0x6e0] sm:$0xff]  ;;  %v9735_v10 = vld [vmem:[#allocation8 + $0x78c] ss:$16 sps:$4 sm:$0xff]  }
 0x31e   :  { %5454 = vmatpush1.bf16.msra.mxu1 %v9661_v15  ;;  %3440 = vmatprep.mubr.bf16.mxu0 %v727_v16  ;;  %v9712_v15 = vld [vmem:[#allocation8 + $0x720] ss:$16 sps:$4 sm:$0xff]   ;;  %v343_v11 = vld [vmem:[#allocation5 + $0x728] sm:$0xff] }
 0x31f   :  { %5084 = vmatprep.mubr.bf16.mxu1 %v727_v16  ;;  %3811 = vmatprep.subr.bf16.mxu0 %v9666_v17  ;;  %v9714_v16 = vld [vmem:[#allocation8 + $0x724] ss:$16 sps:$4 sm:$0xff]   ;;  %v9715_v17 = vld [vmem:[#allocation8 + $0x728] ss:$16 sps:$4 sm:$0xff]  }
 0x320   :  { %5455 = vmatprep.subr.bf16.mxu1 %v9669_v18  ;;  %v214_v18 = vld [vmem:[#allocation5 + $0x320] sm:$0xff]  ;;  %v351_v12 = vld [vmem:[#allocation5 + $0x768] sm:$0xff] }
 0x321   :  { %3812 = vmatpush1.bf16.msra.mxu0 %v9664_v22  ;;  %v239_v22 = vld [vmem:[#allocation5 + $0x3e8] sm:$0xff] }
 0x322   :  { %5456 = vmatpush1.bf16.msra.mxu1 %v9667_v23  ;;  %3813 = vmatprep.subr.bf16.mxu0 %v9672_v25  ;;  %v766_v23 = vpack.c.bf16 %v222_v19, %v214_v18  ;;  %v775_v24 = vpack.c.bf16 %v239_v22, %v231_v21  ;;  %v230_v25 = vld [vmem:[#allocation5 + $0x3a0] sm:$0xff]  ;;  %v367_v18 = vld [vmem:[#allocation5 + $0x7e8] sm:$0xff] }
 0x323   :  { %5457 = vmatprep.subr.bf16.mxu1 %v9675_v26  ;;  %v238_v26 = vld [vmem:[#allocation5 + $0x3e0] sm:$0xff] }
 0x324   :  { %3441 = vmatmul.mubr.bf16.gmra.mrb[4].mxu0 %v726_v27  ;;  %v358_v21 = vld [vmem:[#allocation5 + $0x7a0] sm:$0xff] }
 0x325   :  { %5085 = vmatmul.mubr.bf16.gmra.mrb[4].mxu1 %v726_v27  ;;  %3450 = vmatprep.mubr.bf16.mxu0 %v735_v28  ;;  %v247_v27 = vld [vmem:[#allocation5 + $0x428] sm:$0xff]  ;;  %v366_v22 = vld [vmem:[#allocation5 + $0x7e0] sm:$0xff] }
 0x326   :  { %5094 = vmatprep.mubr.bf16.mxu1 %v735_v28  ;;  %3814 = vmatpush1.bf16.msra.mxu0 %v9670_v29  ;;  %v255_v28 = vld [vmem:[#allocation5 + $0x468] sm:$0xff]  ;;  %v774_v29 = vpack.c.bf16 %v238_v26, %v230_v25 }
 0x327   :  { %5458 = vmatpush1.bf16.msra.mxu1 %v9673_v30  ;;  %3815 = vmatprep.subr.bf16.mxu0 %v9678_v31  ;;  %v783_v30 = vpack.c.bf16 %v255_v28, %v247_v27  ;;  %v9718_v31 = vld [vmem:[#allocation8 + $0x740] ss:$16 sps:$4 sm:$0xff]   ;;  %v375_v25 = vld [vmem:[#allocation5 + $0x828] sm:$0xff]  ;;  %v838_v27 = vpack.c.bf16 %v366_v22, %v358_v21 }
 0x328   :  { %5459 = vmatprep.subr.bf16.mxu1 %v9681_v32  ;;  %v9720_v32 = vld [vmem:[#allocation8 + $0x744] ss:$16 sps:$4 sm:$0xff]   ;;  %v383_v26 = vld [vmem:[#allocation5 + $0x868] sm:$0xff] }
 0x329   :  { %v847_v28 = vpack.c.bf16 %v383_v26, %v375_v25  ;;  %v519_v25 = vld [vmem:[#allocation5 + $0xca8] sm:$0xff] }
 0x32a   :  { %3816 = vmatpush1.bf16.msra.mxu0 %v9676_v37  ;;  %v782_v37 = vpack.c.bf16 %v254_v34, %v246_v33  ;;  %v391_v33 = vld [vmem:[#allocation5 + $0x8a8] sm:$0xff] }
 0x32b   :  { %5460 = vmatpush1.bf16.msra.mxu1 %v9679_v38  ;;  %3817 = vmatprep.subr.bf16.mxu0 %v9684_v39  ;;  %v791_v38 = vpack.c.bf16 %v271_v36, %v263_v35  ;;  %v9721_v39 = vld [vmem:[#allocation8 + $0x748] ss:$16 sps:$4 sm:$0xff]  }
 0x32c   :  { %5461 = vmatprep.subr.bf16.mxu1 %v9687_v40  ;;  %3451 = vmatmul.mubr.bf16.gmra.mrb[8].mxu0 %v734_v41  ;;  %v9723_v40 = vld [vmem:[#allocation8 + $0x74c] ss:$16 sps:$4 sm:$0xff]  }
 0x32d   :  { %5095 = vmatmul.mubr.bf16.gmra.mrb[8].mxu1 %v734_v41  ;;  %3460 = vmatprep.mubr.bf16.mxu0 %v743_v42  ;;  %v262_v41 = vld [vmem:[#allocation5 + $0x4a0] sm:$0xff]  ;;  %v399_v34 = vld [vmem:[#allocation5 + $0x8e8] sm:$0xff] }
 0x32e   :  { %5104 = vmatprep.mubr.bf16.mxu1 %v743_v42  ;;  %3818 = vmatpush1.bf16.msra.mxu0 %v9682_v43  ;;  %v270_v42 = vld [vmem:[#allocation5 + $0x4e0] sm:$0xff]  ;;  %v279_v43 = vld [vmem:[#allocation5 + $0x528] sm:$0xff]  ;;  %v855_v36 = vpack.c.bf16 %v399_v34, %v391_v33 }
 0x32f   :  { %5462 = vmatpush1.bf16.msra.mxu1 %v9685_v44  ;;  %3819 = vmatprep.subr.bf16.mxu0 %v9690_v45  ;;  %v287_v44 = vld [vmem:[#allocation5 + $0x568] sm:$0xff]  ;;  %v790_v45 = vpack.c.bf16 %v270_v42, %v262_v41 }
 0x330   :  { %5463 = vmatprep.subr.bf16.mxu1 %v9693_v46  ;;  %v799_v46 = vpack.c.bf16 %v287_v44, %v279_v43  ;;  %v9742_v43 = vld [vmem:[#allocation8 + $0x7c0] ss:$16 sps:$4 sm:$0xff]   ;;  %v9744_v44 = vld [vmem:[#allocation8 + $0x7c4] ss:$16 sps:$4 sm:$0xff]   ;;  %v527_v26 = vld [vmem:[#allocation5 + $0xce8] sm:$0xff] }
 0x332   :  { %3820 = vmatpush1.bf16.msra.mxu0 %v9688_v51  ;;  %v798_v51 = vpack.c.bf16 %v286_v48, %v278_v47  ;;  %v414_v47 = vld [vmem:[#allocation5 + $0x960] sm:$0xff]  ;;  %v9747_v48 = vld [vmem:[#allocation8 + $0x7cc] ss:$16 sps:$4 sm:$0xff]  }
 0x333   :  { %5464 = vmatpush1.bf16.msra.mxu1 %v9691_v52  ;;  %3821 = vmatprep.subr.bf16.mxu0 %v9696_v53  ;;  %v807_v52 = vpack.c.bf16 %v303_v50, %v295_v49  ;;  %v9724_v53 = vld [vmem:[#allocation8 + $0x760] ss:$16 sps:$4 sm:$0xff]   ;;  %v423_v49 = vld [vmem:[#allocation5 + $0x9a8] sm:$0xff] }
 0x334   :  { %5465 = vmatprep.subr.bf16.mxu1 %v9699_v54  ;;  %3461 = vmatmul.mubr.bf16.gmra.mrb[12].mxu0 %v742_v55  ;;  %v9726_v54 = vld [vmem:[#allocation8 + $0x764] ss:$16 sps:$4 sm:$0xff]   ;;  %v431_v50 = vld [vmem:[#allocation5 + $0x9e8] sm:$0xff] }
 0x335   :  { %5105 = vmatmul.mubr.bf16.gmra.mrb[12].mxu1 %v742_v55  ;;  %3470 = vmatprep.mubr.bf16.mxu0 %v751_v56  ;;  %v9727_v55 = vld [vmem:[#allocation8 + $0x768] ss:$16 sps:$4 sm:$0xff]  }
 0x336   :  { %5114 = vmatprep.mubr.bf16.mxu1 %v751_v56  ;;  %3822 = vmatpush1.bf16.msra.mxu0 %v9694_v57  ;;  %v294_v56 = vld [vmem:[#allocation5 + $0x5a0] sm:$0xff] }
 0x337   :  { %5466 = vmatpush1.bf16.msra.mxu1 %v9697_v58  ;;  %3823 = vmatprep.subr.bf16.mxu0 %v9702_v59  ;;  %v302_v57 = vld [vmem:[#allocation5 + $0x5e0] sm:$0xff]  ;;  %v9729_v58 = vld [vmem:[#allocation8 + $0x76c] ss:$16 sps:$4 sm:$0xff]  }
 0x338   :  { %5467 = vmatprep.subr.bf16.mxu1 %v9705_v60  ;;  %v311_v59 = vld [vmem:[#allocation5 + $0x628] sm:$0xff]  ;;  %v806_v61 = vpack.c.bf16 %v302_v57, %v294_v56 }
 0x339   :  { %v319_v60 = vld [vmem:[#allocation5 + $0x668] sm:$0xff] }
 0x33a   :  { %3824 = vmatpush1.bf16.msra.mxu0 %v9700_v1  ;;  %v815_v62 = vpack.c.bf16 %v319_v60, %v311_v59  ;;  %v327_v1 = vld [vmem:[#allocation5 + $0x6a8] sm:$0xff]  ;;  %v438_v59 = vld [vmem:[#allocation5 + $0xa20] sm:$0xff] }
 0x33b   :  { %5468 = vmatpush1.bf16.msra.mxu1 %v9703_v2  ;;  %3825 = vmatprep.subr.bf16.mxu0 %v9708_v3  ;;  %v335_v2 = vld [vmem:[#allocation5 + $0x6e8] sm:$0xff]  ;;  %v814_v3 = vpack.c.bf16 %v318_v0, %v310_v63  ;;  %v9748_v60 = vld [vmem:[#allocation8 + $0x7e0] ss:$16 sps:$4 sm:$0xff]  }
 0x33c   :  { %5469 = vmatprep.subr.bf16.mxu1 %v9711_v4  ;;  %3471 = vmatmul.mubr.bf16.gmra.mrb[16].mxu0 %v750_v5  ;;  %v823_v4 = vpack.c.bf16 %v335_v2, %v327_v1  ;;  %v447_v56 = vld [vmem:[#allocation5 + $0xa68] sm:$0xff] }
 0x33d   :  { %5115 = vmatmul.mubr.bf16.gmra.mrb[16].mxu1 %v750_v5  ;;  %3480 = vmatprep.mubr.bf16.mxu0 %v759_v6  ;;  %v9730_v5 = vld [vmem:[#allocation8 + $0x780] ss:$16 sps:$4 sm:$0xff]   ;;  %v9751_v63 = vld [vmem:[#allocation8 + $0x7e8] ss:$16 sps:$4 sm:$0xff]   ;;  %v9753_v0 = vld [vmem:[#allocation8 + $0x7ec] ss:$16 sps:$4 sm:$0xff]  }
 0x33e   :  { %5124 = vmatprep.mubr.bf16.mxu1 %v759_v6  ;;  %3826 = vmatpush1.bf16.msra.mxu0 %v9706_v7  ;;  %v9732_v6 = vld [vmem:[#allocation8 + $0x784] ss:$16 sps:$4 sm:$0xff]   ;;  %v9733_v7 = vld [vmem:[#allocation8 + $0x788] ss:$16 sps:$4 sm:$0xff]  }
 0x33f   :  { %5470 = vmatpush1.bf16.msra.mxu1 %v9709_v8  ;;  %3827 = vmatprep.subr.bf16.mxu0 %v9714_v16  ;;  %v326_v8 = vld [vmem:[#allocation5 + $0x6a0] sm:$0xff]  ;;  %v455_v1 = vld [vmem:[#allocation5 + $0xaa8] sm:$0xff] }
 0x340   :  { %5471 = vmatprep.subr.bf16.mxu1 %v9717_v20  ;;  %v350_v16 = vld [vmem:[#allocation5 + $0x760] sm:$0xff]  ;;  %v463_v2 = vld [vmem:[#allocation5 + $0xae8] sm:$0xff] }
 0x342   :  { %3828 = vmatpush1.bf16.msra.mxu0 %v9712_v15  ;;  %v342_v15 = vld [vmem:[#allocation5 + $0x720] sm:$0xff] }
 0x343   :  { %5472 = vmatpush1.bf16.msra.mxu1 %v9715_v17  ;;  %3829 = vmatprep.subr.bf16.mxu0 %v9720_v32  ;;  %v359_v17 = vld [vmem:[#allocation5 + $0x7a8] sm:$0xff]  ;;  %v830_v19 = vpack.c.bf16 %v350_v16, %v342_v15  ;;  %v382_v32 = vld [vmem:[#allocation5 + $0x860] sm:$0xff] }
 0x344   :  { %3481 = vmatmul.mubr.bf16.gmra.mrb[20].mxu0 %v758_v13  ;;  %5473 = vmatprep.subr.bf16.mxu1 %v9723_v40  ;;  %v839_v20 = vpack.c.bf16 %v367_v18, %v359_v17  ;;  %v415_v40 = vld [vmem:[#allocation5 + $0x968] sm:$0xff]  ;;  %v486_v17 = vld [vmem:[#allocation5 + $0xba0] sm:$0xff] }
 0x345   :  { %5125 = vmatmul.mubr.bf16.gmra.mrb[20].mxu1 %v758_v13  ;;  %3490 = vmatprep.mubr.bf16.mxu0 %v767_v14  ;;  %v822_v13 = vpack.c.bf16 %v334_v9, %v326_v8  ;;  %v479_v8 = vld [vmem:[#allocation5 + $0xb68] sm:$0xff]  ;;  %v494_v18 = vld [vmem:[#allocation5 + $0xbe0] sm:$0xff] }
 0x346   :  { %5134 = vmatprep.mubr.bf16.mxu1 %v767_v14  ;;  %3830 = vmatpush1.bf16.msra.mxu0 %v9718_v31  ;;  %v831_v14 = vpack.c.bf16 %v351_v12, %v343_v11  ;;  %v374_v31 = vld [vmem:[#allocation5 + $0x820] sm:$0xff]  ;;  %v902_v21 = vpack.c.bf16 %v494_v18, %v486_v17 }
 0x347   :  { %5474 = vmatpush1.bf16.msra.mxu1 %v9721_v39  ;;  %3831 = vmatprep.subr.bf16.mxu0 %v9726_v54  ;;  %v846_v35 = vpack.c.bf16 %v382_v32, %v374_v31  ;;  %v407_v39 = vld [vmem:[#allocation5 + $0x928] sm:$0xff]  ;;  %v430_v54 = vld [vmem:[#allocation5 + $0x9e0] sm:$0xff] }
 0x348   :  { %5475 = vmatprep.subr.bf16.mxu1 %v9729_v58  ;;  %v863_v42 = vpack.c.bf16 %v415_v40, %v407_v39  ;;  %v470_v11 = vld [vmem:[#allocation5 + $0xb20] sm:$0xff]  ;;  %v535_v31 = vld [vmem:[#allocation5 + $0xd28] sm:$0xff] }
 0x349   :  { %v478_v12 = vld [vmem:[#allocation5 + $0xb60] sm:$0xff]  ;;  %v543_v32 = vld [vmem:[#allocation5 + $0xd68] sm:$0xff] }
 0x34a   :  { %3832 = vmatpush1.bf16.msra.mxu0 %v9724_v53  ;;  %v422_v53 = vld [vmem:[#allocation5 + $0x9a0] sm:$0xff]  ;;  %v894_v15 = vpack.c.bf16 %v478_v12, %v470_v11  ;;  %v927_v34 = vpack.c.bf16 %v543_v32, %v535_v31 }
 0x34b   :  { %5476 = vmatpush1.bf16.msra.mxu1 %v9727_v55  ;;  %3833 = vmatprep.subr.bf16.mxu0 %v9732_v6  ;;  %v439_v55 = vld [vmem:[#allocation5 + $0xa28] sm:$0xff]  ;;  %v870_v57 = vpack.c.bf16 %v430_v54, %v422_v53  ;;  %v462_v6 = vld [vmem:[#allocation5 + $0xae0] sm:$0xff] }
 0x34c   :  { %3491 = vmatmul.mubr.bf16.gmra.mrb[24].mxu0 %v766_v23  ;;  %5477 = vmatprep.subr.bf16.mxu1 %v9735_v10  ;;  %v879_v58 = vpack.c.bf16 %v447_v56, %v439_v55  ;;  %v582_v53 = vld [vmem:[#allocation5 + $0xea0] sm:$0xff]  ;;  %v599_v55 = vld [vmem:[#allocation5 + $0xf28] sm:$0xff] }
 0x34d   :  { %5135 = vmatmul.mubr.bf16.gmra.mrb[24].mxu1 %v766_v23  ;;  %3500 = vmatprep.mubr.bf16.mxu0 %v775_v24  ;;  %v9736_v23 = vld [vmem:[#allocation8 + $0x7a0] ss:$16 sps:$4 sm:$0xff]   ;;  %v607_v56 = vld [vmem:[#allocation5 + $0xf68] sm:$0xff] }
 0x34e   :  { %5144 = vmatprep.mubr.bf16.mxu1 %v775_v24  ;;  %3834 = vmatpush1.bf16.msra.mxu0 %v9730_v5  ;;  %v9738_v24 = vld [vmem:[#allocation8 + $0x7a4] ss:$16 sps:$4 sm:$0xff]  }
 0x34f   :  { %5478 = vmatpush1.bf16.msra.mxu1 %v9733_v7  ;;  %3835 = vmatprep.subr.bf16.mxu0 %v9738_v24  ;;  %v454_v5 = vld [vmem:[#allocation5 + $0xaa0] sm:$0xff]  ;;  %v471_v7 = vld [vmem:[#allocation5 + $0xb28] sm:$0xff] }
 0x350   :  { %v886_v9 = vpack.c.bf16 %v462_v6, %v454_v5  ;;  %v895_v10 = vpack.c.bf16 %v479_v8, %v471_v7  ;;  %v510_v24 = vld [vmem:[#allocation5 + $0xc60] sm:$0xff] }
 0x351   :  { %v590_v54 = vld [vmem:[#allocation5 + $0xee0] sm:$0xff] }
 0x352   :  { %3836 = vmatpush1.bf16.msra.mxu0 %v9736_v23  ;;  %v502_v23 = vld [vmem:[#allocation5 + $0xc20] sm:$0xff] }
 0x353   :  { %3837 = vmatprep.subr.bf16.mxu0 %v9744_v44  ;;  %v575_v44 = vld [vmem:[#allocation5 + $0xe68] sm:$0xff]  ;;  %v630_v7 = vld [vmem:[#allocation5 + $0x1020] sm:$0xff] }
 0x354   :  { %3501 = vmatmul.mubr.bf16.gmra.mrb[28].mxu0 %v774_v29  ;;  %v638_v8 = vld [vmem:[#allocation5 + $0x1060] sm:$0xff] }
 0x355   :  { %5145 = vmatmul.mubr.bf16.gmra.mrb[28].mxu1 %v774_v29  ;;  %3510 = vmatprep.mubr.bf16.mxu0 %v783_v30  ;;  %v9739_v29 = vld [vmem:[#allocation8 + $0x7a8] ss:$16 sps:$4 sm:$0xff]   ;;  %v974_v11 = vpack.c.bf16 %v638_v8, %v630_v7  ;;  %v694_v31 = vld [vmem:[#allocation5 + $0x1220] sm:$0xff]  ;;  %v200_v7 = vld [vmem:[#allocation5 + $0x2b0] sm:$0xff] }
 0x356   :  { %5154 = vmatprep.mubr.bf16.mxu1 %v783_v30  ;;  %v9741_v30 = vld [vmem:[#allocation8 + $0x7ac] ss:$16 sps:$4 sm:$0xff]   ;;  %3838 = vmatpush1.bf16.msra.mxu0 %v9742_v43  ;;  %v702_v32 = vld [vmem:[#allocation5 + $0x1260] sm:$0xff]  ;;  %v208_v8 = vld [vmem:[#allocation5 + $0x2f0] sm:$0xff] }
 0x357   :  { %5479 = vmatprep.subr.bf16.mxu1 %v9741_v30  ;;  %v526_v30 = vld [vmem:[#allocation5 + $0xce0] sm:$0xff]  ;;  %v567_v43 = vld [vmem:[#allocation5 + $0xe28] sm:$0xff] }
 0x358   :  { %5480 = vmatpush1.bf16.msra.mxu1 %v9739_v29  ;;  %v518_v29 = vld [vmem:[#allocation5 + $0xca0] sm:$0xff] }
 0x359   :  { %5481 = vmatprep.subr.bf16.mxu1 %v9747_v48  ;;  %v918_v33 = vpack.c.bf16 %v526_v30, %v518_v29  ;;  %v574_v48 = vld [vmem:[#allocation5 + $0xe60] sm:$0xff] }
 0x35c   :  { %3511 = vmatmul.mubr.bf16.gmra.mrb[32].mxu0 %v782_v37 }
 0x35d   :  { %5155 = vmatmul.mubr.bf16.gmra.mrb[32].mxu1 %v782_v37  ;;  %3520 = vmatprep.mubr.bf16.mxu0 %v791_v38  ;;  %v390_v37 = vld [vmem:[#allocation5 + $0x8a0] sm:$0xff] }
 0x35e   :  { %5164 = vmatprep.mubr.bf16.mxu1 %v791_v38  ;;  %v398_v38 = vld [vmem:[#allocation5 + $0x8e0] sm:$0xff] }
 0x35f   :  { %v854_v41 = vpack.c.bf16 %v398_v38, %v390_v37  ;;  %v551_v37 = vld [vmem:[#allocation5 + $0xda8] sm:$0xff] }
 0x360   :  { %v559_v38 = vld [vmem:[#allocation5 + $0xde8] sm:$0xff] }
 0x361   :  { %v935_v40 = vpack.c.bf16 %v559_v38, %v551_v37  ;;  %v121_v37 = vld [vmem:[#allocation5 + $0x38] sm:$0xff] }
 0x362   :  { %v129_v38 = vld [vmem:[#allocation5 + $0x78] sm:$0xff] }
 0x364   :  { %3521 = vmatmul.mubr.bf16.gmra.mrb[36].mxu0 %v790_v45 }
 0x365   :  { %5165 = vmatmul.mubr.bf16.gmra.mrb[36].mxu1 %v790_v45  ;;  %3530 = vmatprep.mubr.bf16.mxu0 %v799_v46  ;;  %v9745_v45 = vld [vmem:[#allocation8 + $0x7c8] ss:$16 sps:$4 sm:$0xff]  }
 0x366   :  { %5174 = vmatprep.mubr.bf16.mxu1 %v799_v46  ;;  %v406_v46 = vld [vmem:[#allocation5 + $0x920] sm:$0xff]  ;;  %5482 = vmatpush1.bf16.msra.mxu1 %v9745_v45 }
 0x367   :  { %5483 = vmatprep.subr.bf16.mxu1 %v9753_v0 }
 0x36a   :  { %5484 = vmatpush1.bf16.msra.mxu1 %v9751_v63 }
 0x36c   :  { %3531 = vmatmul.mubr.bf16.gmra.mrb[40].mxu0 %v798_v51 }
 0x36d   :  { %5175 = vmatmul.mubr.bf16.gmra.mrb[40].mxu1 %v798_v51  ;;  %3540 = vmatprep.mubr.bf16.mxu0 %v807_v52  ;;  %v862_v51 = vpack.c.bf16 %v414_v47, %v406_v46  ;;  %v943_v46 = vpack.c.bf16 %v575_v44, %v567_v43  ;;  %v566_v47 = vld [vmem:[#allocation5 + $0xe20] sm:$0xff]  ;;  %v137_v43 = vld [vmem:[#allocation5 + $0xb8] sm:$0xff] }
 0x36e   :  { %5184 = vmatprep.mubr.bf16.mxu1 %v807_v52  ;;  %v871_v52 = vpack.c.bf16 %v431_v50, %v423_v49  ;;  %v583_v49 = vld [vmem:[#allocation5 + $0xea8] sm:$0xff]  ;;  %v145_v44 = vld [vmem:[#allocation5 + $0xf8] sm:$0xff] }
 0x36f   :  { %v591_v50 = vld [vmem:[#allocation5 + $0xee8] sm:$0xff] }
 0x374   :  { %3541 = vmatmul.mubr.bf16.gmra.mrb[44].mxu0 %v806_v61 }
 0x375   :  { %5185 = vmatmul.mubr.bf16.gmra.mrb[44].mxu1 %v806_v61  ;;  %3550 = vmatprep.mubr.bf16.mxu0 %v815_v62  ;;  %v9750_v61 = vld [vmem:[#allocation8 + $0x7e4] ss:$16 sps:$4 sm:$0xff]  }
 0x376   :  { %5194 = vmatprep.mubr.bf16.mxu1 %v815_v62  ;;  %v446_v62 = vld [vmem:[#allocation5 + $0xa60] sm:$0xff]  ;;  %3839 = vmatprep.subr.bf16.mxu0 %v9750_v61  ;;  %v615_v61 = vld [vmem:[#allocation5 + $0xfa8] sm:$0xff] }
 0x377   :  { %3840 = vmatpush1.bf16.msra.mxu0 %v9748_v60  ;;  %v606_v60 = vld [vmem:[#allocation5 + $0xf60] sm:$0xff] }
 0x37c   :  { %3551 = vmatmul.mubr.bf16.gmra.mrb[48].mxu0 %v814_v3 }
 0x37d   :  { %5195 = vmatmul.mubr.bf16.gmra.mrb[48].mxu1 %v814_v3  ;;  %3560 = vmatprep.mubr.bf16.mxu0 %v823_v4  ;;  %v878_v3 = vpack.c.bf16 %v446_v62, %v438_v59  ;;  %v598_v59 = vld [vmem:[#allocation5 + $0xf20] sm:$0xff]  ;;  %v623_v62 = vld [vmem:[#allocation5 + $0xfe8] sm:$0xff] }
 0x37e   :  { %5204 = vmatprep.mubr.bf16.mxu1 %v823_v4  ;;  %v887_v4 = vpack.c.bf16 %v463_v2, %v455_v1  ;;  %v958_v63 = vpack.c.bf16 %v606_v60, %v598_v59  ;;  %v967_v0 = vpack.c.bf16 %v623_v62, %v615_v61  ;;  %v614_v1 = vld [vmem:[#allocation5 + $0xfa0] sm:$0xff]  ;;  %v168_v59 = vld [vmem:[#allocation5 + $0x1b0] sm:$0xff]  ;;  %v185_v61 = vld [vmem:[#allocation5 + $0x238] sm:$0xff] }
 0x37f   :  { %v622_v2 = vld [vmem:[#allocation5 + $0xfe0] sm:$0xff]  ;;  %v176_v60 = vld [vmem:[#allocation5 + $0x1f0] sm:$0xff]  ;;  %v193_v62 = vld [vmem:[#allocation5 + $0x278] sm:$0xff] }
 0x380   :  { %v966_v5 = vpack.c.bf16 %v622_v2, %v614_v1  ;;  %v184_v1 = vld [vmem:[#allocation5 + $0x230] sm:$0xff] }
 0x381   :  { %v192_v2 = vld [vmem:[#allocation5 + $0x270] sm:$0xff] }
 0x384   :  { %3561 = vmatmul.mubr.bf16.gmra.mrb[52].mxu0 %v822_v13 }
 0x385   :  { %5205 = vmatmul.mubr.bf16.gmra.mrb[52].mxu1 %v822_v13  ;;  %3570 = vmatprep.mubr.bf16.mxu0 %v831_v14  ;;  %v487_v13 = vld [vmem:[#allocation5 + $0xba8] sm:$0xff] }
 0x386   :  { %5214 = vmatprep.mubr.bf16.mxu1 %v831_v14  ;;  %v495_v14 = vld [vmem:[#allocation5 + $0xbe8] sm:$0xff] }
 0x387   :  { %v903_v16 = vpack.c.bf16 %v495_v14, %v487_v13  ;;  %v646_v13 = vld [vmem:[#allocation5 + $0x10a0] sm:$0xff] }
 0x388   :  { %v654_v14 = vld [vmem:[#allocation5 + $0x10e0] sm:$0xff] }
 0x389   :  { %v982_v17 = vpack.c.bf16 %v654_v14, %v646_v13  ;;  %v216_v13 = vld [vmem:[#allocation5 + $0x330] sm:$0xff] }
 0x38a   :  { %v224_v14 = vld [vmem:[#allocation5 + $0x370] sm:$0xff] }
 0x38c   :  { %3571 = vmatmul.mubr.bf16.gmra.mrb[56].mxu0 %v830_v19 }
 0x38d   :  { %5215 = vmatmul.mubr.bf16.gmra.mrb[56].mxu1 %v830_v19  ;;  %3580 = vmatprep.mubr.bf16.mxu0 %v839_v20  ;;  %v503_v19 = vld [vmem:[#allocation5 + $0xc28] sm:$0xff] }
 0x38e   :  { %5224 = vmatprep.mubr.bf16.mxu1 %v839_v20  ;;  %v511_v20 = vld [vmem:[#allocation5 + $0xc68] sm:$0xff] }
 0x38f   :  { %v911_v22 = vpack.c.bf16 %v511_v20, %v503_v19  ;;  %v662_v19 = vld [vmem:[#allocation5 + $0x1120] sm:$0xff] }
 0x390   :  { %v670_v20 = vld [vmem:[#allocation5 + $0x1160] sm:$0xff] }
 0x394   :  { %3581 = vmatmul.mubr.bf16.gmra.mrb[60].mxu0 %v838_v27 }
 0x395   :  { %5225 = vmatmul.mubr.bf16.gmra.mrb[60].mxu1 %v838_v27  ;;  %3590 = vmatprep.mubr.bf16.mxu0 %v847_v28  ;;  %v910_v27 = vpack.c.bf16 %v510_v24, %v502_v23  ;;  %v990_v23 = vpack.c.bf16 %v670_v20, %v662_v19  ;;  %v232_v19 = vld [vmem:[#allocation5 + $0x3b0] sm:$0xff] }
 0x396   :  { %5234 = vmatprep.mubr.bf16.mxu1 %v847_v28  ;;  %v919_v28 = vpack.c.bf16 %v527_v26, %v519_v25  ;;  %v678_v25 = vld [vmem:[#allocation5 + $0x11a0] sm:$0xff]  ;;  %v240_v20 = vld [vmem:[#allocation5 + $0x3f0] sm:$0xff] }
 0x397   :  { %v686_v26 = vld [vmem:[#allocation5 + $0x11e0] sm:$0xff] }
 0x398   :  { %v998_v29 = vpack.c.bf16 %v686_v26, %v678_v25  ;;  %v248_v25 = vld [vmem:[#allocation5 + $0x430] sm:$0xff] }
 0x399   :  { %v256_v26 = vld [vmem:[#allocation5 + $0x470] sm:$0xff] }
 0x39c   :  { %3591 = vmatmul.mubr.bf16.gmra.mrb[64].mxu0 %v846_v35 }
 0x39d   :  { %5235 = vmatmul.mubr.bf16.gmra.mrb[64].mxu1 %v846_v35  ;;  %3600 = vmatprep.mubr.bf16.mxu0 %v855_v36  ;;  %v534_v35 = vld [vmem:[#allocation5 + $0xd20] sm:$0xff] }
 0x39e   :  { %5244 = vmatprep.mubr.bf16.mxu1 %v855_v36  ;;  %v542_v36 = vld [vmem:[#allocation5 + $0xd60] sm:$0xff] }
 0x39f   :  { %v926_v39 = vpack.c.bf16 %v542_v36, %v534_v35  ;;  %v710_v36 = vld [vmem:[#allocation5 + $0x12a0] sm:$0xff] }
 0x3a4   :  { %3601 = vmatmul.mubr.bf16.gmra.mrb[68].mxu0 %v854_v41 }
 0x3a5   :  { %5245 = vmatmul.mubr.bf16.gmra.mrb[68].mxu1 %v854_v41  ;;  %3610 = vmatprep.mubr.bf16.mxu0 %v863_v42  ;;  %v550_v41 = vld [vmem:[#allocation5 + $0xda0] sm:$0xff] }
 0x3a6   :  { %5254 = vmatprep.mubr.bf16.mxu1 %v863_v42  ;;  %v558_v42 = vld [vmem:[#allocation5 + $0xde0] sm:$0xff] }
 0x3a7   :  { %v934_v45 = vpack.c.bf16 %v558_v42, %v550_v41  ;;  %v120_v41 = vld [vmem:[#allocation5 + $0x30] sm:$0xff] }
 0x3a8   :  { %v128_v42 = vld [vmem:[#allocation5 + $0x70] sm:$0xff] }
 0x3ac   :  { %3611 = vmatmul.mubr.bf16.gmra.mrb[72].mxu0 %v862_v51 }
 0x3ad   :  { %5255 = vmatmul.mubr.bf16.gmra.mrb[72].mxu1 %v862_v51  ;;  %3620 = vmatprep.mubr.bf16.mxu0 %v871_v52  ;;  %v942_v51 = vpack.c.bf16 %v574_v48, %v566_v47  ;;  %v136_v47 = vld [vmem:[#allocation5 + $0xb0] sm:$0xff] }
 0x3ae   :  { %5264 = vmatprep.mubr.bf16.mxu1 %v871_v52  ;;  %v951_v52 = vpack.c.bf16 %v591_v50, %v583_v49  ;;  %v144_v48 = vld [vmem:[#allocation5 + $0xf0] sm:$0xff]  ;;  %v153_v49 = vld [vmem:[#allocation5 + $0x138] sm:$0xff] }
 0x3af   :  { %v161_v50 = vld [vmem:[#allocation5 + $0x178] sm:$0xff] }
 0x3b4   :  { %3621 = vmatmul.mubr.bf16.gmra.mrb[76].mxu0 %v870_v57 }
 0x3b5   :  { %5265 = vmatmul.mubr.bf16.gmra.mrb[76].mxu1 %v870_v57  ;;  %3630 = vmatprep.mubr.bf16.mxu0 %v879_v58  ;;  %v950_v57 = vpack.c.bf16 %v590_v54, %v582_v53  ;;  %v152_v53 = vld [vmem:[#allocation5 + $0x130] sm:$0xff] }
 0x3b6   :  { %5274 = vmatprep.mubr.bf16.mxu1 %v879_v58  ;;  %v959_v58 = vpack.c.bf16 %v607_v56, %v599_v55  ;;  %v160_v54 = vld [vmem:[#allocation5 + $0x170] sm:$0xff]  ;;  %v169_v55 = vld [vmem:[#allocation5 + $0x1b8] sm:$0xff] }
 0x3b7   :  { %v177_v56 = vld [vmem:[#allocation5 + $0x1f8] sm:$0xff] }
 0x3bc   :  { %3631 = vmatmul.mubr.bf16.gmra.mrb[80].mxu0 %v878_v3 }
 0x3bd   :  { %5275 = vmatmul.mubr.bf16.gmra.mrb[80].mxu1 %v878_v3  ;;  %3640 = vmatprep.mubr.bf16.mxu0 %v887_v4  ;;  %v631_v3 = vld [vmem:[#allocation5 + $0x1028] sm:$0xff] }
 0x3be   :  { %5284 = vmatprep.mubr.bf16.mxu1 %v887_v4  ;;  %v639_v4 = vld [vmem:[#allocation5 + $0x1068] sm:$0xff] }
 0x3bf   :  { %v975_v6 = vpack.c.bf16 %v639_v4, %v631_v3  ;;  %v201_v3 = vld [vmem:[#allocation5 + $0x2b8] sm:$0xff] }
 0x3c0   :  { %v209_v4 = vld [vmem:[#allocation5 + $0x2f8] sm:$0xff] }
 0x3c4   :  { %3641 = vmatmul.mubr.bf16.gmra.mrb[84].mxu0 %v886_v9 }
 0x3c5   :  { %5285 = vmatmul.mubr.bf16.gmra.mrb[84].mxu1 %v886_v9  ;;  %3650 = vmatprep.mubr.bf16.mxu0 %v895_v10  ;;  %v647_v9 = vld [vmem:[#allocation5 + $0x10a8] sm:$0xff] }
 0x3c6   :  { %5294 = vmatprep.mubr.bf16.mxu1 %v895_v10  ;;  %v655_v10 = vld [vmem:[#allocation5 + $0x10e8] sm:$0xff] }
 0x3c7   :  { %v983_v12 = vpack.c.bf16 %v655_v10, %v647_v9  ;;  %v217_v9 = vld [vmem:[#allocation5 + $0x338] sm:$0xff] }
 0x3c8   :  { %v225_v10 = vld [vmem:[#allocation5 + $0x378] sm:$0xff] }
 0x3cc   :  { %3651 = vmatmul.mubr.bf16.gmra.mrb[88].mxu0 %v894_v15 }
 0x3cd   :  { %5295 = vmatmul.mubr.bf16.gmra.mrb[88].mxu1 %v894_v15  ;;  %3660 = vmatprep.mubr.bf16.mxu0 %v903_v16  ;;  %v663_v15 = vld [vmem:[#allocation5 + $0x1128] sm:$0xff] }
 0x3ce   :  { %5304 = vmatprep.mubr.bf16.mxu1 %v903_v16  ;;  %v671_v16 = vld [vmem:[#allocation5 + $0x1168] sm:$0xff] }
 0x3cf   :  { %v991_v18 = vpack.c.bf16 %v671_v16, %v663_v15  ;;  %v233_v15 = vld [vmem:[#allocation5 + $0x3b8] sm:$0xff] }
 0x3d0   :  { %v241_v16 = vld [vmem:[#allocation5 + $0x3f8] sm:$0xff] }
 0x3d4   :  { %3661 = vmatmul.mubr.bf16.gmra.mrb[92].mxu0 %v902_v21 }
 0x3d5   :  { %5305 = vmatmul.mubr.bf16.gmra.mrb[92].mxu1 %v902_v21  ;;  %3670 = vmatprep.mubr.bf16.mxu0 %v911_v22  ;;  %v679_v21 = vld [vmem:[#allocation5 + $0x11a8] sm:$0xff] }
 0x3d6   :  { %5314 = vmatprep.mubr.bf16.mxu1 %v911_v22  ;;  %v687_v22 = vld [vmem:[#allocation5 + $0x11e8] sm:$0xff] }
 0x3d7   :  { %v999_v24 = vpack.c.bf16 %v687_v22, %v679_v21  ;;  %v249_v21 = vld [vmem:[#allocation5 + $0x438] sm:$0xff] }
 0x3d8   :  { %v257_v22 = vld [vmem:[#allocation5 + $0x478] sm:$0xff] }
 0x3dc   :  { %3671 = vmatmul.mubr.bf16.gmra.mrb[96].mxu0 %v910_v27 }
 0x3dd   :  { %5315 = vmatmul.mubr.bf16.gmra.mrb[96].mxu1 %v910_v27  ;;  %3680 = vmatprep.mubr.bf16.mxu0 %v919_v28  ;;  %v695_v27 = vld [vmem:[#allocation5 + $0x1228] sm:$0xff] }
 0x3de   :  { %5324 = vmatprep.mubr.bf16.mxu1 %v919_v28  ;;  %v703_v28 = vld [vmem:[#allocation5 + $0x1268] sm:$0xff] }
 0x3df   :  { %v1007_v30 = vpack.c.bf16 %v703_v28, %v695_v27  ;;  %v265_v27 = vld [vmem:[#allocation5 + $0x4b8] sm:$0xff] }
 0x3e0   :  { %v273_v28 = vld [vmem:[#allocation5 + $0x4f8] sm:$0xff] }
 0x3e4   :  { %3681 = vmatmul.mubr.bf16.gmra.mrb[100].mxu0 %v918_v33 }
 0x3e5   :  { %5325 = vmatmul.mubr.bf16.gmra.mrb[100].mxu1 %v918_v33  ;;  %3690 = vmatprep.mubr.bf16.mxu0 %v927_v34  ;;  %v711_v33 = vld [vmem:[#allocation5 + $0x12a8] sm:$0xff] }
 0x3e6   :  { %5334 = vmatprep.mubr.bf16.mxu1 %v927_v34  ;;  %v1006_v34 = vpack.c.bf16 %v702_v32, %v694_v31  ;;  %v1015_v35 = vpack.c.bf16 %v711_v33, %v711_v33  ;;  %v264_v31 = vld [vmem:[#allocation5 + $0x4b0] sm:$0xff]  ;;  %v281_v33 = vld [vmem:[#allocation5 + $0x538] sm:$0xff] }
 0x3e7   :  { %v272_v32 = vld [vmem:[#allocation5 + $0x4f0] sm:$0xff] }
 0x3ec   :  { %3691 = vmatmul.mubr.bf16.gmra.mrb[104].mxu0 %v926_v39 }
 0x3ed   :  { %5335 = vmatmul.mubr.bf16.gmra.mrb[104].mxu1 %v926_v39  ;;  %3700 = vmatprep.mubr.bf16.mxu0 %v935_v40  ;;  %v1014_v39 = vpack.c.bf16 %v710_v36, %v710_v36 }
 0x3ee   :  { %5344 = vmatprep.mubr.bf16.mxu1 %v935_v40  ;;  %v721_v40 = vpack.c.bf16 %v129_v38, %v121_v37  ;;  %v280_v37 = vld [vmem:[#allocation5 + $0x530] sm:$0xff] }
 0x3ef   :  { %v288_v38 = vld [vmem:[#allocation5 + $0x570] sm:$0xff] }
 0x3f4   :  { %3701 = vmatmul.mubr.bf16.gmra.mrb[108].mxu0 %v934_v45 }
 0x3f5   :  { %5345 = vmatmul.mubr.bf16.gmra.mrb[108].mxu1 %v934_v45  ;;  %3710 = vmatprep.mubr.bf16.mxu0 %v943_v46  ;;  %v720_v45 = vpack.c.bf16 %v128_v42, %v120_v41  ;;  %v800_v41 = vpack.c.bf16 %v288_v38, %v280_v37 }
 0x3f6   :  { %5354 = vmatprep.mubr.bf16.mxu1 %v943_v46  ;;  %v729_v46 = vpack.c.bf16 %v145_v44, %v137_v43  ;;  %v296_v43 = vld [vmem:[#allocation5 + $0x5b0] sm:$0xff] }
 0x3f7   :  { %v304_v44 = vld [vmem:[#allocation5 + $0x5f0] sm:$0xff] }
 0x3fc   :  { %3711 = vmatmul.mubr.bf16.gmra.mrb[112].mxu0 %v942_v51 }
 0x3fd   :  { %5355 = vmatmul.mubr.bf16.gmra.mrb[112].mxu1 %v942_v51  ;;  %3720 = vmatprep.mubr.bf16.mxu0 %v951_v52  ;;  %v728_v51 = vpack.c.bf16 %v144_v48, %v136_v47  ;;  %v808_v47 = vpack.c.bf16 %v304_v44, %v296_v43 }
 0x3fe   :  { %5364 = vmatprep.mubr.bf16.mxu1 %v951_v52  ;;  %v737_v52 = vpack.c.bf16 %v161_v50, %v153_v49  ;;  %v312_v49 = vld [vmem:[#allocation5 + $0x630] sm:$0xff] }
 0x3ff   :  { %v320_v50 = vld [vmem:[#allocation5 + $0x670] sm:$0xff] }
 0x404   :  { %3721 = vmatmul.mubr.bf16.gmra.mrb[116].mxu0 %v950_v57 }
 0x405   :  { %5365 = vmatmul.mubr.bf16.gmra.mrb[116].mxu1 %v950_v57  ;;  %3730 = vmatprep.mubr.bf16.mxu0 %v959_v58  ;;  %v736_v57 = vpack.c.bf16 %v160_v54, %v152_v53  ;;  %v816_v53 = vpack.c.bf16 %v320_v50, %v312_v49 }
 0x406   :  { %5374 = vmatprep.mubr.bf16.mxu1 %v959_v58  ;;  %v745_v58 = vpack.c.bf16 %v177_v56, %v169_v55  ;;  %v328_v55 = vld [vmem:[#allocation5 + $0x6b0] sm:$0xff] }
 0x407   :  { %v336_v56 = vld [vmem:[#allocation5 + $0x6f0] sm:$0xff] }
 0x40c   :  { %3731 = vmatmul.mubr.bf16.gmra.mrb[120].mxu0 %v958_v63 }
 0x40d   :  { %5375 = vmatmul.mubr.bf16.gmra.mrb[120].mxu1 %v958_v63  ;;  %3740 = vmatprep.mubr.bf16.mxu0 %v967_v0  ;;  %v744_v63 = vpack.c.bf16 %v176_v60, %v168_v59  ;;  %v824_v59 = vpack.c.bf16 %v336_v56, %v328_v55 }
 0x40e   :  { %5384 = vmatprep.mubr.bf16.mxu1 %v967_v0  ;;  %v753_v0 = vpack.c.bf16 %v193_v62, %v185_v61  ;;  %v1276_v61 = vlaneseq  ;;  %v344_v62 = vld [vmem:[#allocation5 + $0x730] sm:$0xff] }
 0x414   :  { %3741 = vmatmul.mubr.bf16.gmra.mrb[124].mxu0 %v966_v5 }
 0x415   :  { %5385 = vmatmul.mubr.bf16.gmra.mrb[124].mxu1 %v966_v5  ;;  %3750 = vmatprep.mubr.bf16.mxu0 %v975_v6  ;;  %v752_v5 = vpack.c.bf16 %v192_v2, %v184_v1  ;;  %v369_v1 = vld [vmem:[#allocation5 + $0x7f8] sm:$0xff]  ;;  %v7502_v2 = vld [vmem:[#allocation11] sm:$0xff] }
 0x416   :  { %5394 = vmatprep.mubr.bf16.mxu1 %v975_v6  ;;  %v761_v6 = vpack.c.bf16 %v209_v4, %v201_v3  ;;  %v9982_v3 = vmov 1983009808  }
 0x417   :  { %v7507_v4 = vunpack.c.l.s4 %v9982_v3 }
 0x41c   :  { %3751 = vmatmul.mubr.bf16.gmra.mrb[128].mxu0 %v974_v11 }
 0x41d   :  { %5395 = vmatmul.mubr.bf16.gmra.mrb[128].mxu1 %v974_v11  ;;  %3760 = vmatprep.mubr.bf16.mxu0 %v983_v12  ;;  %v760_v11 = vpack.c.bf16 %v208_v8, %v200_v7  ;;  %v7508_v7 = vunpack.c.0.s8 %v7507_v4 }
 0x41e   :  { %5404 = vmatprep.mubr.bf16.mxu1 %v983_v12  ;;  %v769_v12 = vpack.c.bf16 %v225_v10, %v217_v9  ;;  %v7505_v9 = vcombine.high %v7502_v2, %v7502_v2 }
 0x424   :  { %3761 = vmatmul.mubr.bf16.gmra.mrb[132].mxu0 %v982_v17 }
 0x425   :  { %5405 = vmatmul.mubr.bf16.gmra.mrb[132].mxu1 %v982_v17  ;;  %3770 = vmatprep.mubr.bf16.mxu0 %v991_v18  ;;  %v768_v17 = vpack.c.bf16 %v224_v14, %v216_v13  ;;  %v360_v13 = vld [vmem:[#allocation5 + $0x7b0] sm:$0xff] }
 0x426   :  { %5414 = vmatprep.mubr.bf16.mxu1 %v991_v18  ;;  %v777_v18 = vpack.c.bf16 %v241_v16, %v233_v15  ;;  %v368_v14 = vld [vmem:[#allocation5 + $0x7f0] sm:$0xff]  ;;  %v377_v15 = vld [vmem:[#allocation5 + $0x838] sm:$0xff] }
 0x427   :  { %v385_v16 = vld [vmem:[#allocation5 + $0x878] sm:$0xff] }
 0x42c   :  { %3771 = vmatmul.mubr.bf16.gmra.mrb[136].mxu0 %v990_v23 }
 0x42d   :  { %5415 = vmatmul.mubr.bf16.gmra.mrb[136].mxu1 %v990_v23  ;;  %3780 = vmatprep.mubr.bf16.mxu0 %v999_v24  ;;  %v776_v23 = vpack.c.bf16 %v240_v20, %v232_v19  ;;  %v840_v19 = vpack.c.bf16 %v368_v14, %v360_v13  ;;  %v849_v20 = vpack.c.bf16 %v385_v16, %v377_v15  ;;  %v528_v13 = vld [vmem:[#allocation5 + $0xcf0] sm:$0xff]  ;;  %v537_v14 = vld [vmem:[#allocation5 + $0xd38] sm:$0xff] }
 0x42e   :  { %5424 = vmatprep.mubr.bf16.mxu1 %v999_v24  ;;  %v785_v24 = vpack.c.bf16 %v257_v22, %v249_v21  ;;  %v376_v21 = vld [vmem:[#allocation5 + $0x830] sm:$0xff]  ;;  %v545_v15 = vld [vmem:[#allocation5 + $0xd78] sm:$0xff] }
 0x42f   :  { %v384_v22 = vld [vmem:[#allocation5 + $0x870] sm:$0xff] }
 0x430   :  { %v536_v16 = vld [vmem:[#allocation5 + $0xd30] sm:$0xff] }
 0x434   :  { %3781 = vmatmul.mubr.bf16.gmra.mrb[140].mxu0 %v998_v29 }
 0x435   :  { %5425 = vmatmul.mubr.bf16.gmra.mrb[140].mxu1 %v998_v29  ;;  %3790 = vmatprep.mubr.bf16.mxu0 %v1007_v30  ;;  %v784_v29 = vpack.c.bf16 %v256_v26, %v248_v25  ;;  %v848_v25 = vpack.c.bf16 %v384_v22, %v376_v21  ;;  %v553_v21 = vld [vmem:[#allocation5 + $0xdb8] sm:$0xff] }
 0x436   :  { %5434 = vmatprep.mubr.bf16.mxu1 %v1007_v30  ;;  %v793_v30 = vpack.c.bf16 %v273_v28, %v265_v27  ;;  %v392_v27 = vld [vmem:[#allocation5 + $0x8b0] sm:$0xff] }
 0x437   :  { %v400_v28 = vld [vmem:[#allocation5 + $0x8f0] sm:$0xff] }
 0x43c   :  { %3791 = vmatmul.mubr.bf16.gmra.mrb[144].mxu0 %v1006_v34 }
 0x43d   :  { %5435 = vmatmul.mubr.bf16.gmra.mrb[144].mxu1 %v1006_v34  ;;  %3800 = vmatprep.mubr.bf16.mxu0 %v1015_v35  ;;  %v289_v34 = vld [vmem:[#allocation5 + $0x578] sm:$0xff] }
 0x43e   :  { %5444 = vmatprep.mubr.bf16.mxu1 %v1015_v35  ;;  %v792_v35 = vpack.c.bf16 %v272_v32, %v264_v31  ;;  %v801_v36 = vpack.c.bf16 %v289_v34, %v281_v33  ;;  %v856_v31 = vpack.c.bf16 %v400_v28, %v392_v27  ;;  %v408_v33 = vld [vmem:[#allocation5 + $0x930] sm:$0xff]  ;;  %v929_v28 = vpack.c.bf16 %v545_v15, %v537_v14  ;;  %v673_v14 = vld [vmem:[#allocation5 + $0x1178] sm:$0xff] }
 0x43f   :  { %v416_v34 = vld [vmem:[#allocation5 + $0x970] sm:$0xff] }
 0x440   :  { %v864_v37 = vpack.c.bf16 %v416_v34, %v408_v33  ;;  %v560_v27 = vld [vmem:[#allocation5 + $0xdf0] sm:$0xff]  ;;  %v585_v33 = vld [vmem:[#allocation5 + $0xeb8] sm:$0xff] }
 0x441   :  { %v593_v34 = vld [vmem:[#allocation5 + $0xef8] sm:$0xff]  ;;  %v664_v15 = vld [vmem:[#allocation5 + $0x1130] sm:$0xff] }
 0x444   :  { %3801 = vmatmul.mubr.bf16.gmra.mrb[148].mxu0 %v1014_v39 }
 0x445   :  { %5445 = vmatmul.mubr.bf16.gmra.mrb[148].mxu1 %v1014_v39  ;;  %3841 = vmatprep.mubr.bf16.mxu0 %v721_v40  ;;  %v297_v39 = vld [vmem:[#allocation5 + $0x5b8] sm:$0xff] }
 0x446   :  { %5485 = vmatprep.mubr.bf16.mxu1 %v721_v40  ;;  %v305_v40 = vld [vmem:[#allocation5 + $0x5f8] sm:$0xff] }
 0x447   :  { %v809_v42 = vpack.c.bf16 %v305_v40, %v297_v39  ;;  %v424_v39 = vld [vmem:[#allocation5 + $0x9b0] sm:$0xff] }
 0x448   :  { %v432_v40 = vld [vmem:[#allocation5 + $0x9f0] sm:$0xff] }
 0x449   :  { %v872_v43 = vpack.c.bf16 %v432_v40, %v424_v39 }
 0x44c   :  { %3842 = vmatmul.mubr.bf16.vlgmr.msra.gmra.mrb[0].mxu0 %v720_v45 }
 0x44d   :  { %5486 = vmatmul.mubr.bf16.vlgmr.msra.gmra.mrb[0].mxu1 %v720_v45  ;;  %3851 = vmatprep.mubr.bf16.mxu0 %v729_v46  ;;  %v313_v45 = vld [vmem:[#allocation5 + $0x638] sm:$0xff] }
 0x44e   :  { %5495 = vmatprep.mubr.bf16.mxu1 %v729_v46  ;;  %v321_v46 = vld [vmem:[#allocation5 + $0x678] sm:$0xff] }
 0x44f   :  { %v817_v48 = vpack.c.bf16 %v321_v46, %v313_v45  ;;  %v440_v45 = vld [vmem:[#allocation5 + $0xa30] sm:$0xff] }
 0x450   :  { %v448_v46 = vld [vmem:[#allocation5 + $0xa70] sm:$0xff] }
 0x451   :  { %v880_v49 = vpack.c.bf16 %v448_v46, %v440_v45  ;;  %v10144_v45 = vstv %s10121_s6 }
 0x454   :  { %3852 = vmatmul.mubr.bf16.gmra.mrb[4].mxu0 %v728_v51 }
 0x455   :  { %5496 = vmatmul.mubr.bf16.gmra.mrb[4].mxu1 %v728_v51  ;;  %3861 = vmatprep.mubr.bf16.mxu0 %v737_v52  ;;  %v329_v51 = vld [vmem:[#allocation5 + $0x6b8] sm:$0xff] }
 0x456   :  { %5505 = vmatprep.mubr.bf16.mxu1 %v737_v52  ;;  %v337_v52 = vld [vmem:[#allocation5 + $0x6f8] sm:$0xff] }
 0x457   :  { %v825_v54 = vpack.c.bf16 %v337_v52, %v329_v51  ;;  %v456_v51 = vld [vmem:[#allocation5 + $0xab0] sm:$0xff] }
 0x458   :  { %v464_v52 = vld [vmem:[#allocation5 + $0xaf0] sm:$0xff] }
 0x459   :  { %v888_v55 = vpack.c.bf16 %v464_v52, %v456_v51  ;;  %v624_v51 = vld [vmem:[#allocation5 + $0xff0] sm:$0xff] }
 0x45c   :  { %3862 = vmatmul.mubr.bf16.gmra.mrb[8].mxu0 %v736_v57 }
 0x45d   :  { %5506 = vmatmul.mubr.bf16.gmra.mrb[8].mxu1 %v736_v57  ;;  %3871 = vmatprep.mubr.bf16.mxu0 %v745_v58  ;;  %v345_v57 = vld [vmem:[#allocation5 + $0x738] sm:$0xff] }
 0x45e   :  { %5515 = vmatprep.mubr.bf16.mxu1 %v745_v58  ;;  %v353_v58 = vld [vmem:[#allocation5 + $0x778] sm:$0xff] }
 0x45f   :  { %v833_v60 = vpack.c.bf16 %v353_v58, %v345_v57  ;;  %v472_v57 = vld [vmem:[#allocation5 + $0xb30] sm:$0xff] }
 0x460   :  { %v480_v58 = vld [vmem:[#allocation5 + $0xb70] sm:$0xff] }
 0x464   :  { %3872 = vmatmul.mubr.bf16.gmra.mrb[12].mxu0 %v744_v63 }
 0x465   :  { %5516 = vmatmul.mubr.bf16.gmra.mrb[12].mxu1 %v744_v63  ;;  %3881 = vmatprep.mubr.bf16.mxu0 %v753_v0  ;;  %v352_v63 = vld [vmem:[#allocation5 + $0x770] sm:$0xff] }
 0x466   :  { %5525 = vmatprep.mubr.bf16.mxu1 %v753_v0  ;;  %v361_v0 = vld [vmem:[#allocation5 + $0x7b8] sm:$0xff] }
 0x467   :  { %v841_v8 = vpack.c.bf16 %v369_v1, %v361_v0  ;;  %v496_v0 = vld [vmem:[#allocation5 + $0xbf0] sm:$0xff]  ;;  %v505_v1 = vld [vmem:[#allocation5 + $0xc38] sm:$0xff] }
 0x46c   :  { %3882 = vmatmul.mubr.bf16.gmra.mrb[16].mxu0 %v752_v5 }
 0x46d   :  { %5526 = vmatmul.mubr.bf16.gmra.mrb[16].mxu1 %v752_v5  ;;  %3891 = vmatprep.mubr.bf16.mxu0 %v761_v6  ;;  %v832_v5 = vpack.c.bf16 %v352_v63, %v344_v62  ;;  %v488_v63 = vld [vmem:[#allocation5 + $0xbb0] sm:$0xff] }
 0x46e   :  { %5535 = vmatprep.mubr.bf16.mxu1 %v761_v6  ;;  %v10118_v6 = vshrl.u32 %v1276_v61, 7  ;;  %v896_v61 = vpack.c.bf16 %v480_v58, %v472_v57  ;;  %v904_v3 = vpack.c.bf16 %v496_v0, %v488_v63  ;;  %v641_v57 = vld [vmem:[#allocation5 + $0x1078] sm:$0xff]  ;;  %v632_v58 = vld [vmem:[#allocation5 + $0x1030] sm:$0xff] }
 0x46f   :  { %v640_v63 = vld [vmem:[#allocation5 + $0x1070] sm:$0xff]  ;;  %v649_v0 = vld [vmem:[#allocation5 + $0x10b8] sm:$0xff] }
 0x470   :  { %v7511_v10 = vsub.s32 %v7508_v7, %v10118_v6  ;;  %v512_v7 = vld [vmem:[#allocation5 + $0xc70] sm:$0xff]  ;;  %v10155_v52 = vadd.s32 8, %v10118_v6  ;;  %vm6634_vm0 = vcmp.lt.s32.totalorder %v10118_v6, %v10144_v45 }
 0x472   :  { %vm6635_vm1 = vcmp.lt.s32.totalorder %v10155_v52, %v10144_v45  ;;  %v10338_v52 = vadd.s32 240, %v10118_v6 }
 0x474   :  { %3892 = vmatmul.mubr.bf16.gmra.mrb[20].mxu0 %v760_v11  ;;  %11811 = vst [vmem:[#allocation41_spill] sm:$0xff] %v10338_v52 }
 0x475   :  { %5536 = vmatmul.mubr.bf16.gmra.mrb[20].mxu1 %v760_v11  ;;  %3901 = vmatprep.mubr.bf16.mxu0 %v769_v12  ;;  %v7512_v11 = vrot.slane %v7502_v2, %v7511_v10  ;;  %v513_v2 = vld [vmem:[#allocation5 + $0xc78] sm:$0xff] }
 0x476   :  { %5545 = vmatprep.mubr.bf16.mxu1 %v769_v12  ;;  %v7519_v12 = vrot.slane %v7505_v9, %v7511_v10  ;;  %v913_v4 = vpack.c.bf16 %v513_v2, %v505_v1  ;;  %v529_v9 = vld [vmem:[#allocation5 + $0xcf8] sm:$0xff]  ;;  %v10175_v2 = vadd.s32 40, %v10118_v6 }
 0x477   :  { %v657_v1 = vld [vmem:[#allocation5 + $0x10f8] sm:$0xff] }
 0x478   :  { %vm6639_vm5 = vcmp.lt.s32.totalorder %v10175_v2, %v10144_v45 }
 0x47c   :  { %3902 = vmatmul.mubr.bf16.gmra.mrb[24].mxu0 %v768_v17 }
 0x47d   :  { %5546 = vmatmul.mubr.bf16.gmra.mrb[24].mxu1 %v768_v17  ;;  %3911 = vmatprep.mubr.bf16.mxu0 %v777_v18  ;;  %v7520_v17 = vcombine.high %v7512_v11, %v7512_v11 }
 0x47e   :  { %5555 = vmatprep.mubr.bf16.mxu1 %v777_v18  ;;  %v7521_v18 = vcombine.high %v7519_v12, %v7519_v12 }
 0x47f   :  { %7526 = vmatprep.subr.mxu1 %v7520_v17  ;;  %v544_v17 = vld [vmem:[#allocation5 + $0xd70] sm:$0xff] }
 0x480   :  { %7596 = vmatprep.subr.mxu0 %v7521_v18  ;;  %7527 = vmatpush1.xpose.msra.mxu1 %v7512_v11  ;;  %v1274_v18 = vld [vmem:[#allocation10] sm:$0xf]  ;;  %v10135_v39 = vpack.c.bf16 %v544_v17, %v536_v16  ;;  %v672_v16 = vld [vmem:[#allocation5 + $0x1170] sm:$0xff]  ;;  %v10195_v17 = vadd.s32 72, %v10118_v6 }
 0x481   :  { %7597 = vmatpush1.xpose.msra.mxu0 %v7519_v12  ;;  %v520_v12 = vld [vmem:[#allocation5 + $0xcb0] sm:$0xff] }
 0x482   :  { %v920_v22 = vpack.c.bf16 %v528_v13, %v520_v12  ;;  %v10190_v12 = vadd.s32 64, %v10118_v6  ;;  %vm6643_vm9 = vcmp.lt.s32.totalorder %v10195_v17, %v10144_v45 }
 0x484   :  { %3912 = vmatmul.mubr.bf16.gmra.mrb[28].mxu0 %v776_v23  ;;  %vm6642_vm8 = vcmp.lt.s32.totalorder %v10190_v12, %v10144_v45 }
 0x485   :  { %5556 = vmatmul.mubr.bf16.gmra.mrb[28].mxu1 %v776_v23  ;;  %3921 = vmatprep.mubr.bf16.mxu0 %v785_v24  ;;  %v393_v23 = vld [vmem:[#allocation5 + $0x8b8] sm:$0xff] }
 0x486   :  { %5565 = vmatprep.mubr.bf16.mxu1 %v785_v24  ;;  %v401_v24 = vld [vmem:[#allocation5 + $0x8f8] sm:$0xff] }
 0x487   :  { %v857_v26 = vpack.c.bf16 %v401_v24, %v393_v23  ;;  %v10130_v23 = vsub.s32 1, %v10118_v6  ;;  %v10133_v24 = vsub.s32 3, %v10118_v6 }
 0x489   :  { %11798 = vst [vmem:[#allocation28_spill] sm:$0xff] %v10130_v23  ;;  %11799 = vst [vmem:[#allocation29_spill] sm:$0xff] %v10133_v24  ;;  %v10147_v46 = vrot.slane %v1274_v18, %v10130_v23 }
 0x48c   :  { %3922 = vmatmul.mubr.bf16.gmra.mrb[32].mxu0 %v784_v29 }
 0x48d   :  { %5566 = vmatmul.mubr.bf16.gmra.mrb[32].mxu1 %v784_v29  ;;  %3931 = vmatprep.mubr.bf16.mxu0 %v793_v30  ;;  %v409_v29 = vld [vmem:[#allocation5 + $0x938] sm:$0xff] }
 0x48e   :  { %5575 = vmatprep.mubr.bf16.mxu1 %v793_v30  ;;  %v417_v30 = vld [vmem:[#allocation5 + $0x978] sm:$0xff] }
 0x48f   :  { %v865_v32 = vpack.c.bf16 %v417_v30, %v409_v29  ;;  %v569_v29 = vld [vmem:[#allocation5 + $0xe38] sm:$0xff] }
 0x490   :  { %v577_v30 = vld [vmem:[#allocation5 + $0xe78] sm:$0xff] }
 0x494   :  { %3932 = vmatmul.mubr.bf16.gmra.mrb[36].mxu0 %v792_v35 }
 0x495   :  { %5576 = vmatmul.mubr.bf16.gmra.mrb[36].mxu1 %v792_v35  ;;  %3941 = vmatprep.mubr.bf16.mxu0 %v801_v36  ;;  %v425_v35 = vld [vmem:[#allocation5 + $0x9b8] sm:$0xff] }
 0x496   :  { %5585 = vmatprep.mubr.bf16.mxu1 %v801_v36  ;;  %v433_v36 = vld [vmem:[#allocation5 + $0x9f8] sm:$0xff] }
 0x497   :  { %v873_v38 = vpack.c.bf16 %v433_v36, %v425_v35  ;;  %v584_v35 = vld [vmem:[#allocation5 + $0xeb0] sm:$0xff] }
 0x498   :  { %v592_v36 = vld [vmem:[#allocation5 + $0xef0] sm:$0xff] }
 0x49c   :  { %3942 = vmatmul.mubr.bf16.gmra.mrb[40].mxu0 %v800_v41 }
 0x49d   :  { %5586 = vmatmul.mubr.bf16.gmra.mrb[40].mxu1 %v800_v41  ;;  %3951 = vmatprep.mubr.bf16.mxu0 %v809_v42  ;;  %v441_v41 = vld [vmem:[#allocation5 + $0xa38] sm:$0xff] }
 0x49e   :  { %5595 = vmatprep.mubr.bf16.mxu1 %v809_v42  ;;  %v449_v42 = vld [vmem:[#allocation5 + $0xa78] sm:$0xff] }
 0x49f   :  { %v881_v44 = vpack.c.bf16 %v449_v42, %v441_v41  ;;  %v600_v42 = vld [vmem:[#allocation5 + $0xf30] sm:$0xff] }
 0x4a4   :  { %3952 = vmatmul.mubr.bf16.gmra.mrb[44].mxu0 %v808_v47 }
 0x4a5   :  { %5596 = vmatmul.mubr.bf16.gmra.mrb[44].mxu1 %v808_v47  ;;  %3961 = vmatprep.mubr.bf16.mxu0 %v817_v48  ;;  %v457_v47 = vld [vmem:[#allocation5 + $0xab8] sm:$0xff] }
 0x4a6   :  { %5605 = vmatprep.mubr.bf16.mxu1 %v817_v48  ;;  %v465_v48 = vld [vmem:[#allocation5 + $0xaf8] sm:$0xff] }
 0x4a7   :  { %v889_v50 = vpack.c.bf16 %v465_v48, %v457_v47  ;;  %v10150_v47 = vrot.slane %v1274_v18, %v10133_v24 }
 0x4ac   :  { %3962 = vmatmul.mubr.bf16.gmra.mrb[48].mxu0 %v816_v53 }
 0x4ad   :  { %5606 = vmatmul.mubr.bf16.gmra.mrb[48].mxu1 %v816_v53  ;;  %3971 = vmatprep.mubr.bf16.mxu0 %v825_v54  ;;  %v473_v53 = vld [vmem:[#allocation5 + $0xb38] sm:$0xff] }
 0x4ae   :  { %5615 = vmatprep.mubr.bf16.mxu1 %v825_v54  ;;  %v481_v54 = vld [vmem:[#allocation5 + $0xb78] sm:$0xff] }
 0x4af   :  { %v897_v56 = vpack.c.bf16 %v481_v54, %v473_v53  ;;  %v10160_v54 = vadd.s32 16, %v10118_v6 }
 0x4b1   :  { %vm6636_vm2 = vcmp.lt.s32.totalorder %v10160_v54, %v10144_v45 }
 0x4b4   :  { %3972 = vmatmul.mubr.bf16.gmra.mrb[52].mxu0 %v824_v59 }
 0x4b5   :  { %5616 = vmatmul.mubr.bf16.gmra.mrb[52].mxu1 %v824_v59  ;;  %3981 = vmatprep.mubr.bf16.mxu0 %v833_v60  ;;  %v489_v59 = vld [vmem:[#allocation5 + $0xbb8] sm:$0xff] }
 0x4b6   :  { %5625 = vmatprep.mubr.bf16.mxu1 %v833_v60  ;;  %v497_v60 = vld [vmem:[#allocation5 + $0xbf8] sm:$0xff] }
 0x4b7   :  { %v905_v62 = vpack.c.bf16 %v497_v60, %v489_v59  ;;  %v10165_v59 = vpack.c.bf16 %v577_v30, %v569_v29  ;;  %v10209_v29 = vpack.c.bf16 %v640_v63, %v632_v58  ;;  %v10212_v30 = vadd.s32 96, %v10118_v6 }
 0x4b8   :  { %v10243_v58 = vadd.s32 136, %v10118_v6 }
 0x4b9   :  { %vm6646_vm12 = vcmp.lt.s32.totalorder %v10212_v30, %v10144_v45 }
 0x4bc   :  { %3982 = vmatmul.mubr.bf16.gmra.mrb[56].mxu0 %v832_v5 }
 0x4bd   :  { %5626 = vmatmul.mubr.bf16.gmra.mrb[56].mxu1 %v832_v5  ;;  %3991 = vmatprep.mubr.bf16.mxu0 %v841_v8  ;;  %v504_v5 = vld [vmem:[#allocation5 + $0xc30] sm:$0xff] }
 0x4be   :  { %5635 = vmatprep.mubr.bf16.mxu1 %v841_v8  ;;  %v521_v8 = vld [vmem:[#allocation5 + $0xcb8] sm:$0xff]  ;;  %v912_v10 = vpack.c.bf16 %v512_v7, %v504_v5  ;;  %v648_v7 = vld [vmem:[#allocation5 + $0x10b0] sm:$0xff] }
 0x4bf   :  { %v921_v11 = vpack.c.bf16 %v529_v9, %v521_v8  ;;  %v656_v8 = vld [vmem:[#allocation5 + $0x10f0] sm:$0xff]  ;;  %v665_v9 = vld [vmem:[#allocation5 + $0x1138] sm:$0xff] }
 0x4c4   :  { %3992 = vmatmul.mubr.bf16.gmra.mrb[60].mxu0 %v840_v19 }
 0x4c5   :  { %5636 = vmatmul.mubr.bf16.gmra.mrb[60].mxu1 %v840_v19  ;;  %4001 = vmatprep.mubr.bf16.mxu0 %v849_v20  ;;  %v10124_v19 = vsub.s32 0, %v10118_v6 }
 0x4c6   :  { %5645 = vmatprep.mubr.bf16.mxu1 %v849_v20  ;;  %v10127_v20 = vsub.s32 2, %v10118_v6 }
 0x4c7   :  { %11796 = vst [vmem:[#allocation26_spill] sm:$0xff] %v10124_v19  ;;  %v10138_v40 = vrot.slane %v1274_v18, %v10124_v19 }
 0x4c8   :  { %11797 = vst [vmem:[#allocation27_spill] sm:$0xff] %v10127_v20  ;;  %v10141_v41 = vrot.slane %v1274_v18, %v10127_v20 }
 0x4cc   :  { %4002 = vmatmul.mubr.bf16.gmra.mrb[64].mxu0 %v848_v25 }
 0x4cd   :  { %5646 = vmatmul.mubr.bf16.gmra.mrb[64].mxu1 %v848_v25  ;;  %4011 = vmatprep.mubr.bf16.mxu0 %v857_v26  ;;  %v561_v25 = vld [vmem:[#allocation5 + $0xdf8] sm:$0xff] }
 0x4ce   :  { %5655 = vmatprep.mubr.bf16.mxu1 %v857_v26  ;;  %v552_v26 = vld [vmem:[#allocation5 + $0xdb0] sm:$0xff]  ;;  %v10152_v48 = vpack.c.bf16 %v561_v25, %v553_v21  ;;  %v10200_v21 = vadd.s32 80, %v10118_v6  ;;  %v681_v25 = vld [vmem:[#allocation5 + $0x11b8] sm:$0xff] }
 0x4cf   :  { %v10157_v53 = vpack.c.bf16 %v560_v27, %v552_v26  ;;  %v689_v26 = vld [vmem:[#allocation5 + $0x11f8] sm:$0xff]  ;;  %v680_v27 = vld [vmem:[#allocation5 + $0x11b0] sm:$0xff] }
 0x4d0   :  { %vm6644_vm10 = vcmp.lt.s32.totalorder %v10200_v21, %v10144_v45 }
 0x4d4   :  { %4012 = vmatmul.mubr.bf16.gmra.mrb[68].mxu0 %v856_v31 }
 0x4d5   :  { %5656 = vmatmul.mubr.bf16.gmra.mrb[68].mxu1 %v856_v31  ;;  %4021 = vmatprep.mubr.bf16.mxu0 %v865_v32  ;;  %v568_v31 = vld [vmem:[#allocation5 + $0xe30] sm:$0xff] }
 0x4d6   :  { %5665 = vmatprep.mubr.bf16.mxu1 %v865_v32  ;;  %v576_v32 = vld [vmem:[#allocation5 + $0xe70] sm:$0xff] }
 0x4d7   :  { %v10167_v60 = vpack.c.bf16 %v576_v32, %v568_v31  ;;  %v10214_v31 = vpack.c.bf16 %v657_v1, %v649_v0  ;;  %v688_v32 = vld [vmem:[#allocation5 + $0x11f0] sm:$0xff]  ;;  %v10253_v1 = vadd.s32 152, %v10118_v6 }
 0x4d8   :  { %v10245_v63 = vpack.c.bf16 %v688_v32, %v680_v27 }
 0x4dc   :  { %4022 = vmatmul.mubr.bf16.gmra.mrb[72].mxu0 %v864_v37 }
 0x4dd   :  { %5666 = vmatmul.mubr.bf16.gmra.mrb[72].mxu1 %v864_v37  ;;  %4031 = vmatprep.mubr.bf16.mxu0 %v873_v38  ;;  %v601_v37 = vld [vmem:[#allocation5 + $0xf38] sm:$0xff] }
 0x4de   :  { %5675 = vmatprep.mubr.bf16.mxu1 %v873_v38  ;;  %v609_v38 = vld [vmem:[#allocation5 + $0xf78] sm:$0xff] }
 0x4df   :  { %v10182_v5 = vpack.c.bf16 %v609_v38, %v601_v37  ;;  %v10224_v37 = vadd.s32 112, %v10118_v6  ;;  %v10226_v38 = vpack.c.bf16 %v673_v14, %v665_v9 }
 0x4e1   :  { %vm6648_vm14 = vcmp.lt.s32.totalorder %v10224_v37, %v10144_v45 }
 0x4e4   :  { %4032 = vmatmul.mubr.bf16.gmra.mrb[76].mxu0 %v872_v43 }
 0x4e5   :  { %5676 = vmatmul.mubr.bf16.gmra.mrb[76].mxu1 %v872_v43  ;;  %4041 = vmatprep.mubr.bf16.mxu0 %v881_v44  ;;  %v608_v43 = vld [vmem:[#allocation5 + $0xf70] sm:$0xff] }
 0x4e6   :  { %5685 = vmatprep.mubr.bf16.mxu1 %v881_v44  ;;  %v617_v44 = vld [vmem:[#allocation5 + $0xfb8] sm:$0xff] }
 0x4ec   :  { %4042 = vmatmul.mubr.bf16.gmra.mrb[80].mxu0 %v880_v49 }
 0x4ed   :  { %5686 = vmatmul.mubr.bf16.gmra.mrb[80].mxu1 %v880_v49  ;;  %4051 = vmatprep.mubr.bf16.mxu0 %v889_v50  ;;  %v625_v49 = vld [vmem:[#allocation5 + $0xff8] sm:$0xff] }
 0x4ee   :  { %5695 = vmatprep.mubr.bf16.mxu1 %v889_v50  ;;  %v616_v50 = vld [vmem:[#allocation5 + $0xfb0] sm:$0xff]  ;;  %v10192_v13 = vpack.c.bf16 %v625_v49, %v617_v44  ;;  %v713_v44 = vld [vmem:[#allocation5 + $0x12b8] sm:$0xff]  ;;  %v10231_v49 = vadd.s32 120, %v10118_v6 }
 0x4ef   :  { %v10197_v18 = vpack.c.bf16 %v624_v51, %v616_v50  ;;  %v10233_v50 = vpack.c.bf16 %v672_v16, %v664_v15  ;;  %v10236_v51 = vadd.s32 128, %v10118_v6  ;;  %v10260_v9 = vpack.c.bf16 %v713_v44, %v713_v44 }
 0x4f0   :  { %v10263_v15 = vadd.s32 168, %v10118_v6  ;;  %vm6649_vm15 = vcmp.lt.s32.totalorder %v10231_v49, %v10144_v45 }
 0x4f1   :  { %11800 = vst [vmem:[#allocation30_spill] sm:$0xff] %v10260_v9 }
 0x4f2   :  { %11801 = vst [vmem:[#allocation31_spill] sm:$0xff] %v10263_v15 }
 0x4f4   :  { %4052 = vmatmul.mubr.bf16.gmra.mrb[84].mxu0 %v888_v55 }
 0x4f5   :  { %5696 = vmatmul.mubr.bf16.gmra.mrb[84].mxu1 %v888_v55  ;;  %4061 = vmatprep.mubr.bf16.mxu0 %v897_v56  ;;  %v10163_v55 = vadd.s32 24, %v10118_v6 }
 0x4f6   :  { %5705 = vmatprep.mubr.bf16.mxu1 %v897_v56  ;;  %v633_v56 = vld [vmem:[#allocation5 + $0x1038] sm:$0xff] }
 0x4f7   :  { %vm6637_vm3 = vcmp.lt.s32.totalorder %v10163_v55, %v10144_v45 }
 0x4fc   :  { %4062 = vmatmul.mubr.bf16.gmra.mrb[88].mxu0 %v896_v61 }
 0x4fd   :  { %5706 = vmatmul.mubr.bf16.gmra.mrb[88].mxu1 %v896_v61  ;;  %4071 = vmatprep.mubr.bf16.mxu0 %v905_v62  ;;  %v10170_v61 = vadd.s32 32, %v10118_v6 }
 0x4fe   :  { %5715 = vmatprep.mubr.bf16.mxu1 %v905_v62  ;;  %v10172_v62 = vpack.c.bf16 %v593_v34, %v585_v33  ;;  %v697_v33 = vld [vmem:[#allocation5 + $0x1238] sm:$0xff] }
 0x4ff   :  { %v705_v34 = vld [vmem:[#allocation5 + $0x1278] sm:$0xff]  ;;  %vm6638_vm4 = vcmp.lt.s32.totalorder %v10170_v61, %v10144_v45  ;;  %v10415_v61 = vadd.s32 280, %v10118_v6 }
 0x500   :  { %v10250_v0 = vpack.c.bf16 %v705_v34, %v697_v33 }
 0x504   :  { %4072 = vmatmul.mubr.bf16.gmra.mrb[92].mxu0 %v904_v3 }
 0x505   :  { %5716 = vmatmul.mubr.bf16.gmra.mrb[92].mxu1 %v904_v3  ;;  %4081 = vmatprep.mubr.bf16.mxu0 %v913_v4  ;;  %v10177_v3 = vpack.c.bf16 %v592_v36, %v584_v35  ;;  %v10219_v35 = vadd.s32 104, %v10118_v6  ;;  %v10221_v36 = vpack.c.bf16 %v656_v8, %v648_v7  ;;  %v10258_v8 = vadd.s32 160, %v10118_v6 }
 0x506   :  { %5725 = vmatprep.mubr.bf16.mxu1 %v913_v4  ;;  %v10180_v4 = vadd.s32 48, %v10118_v6 }
 0x507   :  { %vm6647_vm13 = vcmp.lt.s32.totalorder %v10219_v35, %v10144_v45 }
 0x508   :  { %vm6640_vm6 = vcmp.lt.s32.totalorder %v10180_v4, %v10144_v45 }
 0x50c   :  { %4082 = vmatmul.mubr.bf16.gmra.mrb[96].mxu0 %v912_v10 }
 0x50d   :  { %5726 = vmatmul.mubr.bf16.gmra.mrb[96].mxu1 %v912_v10  ;;  %4091 = vmatprep.mubr.bf16.mxu0 %v921_v11  ;;  %v10185_v10 = vadd.s32 56, %v10118_v6 }
 0x50e   :  { %5735 = vmatprep.mubr.bf16.mxu1 %v921_v11  ;;  %v10187_v11 = vpack.c.bf16 %v608_v43, %v600_v42  ;;  %v696_v42 = vld [vmem:[#allocation5 + $0x1230] sm:$0xff] }
 0x50f   :  { %v704_v43 = vld [vmem:[#allocation5 + $0x1270] sm:$0xff]  ;;  %vm6641_vm7 = vcmp.lt.s32.totalorder %v10185_v10, %v10144_v45 }
 0x510   :  { %v10255_v7 = vpack.c.bf16 %v704_v43, %v696_v42  ;;  %v10276_v42 = vadd.s32 192, %v10118_v6  ;;  %v10279_v43 = vadd.s32 200, %v10118_v6 }
 0x512   :  { %11805 = vst [vmem:[#allocation35_spill] sm:$0xff] %v10276_v42  ;;  %11806 = vst [vmem:[#allocation36_spill] sm:$0xff] %v10279_v43 }
 0x514   :  { %4092 = vmatmul.mubr.bf16.gmra.mrb[100].mxu0 %v920_v22 }
 0x515   :  { %5736 = vmatmul.mubr.bf16.gmra.mrb[100].mxu1 %v920_v22  ;;  %4101 = vmatprep.mubr.bf16.mxu0 %v929_v28  ;;  %v10202_v22 = vpack.c.bf16 %v641_v57, %v633_v56  ;;  %v10238_v56 = vpack.c.bf16 %v689_v26, %v681_v25  ;;  %v712_v57 = vld [vmem:[#allocation5 + $0x12b0] sm:$0xff]  ;;  %v10268_v25 = vadd.s32 176, %v10118_v6  ;;  %v10271_v26 = vadd.s32 184, %v10118_v6 }
 0x516   :  { %5745 = vmatprep.mubr.bf16.mxu1 %v929_v28  ;;  %v10207_v28 = vadd.s32 88, %v10118_v6  ;;  %v10265_v16 = vpack.c.bf16 %v712_v57, %v712_v57 }
 0x517   :  { %11803 = vst [vmem:[#allocation33_spill] sm:$0xff] %v10268_v25  ;;  %11804 = vst [vmem:[#allocation34_spill] sm:$0xff] %v10271_v26 }
 0x518   :  { %11802 = vst [vmem:[#allocation32_spill] sm:$0xff] %v10265_v16  ;;  %vm6645_vm11 = vcmp.lt.s32.totalorder %v10207_v28, %v10144_v45 }
 0x51c   :  { %4102 = vmatmul.mubr.bf16.gmra.mrb[104].mxu0 %v10135_v39 }
 0x51d   :  { %5746 = vmatmul.mubr.bf16.gmra.mrb[104].mxu1 %v10135_v39  ;;  %4111 = vmatprep.mubr.bf16.mxu0 %v10152_v48  ;;  %v10248_v39 = vadd.s32 144, %v10118_v6 }
 0x51e   :  { %5755 = vmatprep.mubr.bf16.mxu1 %v10152_v48 }
 0x51f   :  { %v3843_v48 = vpop.f32.mrb[0].mxu0 }
 0x520   :  { %v5487_v14 = vpop.f32.mrb[0].mxu1  ;;  %v8140_v27 = vadd.f32 %v3843_v48, %v10138_v40  ;;  %v3845_v33 = vpop.f32.mrb[1].mxu0  ;;  %v10286_v48 = vadd.s32 208, %v10118_v6 }
 0x521   :  { %v8290_v32 = vadd.f32 %v5487_v14, %v10141_v41  ;;  %v5489_v34 = vpop.f32.mrb[1].mxu1  ;;  %v8141_v44 = vadd.f32 %v3845_v33, %v10147_v46  ;;  %v3847_v24 = vpop.f32.mrb[2].mxu0  ;;  %v10289_v14 = vadd.s32 216, %v10118_v6 }
 0x522   :  { %v8291_v57 = vadd.f32 %v5489_v34, %v10150_v47  ;;  %v5491_v20 = vpop.f32.mrb[2].mxu1  ;;  %11807 = vst [vmem:[#allocation37_spill] sm:$0xff] %v10286_v48  ;;  %v5864_v23 = vmax.f32 %v8140_v27, 0.0  ;;  %v8142_v42 = vadd.f32 %v3847_v24, %v10138_v40  ;;  %v3849_v33 = vpop.f32.mrb[3].mxu0  ;;  %v10300_v24 = vadd.s32 224, %v10118_v6 }
 0x523   :  { %11808 = vst [vmem:[#allocation38_spill] sm:$0xff] %v10289_v14  ;;  %v5866_v19 = vmax.f32 %v8290_v32, 0.0  ;;  %v8292_v43 = vadd.f32 %v5491_v20, %v10141_v41  ;;  %v5493_v26 = vpop.f32.mrb[3].mxu1  ;;  %v5865_v34 = vmax.f32 %v8141_v44, 0.0  ;;  %v8143_v25 = vadd.f32 %v3849_v33, %v10147_v46 }
 0x524   :  { %v5867_v16 = vmax.f32 %v8291_v57, 0.0  ;;  %v8293_v9 = vadd.f32 %v5493_v26, %v10150_v47  ;;  %v5868_v48 = vmax.f32 %v8142_v42, 0.0  ;;  %4112 = vmatmul.mubr.bf16.gmra.mrb[108].mxu0 %v10157_v53  ;;  %11809 = vst [vmem:[#allocation39_spill] sm:$0xff] %v10300_v24  ;;  %v10303_v20 = vadd.s32 232, %v10118_v6 }
 0x525   :  { %v5870_v15 = vmax.f32 %v8292_v43, 0.0  ;;  %5756 = vmatmul.mubr.bf16.gmra.mrb[108].mxu1 %v10157_v53  ;;  %v6859_v27 = vsel %vm6634_vm0, %v5864_v23, 0.0  ;;  %v6861_v26 = vsel %vm6634_vm0, %v5866_v19, 0.0  ;;  %v5869_v32 = vmax.f32 %v8143_v25, 0.0  ;;  %4121 = vmatprep.mubr.bf16.mxu0 %v10165_v59 }
 0x526   :  { %11810 = vst [vmem:[#allocation40_spill] sm:$0xff] %v10303_v20  ;;  %v5871_v42 = vmax.f32 %v8293_v9, 0.0  ;;  %5765 = vmatprep.mubr.bf16.mxu1 %v10165_v59  ;;  %v6860_v53 = vsel %vm6634_vm0, %v5865_v34, 0.0  ;;  %v6862_v43 = vsel %vm6634_vm0, %v5867_v16, 0.0  ;;  %v6863_v23 = vsel %vm6635_vm1, %v5868_v48, 0.0 }
 0x527   :  { %v6865_v19 = vsel %vm6635_vm1, %v5870_v15, 0.0  ;;  %v7163_v9 = vadd.f32 %v6863_v23, %v6859_v27  ;;  %v6864_v59 = vsel %vm6635_vm1, %v5869_v32, 0.0  ;;  %v3853_v57 = vpop.f32.mrb[4].mxu0  ;;  %vm6650_vm0 = vcmp.lt.s32.totalorder %v10236_v51, %v10144_v45 }
 0x528   :  { %v7311_v25 = vadd.f32 %v6865_v19, %v6861_v26  ;;  %v6866_v44 = vsel %vm6635_vm1, %v5871_v42, 0.0  ;;  %v5497_v16 = vpop.f32.mrb[4].mxu1  ;;  %v7237_v33 = vadd.f32 %v6864_v59, %v6860_v53  ;;  %v8144_v48 = vadd.f32 %v3853_v57, %v10138_v40  ;;  %v3855_v24 = vpop.f32.mrb[5].mxu0 }
 0x529   :  { %v7385_v34 = vadd.f32 %v6866_v44, %v6862_v43  ;;  %v8294_v20 = vadd.f32 %v5497_v16, %v10141_v41  ;;  %v5499_v15 = vpop.f32.mrb[5].mxu1  ;;  %v8145_v27 = vadd.f32 %v3855_v24, %v10147_v46  ;;  %v3857_v23 = vpop.f32.mrb[6].mxu0  ;;  %v10341_v42 = vadd.s32 248, %v10118_v6 }
 0x52a   :  { %v8295_v26 = vadd.f32 %v5499_v15, %v10150_v47  ;;  %v5501_v32 = vpop.f32.mrb[6].mxu1  ;;  %v5872_v53 = vmax.f32 %v8144_v48, 0.0  ;;  %v8146_v19 = vadd.f32 %v3857_v23, %v10138_v40  ;;  %v3859_v24 = vpop.f32.mrb[7].mxu0  ;;  %vm6651_vm1 = vcmp.lt.s32.totalorder %v10243_v58, %v10144_v45 }
 0x52b   :  { %v5874_v43 = vmax.f32 %v8294_v20, 0.0  ;;  %v8296_v59 = vadd.f32 %v5501_v32, %v10141_v41  ;;  %v5503_v44 = vpop.f32.mrb[7].mxu1  ;;  %v5873_v57 = vmax.f32 %v8145_v27, 0.0  ;;  %v8147_v15 = vadd.f32 %v3859_v24, %v10147_v46 }
 0x52c   :  { %v5875_v16 = vmax.f32 %v8295_v26, 0.0  ;;  %v8297_v14 = vadd.f32 %v5503_v44, %v10150_v47  ;;  %v6867_v52 = vsel %vm6636_vm2, %v5872_v53, 0.0  ;;  %v5876_v48 = vmax.f32 %v8146_v19, 0.0  ;;  %4122 = vmatmul.mubr.bf16.gmra.mrb[112].mxu0 %v10167_v60 }
 0x52d   :  { %v6869_v20 = vsel %vm6636_vm2, %v5874_v43, 0.0  ;;  %v5878_v23 = vmax.f32 %v8296_v59, 0.0  ;;  %5766 = vmatmul.mubr.bf16.gmra.mrb[112].mxu1 %v10167_v60  ;;  %v7164_v27 = vadd.f32 %v7163_v9, %v6867_v52  ;;  %v6868_v32 = vsel %vm6636_vm2, %v5873_v57, 0.0  ;;  %4131 = vmatprep.mubr.bf16.mxu0 %v10172_v62 }
 0x52e   :  { %v7312_v26 = vadd.f32 %v7311_v25, %v6869_v20  ;;  %v6870_v53 = vsel %vm6636_vm2, %v5875_v16, 0.0  ;;  %5775 = vmatprep.mubr.bf16.mxu1 %v10172_v62  ;;  %v7238_v43 = vadd.f32 %v7237_v33, %v6868_v32  ;;  %v6871_v60 = vsel %vm6637_vm3, %v5876_v48, 0.0 }
 0x52f   :  { %v7386_v19 = vadd.f32 %v7385_v34, %v6870_v53  ;;  %v6873_v9 = vsel %vm6637_vm3, %v5878_v23, 0.0  ;;  %v7165_v25 = vadd.f32 %v7164_v27, %v6871_v60  ;;  %v5877_v52 = vmax.f32 %v8147_v15, 0.0  ;;  %v3863_v24 = vpop.f32.mrb[8].mxu0 }
 0x530   :  { %v7313_v54 = vadd.f32 %v7312_v26, %v6873_v9  ;;  %v5879_v59 = vmax.f32 %v8297_v14, 0.0  ;;  %v5507_v44 = vpop.f32.mrb[8].mxu1  ;;  %v8148_v57 = vadd.f32 %v3863_v24, %v10138_v40  ;;  %v3865_v33 = vpop.f32.mrb[9].mxu0  ;;  %v10374_v16 = vadd.s32 256, %v10118_v6 }
 0x531   :  { %v8298_v62 = vadd.f32 %v5507_v44, %v10141_v41  ;;  %v5509_v34 = vpop.f32.mrb[9].mxu1  ;;  %v10377_v20 = vadd.s32 264, %v10118_v6  ;;  %v6872_v48 = vsel %vm6637_vm3, %v5877_v52, 0.0  ;;  %v8149_v15 = vadd.f32 %v3865_v33, %v10147_v46  ;;  %v3867_v27 = vpop.f32.mrb[10].mxu0 }
 0x532   :  { %v6874_v14 = vsel %vm6637_vm3, %v5879_v59, 0.0  ;;  %v8299_v23 = vadd.f32 %v5509_v34, %v10150_v47  ;;  %v5511_v26 = vpop.f32.mrb[10].mxu1  ;;  %v7239_v32 = vadd.f32 %v7238_v43, %v6872_v48  ;;  %v5880_v60 = vmax.f32 %v8148_v57, 0.0  ;;  %v3869_v24 = vpop.f32.mrb[11].mxu0 }
 0x533   :  { %11812 = vst [vmem:[#allocation42_spill] sm:$0xff] %v10377_v20  ;;  %v7387_v53 = vadd.f32 %v7386_v19, %v6874_v14  ;;  %v5882_v9 = vmax.f32 %v8298_v62, 0.0  ;;  %v5513_v44 = vpop.f32.mrb[11].mxu1  ;;  %v5881_v52 = vmax.f32 %v8149_v15, 0.0  ;;  %v8150_v55 = vadd.f32 %v3867_v27, %v10138_v40 }
 0x534   :  { %v5883_v20 = vmax.f32 %v8299_v23, 0.0  ;;  %v8300_v59 = vadd.f32 %v5511_v26, %v10141_v41  ;;  %v6875_v33 = vsel %vm6638_vm4, %v5880_v60, 0.0  ;;  %v8151_v43 = vadd.f32 %v3869_v24, %v10147_v46  ;;  %4132 = vmatmul.mubr.bf16.gmra.mrb[116].mxu0 %v10177_v3 }
 0x535   :  { %v6877_v34 = vsel %vm6638_vm4, %v5882_v9, 0.0  ;;  %v8301_v19 = vadd.f32 %v5513_v44, %v10150_v47  ;;  %5776 = vmatmul.mubr.bf16.gmra.mrb[116].mxu1 %v10177_v3  ;;  %v7166_v57 = vadd.f32 %v7165_v25, %v6875_v33  ;;  %v6876_v48 = vsel %vm6638_vm4, %v5881_v52, 0.0  ;;  %4141 = vmatprep.mubr.bf16.mxu0 %v10182_v5 }
 0x536   :  { %v7314_v62 = vadd.f32 %v7313_v54, %v6877_v34  ;;  %v6878_v14 = vsel %vm6638_vm4, %v5883_v20, 0.0  ;;  %5785 = vmatprep.mubr.bf16.mxu1 %v10182_v5  ;;  %v7240_v15 = vadd.f32 %v7239_v32, %v6876_v48  ;;  %v5884_v3 = vmax.f32 %v8150_v55, 0.0 }
 0x537   :  { %v7388_v23 = vadd.f32 %v7387_v53, %v6878_v14  ;;  %v5886_v25 = vmax.f32 %v8300_v59, 0.0  ;;  %v5885_v54 = vmax.f32 %v8151_v43, 0.0  ;;  %v5887_v27 = vmax.f32 %v8301_v19, 0.0  ;;  %v3873_v26 = vpop.f32.mrb[12].mxu0 }
 0x538   :  { %v5517_v60 = vpop.f32.mrb[12].mxu1  ;;  %v10412_v9 = vadd.s32 272, %v10118_v6  ;;  %v6879_v20 = vsel %vm6639_vm5, %v5884_v3, 0.0  ;;  %v8152_v32 = vadd.f32 %v3873_v26, %v10138_v40  ;;  %v3875_v24 = vpop.f32.mrb[13].mxu0  ;;  %vm6652_vm2 = vcmp.lt.s32.totalorder %v10248_v39, %v10144_v45 }
 0x539   :  { %v6881_v5 = vsel %vm6639_vm5, %v5886_v25, 0.0  ;;  %v8302_v53 = vadd.f32 %v5517_v60, %v10141_v41  ;;  %v5519_v44 = vpop.f32.mrb[13].mxu1  ;;  %v7167_v52 = vadd.f32 %v7166_v57, %v6879_v20  ;;  %v6880_v59 = vsel %vm6639_vm5, %v5885_v54, 0.0  ;;  %v3877_v34 = vpop.f32.mrb[14].mxu0 }
 0x53a   :  { %v7315_v55 = vadd.f32 %v7314_v62, %v6881_v5  ;;  %v6882_v33 = vsel %vm6639_vm5, %v5887_v27, 0.0  ;;  %v5521_v43 = vpop.f32.mrb[14].mxu1  ;;  %v7241_v19 = vadd.f32 %v7240_v15, %v6880_v59  ;;  %v5888_v14 = vmax.f32 %v8152_v32, 0.0  ;;  %v3879_v25 = vpop.f32.mrb[15].mxu0 }
 0x53b   :  { %v7389_v48 = vadd.f32 %v7388_v23, %v6882_v33  ;;  %v5890_v3 = vmax.f32 %v8302_v53, 0.0  ;;  %v5523_v26 = vpop.f32.mrb[15].mxu1  ;;  %v8153_v60 = vadd.f32 %v3875_v24, %v10147_v46  ;;  %v8303_v57 = vadd.f32 %v5519_v44, %v10150_v47 }
 0x53c   :  { %v8154_v62 = vadd.f32 %v3877_v34, %v10138_v40  ;;  %v8304_v54 = vadd.f32 %v5521_v43, %v10141_v41  ;;  %v6883_v2 = vsel %vm6640_vm6, %v5888_v14, 0.0  ;;  %v8155_v23 = vadd.f32 %v3879_v25, %v10147_v46  ;;  %4142 = vmatmul.mubr.bf16.gmra.mrb[120].mxu0 %v10187_v11 }
 0x53d   :  { %v6885_v15 = vsel %vm6640_vm6, %v5890_v3, 0.0  ;;  %v8305_v27 = vadd.f32 %v5523_v26, %v10150_v47  ;;  %5786 = vmatmul.mubr.bf16.gmra.mrb[120].mxu1 %v10187_v11  ;;  %v7168_v20 = vadd.f32 %v7167_v52, %v6883_v2  ;;  %v5889_v32 = vmax.f32 %v8153_v60, 0.0  ;;  %4151 = vmatprep.mubr.bf16.mxu0 %v10192_v13 }
 0x53e   :  { %v7316_v5 = vadd.f32 %v7315_v55, %v6885_v15  ;;  %v5891_v53 = vmax.f32 %v8303_v57, 0.0  ;;  %5795 = vmatprep.mubr.bf16.mxu1 %v10192_v13  ;;  %v5892_v24 = vmax.f32 %v8154_v62, 0.0  ;;  %v5894_v44 = vmax.f32 %v8304_v54, 0.0 }
 0x53f   :  { %v5893_v59 = vmax.f32 %v8155_v23, 0.0  ;;  %v5895_v33 = vmax.f32 %v8305_v27, 0.0  ;;  %v6884_v34 = vsel %vm6640_vm6, %v5889_v32, 0.0  ;;  %v3883_v52 = vpop.f32.mrb[16].mxu0  ;;  %v10458_v43 = vadd.s32 288, %v10118_v6 }
 0x540   :  { %v6886_v11 = vsel %vm6640_vm6, %v5891_v53, 0.0  ;;  %v5527_v55 = vpop.f32.mrb[16].mxu1  ;;  %v10461_v14 = vadd.s32 296, %v10118_v6  ;;  %v7242_v13 = vadd.f32 %v7241_v19, %v6884_v34  ;;  %v6887_v25 = vsel %vm6641_vm7, %v5892_v24, 0.0  ;;  %v3885_v4 = vpop.f32.mrb[17].mxu0 }
 0x541   :  { %v7390_v3 = vadd.f32 %v7389_v48, %v6886_v11  ;;  %v6889_v26 = vsel %vm6641_vm7, %v5894_v44, 0.0  ;;  %v5529_v60 = vpop.f32.mrb[17].mxu1  ;;  %v7169_v57 = vadd.f32 %v7168_v20, %v6887_v25  ;;  %v6888_v54 = vsel %vm6641_vm7, %v5893_v59, 0.0  ;;  %v3887_v48 = vpop.f32.mrb[18].mxu0 }
 0x542   :  { %v7317_v62 = vadd.f32 %v7316_v5, %v6889_v26  ;;  %v6890_v19 = vsel %vm6641_vm7, %v5895_v33, 0.0  ;;  %v5531_v2 = vpop.f32.mrb[18].mxu1  ;;  %v7243_v15 = vadd.f32 %v7242_v13, %v6888_v54  ;;  %v8156_v27 = vadd.f32 %v3883_v52, %v10138_v40  ;;  %v3889_v53 = vpop.f32.mrb[19].mxu0 }
 0x543   :  { %v7391_v23 = vadd.f32 %v7390_v3, %v6890_v19  ;;  %v8306_v32 = vadd.f32 %v5527_v55, %v10141_v41  ;;  %v5533_v24 = vpop.f32.mrb[19].mxu1  ;;  %v8157_v20 = vadd.f32 %v3885_v4, %v10147_v46  ;;  %v8307_v5 = vadd.f32 %v5529_v60, %v10150_v47 }
 0x544   :  { %v8158_v44 = vadd.f32 %v3887_v48, %v10138_v40  ;;  %v8308_v59 = vadd.f32 %v5531_v2, %v10141_v41  ;;  %v5896_v10 = vmax.f32 %v8156_v27, 0.0  ;;  %v8159_v34 = vadd.f32 %v3889_v53, %v10147_v46  ;;  %4152 = vmatmul.mubr.bf16.gmra.mrb[124].mxu0 %v10197_v18 }
 0x545   :  { %v5898_v33 = vmax.f32 %v8306_v32, 0.0  ;;  %v8309_v11 = vadd.f32 %v5533_v24, %v10150_v47  ;;  %5796 = vmatmul.mubr.bf16.gmra.mrb[124].mxu1 %v10197_v18  ;;  %v5897_v52 = vmax.f32 %v8157_v20, 0.0  ;;  %v5899_v55 = vmax.f32 %v8307_v5, 0.0  ;;  %4161 = vmatprep.mubr.bf16.mxu0 %v10202_v22 }
 0x546   :  { %v5900_v13 = vmax.f32 %v8158_v44, 0.0  ;;  %v5902_v3 = vmax.f32 %v8308_v59, 0.0  ;;  %5805 = vmatprep.mubr.bf16.mxu1 %v10202_v22  ;;  %v6891_v25 = vsel %vm6642_vm8, %v5896_v10, 0.0  ;;  %v5901_v18 = vmax.f32 %v8159_v34, 0.0 }
 0x547   :  { %v6893_v26 = vsel %vm6642_vm8, %v5898_v33, 0.0  ;;  %v5903_v4 = vmax.f32 %v8309_v11, 0.0  ;;  %v7170_v60 = vadd.f32 %v7169_v57, %v6891_v25  ;;  %v6892_v19 = vsel %vm6642_vm8, %v5897_v52, 0.0  ;;  %v3893_v48 = vpop.f32.mrb[20].mxu0 }
 0x548   :  { %v7318_v54 = vadd.f32 %v7317_v62, %v6893_v26  ;;  %v6894_v22 = vsel %vm6642_vm8, %v5899_v55, 0.0  ;;  %v5537_v2 = vpop.f32.mrb[20].mxu1  ;;  %v7244_v27 = vadd.f32 %v7243_v15, %v6892_v19  ;;  %v6895_v53 = vsel %vm6643_vm9, %v5900_v13, 0.0  ;;  %v3895_v62 = vpop.f32.mrb[21].mxu0 }
 0x549   :  { %v7392_v32 = vadd.f32 %v7391_v23, %v6894_v22  ;;  %v6897_v57 = vsel %vm6643_vm9, %v5902_v3, 0.0  ;;  %v5539_v24 = vpop.f32.mrb[21].mxu1  ;;  %v7171_v20 = vadd.f32 %v7170_v60, %v6895_v53  ;;  %v6896_v12 = vsel %vm6643_vm9, %v5901_v18, 0.0  ;;  %v3897_v23 = vpop.f32.mrb[22].mxu0 }
 0x54a   :  { %v7319_v5 = vadd.f32 %v7318_v54, %v6897_v57  ;;  %v6898_v15 = vsel %vm6643_vm9, %v5903_v4, 0.0  ;;  %v5541_v44 = vpop.f32.mrb[22].mxu1  ;;  %v7245_v59 = vadd.f32 %v7244_v27, %v6896_v12  ;;  %v8160_v33 = vadd.f32 %v3893_v48, %v10138_v40  ;;  %v3899_v11 = vpop.f32.mrb[23].mxu0 }
 0x54b   :  { %v7393_v10 = vadd.f32 %v7392_v32, %v6898_v15  ;;  %v8310_v34 = vadd.f32 %v5537_v2, %v10141_v41  ;;  %v5543_v52 = vpop.f32.mrb[23].mxu1  ;;  %v8161_v55 = vadd.f32 %v3895_v62, %v10147_v46  ;;  %v8311_v13 = vadd.f32 %v5539_v24, %v10150_v47 }
 0x54c   :  { %v8162_v3 = vadd.f32 %v3897_v23, %v10138_v40  ;;  %v8312_v25 = vadd.f32 %v5541_v44, %v10141_v41  ;;  %v5904_v17 = vmax.f32 %v8160_v33, 0.0  ;;  %v8163_v18 = vadd.f32 %v3899_v11, %v10147_v46  ;;  %4162 = vmatmul.mubr.bf16.gmra.mrb[128].mxu0 %v10209_v29 }
 0x54d   :  { %v5906_v26 = vmax.f32 %v8310_v34, 0.0  ;;  %v8313_v4 = vadd.f32 %v5543_v52, %v10150_v47  ;;  %5806 = vmatmul.mubr.bf16.gmra.mrb[128].mxu1 %v10209_v29  ;;  %v5905_v60 = vmax.f32 %v8161_v55, 0.0  ;;  %v5907_v54 = vmax.f32 %v8311_v13, 0.0  ;;  %4171 = vmatprep.mubr.bf16.mxu0 %v10214_v31 }
 0x54e   :  { %v5908_v19 = vmax.f32 %v8162_v3, 0.0  ;;  %v5910_v22 = vmax.f32 %v8312_v25, 0.0  ;;  %5815 = vmatprep.mubr.bf16.mxu1 %v10214_v31  ;;  %v6899_v48 = vsel %vm6644_vm10, %v5904_v17, 0.0  ;;  %v5909_v29 = vmax.f32 %v8163_v18, 0.0 }
 0x54f   :  { %v6901_v2 = vsel %vm6644_vm10, %v5906_v26, 0.0  ;;  %v5911_v27 = vmax.f32 %v8313_v4, 0.0  ;;  %v7172_v32 = vadd.f32 %v7171_v20, %v6899_v48  ;;  %v6900_v57 = vsel %vm6644_vm10, %v5905_v60, 0.0  ;;  %v3903_v62 = vpop.f32.mrb[24].mxu0 }
 0x550   :  { %v7320_v53 = vadd.f32 %v7319_v5, %v6901_v2  ;;  %v6902_v31 = vsel %vm6644_vm10, %v5907_v54, 0.0  ;;  %v5547_v24 = vpop.f32.mrb[24].mxu1  ;;  %v7246_v12 = vadd.f32 %v7245_v59, %v6900_v57  ;;  %v6903_v23 = vsel %vm6645_vm11, %v5908_v19, 0.0  ;;  %v3905_v5 = vpop.f32.mrb[25].mxu0 }
 0x551   :  { %v7394_v15 = vadd.f32 %v7393_v10, %v6902_v31  ;;  %v6905_v20 = vsel %vm6645_vm11, %v5910_v22, 0.0  ;;  %v5549_v44 = vpop.f32.mrb[25].mxu1  ;;  %v7173_v33 = vadd.f32 %v7172_v32, %v6903_v23  ;;  %v6904_v21 = vsel %vm6645_vm11, %v5909_v29, 0.0  ;;  %v3907_v10 = vpop.f32.mrb[26].mxu0 }
 0x552   :  { %v7321_v34 = vadd.f32 %v7320_v53, %v6905_v20  ;;  %v6906_v59 = vsel %vm6645_vm11, %v5911_v27, 0.0  ;;  %v5551_v11 = vpop.f32.mrb[26].mxu1  ;;  %v7247_v52 = vadd.f32 %v7246_v12, %v6904_v21  ;;  %v8164_v13 = vadd.f32 %v3903_v62, %v10138_v40  ;;  %v3909_v25 = vpop.f32.mrb[27].mxu0 }
 0x553   :  { %v7395_v55 = vadd.f32 %v7394_v15, %v6906_v59  ;;  %v8314_v3 = vadd.f32 %v5547_v24, %v10141_v41  ;;  %v5553_v17 = vpop.f32.mrb[27].mxu1  ;;  %v8165_v26 = vadd.f32 %v3905_v5, %v10147_v46  ;;  %v8315_v18 = vadd.f32 %v5549_v44, %v10150_v47 }
 0x554   :  { %v8166_v4 = vadd.f32 %v3907_v10, %v10138_v40  ;;  %v8316_v60 = vadd.f32 %v5551_v11, %v10141_v41  ;;  %v5912_v28 = vmax.f32 %v8164_v13, 0.0  ;;  %v8167_v19 = vadd.f32 %v3909_v25, %v10147_v46  ;;  %4172 = vmatmul.mubr.bf16.gmra.mrb[132].mxu0 %v10221_v36 }
 0x555   :  { %v5914_v54 = vmax.f32 %v8314_v3, 0.0  ;;  %v8317_v22 = vadd.f32 %v5553_v17, %v10150_v47  ;;  %5816 = vmatmul.mubr.bf16.gmra.mrb[132].mxu1 %v10221_v36  ;;  %v5913_v48 = vmax.f32 %v8165_v26, 0.0  ;;  %v5915_v2 = vmax.f32 %v8315_v18, 0.0  ;;  %4181 = vmatprep.mubr.bf16.mxu0 %v10226_v38 }
 0x556   :  { %v5916_v29 = vmax.f32 %v8166_v4, 0.0  ;;  %v5918_v27 = vmax.f32 %v8316_v60, 0.0  ;;  %5825 = vmatprep.mubr.bf16.mxu1 %v10226_v38  ;;  %v6907_v32 = vsel %vm6646_vm12, %v5912_v28, 0.0  ;;  %v5917_v36 = vmax.f32 %v8167_v19, 0.0 }
 0x557   :  { %v6909_v53 = vsel %vm6646_vm12, %v5914_v54, 0.0  ;;  %v5919_v57 = vmax.f32 %v8317_v22, 0.0  ;;  %v7174_v31 = vadd.f32 %v7173_v33, %v6907_v32  ;;  %v6908_v24 = vsel %vm6646_vm12, %v5913_v48, 0.0  ;;  %v3913_v12 = vpop.f32.mrb[28].mxu0 }
 0x558   :  { %v7322_v62 = vadd.f32 %v7321_v34, %v6909_v53  ;;  %v6910_v38 = vsel %vm6646_vm12, %v5915_v2, 0.0  ;;  %v5557_v15 = vpop.f32.mrb[28].mxu1  ;;  %v7248_v23 = vadd.f32 %v7247_v52, %v6908_v24  ;;  %v6911_v5 = vsel %vm6647_vm13, %v5916_v29, 0.0  ;;  %v3915_v33 = vpop.f32.mrb[29].mxu0 }
 0x559   :  { %v7396_v20 = vadd.f32 %v7395_v55, %v6910_v38  ;;  %v6913_v44 = vsel %vm6647_vm13, %v5918_v27, 0.0  ;;  %v5559_v34 = vpop.f32.mrb[29].mxu1  ;;  %v7175_v21 = vadd.f32 %v7174_v31, %v6911_v5  ;;  %v6912_v30 = vsel %vm6647_vm13, %v5917_v36, 0.0  ;;  %v3917_v11 = vpop.f32.mrb[30].mxu0 }
 0x55a   :  { %v7323_v59 = vadd.f32 %v7322_v62, %v6913_v44  ;;  %v6914_v10 = vsel %vm6647_vm13, %v5919_v57, 0.0  ;;  %v5561_v52 = vpop.f32.mrb[30].mxu1  ;;  %v7249_v55 = vadd.f32 %v7248_v23, %v6912_v30  ;;  %v8168_v3 = vadd.f32 %v3913_v12, %v10138_v40  ;;  %v3919_v17 = vpop.f32.mrb[31].mxu0 }
 0x55b   :  { %v7397_v13 = vadd.f32 %v7396_v20, %v6914_v10  ;;  %v8318_v25 = vadd.f32 %v5557_v15, %v10141_v41  ;;  %v5563_v26 = vpop.f32.mrb[31].mxu1  ;;  %v8169_v18 = vadd.f32 %v3915_v33, %v10147_v46  ;;  %v8319_v4 = vadd.f32 %v5559_v34, %v10150_v47 }
 0x55c   :  { %v8170_v60 = vadd.f32 %v3917_v11, %v10138_v40  ;;  %v8320_v28 = vadd.f32 %v5561_v52, %v10141_v41  ;;  %v5920_v35 = vmax.f32 %v8168_v3, 0.0  ;;  %v8171_v19 = vadd.f32 %v3919_v17, %v10147_v46  ;;  %4182 = vmatmul.mubr.bf16.gmra.mrb[136].mxu0 %v10233_v50 }
 0x55d   :  { %v5922_v54 = vmax.f32 %v8318_v25, 0.0  ;;  %v8321_v22 = vadd.f32 %v5563_v26, %v10150_v47  ;;  %5826 = vmatmul.mubr.bf16.gmra.mrb[136].mxu1 %v10233_v50  ;;  %v5921_v48 = vmax.f32 %v8169_v18, 0.0  ;;  %v5923_v2 = vmax.f32 %v8319_v4, 0.0  ;;  %4191 = vmatprep.mubr.bf16.mxu0 %v10238_v56 }
 0x55e   :  { %v5924_v29 = vmax.f32 %v8170_v60, 0.0  ;;  %v5926_v27 = vmax.f32 %v8320_v28, 0.0  ;;  %5835 = vmatprep.mubr.bf16.mxu1 %v10238_v56  ;;  %v6915_v32 = vsel %vm6648_vm14, %v5920_v35, 0.0  ;;  %v5925_v50 = vmax.f32 %v8171_v19, 0.0 }
 0x55f   :  { %v6917_v53 = vsel %vm6648_vm14, %v5922_v54, 0.0  ;;  %v5927_v36 = vmax.f32 %v8321_v22, 0.0  ;;  %v7176_v57 = vadd.f32 %v7175_v21, %v6915_v32  ;;  %v6916_v62 = vsel %vm6648_vm14, %v5921_v48, 0.0  ;;  %v3923_v24 = vpop.f32.mrb[32].mxu0 }
 0x560   :  { %v7324_v31 = vadd.f32 %v7323_v59, %v6917_v53  ;;  %v6918_v56 = vsel %vm6648_vm14, %v5923_v2, 0.0  ;;  %v5567_v38 = vpop.f32.mrb[32].mxu1  ;;  %v7250_v12 = vadd.f32 %v7249_v55, %v6916_v62  ;;  %v6919_v23 = vsel %vm6649_vm15, %v5924_v29, 0.0  ;;  %v3925_v5 = vpop.f32.mrb[33].mxu0 }
 0x561   :  { %v7398_v15 = vadd.f32 %v7397_v13, %v6918_v56  ;;  %v6921_v20 = vsel %vm6649_vm15, %v5926_v27, 0.0  ;;  %v5569_v44 = vpop.f32.mrb[33].mxu1  ;;  %v7177_v33 = vadd.f32 %v7176_v57, %v6919_v23  ;;  %v6920_v37 = vsel %vm6649_vm15, %v5925_v50, 0.0  ;;  %v3927_v59 = vpop.f32.mrb[34].mxu0 }
 0x562   :  { %v7325_v34 = vadd.f32 %v7324_v31, %v6921_v20  ;;  %v6922_v21 = vsel %vm6649_vm15, %v5927_v36, 0.0  ;;  %v5571_v30 = vpop.f32.mrb[34].mxu1  ;;  %v7251_v10 = vadd.f32 %v7250_v12, %v6920_v37  ;;  %v8172_v52 = vadd.f32 %v3923_v24, %v10138_v40  ;;  %v3929_v13 = vpop.f32.mrb[35].mxu0 }
 0x563   :  { %v7399_v11 = vadd.f32 %v7398_v15, %v6922_v21  ;;  %v8322_v55 = vadd.f32 %v5567_v38, %v10141_v41  ;;  %v5573_v3 = vpop.f32.mrb[35].mxu1  ;;  %v8173_v25 = vadd.f32 %v3925_v5, %v10147_v46  ;;  %v8323_v17 = vadd.f32 %v5569_v44, %v10150_v47 }
 0x564   :  { %v8174_v26 = vadd.f32 %v3927_v59, %v10138_v40  ;;  %v8324_v18 = vadd.f32 %v5571_v30, %v10141_v41  ;;  %v5928_v49 = vmax.f32 %v8172_v52, 0.0  ;;  %v8175_v60 = vadd.f32 %v3929_v13, %v10147_v46  ;;  %4192 = vmatmul.mubr.bf16.gmra.mrb[140].mxu0 %v10245_v63 }
 0x565   :  { %v5930_v4 = vmax.f32 %v8322_v55, 0.0  ;;  %v8325_v28 = vadd.f32 %v5573_v3, %v10150_v47  ;;  %5836 = vmatmul.mubr.bf16.gmra.mrb[140].mxu1 %v10245_v63  ;;  %v5929_v35 = vmax.f32 %v8173_v25, 0.0  ;;  %v5931_v54 = vmax.f32 %v8323_v17, 0.0  ;;  %4201 = vmatprep.mubr.bf16.mxu0 %v10250_v0 }
 0x566   :  { %v5932_v19 = vmax.f32 %v8174_v26, 0.0  ;;  %v5934_v22 = vmax.f32 %v8324_v18, 0.0  ;;  %vm6653_vm3 = vcmp.lt.s32.totalorder %v10253_v1, %v10144_v45  ;;  %5845 = vmatprep.mubr.bf16.mxu1 %v10250_v0  ;;  %v6923_v48 = vsel %vm6650_vm0, %v5928_v49, 0.0  ;;  %v11813_v49 = vld [vmem:[#allocation31_spill] sm:$0xff]  ;;  %v11815_v1 = vld [vmem:[#allocation33_spill] sm:$0xff] }
 0x567   :  { %v6925_v2 = vsel %vm6650_vm0, %v5930_v4, 0.0  ;;  %v5933_v63 = vmax.f32 %v8175_v60, 0.0  ;;  %v5935_v29 = vmax.f32 %v8325_v28, 0.0  ;;  %v7178_v27 = vadd.f32 %v7177_v33, %v6923_v48  ;;  %v3933_v50 = vpop.f32.mrb[36].mxu0  ;;  %v11814_v4 = vld [vmem:[#allocation30_spill] sm:$0xff] }
 0x568   :  { %v7326_v32 = vadd.f32 %v7325_v34, %v6925_v2  ;;  %v6924_v53 = vsel %vm6650_vm0, %v5929_v35, 0.0  ;;  %v6926_v0 = vsel %vm6650_vm0, %v5931_v54, 0.0  ;;  %v5577_v36 = vpop.f32.mrb[36].mxu1  ;;  %v6927_v62 = vsel %vm6651_vm1, %v5932_v19, 0.0  ;;  %v3935_v24 = vpop.f32.mrb[37].mxu0 }
 0x569   :  { %v7252_v57 = vadd.f32 %v7251_v10, %v6924_v53  ;;  %v7400_v31 = vadd.f32 %v7399_v11, %v6926_v0  ;;  %v6929_v56 = vsel %vm6651_vm1, %v5934_v22, 0.0  ;;  %v5579_v38 = vpop.f32.mrb[37].mxu1  ;;  %v7179_v12 = vadd.f32 %v7178_v27, %v6927_v62  ;;  %v3937_v20 = vpop.f32.mrb[38].mxu0 }
 0x56a   :  { %v7327_v15 = vadd.f32 %v7326_v32, %v6929_v56  ;;  %v6928_v51 = vsel %vm6651_vm1, %v5933_v63, 0.0  ;;  %v6930_v23 = vsel %vm6651_vm1, %v5935_v29, 0.0  ;;  %v5581_v5 = vpop.f32.mrb[38].mxu1  ;;  %v8176_v34 = vadd.f32 %v3933_v50, %v10138_v40  ;;  %v3939_v21 = vpop.f32.mrb[39].mxu0 }
 0x56b   :  { %v7253_v44 = vadd.f32 %v7252_v57, %v6928_v51  ;;  %v7401_v33 = vadd.f32 %v7400_v31, %v6930_v23  ;;  %v8326_v37 = vadd.f32 %v5577_v36, %v10141_v41  ;;  %v5583_v59 = vpop.f32.mrb[39].mxu1  ;;  %v8177_v30 = vadd.f32 %v3935_v24, %v10147_v46 }
 0x56c   :  { %v8327_v10 = vadd.f32 %v5579_v38, %v10150_v47  ;;  %v8178_v11 = vadd.f32 %v3937_v20, %v10138_v40  ;;  %v8328_v52 = vadd.f32 %v5581_v5, %v10141_v41  ;;  %vm6654_vm4 = vcmp.lt.s32.totalorder %v10258_v8, %v10144_v45  ;;  %4202 = vmatmul.mubr.bf16.gmra.mrb[144].mxu0 %v10255_v7 }
 0x56d   :  { %v5936_v58 = vmax.f32 %v8176_v34, 0.0  ;;  %v5938_v55 = vmax.f32 %v8326_v37, 0.0  ;;  %v8179_v13 = vadd.f32 %v3939_v21, %v10147_v46  ;;  %v8329_v3 = vadd.f32 %v5583_v59, %v10150_v47  ;;  %5846 = vmatmul.mubr.bf16.gmra.mrb[144].mxu1 %v10255_v7  ;;  %4211 = vmatprep.mubr.bf16.mxu0 %v11814_v4 }
 0x56e   :  { %v5937_v25 = vmax.f32 %v8177_v30, 0.0  ;;  %v5939_v17 = vmax.f32 %v8327_v10, 0.0  ;;  %v5940_v26 = vmax.f32 %v8178_v11, 0.0  ;;  %v5942_v18 = vmax.f32 %v8328_v52, 0.0  ;;  %5855 = vmatprep.mubr.bf16.mxu1 %v11814_v4  ;;  %v11816_v30 = vld [vmem:[#allocation32_spill] sm:$0xff] }
 0x56f   :  { %vm6655_vm5 = vcmp.lt.s32.totalorder %v11813_v49, %v10144_v45  ;;  %v6931_v60 = vsel %vm6652_vm2, %v5936_v58, 0.0  ;;  %v6933_v28 = vsel %vm6652_vm2, %v5938_v55, 0.0  ;;  %v5941_v7 = vmax.f32 %v8179_v13, 0.0  ;;  %v3943_v2 = vpop.f32.mrb[40].mxu0  ;;  %v11817_v55 = vld [vmem:[#allocation34_spill] sm:$0xff]  ;;  %v11818_v49 = vld [vmem:[#allocation35_spill] sm:$0xff] }
 0x570   :  { %v5943_v35 = vmax.f32 %v8329_v3, 0.0  ;;  %v7180_v54 = vadd.f32 %v7179_v12, %v6931_v60  ;;  %v7328_v19 = vadd.f32 %v7327_v15, %v6933_v28  ;;  %v6932_v22 = vsel %vm6652_vm2, %v5937_v25, 0.0  ;;  %v5587_v63 = vpop.f32.mrb[40].mxu1  ;;  %v3945_v0 = vpop.f32.mrb[41].mxu0 }
 0x571   :  { %v6934_v48 = vsel %vm6652_vm2, %v5939_v17, 0.0  ;;  %v7254_v29 = vadd.f32 %v7253_v44, %v6932_v22  ;;  %v6935_v32 = vsel %vm6653_vm3, %v5940_v26, 0.0  ;;  %v6937_v53 = vsel %vm6653_vm3, %v5942_v18, 0.0  ;;  %v5589_v50 = vpop.f32.mrb[41].mxu1  ;;  %v3947_v62 = vpop.f32.mrb[42].mxu0 }
 0x572   :  { %v7402_v27 = vadd.f32 %v7401_v33, %v6934_v48  ;;  %v7181_v36 = vadd.f32 %v7180_v54, %v6935_v32  ;;  %v7329_v57 = vadd.f32 %v7328_v19, %v6937_v53  ;;  %v6936_v39 = vsel %vm6653_vm3, %v5941_v7, 0.0  ;;  %v5591_v56 = vpop.f32.mrb[42].mxu1  ;;  %v3949_v51 = vpop.f32.mrb[43].mxu0 }
 0x573   :  { %v6938_v31 = vsel %vm6653_vm3, %v5943_v35, 0.0  ;;  %v7255_v24 = vadd.f32 %v7254_v29, %v6936_v39  ;;  %v8180_v12 = vadd.f32 %v3943_v2, %v10138_v40  ;;  %v8330_v15 = vadd.f32 %v5587_v63, %v10141_v41  ;;  %v5593_v23 = vpop.f32.mrb[43].mxu1 }
 0x574   :  { %v7403_v38 = vadd.f32 %v7402_v27, %v6938_v31  ;;  %v8181_v20 = vadd.f32 %v3945_v0, %v10147_v46  ;;  %v8331_v5 = vadd.f32 %v5589_v50, %v10150_v47  ;;  %v8182_v44 = vadd.f32 %v3947_v62, %v10138_v40  ;;  %4212 = vmatmul.mubr.bf16.gmra.mrb[148].mxu0 %v11816_v30 }
 0x575   :  { %v8332_v33 = vadd.f32 %v5591_v56, %v10141_v41  ;;  %vm6656_vm6 = vcmp.lt.s32.totalorder %v11815_v1, %v10144_v45  ;;  %v5944_v34 = vmax.f32 %v8180_v12, 0.0  ;;  %v5946_v37 = vmax.f32 %v8330_v15, 0.0  ;;  %5856 = vmatmul.mubr.bf16.gmra.mrb[148].mxu1 %v11816_v30 }
 0x576   :  { %v8183_v21 = vadd.f32 %v3949_v51, %v10147_v46  ;;  %v8333_v59 = vadd.f32 %v5593_v23, %v10150_v47  ;;  %v5945_v10 = vmax.f32 %v8181_v20, 0.0  ;;  %v5947_v11 = vmax.f32 %v8331_v5, 0.0 }
 0x577   :  { %v5948_v52 = vmax.f32 %v8182_v44, 0.0  ;;  %v5950_v58 = vmax.f32 %v8332_v33, 0.0  ;;  %vm6657_vm7 = vcmp.lt.s32.totalorder %v11817_v55, %v10144_v45  ;;  %v6939_v13 = vsel %vm6654_vm4, %v5944_v34, 0.0  ;;  %v3953_v28 = vpop.f32.mrb[44].mxu0  ;;  %v11819_v34 = vld [vmem:[#allocation36_spill] sm:$0xff]  ;;  %v11820_v55 = vld [vmem:[#allocation37_spill] sm:$0xff] }
 0x578   :  { %v6941_v3 = vsel %vm6654_vm4, %v5946_v37, 0.0  ;;  %v5949_v25 = vmax.f32 %v8183_v21, 0.0  ;;  %v5951_v17 = vmax.f32 %v8333_v59, 0.0  ;;  %v7182_v26 = vadd.f32 %v7181_v36, %v6939_v13  ;;  %v5597_v7 = vpop.f32.mrb[44].mxu1  ;;  %v3955_v48 = vpop.f32.mrb[45].mxu0 }
 0x579   :  { %v7330_v18 = vadd.f32 %v7329_v57, %v6941_v3  ;;  %v6940_v4 = vsel %vm6654_vm4, %v5945_v10, 0.0  ;;  %v6942_v60 = vsel %vm6654_vm4, %v5947_v11, 0.0  ;;  %v6943_v19 = vsel %vm6655_vm5, %v5948_v52, 0.0  ;;  %v5599_v2 = vpop.f32.mrb[45].mxu1  ;;  %v3957_v32 = vpop.f32.mrb[46].mxu0 }
 0x57a   :  { %v7256_v35 = vadd.f32 %v7255_v24, %v6940_v4  ;;  %v7404_v54 = vadd.f32 %v7403_v38, %v6942_v60  ;;  %v6945_v22 = vsel %vm6655_vm5, %v5950_v58, 0.0  ;;  %v7183_v63 = vadd.f32 %v7182_v26, %v6943_v19  ;;  %v5601_v53 = vpop.f32.mrb[46].mxu1  ;;  %v3959_v39 = vpop.f32.mrb[47].mxu0 }
 0x57b   :  { %v7331_v29 = vadd.f32 %v7330_v18, %v6945_v22  ;;  %v6944_v8 = vsel %vm6655_vm5, %v5949_v25, 0.0  ;;  %v6946_v27 = vsel %vm6655_vm5, %v5951_v17, 0.0  ;;  %v8184_v36 = vadd.f32 %v3953_v28, %v10138_v40  ;;  %v5603_v31 = vpop.f32.mrb[47].mxu1 }
 0x57c   :  { %v7257_v0 = vadd.f32 %v7256_v35, %v6944_v8  ;;  %v7405_v50 = vadd.f32 %v7404_v54, %v6946_v27  ;;  %v8334_v57 = vadd.f32 %v5597_v7, %v10141_v41  ;;  %v8185_v62 = vadd.f32 %v3955_v48, %v10147_v46 }
 0x57d   :  { %v8335_v56 = vadd.f32 %v5599_v2, %v10150_v47  ;;  %v8186_v24 = vadd.f32 %v3957_v32, %v10138_v40  ;;  %v8336_v38 = vadd.f32 %v5601_v53, %v10141_v41  ;;  %vm6658_vm8 = vcmp.lt.s32.totalorder %v11818_v49, %v10144_v45 }
 0x57e   :  { %v5952_v12 = vmax.f32 %v8184_v36, 0.0  ;;  %v5954_v15 = vmax.f32 %v8334_v57, 0.0  ;;  %v8187_v51 = vadd.f32 %v3959_v39, %v10147_v46  ;;  %v8337_v23 = vadd.f32 %v5603_v31, %v10150_v47 }
 0x57f   :  { %v5953_v20 = vmax.f32 %v8185_v62, 0.0  ;;  %v5955_v5 = vmax.f32 %v8335_v56, 0.0  ;;  %v5956_v44 = vmax.f32 %v8186_v24, 0.0  ;;  %v5958_v33 = vmax.f32 %v8336_v38, 0.0  ;;  %v3963_v13 = vpop.f32.mrb[48].mxu0  ;;  %v11821_v38 = vld [vmem:[#allocation38_spill] sm:$0xff] }
 0x580   :  { %vm6659_vm9 = vcmp.lt.s32.totalorder %v11819_v34, %v10144_v45  ;;  %v6947_v37 = vsel %vm6656_vm6, %v5952_v12, 0.0  ;;  %v6949_v21 = vsel %vm6656_vm6, %v5954_v15, 0.0  ;;  %v5957_v59 = vmax.f32 %v8187_v51, 0.0  ;;  %v5607_v3 = vpop.f32.mrb[48].mxu1  ;;  %v3965_v4 = vpop.f32.mrb[49].mxu0  ;;  %v11822_v34 = vld [vmem:[#allocation39_spill] sm:$0xff] }
 0x581   :  { %v5959_v30 = vmax.f32 %v8337_v23, 0.0  ;;  %v7184_v10 = vadd.f32 %v7183_v63, %v6947_v37  ;;  %v7332_v11 = vadd.f32 %v7331_v29, %v6949_v21  ;;  %v6948_v52 = vsel %vm6656_vm6, %v5953_v20, 0.0  ;;  %v5609_v60 = vpop.f32.mrb[49].mxu1  ;;  %v3967_v54 = vpop.f32.mrb[50].mxu0 }
 0x582   :  { %v6950_v58 = vsel %vm6656_vm6, %v5955_v5, 0.0  ;;  %v7258_v25 = vadd.f32 %v7257_v0, %v6948_v52  ;;  %v6951_v26 = vsel %vm6657_vm7, %v5956_v44, 0.0  ;;  %v6953_v18 = vsel %vm6657_vm7, %v5958_v33, 0.0  ;;  %v5611_v19 = vpop.f32.mrb[50].mxu1  ;;  %v3969_v29 = vpop.f32.mrb[51].mxu0 }
 0x583   :  { %v7406_v17 = vadd.f32 %v7405_v50, %v6950_v58  ;;  %v7185_v28 = vadd.f32 %v7184_v10, %v6951_v26  ;;  %v7333_v7 = vadd.f32 %v7332_v11, %v6953_v18  ;;  %v6952_v1 = vsel %vm6657_vm7, %v5957_v59, 0.0  ;;  %v5613_v8 = vpop.f32.mrb[51].mxu1 }
 0x584   :  { %v6954_v35 = vsel %vm6657_vm7, %v5959_v30, 0.0  ;;  %v7259_v22 = vadd.f32 %v7258_v25, %v6952_v1  ;;  %v8188_v2 = vadd.f32 %v3963_v13, %v10138_v40  ;;  %v8338_v63 = vadd.f32 %v5607_v3, %v10141_v41 }
 0x585   :  { %v7407_v48 = vadd.f32 %v7406_v17, %v6954_v35  ;;  %v8189_v27 = vadd.f32 %v3965_v4, %v10147_v46  ;;  %v8339_v32 = vadd.f32 %v5609_v60, %v10150_v47  ;;  %v8190_v53 = vadd.f32 %v3967_v54, %v10138_v40 }
 0x586   :  { %v8340_v0 = vadd.f32 %v5611_v19, %v10141_v41  ;;  %vm6660_vm10 = vcmp.lt.s32.totalorder %v11820_v55, %v10144_v45  ;;  %v5960_v50 = vmax.f32 %v8188_v2, 0.0  ;;  %v5962_v36 = vmax.f32 %v8338_v63, 0.0 }
 0x587   :  { %v8191_v57 = vadd.f32 %v3969_v29, %v10147_v46  ;;  %v8341_v39 = vadd.f32 %v5613_v8, %v10150_v47  ;;  %v5961_v31 = vmax.f32 %v8189_v27, 0.0  ;;  %v5963_v62 = vmax.f32 %v8339_v32, 0.0  ;;  %v3973_v37 = vpop.f32.mrb[52].mxu0 }
 0x588   :  { %v5964_v56 = vmax.f32 %v8190_v53, 0.0  ;;  %v5966_v24 = vmax.f32 %v8340_v0, 0.0  ;;  %vm6661_vm11 = vcmp.lt.s32.totalorder %v11821_v38, %v10144_v45  ;;  %v6955_v12 = vsel %vm6658_vm8, %v5960_v50, 0.0  ;;  %v5617_v21 = vpop.f32.mrb[52].mxu1  ;;  %v3975_v52 = vpop.f32.mrb[53].mxu0  ;;  %v11823_v0 = vld [vmem:[#allocation40_spill] sm:$0xff] }
 0x589   :  { %v6957_v15 = vsel %vm6658_vm8, %v5962_v36, 0.0  ;;  %v5965_v51 = vmax.f32 %v8191_v57, 0.0  ;;  %v5967_v23 = vmax.f32 %v8341_v39, 0.0  ;;  %v7186_v20 = vadd.f32 %v7185_v28, %v6955_v12  ;;  %v5619_v58 = vpop.f32.mrb[53].mxu1  ;;  %v3977_v17 = vpop.f32.mrb[54].mxu0  ;;  %v11824_v38 = vld [vmem:[#allocation41_spill] sm:$0xff] }
 0x58a   :  { %v7334_v5 = vadd.f32 %v7333_v7, %v6957_v15  ;;  %v6956_v44 = vsel %vm6658_vm8, %v5961_v31, 0.0  ;;  %v6958_v33 = vsel %vm6658_vm8, %v5963_v62, 0.0  ;;  %v6959_v10 = vsel %vm6659_vm9, %v5964_v56, 0.0  ;;  %v5621_v26 = vpop.f32.mrb[54].mxu1  ;;  %v3979_v7 = vpop.f32.mrb[55].mxu0 }
 0x58b   :  { %v7260_v59 = vadd.f32 %v7259_v22, %v6956_v44  ;;  %v7408_v30 = vadd.f32 %v7407_v48, %v6958_v33  ;;  %v6961_v11 = vsel %vm6659_vm9, %v5966_v24, 0.0  ;;  %v7187_v13 = vadd.f32 %v7186_v20, %v6959_v10  ;;  %v5623_v1 = vpop.f32.mrb[55].mxu1 }
 0x58c   :  { %v7335_v3 = vadd.f32 %v7334_v5, %v6961_v11  ;;  %v6960_v49 = vsel %vm6659_vm9, %v5965_v51, 0.0  ;;  %v6962_v25 = vsel %vm6659_vm9, %v5967_v23, 0.0  ;;  %v8192_v60 = vadd.f32 %v3973_v37, %v10138_v40 }
 0x58d   :  { %v7261_v18 = vadd.f32 %v7260_v59, %v6960_v49  ;;  %v7409_v4 = vadd.f32 %v7408_v30, %v6962_v25  ;;  %v8342_v28 = vadd.f32 %v5617_v21, %v10141_v41  ;;  %v8193_v35 = vadd.f32 %v3975_v52, %v10147_v46 }
 0x58e   :  { %v8343_v54 = vadd.f32 %v5619_v58, %v10150_v47  ;;  %v8194_v19 = vadd.f32 %v3977_v17, %v10138_v40  ;;  %v8344_v22 = vadd.f32 %v5621_v26, %v10141_v41  ;;  %vm6662_vm12 = vcmp.lt.s32.totalorder %v11822_v34, %v10144_v45 }
 0x58f   :  { %v5968_v48 = vmax.f32 %v8192_v60, 0.0  ;;  %v5970_v2 = vmax.f32 %v8342_v28, 0.0  ;;  %v8195_v63 = vadd.f32 %v3979_v7, %v10147_v46  ;;  %v8345_v29 = vadd.f32 %v5623_v1, %v10150_v47  ;;  %v3983_v12 = vpop.f32.mrb[56].mxu0 }
 0x590   :  { %v5969_v8 = vmax.f32 %v8193_v35, 0.0  ;;  %v5971_v27 = vmax.f32 %v8343_v54, 0.0  ;;  %v5972_v32 = vmax.f32 %v8194_v19, 0.0  ;;  %v5974_v53 = vmax.f32 %v8344_v22, 0.0  ;;  %v5627_v15 = vpop.f32.mrb[56].mxu1  ;;  %v3985_v44 = vpop.f32.mrb[57].mxu0 }
 0x591   :  { %vm6663_vm13 = vcmp.lt.s32.totalorder %v11823_v0, %v10144_v45  ;;  %v6963_v50 = vsel %vm6660_vm10, %v5968_v48, 0.0  ;;  %v6965_v36 = vsel %vm6660_vm10, %v5970_v2, 0.0  ;;  %v5973_v57 = vmax.f32 %v8195_v63, 0.0  ;;  %v5629_v33 = vpop.f32.mrb[57].mxu1  ;;  %v3987_v30 = vpop.f32.mrb[58].mxu0 }
 0x592   :  { %v5975_v39 = vmax.f32 %v8345_v29, 0.0  ;;  %v7188_v31 = vadd.f32 %v7187_v13, %v6963_v50  ;;  %v7336_v62 = vadd.f32 %v7335_v3, %v6965_v36  ;;  %v6964_v56 = vsel %vm6660_vm10, %v5969_v8, 0.0  ;;  %v5631_v10 = vpop.f32.mrb[58].mxu1  ;;  %v3989_v3 = vpop.f32.mrb[59].mxu0 }
 0x593   :  { %v6966_v24 = vsel %vm6660_vm10, %v5971_v27, 0.0  ;;  %v7262_v51 = vadd.f32 %v7261_v18, %v6964_v56  ;;  %v6967_v20 = vsel %vm6661_vm11, %v5972_v32, 0.0  ;;  %v6969_v5 = vsel %vm6661_vm11, %v5974_v53, 0.0  ;;  %v5633_v49 = vpop.f32.mrb[59].mxu1 }
 0x594   :  { %v7410_v23 = vadd.f32 %v7409_v4, %v6966_v24  ;;  %v7189_v37 = vadd.f32 %v7188_v31, %v6967_v20  ;;  %v7337_v21 = vadd.f32 %v7336_v62, %v6969_v5  ;;  %v6968_v55 = vsel %vm6661_vm11, %v5973_v57, 0.0 }
 0x595   :  { %v6970_v59 = vsel %vm6661_vm11, %v5975_v39, 0.0  ;;  %v7263_v11 = vadd.f32 %v7262_v51, %v6968_v55  ;;  %v8196_v58 = vadd.f32 %v3983_v12, %v10138_v40  ;;  %v8346_v13 = vadd.f32 %v5627_v15, %v10141_v41 }
 0x596   :  { %v7411_v52 = vadd.f32 %v7410_v23, %v6970_v59  ;;  %v8197_v25 = vadd.f32 %v3985_v44, %v10147_v46  ;;  %v8347_v17 = vadd.f32 %v5629_v33, %v10150_v47  ;;  %v8198_v26 = vadd.f32 %v3987_v30, %v10138_v40 }
 0x597   :  { %v8348_v18 = vadd.f32 %v5631_v10, %v10141_v41  ;;  %vm6664_vm14 = vcmp.lt.s32.totalorder %v11824_v38, %v10144_v45  ;;  %v5976_v4 = vmax.f32 %v8196_v58, 0.0  ;;  %v5978_v60 = vmax.f32 %v8346_v13, 0.0  ;;  %v3993_v53 = vpop.f32.mrb[60].mxu0 }
 0x598   :  { %v8199_v28 = vadd.f32 %v3989_v3, %v10147_v46  ;;  %v8349_v7 = vadd.f32 %v5633_v49, %v10150_v47  ;;  %v5977_v1 = vmax.f32 %v8197_v25, 0.0  ;;  %v5979_v35 = vmax.f32 %v8347_v17, 0.0  ;;  %v5637_v50 = vpop.f32.mrb[60].mxu1  ;;  %v3995_v62 = vpop.f32.mrb[61].mxu0  ;;  %v11825_v17 = vld [vmem:[#allocation42_spill] sm:$0xff] }
 0x599   :  { %v5980_v54 = vmax.f32 %v8198_v26, 0.0  ;;  %v5982_v19 = vmax.f32 %v8348_v18, 0.0  ;;  %vm6665_vm15 = vcmp.lt.s32.totalorder %v10341_v42, %v10144_v45  ;;  %v6971_v22 = vsel %vm6662_vm12, %v5976_v4, 0.0  ;;  %v5639_v56 = vpop.f32.mrb[61].mxu1  ;;  %v3997_v51 = vpop.f32.mrb[62].mxu0 }
 0x59a   :  { %v6973_v48 = vsel %vm6662_vm12, %v5978_v60, 0.0  ;;  %v5981_v2 = vmax.f32 %v8199_v28, 0.0  ;;  %v5983_v63 = vmax.f32 %v8349_v7, 0.0  ;;  %v7190_v29 = vadd.f32 %v7189_v37, %v6971_v22  ;;  %v5641_v23 = vpop.f32.mrb[62].mxu1  ;;  %v3999_v37 = vpop.f32.mrb[63].mxu0 }
 0x59b   :  { %v7338_v8 = vadd.f32 %v7337_v21, %v6973_v48  ;;  %v6972_v27 = vsel %vm6662_vm12, %v5977_v1, 0.0  ;;  %v6974_v32 = vsel %vm6662_vm12, %v5979_v35, 0.0  ;;  %v6975_v39 = vsel %vm6663_vm13, %v5980_v54, 0.0  ;;  %v5643_v21 = vpop.f32.mrb[63].mxu1 }
 0x59c   :  { %v7264_v36 = vadd.f32 %v7263_v11, %v6972_v27  ;;  %v7412_v57 = vadd.f32 %v7411_v52, %v6974_v32  ;;  %v6977_v31 = vsel %vm6663_vm13, %v5982_v19, 0.0  ;;  %v7191_v24 = vadd.f32 %v7190_v29, %v6975_v39 }
 0x59d   :  { %v7339_v12 = vadd.f32 %v7338_v8, %v6977_v31  ;;  %v6976_v34 = vsel %vm6663_vm13, %v5981_v2, 0.0  ;;  %v6978_v15 = vsel %vm6663_vm13, %v5983_v63, 0.0  ;;  %v8200_v44 = vadd.f32 %v3993_v53, %v10138_v40 }
 0x59e   :  { %v7265_v20 = vadd.f32 %v7264_v36, %v6976_v34  ;;  %v7413_v5 = vadd.f32 %v7412_v57, %v6978_v15  ;;  %v8350_v33 = vadd.f32 %v5637_v50, %v10141_v41  ;;  %v8201_v55 = vadd.f32 %v3995_v62, %v10147_v46 }
 0x59f   :  { %v8351_v59 = vadd.f32 %v5639_v56, %v10150_v47  ;;  %v8202_v30 = vadd.f32 %v3997_v51, %v10138_v40  ;;  %v8352_v10 = vadd.f32 %v5641_v23, %v10141_v41  ;;  %vm6666_vm0 = vcmp.lt.s32.totalorder %v10374_v16, %v10144_v45  ;;  %v4003_v54 = vpop.f32.mrb[64].mxu0 }
 0x5a0   :  { %v5984_v0 = vmax.f32 %v8200_v44, 0.0  ;;  %v5986_v11 = vmax.f32 %v8350_v33, 0.0  ;;  %v8203_v52 = vadd.f32 %v3999_v37, %v10147_v46  ;;  %v8353_v58 = vadd.f32 %v5643_v21, %v10150_v47  ;;  %v5647_v19 = vpop.f32.mrb[64].mxu1  ;;  %v4005_v29 = vpop.f32.mrb[65].mxu0 }
 0x5a1   :  { %v5985_v13 = vmax.f32 %v8201_v55, 0.0  ;;  %v5987_v3 = vmax.f32 %v8351_v59, 0.0  ;;  %v5988_v49 = vmax.f32 %v8202_v30, 0.0  ;;  %v5990_v25 = vmax.f32 %v8352_v10, 0.0  ;;  %v5649_v8 = vpop.f32.mrb[65].mxu1  ;;  %v4007_v50 = vpop.f32.mrb[66].mxu0 }
 0x5a2   :  { %vm6667_vm1 = vcmp.lt.s32.totalorder %v11825_v17, %v10144_v45  ;;  %v6979_v26 = vsel %vm6664_vm14, %v5984_v0, 0.0  ;;  %v6981_v18 = vsel %vm6664_vm14, %v5986_v11, 0.0  ;;  %v5989_v4 = vmax.f32 %v8203_v52, 0.0  ;;  %v5651_v36 = vpop.f32.mrb[66].mxu1  ;;  %v4009_v56 = vpop.f32.mrb[67].mxu0 }
 0x5a3   :  { %v5991_v60 = vmax.f32 %v8353_v58, 0.0  ;;  %v7192_v28 = vadd.f32 %v7191_v24, %v6979_v26  ;;  %v7340_v7 = vadd.f32 %v7339_v12, %v6981_v18  ;;  %v6980_v1 = vsel %vm6664_vm14, %v5985_v13, 0.0  ;;  %v5653_v24 = vpop.f32.mrb[67].mxu1 }
 0x5a4   :  { %v6982_v35 = vsel %vm6664_vm14, %v5987_v3, 0.0  ;;  %v7266_v22 = vadd.f32 %v7265_v20, %v6980_v1  ;;  %v6983_v2 = vsel %vm6665_vm15, %v5988_v49, 0.0  ;;  %v6985_v63 = vsel %vm6665_vm15, %v5990_v25, 0.0 }
 0x5a5   :  { %v7414_v48 = vadd.f32 %v7413_v5, %v6982_v35  ;;  %v7193_v27 = vadd.f32 %v7192_v28, %v6983_v2  ;;  %v7341_v32 = vadd.f32 %v7340_v7, %v6985_v63  ;;  %v6984_v38 = vsel %vm6665_vm15, %v5989_v4, 0.0 }
 0x5a6   :  { %v6986_v53 = vsel %vm6665_vm15, %v5991_v60, 0.0  ;;  %v7267_v57 = vadd.f32 %v7266_v22, %v6984_v38  ;;  %v8204_v31 = vadd.f32 %v4003_v54, %v10138_v40  ;;  %v8354_v62 = vadd.f32 %v5647_v19, %v10141_v41 }
 0x5a7   :  { %v7415_v39 = vadd.f32 %v7414_v48, %v6986_v53  ;;  %v8205_v12 = vadd.f32 %v4005_v29, %v10147_v46  ;;  %v8355_v34 = vadd.f32 %v5649_v8, %v10150_v47  ;;  %v8206_v15 = vadd.f32 %v4007_v50, %v10138_v40  ;;  %v4013_v13 = vpop.f32.mrb[68].mxu0 }
 0x5a8   :  { %v8356_v51 = vadd.f32 %v5651_v36, %v10141_v41  ;;  %vm6668_vm2 = vcmp.lt.s32.totalorder %v10412_v9, %v10144_v45  ;;  %v5992_v42 = vmax.f32 %v8204_v31, 0.0  ;;  %v5994_v23 = vmax.f32 %v8354_v62, 0.0  ;;  %v5657_v3 = vpop.f32.mrb[68].mxu1  ;;  %v4015_v4 = vpop.f32.mrb[69].mxu0 }
 0x5a9   :  { %v8207_v20 = vadd.f32 %v4009_v56, %v10147_v46  ;;  %v8357_v5 = vadd.f32 %v5653_v24, %v10150_v47  ;;  %v5993_v44 = vmax.f32 %v8205_v12, 0.0  ;;  %v5995_v33 = vmax.f32 %v8355_v34, 0.0  ;;  %v5659_v60 = vpop.f32.mrb[69].mxu1  ;;  %v4017_v35 = vpop.f32.mrb[70].mxu0 }
 0x5aa   :  { %v5996_v37 = vmax.f32 %v8206_v15, 0.0  ;;  %v5998_v21 = vmax.f32 %v8356_v51, 0.0  ;;  %vm6669_vm3 = vcmp.lt.s32.totalorder %v10415_v61, %v10144_v45  ;;  %v6987_v55 = vsel %vm6666_vm0, %v5992_v42, 0.0  ;;  %v5661_v54 = vpop.f32.mrb[70].mxu1  ;;  %v4019_v63 = vpop.f32.mrb[71].mxu0 }
 0x5ab   :  { %v6989_v59 = vsel %vm6666_vm0, %v5994_v23, 0.0  ;;  %v5997_v30 = vmax.f32 %v8207_v20, 0.0  ;;  %v5999_v10 = vmax.f32 %v8357_v5, 0.0  ;;  %v7194_v0 = vadd.f32 %v7193_v27, %v6987_v55  ;;  %v5663_v29 = vpop.f32.mrb[71].mxu1 }
 0x5ac   :  { %v7342_v11 = vadd.f32 %v7341_v32, %v6989_v59  ;;  %v6988_v52 = vsel %vm6666_vm0, %v5993_v44, 0.0  ;;  %v6990_v58 = vsel %vm6666_vm0, %v5995_v33, 0.0  ;;  %v6991_v26 = vsel %vm6667_vm1, %v5996_v37, 0.0 }
 0x5ad   :  { %v7268_v49 = vadd.f32 %v7267_v57, %v6988_v52  ;;  %v7416_v25 = vadd.f32 %v7415_v39, %v6990_v58  ;;  %v6993_v18 = vsel %vm6667_vm1, %v5998_v21, 0.0  ;;  %v7195_v28 = vadd.f32 %v7194_v0, %v6991_v26 }
 0x5ae   :  { %v7343_v7 = vadd.f32 %v7342_v11, %v6993_v18  ;;  %v6992_v16 = vsel %vm6667_vm1, %v5997_v30, 0.0  ;;  %v6994_v1 = vsel %vm6667_vm1, %v5999_v10, 0.0  ;;  %v8208_v48 = vadd.f32 %v4013_v13, %v10138_v40 }
 0x5af   :  { %v7269_v19 = vadd.f32 %v7268_v49, %v6992_v16  ;;  %v7417_v22 = vadd.f32 %v7416_v25, %v6994_v1  ;;  %v8358_v2 = vadd.f32 %v5657_v3, %v10141_v41  ;;  %v8209_v8 = vadd.f32 %v4015_v4, %v10147_v46  ;;  %v4023_v20 = vpop.f32.mrb[72].mxu0 }
 0x5b0   :  { %v8359_v27 = vadd.f32 %v5659_v60, %v10150_v47  ;;  %v8210_v32 = vadd.f32 %v4017_v35, %v10138_v40  ;;  %v8360_v38 = vadd.f32 %v5661_v54, %v10141_v41  ;;  %v6000_v17 = vmax.f32 %v8208_v48, 0.0  ;;  %v5667_v5 = vpop.f32.mrb[72].mxu1  ;;  %v4025_v55 = vpop.f32.mrb[73].mxu0 }
 0x5b1   :  { %v6002_v53 = vmax.f32 %v8358_v2, 0.0  ;;  %v8211_v50 = vadd.f32 %v4019_v63, %v10147_v46  ;;  %v8361_v36 = vadd.f32 %v5663_v29, %v10150_v47  ;;  %v6001_v57 = vmax.f32 %v8209_v8, 0.0  ;;  %v5669_v59 = vpop.f32.mrb[73].mxu1  ;;  %v4027_v11 = vpop.f32.mrb[74].mxu0 }
 0x5b2   :  { %v6003_v39 = vmax.f32 %v8359_v27, 0.0  ;;  %v6004_v31 = vmax.f32 %v8210_v32, 0.0  ;;  %v6006_v62 = vmax.f32 %v8360_v38, 0.0  ;;  %v6995_v56 = vsel %vm6668_vm2, %v6000_v17, 0.0  ;;  %v5671_v52 = vpop.f32.mrb[74].mxu1  ;;  %v4029_v49 = vpop.f32.mrb[75].mxu0 }
 0x5b3   :  { %v6997_v24 = vsel %vm6668_vm2, %v6002_v53, 0.0  ;;  %v6005_v12 = vmax.f32 %v8211_v50, 0.0  ;;  %v6007_v34 = vmax.f32 %v8361_v36, 0.0  ;;  %v7196_v15 = vadd.f32 %v7195_v28, %v6995_v56  ;;  %v5673_v25 = vpop.f32.mrb[75].mxu1 }
 0x5b4   :  { %v7344_v51 = vadd.f32 %v7343_v7, %v6997_v24  ;;  %v6996_v42 = vsel %vm6668_vm2, %v6001_v57, 0.0  ;;  %v6998_v23 = vsel %vm6668_vm2, %v6003_v39, 0.0  ;;  %v6999_v37 = vsel %vm6669_vm3, %v6004_v31, 0.0 }
 0x5b5   :  { %v7270_v44 = vadd.f32 %v7269_v19, %v6996_v42  ;;  %v7418_v33 = vadd.f32 %v7417_v22, %v6998_v23  ;;  %v7001_v21 = vsel %vm6669_vm3, %v6006_v62, 0.0  ;;  %v7197_v30 = vadd.f32 %v7196_v15, %v6999_v37 }
 0x5b6   :  { %v7345_v10 = vadd.f32 %v7344_v51, %v7001_v21  ;;  %v7000_v9 = vsel %vm6669_vm3, %v6005_v12, 0.0  ;;  %v7002_v0 = vsel %vm6669_vm3, %v6007_v34, 0.0  ;;  %v8212_v3 = vadd.f32 %v4023_v20, %v10138_v40 }
 0x5b7   :  { %v7271_v58 = vadd.f32 %v7270_v44, %v7000_v9  ;;  %v7419_v13 = vadd.f32 %v7418_v33, %v7002_v0  ;;  %vm6670_vm4 = vcmp.lt.s32.totalorder %v10458_v43, %v10144_v45  ;;  %v8362_v26 = vadd.f32 %v5667_v5, %v10141_v41  ;;  %v4033_v32 = vpop.f32.mrb[76].mxu0 }
 0x5b8   :  { %v8213_v18 = vadd.f32 %v4025_v55, %v10147_v46  ;;  %v8363_v4 = vadd.f32 %v5669_v59, %v10150_v47  ;;  %v8214_v61 = vadd.f32 %v4027_v11, %v10138_v40  ;;  %v6008_v60 = vmax.f32 %v8212_v3, 0.0  ;;  %v5677_v38 = vpop.f32.mrb[76].mxu1  ;;  %v4035_v57 = vpop.f32.mrb[77].mxu0 }
 0x5b9   :  { %vm6671_vm5 = vcmp.lt.s32.totalorder %v10461_v14, %v10144_v45  ;;  %v8364_v28 = vadd.f32 %v5671_v52, %v10141_v41  ;;  %v8215_v7 = vadd.f32 %v4029_v49, %v10147_v46  ;;  %v6010_v16 = vmax.f32 %v8362_v26, 0.0  ;;  %v5679_v39 = vpop.f32.mrb[77].mxu1  ;;  %v4037_v24 = vpop.f32.mrb[78].mxu0 }
 0x5ba   :  { %v6009_v1 = vmax.f32 %v8213_v18, 0.0  ;;  %v6011_v35 = vmax.f32 %v8363_v4, 0.0  ;;  %v6012_v54 = vmax.f32 %v8214_v61, 0.0  ;;  %v7003_v19 = vsel %vm6670_vm4, %v6008_v60, 0.0  ;;  %v5681_v12 = vpop.f32.mrb[78].mxu1  ;;  %v4039_v23 = vpop.f32.mrb[79].mxu0 }
 0x5bb   :  { %v6014_v22 = vmax.f32 %v8364_v28, 0.0  ;;  %v6013_v48 = vmax.f32 %v8215_v7, 0.0  ;;  %v8365_v2 = vadd.f32 %v5673_v25, %v10150_v47  ;;  %v7198_v63 = vadd.f32 %v7197_v30, %v7003_v19  ;;  %v5683_v20 = vpop.f32.mrb[79].mxu1 }
 0x5bc   :  { %v7005_v29 = vsel %vm6670_vm4, %v6010_v16, 0.0  ;;  %v7004_v8 = vsel %vm6670_vm4, %v6009_v1, 0.0  ;;  %v7006_v27 = vsel %vm6670_vm4, %v6011_v35, 0.0  ;;  %v7007_v36 = vsel %vm6671_vm5, %v6012_v54, 0.0 }
 0x5bd   :  { %v7346_v17 = vadd.f32 %v7345_v10, %v7005_v29  ;;  %v7272_v53 = vadd.f32 %v7271_v58, %v7004_v8  ;;  %v7420_v50 = vadd.f32 %v7419_v13, %v7006_v27  ;;  %v7199_v31 = vadd.f32 %v7198_v63, %v7007_v36 }
 0x5be   :  { %v7009_v62 = vsel %vm6671_vm5, %v6014_v22, 0.0  ;;  %v7008_v43 = vsel %vm6671_vm5, %v6013_v48, 0.0  ;;  %v6015_v56 = vmax.f32 %v8365_v2, 0.0  ;;  %v8216_v51 = vadd.f32 %v4033_v32, %v10138_v40 }
 0x5bf   :  { %v7347_v34 = vadd.f32 %v7346_v17, %v7009_v62  ;;  %v7273_v15 = vadd.f32 %v7272_v53, %v7008_v43  ;;  %v6519_v42 = vadd.s32 304, %v10118_v6  ;;  %v8366_v44 = vadd.f32 %v5677_v38, %v10141_v41  ;;  %v4043_v26 = vpop.f32.mrb[80].mxu0 }
 0x5c0   :  { %v7010_v5 = vsel %vm6671_vm5, %v6015_v56, 0.0  ;;  %v8217_v33 = vadd.f32 %v4035_v57, %v10147_v46  ;;  %v8367_v37 = vadd.f32 %v5679_v39, %v10150_v47  ;;  %v6016_v55 = vmax.f32 %v8216_v51, 0.0  ;;  %v5687_v18 = vpop.f32.mrb[80].mxu1  ;;  %v4045_v28 = vpop.f32.mrb[81].mxu0 }
 0x5c1   :  { %v7421_v21 = vadd.f32 %v7420_v50, %v7010_v5  ;;  %vm6672_vm6 = vcmp.lt.s32.totalorder %v6519_v42, %v10144_v45  ;;  %v8218_v59 = vadd.f32 %v4037_v24, %v10138_v40  ;;  %v6018_v30 = vmax.f32 %v8366_v44, 0.0  ;;  %v5689_v7 = vpop.f32.mrb[81].mxu1  ;;  %v4047_v19 = vpop.f32.mrb[82].mxu0 }
 0x5c2   :  { %v6017_v10 = vmax.f32 %v8217_v33, 0.0  ;;  %v6019_v9 = vmax.f32 %v8367_v37, 0.0  ;;  %v6520_v0 = vadd.s32 312, %v10118_v6  ;;  %v7011_v11 = vsel %vm6672_vm6, %v6016_v55, 0.0  ;;  %v5691_v22 = vpop.f32.mrb[82].mxu1  ;;  %v4049_v8 = vpop.f32.mrb[83].mxu0 }
 0x5c3   :  { %v6020_v14 = vmax.f32 %v8218_v59, 0.0  ;;  %v8368_v52 = vadd.f32 %v5681_v12, %v10141_v41  ;;  %v8219_v58 = vadd.f32 %v4039_v23, %v10147_v46  ;;  %v7200_v13 = vadd.f32 %v7199_v31, %v7011_v11  ;;  %v5693_v27 = vpop.f32.mrb[83].mxu1 }
 0x5c4   :  { %v7013_v3 = vsel %vm6672_vm6, %v6018_v30, 0.0  ;;  %v7012_v49 = vsel %vm6672_vm6, %v6017_v10, 0.0  ;;  %v7014_v25 = vsel %vm6672_vm6, %v6019_v9, 0.0  ;;  %vm6673_vm7 = vcmp.lt.s32.totalorder %v6520_v0, %v10144_v45 }
 0x5c5   :  { %v7348_v4 = vadd.f32 %v7347_v34, %v7013_v3  ;;  %v7274_v61 = vadd.f32 %v7273_v15, %v7012_v49  ;;  %v7422_v60 = vadd.f32 %v7421_v21, %v7014_v25  ;;  %v7015_v16 = vsel %vm6673_vm7, %v6020_v14, 0.0 }
 0x5c6   :  { %v6022_v1 = vmax.f32 %v8368_v52, 0.0  ;;  %v6021_v35 = vmax.f32 %v8219_v58, 0.0  ;;  %v8369_v54 = vadd.f32 %v5683_v20, %v10150_v47  ;;  %v7201_v48 = vadd.f32 %v7200_v13, %v7015_v16 }
 0x5c7   :  { %v8220_v2 = vadd.f32 %v4043_v26, %v10138_v40  ;;  %v6521_v63 = vadd.s32 320, %v10118_v6  ;;  %v8370_v29 = vadd.f32 %v5687_v18, %v10141_v41  ;;  %v8221_v53 = vadd.f32 %v4045_v28, %v10147_v46  ;;  %v4053_v20 = vpop.f32.mrb[84].mxu0 }
 0x5c8   :  { %v7017_v32 = vsel %vm6673_vm7, %v6022_v1, 0.0  ;;  %v7016_v38 = vsel %vm6673_vm7, %v6021_v35, 0.0  ;;  %v6023_v17 = vmax.f32 %v8369_v54, 0.0  ;;  %v8371_v43 = vadd.f32 %v5689_v7, %v10150_v47  ;;  %v5697_v5 = vpop.f32.mrb[84].mxu1  ;;  %v4055_v21 = vpop.f32.mrb[85].mxu0 }
 0x5c9   :  { %v7349_v50 = vadd.f32 %v7348_v4, %v7017_v32  ;;  %v7275_v36 = vadd.f32 %v7274_v61, %v7016_v38  ;;  %v6024_v57 = vmax.f32 %v8220_v2, 0.0  ;;  %vm6674_vm8 = vcmp.lt.s32.totalorder %v6521_v63, %v10144_v45  ;;  %v5699_v55 = vpop.f32.mrb[85].mxu1  ;;  %v4057_v0 = vpop.f32.mrb[86].mxu0 }
 0x5ca   :  { %v7018_v39 = vsel %vm6673_vm7, %v6023_v17, 0.0  ;;  %v6026_v31 = vmax.f32 %v8370_v29, 0.0  ;;  %v6025_v62 = vmax.f32 %v8221_v53, 0.0  ;;  %v8222_v12 = vadd.f32 %v4047_v19, %v10138_v40  ;;  %v5701_v11 = vpop.f32.mrb[86].mxu1  ;;  %v4059_v3 = vpop.f32.mrb[87].mxu0 }
 0x5cb   :  { %v7423_v56 = vadd.f32 %v7422_v60, %v7018_v39  ;;  %v7019_v24 = vsel %vm6674_vm8, %v6024_v57, 0.0  ;;  %v6522_v34 = vadd.s32 328, %v10118_v6  ;;  %v6027_v23 = vmax.f32 %v8371_v43, 0.0  ;;  %v5703_v49 = vpop.f32.mrb[87].mxu1 }
 0x5cc   :  { %v7202_v15 = vadd.f32 %v7201_v48, %v7019_v24  ;;  %v7021_v51 = vsel %vm6674_vm8, %v6026_v31, 0.0  ;;  %v7020_v42 = vsel %vm6674_vm8, %v6025_v62, 0.0  ;;  %v6028_v37 = vmax.f32 %v8222_v12, 0.0 }
 0x5cd   :  { %v7350_v44 = vadd.f32 %v7349_v50, %v7021_v51  ;;  %v7276_v33 = vadd.f32 %v7275_v36, %v7020_v42  ;;  %vm6675_vm9 = vcmp.lt.s32.totalorder %v6522_v34, %v10144_v45  ;;  %v7022_v59 = vsel %vm6674_vm8, %v6027_v23, 0.0 }
 0x5ce   :  { %v8372_v30 = vadd.f32 %v5691_v22, %v10141_v41  ;;  %v8223_v10 = vadd.f32 %v4049_v8, %v10147_v46  ;;  %v8373_v9 = vadd.f32 %v5693_v27, %v10150_v47  ;;  %v7424_v14 = vadd.f32 %v7423_v56, %v7022_v59 }
 0x5cf   :  { %v7023_v52 = vsel %vm6675_vm9, %v6028_v37, 0.0  ;;  %v8224_v58 = vadd.f32 %v4053_v20, %v10138_v40  ;;  %v6523_v13 = vadd.s32 336, %v10118_v6  ;;  %v8374_v60 = vadd.f32 %v5697_v5, %v10141_v41  ;;  %v4063_v27 = vpop.f32.mrb[88].mxu0 }
 0x5d0   :  { %v7203_v25 = vadd.f32 %v7202_v15, %v7023_v52  ;;  %v6030_v26 = vmax.f32 %v8372_v30, 0.0  ;;  %v6029_v18 = vmax.f32 %v8223_v10, 0.0  ;;  %v6031_v4 = vmax.f32 %v8373_v9, 0.0  ;;  %v5707_v32 = vpop.f32.mrb[88].mxu1  ;;  %v4065_v36 = vpop.f32.mrb[89].mxu0 }
 0x5d1   :  { %v6032_v61 = vmax.f32 %v8224_v58, 0.0  ;;  %vm6676_vm10 = vcmp.lt.s32.totalorder %v6523_v13, %v10144_v45  ;;  %v8225_v28 = vadd.f32 %v4055_v21, %v10147_v46  ;;  %v8375_v35 = vadd.f32 %v5699_v55, %v10150_v47  ;;  %v5709_v57 = vpop.f32.mrb[89].mxu1  ;;  %v4067_v56 = vpop.f32.mrb[90].mxu0 }
 0x5d2   :  { %v7025_v7 = vsel %vm6675_vm9, %v6030_v26, 0.0  ;;  %v7024_v16 = vsel %vm6675_vm9, %v6029_v18, 0.0  ;;  %v7026_v1 = vsel %vm6675_vm9, %v6031_v4, 0.0  ;;  %v6034_v63 = vmax.f32 %v8374_v60, 0.0  ;;  %v5711_v24 = vpop.f32.mrb[90].mxu1  ;;  %v4069_v42 = vpop.f32.mrb[91].mxu0 }
 0x5d3   :  { %v7351_v54 = vadd.f32 %v7350_v44, %v7025_v7  ;;  %v7277_v19 = vadd.f32 %v7276_v33, %v7024_v16  ;;  %v7425_v22 = vadd.f32 %v7424_v14, %v7026_v1  ;;  %v7027_v48 = vsel %vm6676_vm10, %v6032_v61, 0.0  ;;  %v5713_v23 = vpop.f32.mrb[91].mxu1 }
 0x5d4   :  { %v7204_v2 = vadd.f32 %v7203_v25, %v7027_v48  ;;  %v6033_v29 = vmax.f32 %v8225_v28, 0.0  ;;  %v6035_v8 = vmax.f32 %v8375_v35, 0.0  ;;  %v8226_v38 = vadd.f32 %v4057_v0, %v10138_v40 }
 0x5d5   :  { %v6524_v17 = vadd.s32 344, %v10118_v6  ;;  %v8376_v53 = vadd.f32 %v5701_v11, %v10141_v41  ;;  %v8227_v50 = vadd.f32 %v4059_v3, %v10147_v46  ;;  %v7029_v39 = vsel %vm6676_vm10, %v6034_v63, 0.0 }
 0x5d6   :  { %v7028_v31 = vsel %vm6676_vm10, %v6033_v29, 0.0  ;;  %v7030_v62 = vsel %vm6676_vm10, %v6035_v8, 0.0  ;;  %v8377_v43 = vadd.f32 %v5703_v49, %v10150_v47  ;;  %v7352_v12 = vadd.f32 %v7351_v54, %v7029_v39 }
 0x5d7   :  { %v7278_v34 = vadd.f32 %v7277_v19, %v7028_v31  ;;  %v7426_v15 = vadd.f32 %v7425_v22, %v7030_v62  ;;  %v6036_v51 = vmax.f32 %v8226_v38, 0.0  ;;  %vm6677_vm11 = vcmp.lt.s32.totalorder %v6524_v17, %v10144_v45  ;;  %v4073_v49 = vpop.f32.mrb[92].mxu0 }
 0x5d8   :  { %v6038_v20 = vmax.f32 %v8376_v53, 0.0  ;;  %v6037_v5 = vmax.f32 %v8227_v50, 0.0  ;;  %v6039_v44 = vmax.f32 %v8377_v43, 0.0  ;;  %v8228_v37 = vadd.f32 %v4063_v27, %v10138_v40  ;;  %v5717_v25 = vpop.f32.mrb[92].mxu1  ;;  %v4075_v60 = vpop.f32.mrb[93].mxu0 }
 0x5d9   :  { %v7031_v33 = vsel %vm6677_vm11, %v6036_v51, 0.0  ;;  %v6525_v21 = vadd.s32 352, %v10118_v6  ;;  %v8378_v55 = vadd.f32 %v5707_v32, %v10141_v41  ;;  %v8229_v13 = vadd.f32 %v4065_v36, %v10147_v46  ;;  %v5719_v28 = vpop.f32.mrb[93].mxu1  ;;  %v4077_v54 = vpop.f32.mrb[94].mxu0 }
 0x5da   :  { %v7205_v59 = vadd.f32 %v7204_v2, %v7031_v33  ;;  %v7033_v30 = vsel %vm6677_vm11, %v6038_v20, 0.0  ;;  %v7032_v10 = vsel %vm6677_vm11, %v6037_v5, 0.0  ;;  %v7034_v9 = vsel %vm6677_vm11, %v6039_v44, 0.0  ;;  %v5721_v19 = vpop.f32.mrb[94].mxu1  ;;  %v4079_v63 = vpop.f32.mrb[95].mxu0 }
 0x5db   :  { %v7353_v0 = vadd.f32 %v7352_v12, %v7033_v30  ;;  %v7279_v11 = vadd.f32 %v7278_v34, %v7032_v10  ;;  %v7427_v14 = vadd.f32 %v7426_v15, %v7034_v9  ;;  %v6040_v52 = vmax.f32 %v8228_v37, 0.0  ;;  %v5723_v29 = vpop.f32.mrb[95].mxu1 }
 0x5dc   :  { %vm6678_vm12 = vcmp.lt.s32.totalorder %v6525_v21, %v10144_v45  ;;  %v6042_v58 = vmax.f32 %v8378_v55, 0.0  ;;  %v8379_v3 = vadd.f32 %v5709_v57, %v10150_v47  ;;  %v8230_v18 = vadd.f32 %v4067_v56, %v10138_v40 }
 0x5dd   :  { %v7035_v26 = vsel %vm6678_vm12, %v6040_v52, 0.0  ;;  %v6526_v4 = vadd.s32 360, %v10118_v6  ;;  %v8380_v61 = vadd.f32 %v5711_v24, %v10141_v41  ;;  %v6041_v1 = vmax.f32 %v8229_v13, 0.0 }
 0x5de   :  { %v7206_v7 = vadd.f32 %v7205_v59, %v7035_v26  ;;  %v7037_v16 = vsel %vm6678_vm12, %v6042_v58, 0.0  ;;  %v6043_v35 = vmax.f32 %v8379_v3, 0.0  ;;  %v6044_v48 = vmax.f32 %v8230_v18, 0.0 }
 0x5df   :  { %v7354_v22 = vadd.f32 %v7353_v0, %v7037_v16  ;;  %vm6679_vm13 = vcmp.lt.s32.totalorder %v6526_v4, %v10144_v45  ;;  %v6046_v2 = vmax.f32 %v8380_v61, 0.0  ;;  %v7036_v8 = vsel %vm6678_vm12, %v6041_v1, 0.0 }
 0x5e0   :  { %v7038_v27 = vsel %vm6678_vm12, %v6043_v35, 0.0  ;;  %v8231_v32 = vadd.f32 %v4069_v42, %v10147_v46  ;;  %v8381_v38 = vadd.f32 %v5713_v23, %v10150_v47  ;;  %v7280_v17 = vadd.f32 %v7279_v11, %v7036_v8  ;;  %v4083_v23 = vpop.f32.mrb[96].mxu0  ;;  %v5727_v20 = vpop.f32.mrb[96].mxu1 }
 0x5e1   :  { %v7428_v53 = vadd.f32 %v7427_v14, %v7038_v27  ;;  %v7039_v50 = vsel %vm6679_vm13, %v6044_v48, 0.0  ;;  %v7041_v36 = vsel %vm6679_vm13, %v6046_v2, 0.0  ;;  %v8232_v43 = vadd.f32 %v4073_v49, %v10138_v40  ;;  %v4085_v37 = vpop.f32.mrb[97].mxu0  ;;  %v5729_v21 = vpop.f32.mrb[97].mxu1 }
 0x5e2   :  { %v7207_v57 = vadd.f32 %v7206_v7, %v7039_v50  ;;  %v7355_v39 = vadd.f32 %v7354_v22, %v7041_v36  ;;  %v6045_v31 = vmax.f32 %v8231_v32, 0.0  ;;  %v6047_v62 = vmax.f32 %v8381_v38, 0.0  ;;  %v4087_v9 = vpop.f32.mrb[98].mxu0  ;;  %v5731_v0 = vpop.f32.mrb[98].mxu1 }
 0x5e3   :  { %v6527_v56 = vadd.s32 368, %v10118_v6  ;;  %v8382_v24 = vadd.f32 %v5717_v25, %v10141_v41  ;;  %v8233_v12 = vadd.f32 %v4075_v60, %v10147_v46  ;;  %v8383_v51 = vadd.f32 %v5719_v28, %v10150_v47  ;;  %v4089_v13 = vpop.f32.mrb[99].mxu0  ;;  %v5733_v3 = vpop.f32.mrb[99].mxu1 }
 0x5e4   :  { %v7040_v34 = vsel %vm6679_vm13, %v6045_v31, 0.0  ;;  %v7042_v15 = vsel %vm6679_vm13, %v6047_v62, 0.0  ;;  %v8234_v42 = vadd.f32 %v4077_v54, %v10138_v40  ;;  %v6048_v33 = vmax.f32 %v8232_v43, 0.0 }
 0x5e5   :  { %v7281_v5 = vadd.f32 %v7280_v17, %v7040_v34  ;;  %v7429_v44 = vadd.f32 %v7428_v53, %v7042_v15  ;;  %vm6680_vm14 = vcmp.lt.s32.totalorder %v6527_v56, %v10144_v45  ;;  %v6050_v55 = vmax.f32 %v8382_v24, 0.0 }
 0x5e6   :  { %v6049_v59 = vmax.f32 %v8233_v12, 0.0  ;;  %v6051_v30 = vmax.f32 %v8383_v51, 0.0  ;;  %v6052_v10 = vmax.f32 %v8234_v42, 0.0  ;;  %v7043_v11 = vsel %vm6680_vm14, %v6048_v33, 0.0 }
 0x5e7   :  { %v6528_v14 = vadd.s32 376, %v10118_v6  ;;  %v8384_v52 = vadd.f32 %v5721_v19, %v10141_v41  ;;  %v8235_v58 = vadd.f32 %v4079_v63, %v10147_v46  ;;  %v7208_v49 = vadd.f32 %v7207_v57, %v7043_v11  ;;  %v4093_v27 = vpop.f32.mrb[100].mxu0 }
 0x5e8   :  { %v7045_v25 = vsel %vm6680_vm14, %v6050_v55, 0.0  ;;  %v7044_v26 = vsel %vm6680_vm14, %v6049_v59, 0.0  ;;  %v7046_v18 = vsel %vm6680_vm14, %v6051_v30, 0.0  ;;  %v8385_v1 = vadd.f32 %v5723_v29, %v10150_v47  ;;  %v5737_v32 = vpop.f32.mrb[100].mxu1  ;;  %v4095_v53 = vpop.f32.mrb[101].mxu0 }
 0x5e9   :  { %v7356_v4 = vadd.f32 %v7355_v39, %v7045_v25  ;;  %v7282_v61 = vadd.f32 %v7281_v5, %v7044_v26  ;;  %v7430_v60 = vadd.f32 %v7429_v44, %v7046_v18  ;;  %vm6681_vm15 = vcmp.lt.s32.totalorder %v6528_v14, %v10144_v45  ;;  %v5739_v50 = vpop.f32.mrb[101].mxu1  ;;  %v4097_v62 = vpop.f32.mrb[102].mxu0 }
 0x5ea   :  { %v7047_v28 = vsel %vm6681_vm15, %v6052_v10, 0.0  ;;  %v6054_v7 = vmax.f32 %v8384_v52, 0.0  ;;  %v6053_v16 = vmax.f32 %v8235_v58, 0.0  ;;  %v8236_v54 = vadd.f32 %v4083_v23, %v10138_v40  ;;  %v5741_v43 = vpop.f32.mrb[102].mxu1  ;;  %v4099_v15 = vpop.f32.mrb[103].mxu0 }
 0x5eb   :  { %v7209_v35 = vadd.f32 %v7208_v49, %v7047_v28  ;;  %v6529_v19 = vadd.s32 384, %v10118_v6  ;;  %v8386_v22 = vadd.f32 %v5727_v20, %v10141_v41  ;;  %v6055_v63 = vmax.f32 %v8385_v1, 0.0  ;;  %v5743_v51 = vpop.f32.mrb[103].mxu1 }
 0x5ec   :  { %v7049_v48 = vsel %vm6681_vm15, %v6054_v7, 0.0  ;;  %v7048_v2 = vsel %vm6681_vm15, %v6053_v16, 0.0  ;;  %v8237_v8 = vadd.f32 %v4085_v37, %v10147_v46  ;;  %v6056_v17 = vmax.f32 %v8236_v54, 0.0 }
 0x5ed   :  { %v7357_v38 = vadd.f32 %v7356_v4, %v7049_v48  ;;  %v7283_v29 = vadd.f32 %v7282_v61, %v7048_v2  ;;  %vm6682_vm0 = vcmp.lt.s32.totalorder %v6529_v19, %v10144_v45  ;;  %v7050_v36 = vsel %vm6681_vm15, %v6055_v63, 0.0 }
 0x5ee   :  { %v6058_v57 = vmax.f32 %v8386_v22, 0.0  ;;  %v6057_v39 = vmax.f32 %v8237_v8, 0.0  ;;  %v8387_v31 = vadd.f32 %v5729_v21, %v10150_v47  ;;  %v7431_v56 = vadd.f32 %v7430_v60, %v7050_v36 }
 0x5ef   :  { %v7051_v24 = vsel %vm6682_vm0, %v6056_v17, 0.0  ;;  %v8238_v12 = vadd.f32 %v4087_v9, %v10138_v40  ;;  %v6530_v34 = vadd.s32 392, %v10118_v6  ;;  %v8388_v55 = vadd.f32 %v5731_v0, %v10141_v41  ;;  %v4103_v26 = vpop.f32.mrb[104].mxu0 }
 0x5f0   :  { %v7210_v42 = vadd.f32 %v7209_v35, %v7051_v24  ;;  %v7053_v23 = vsel %vm6682_vm0, %v6058_v57, 0.0  ;;  %v7052_v20 = vsel %vm6682_vm0, %v6057_v39, 0.0  ;;  %v6059_v5 = vmax.f32 %v8387_v31, 0.0  ;;  %v5747_v18 = vpop.f32.mrb[104].mxu1 }
 0x5f1   :  { %v7358_v44 = vadd.f32 %v7357_v38, %v7053_v23  ;;  %v7284_v33 = vadd.f32 %v7283_v29, %v7052_v20  ;;  %v6060_v37 = vmax.f32 %v8238_v12, 0.0  ;;  %vm6683_vm1 = vcmp.lt.s32.totalorder %v6530_v34, %v10144_v45  ;;  %v5749_v61 = vpop.f32.mrb[105].mxu1 }
 0x5f2   :  { %v7054_v21 = vsel %vm6682_vm0, %v6059_v5, 0.0  ;;  %v8239_v59 = vadd.f32 %v4089_v13, %v10147_v46  ;;  %v8389_v30 = vadd.f32 %v5733_v3, %v10150_v47  ;;  %v8240_v11 = vadd.f32 %v4093_v27, %v10138_v40  ;;  %v4105_v3 = vpop.f32.mrb[105].mxu0  ;;  %v5751_v35 = vpop.f32.mrb[106].mxu1 }
 0x5f3   :  { %v7432_v10 = vadd.f32 %v7431_v56, %v7054_v21  ;;  %v7055_v9 = vsel %vm6683_vm1, %v6060_v37, 0.0  ;;  %v6531_v14 = vadd.s32 400, %v10118_v6  ;;  %v6062_v58 = vmax.f32 %v8388_v55, 0.0  ;;  %v4107_v1 = vpop.f32.mrb[106].mxu0  ;;  %v5753_v63 = vpop.f32.mrb[107].mxu1 }
 0x5f4   :  { %v7211_v52 = vadd.f32 %v7210_v42, %v7055_v9  ;;  %v6061_v49 = vmax.f32 %v8239_v59, 0.0  ;;  %v6063_v25 = vmax.f32 %v8389_v30, 0.0  ;;  %v6064_v4 = vmax.f32 %v8240_v11, 0.0  ;;  %v4109_v2 = vpop.f32.mrb[107].mxu0 }
 0x5f5   :  { %vm6684_vm2 = vcmp.lt.s32.totalorder %v6531_v14, %v10144_v45  ;;  %v8390_v0 = vadd.f32 %v5737_v32, %v10141_v41  ;;  %v8241_v13 = vadd.f32 %v4095_v53, %v10147_v46  ;;  %v7057_v60 = vsel %vm6683_vm1, %v6062_v58, 0.0 }
 0x5f6   :  { %v7056_v28 = vsel %vm6683_vm1, %v6061_v49, 0.0  ;;  %v7058_v7 = vsel %vm6683_vm1, %v6063_v25, 0.0  ;;  %v8391_v16 = vadd.f32 %v5739_v50, %v10150_v47  ;;  %v7359_v54 = vadd.f32 %v7358_v44, %v7057_v60 }
 0x5f7   :  { %v7285_v19 = vadd.f32 %v7284_v33, %v7056_v28  ;;  %v7433_v22 = vadd.f32 %v7432_v10, %v7058_v7  ;;  %v7059_v48 = vsel %vm6684_vm2, %v6064_v4, 0.0  ;;  %v6066_v27 = vmax.f32 %v8390_v0, 0.0  ;;  %v4113_v42 = vpop.f32.mrb[108].mxu0 }
 0x5f8   :  { %v7212_v8 = vadd.f32 %v7211_v52, %v7059_v48  ;;  %v6065_v32 = vmax.f32 %v8241_v13, 0.0  ;;  %v6067_v38 = vmax.f32 %v8391_v16, 0.0  ;;  %v8242_v29 = vadd.f32 %v4097_v62, %v10138_v40  ;;  %v5757_v23 = vpop.f32.mrb[108].mxu1  ;;  %v4115_v37 = vpop.f32.mrb[109].mxu0 }
 0x5f9   :  { %v6532_v17 = vadd.s32 408, %v10118_v6  ;;  %v8392_v53 = vadd.f32 %v5741_v43, %v10141_v41  ;;  %v8243_v50 = vadd.f32 %v4099_v15, %v10147_v46  ;;  %v7061_v36 = vsel %vm6684_vm2, %v6066_v27, 0.0  ;;  %v4117_v10 = vpop.f32.mrb[110].mxu0 }
 0x5fa   :  { %v7060_v57 = vsel %vm6684_vm2, %v6065_v32, 0.0  ;;  %v7062_v39 = vsel %vm6684_vm2, %v6067_v38, 0.0  ;;  %v8393_v31 = vadd.f32 %v5743_v51, %v10150_v47  ;;  %v7360_v56 = vadd.f32 %v7359_v54, %v7061_v36  ;;  %v5759_v51 = vpop.f32.mrb[109].mxu1  ;;  %v4119_v49 = vpop.f32.mrb[111].mxu0 }
 0x5fb   :  { %v7286_v24 = vadd.f32 %v7285_v19, %v7060_v57  ;;  %v7434_v62 = vadd.f32 %v7433_v22, %v7062_v39  ;;  %v6068_v12 = vmax.f32 %v8242_v29, 0.0  ;;  %vm6685_vm3 = vcmp.lt.s32.totalorder %v6532_v17, %v10144_v45  ;;  %v5761_v9 = vpop.f32.mrb[110].mxu1 }
 0x5fc   :  { %v6070_v43 = vmax.f32 %v8392_v53, 0.0  ;;  %v6069_v34 = vmax.f32 %v8243_v50, 0.0  ;;  %v6071_v15 = vmax.f32 %v8393_v31, 0.0  ;;  %v8244_v5 = vadd.f32 %v4103_v26, %v10138_v40  ;;  %v11212_v25 = vpop.f32.mrb[111].mxu1 }
 0x5fd   :  { %v7063_v20 = vsel %vm6685_vm3, %v6068_v12, 0.0  ;;  %v6533_v44 = vadd.s32 416, %v10118_v6  ;;  %v8394_v33 = vadd.f32 %v5747_v18, %v10141_v41  ;;  %v8245_v18 = vadd.f32 %v4105_v3, %v10147_v46 }
 0x5fe   :  { %v7213_v21 = vadd.f32 %v7212_v8, %v7063_v20  ;;  %v7065_v55 = vsel %vm6685_vm3, %v6070_v43, 0.0  ;;  %v7064_v59 = vsel %vm6685_vm3, %v6069_v34, 0.0  ;;  %v7066_v30 = vsel %vm6685_vm3, %v6071_v15, 0.0 }
 0x5ff   :  { %v7361_v11 = vadd.f32 %v7360_v56, %v7065_v55  ;;  %v7287_v14 = vadd.f32 %v7286_v24, %v7064_v59  ;;  %v7435_v52 = vadd.f32 %v7434_v62, %v7066_v30  ;;  %v6072_v58 = vmax.f32 %v8244_v5, 0.0  ;;  %v4123_v27 = vpop.f32.mrb[112].mxu0 }
 0x600   :  { %vm6686_vm4 = vcmp.lt.s32.totalorder %v6533_v44, %v10144_v45  ;;  %v6074_v26 = vmax.f32 %v8394_v33, 0.0  ;;  %v8395_v4 = vadd.f32 %v5749_v61, %v10150_v47  ;;  %v8246_v13 = vadd.f32 %v4107_v1, %v10138_v40  ;;  %v5767_v32 = vpop.f32.mrb[112].mxu1  ;;  %v4125_v50 = vpop.f32.mrb[113].mxu0 }
 0x601   :  { %v7067_v0 = vsel %vm6686_vm4, %v6072_v58, 0.0  ;;  %v6534_v60 = vadd.s32 424, %v10118_v6  ;;  %v8396_v28 = vadd.f32 %v5751_v35, %v10141_v41  ;;  %v6073_v54 = vmax.f32 %v8245_v18, 0.0  ;;  %v11235_v36 = vpop.f32.mrb[113].mxu1 }
 0x602   :  { %v7214_v7 = vadd.f32 %v7213_v21, %v7067_v0  ;;  %v7069_v16 = vsel %vm6686_vm4, %v6074_v26, 0.0  ;;  %v6075_v19 = vmax.f32 %v8395_v4, 0.0  ;;  %v6076_v48 = vmax.f32 %v8246_v13, 0.0  ;;  %v11237_v24 = vpop.f32.mrb[114].mxu1 }
 0x603   :  { %v7362_v22 = vadd.f32 %v7361_v11, %v7069_v16  ;;  %vm6687_vm5 = vcmp.lt.s32.totalorder %v6534_v60, %v10144_v45  ;;  %v6078_v3 = vmax.f32 %v8396_v28, 0.0  ;;  %v7068_v61 = vsel %vm6686_vm4, %v6073_v54, 0.0  ;;  %v11245_v15 = vpop.f32.mrb[115].mxu1 }
 0x604   :  { %v7070_v1 = vsel %vm6686_vm4, %v6075_v19, 0.0  ;;  %v8247_v8 = vadd.f32 %v4109_v2, %v10147_v46  ;;  %v8397_v35 = vadd.f32 %v5753_v63, %v10150_v47  ;;  %v7288_v38 = vadd.f32 %v7287_v14, %v7068_v61  ;;  %v4127_v2 = vpop.f32.mrb[114].mxu0 }
 0x605   :  { %v7436_v29 = vadd.f32 %v7435_v52, %v7070_v1  ;;  %v7071_v17 = vsel %vm6687_vm5, %v6076_v48, 0.0  ;;  %v7073_v53 = vsel %vm6687_vm5, %v6078_v3, 0.0  ;;  %v8248_v63 = vadd.f32 %v4113_v42, %v10138_v40  ;;  %v11243_v34 = vpop.f32.mrb[115].mxu0 }
 0x606   :  { %v7215_v57 = vadd.f32 %v7214_v7, %v7071_v17  ;;  %v7363_v39 = vadd.f32 %v7362_v22, %v7073_v53  ;;  %v6077_v31 = vmax.f32 %v8247_v8, 0.0  ;;  %v6079_v56 = vmax.f32 %v8397_v35, 0.0 }
 0x607   :  { %v6535_v62 = vadd.s32 432, %v10118_v6  ;;  %v8398_v12 = vadd.f32 %v5757_v23, %v10141_v41  ;;  %v8249_v43 = vadd.f32 %v4115_v37, %v10147_v46  ;;  %v8399_v44 = vadd.f32 %v5759_v51, %v10150_v47  ;;  %v4133_v4 = vpop.f32.mrb[116].mxu0 }
 0x608   :  { %v7072_v20 = vsel %vm6687_vm5, %v6077_v31, 0.0  ;;  %v7074_v5 = vsel %vm6687_vm5, %v6079_v56, 0.0  ;;  %v8250_v42 = vadd.f32 %v4117_v10, %v10138_v40  ;;  %v6080_v55 = vmax.f32 %v8248_v63, 0.0  ;;  %v11257_v0 = vpop.f32.mrb[116].mxu1  ;;  %v4135_v7 = vpop.f32.mrb[117].mxu0 }
 0x609   :  { %v7289_v33 = vadd.f32 %v7288_v38, %v7072_v20  ;;  %v7437_v21 = vadd.f32 %v7436_v29, %v7074_v5  ;;  %vm6688_vm6 = vcmp.lt.s32.totalorder %v6535_v62, %v10144_v45  ;;  %v6082_v23 = vmax.f32 %v8398_v12, 0.0  ;;  %v11260_v16 = vpop.f32.mrb[117].mxu1  ;;  %v11266_v22 = vpop.f32.mrb[118].mxu0 }
 0x60a   :  { %v6081_v37 = vmax.f32 %v8249_v43, 0.0  ;;  %v6083_v59 = vmax.f32 %v8399_v44, 0.0  ;;  %v6084_v30 = vmax.f32 %v8250_v42, 0.0  ;;  %v7075_v11 = vsel %vm6688_vm6, %v6080_v55, 0.0  ;;  %v11268_v48 = vpop.f32.mrb[118].mxu1  ;;  %v11273_v35 = vpop.f32.mrb[119].mxu0 }
 0x60b   :  { %v6536_v14 = vadd.s32 440, %v10118_v6  ;;  %v8400_v52 = vadd.f32 %v5761_v9, %v10141_v41  ;;  %v8251_v58 = vadd.f32 %v4119_v49, %v10147_v46  ;;  %v7216_v26 = vadd.f32 %v7215_v57, %v7075_v11  ;;  %v11275_v38 = vpop.f32.mrb[119].mxu1 }
 0x60c   :  { %v7077_v51 = vsel %vm6688_vm6, %v6082_v23, 0.0  ;;  %v7076_v18 = vsel %vm6688_vm6, %v6081_v37, 0.0  ;;  %v7078_v10 = vsel %vm6688_vm6, %v6083_v59, 0.0  ;;  %v8401_v19 = vadd.f32 %v11212_v25, %v10150_v47 }
 0x60d   :  { %v7364_v13 = vadd.f32 %v7363_v39, %v7077_v51  ;;  %v7290_v60 = vadd.f32 %v7289_v33, %v7076_v18  ;;  %v7438_v28 = vadd.f32 %v7437_v21, %v7078_v10  ;;  %vm6689_vm7 = vcmp.lt.s32.totalorder %v6536_v14, %v10144_v45 }
 0x60e   :  { %v7079_v9 = vsel %vm6689_vm7, %v6084_v30, 0.0  ;;  %v6086_v54 = vmax.f32 %v8400_v52, 0.0  ;;  %v6085_v49 = vmax.f32 %v8251_v58, 0.0  ;;  %v8252_v61 = vadd.f32 %v4123_v27, %v10138_v40 }
 0x60f   :  { %v7217_v3 = vadd.f32 %v7216_v26, %v7079_v9  ;;  %v6537_v1 = vadd.s32 448, %v10118_v6  ;;  %v8402_v8 = vadd.f32 %v5767_v32, %v10141_v41  ;;  %v6087_v17 = vmax.f32 %v8401_v19, 0.0  ;;  %v11295_v33 = vpop.f32.mrb[120].mxu0 }
 0x610   :  { %v7081_v29 = vsel %vm6689_vm7, %v6086_v54, 0.0  ;;  %v7080_v25 = vsel %vm6689_vm7, %v6085_v49, 0.0  ;;  %v8253_v53 = vadd.f32 %v4125_v50, %v10147_v46  ;;  %v6088_v27 = vmax.f32 %v8252_v61, 0.0  ;;  %v11297_v21 = vpop.f32.mrb[120].mxu1 }
 0x611   :  { %v7365_v57 = vadd.f32 %v7364_v13, %v7081_v29  ;;  %v7291_v39 = vadd.f32 %v7290_v60, %v7080_v25  ;;  %vm6690_vm8 = vcmp.lt.s32.totalorder %v6537_v1, %v10144_v45  ;;  %v7082_v32 = vsel %vm6689_vm7, %v6087_v17, 0.0  ;;  %v11302_v37 = vpop.f32.mrb[121].mxu1 }
 0x612   :  { %v6090_v31 = vmax.f32 %v8402_v8, 0.0  ;;  %v6089_v56 = vmax.f32 %v8253_v53, 0.0  ;;  %v8403_v63 = vadd.f32 %v11235_v36, %v10150_v47  ;;  %v7439_v62 = vadd.f32 %v7438_v28, %v7082_v32  ;;  %v11314_v58 = vpop.f32.mrb[122].mxu1 }
 0x613   :  { %v7083_v12 = vsel %vm6690_vm8, %v6088_v27, 0.0  ;;  %v8254_v43 = vadd.f32 %v4127_v2, %v10138_v40  ;;  %v6538_v50 = vadd.s32 456, %v10118_v6  ;;  %v11300_v2 = vpop.f32.mrb[121].mxu0  ;;  %v8404_v30 = vadd.f32 %v11237_v24, %v10141_v41  ;;  %v11322_v24 = vpop.f32.mrb[123].mxu1 }
 0x614   :  { %v7218_v20 = vadd.f32 %v7217_v3, %v7083_v12  ;;  %v7085_v5 = vsel %vm6690_vm8, %v6090_v31, 0.0  ;;  %v7084_v44 = vsel %vm6690_vm8, %v6089_v56, 0.0  ;;  %v6091_v42 = vmax.f32 %v8403_v63, 0.0  ;;  %v11312_v52 = vpop.f32.mrb[122].mxu0 }
 0x615   :  { %v7366_v36 = vadd.f32 %v7365_v57, %v7085_v5  ;;  %v7292_v55 = vadd.f32 %v7291_v39, %v7084_v44  ;;  %v6092_v23 = vmax.f32 %v8254_v43, 0.0  ;;  %vm6691_vm9 = vcmp.lt.s32.totalorder %v6538_v50, %v10144_v45  ;;  %v11320_v13 = vpop.f32.mrb[123].mxu0 }
 0x616   :  { %v7086_v59 = vsel %vm6690_vm8, %v6091_v42, 0.0  ;;  %v8255_v11 = vadd.f32 %v11243_v34, %v10147_v46  ;;  %v8405_v14 = vadd.f32 %v11245_v15, %v10150_v47  ;;  %v8256_v18 = vadd.f32 %v4133_v4, %v10138_v40 }
 0x617   :  { %v7440_v26 = vadd.f32 %v7439_v62, %v7086_v59  ;;  %v7087_v51 = vsel %vm6691_vm9, %v6092_v23, 0.0  ;;  %v6539_v10 = vadd.s32 464, %v10118_v6  ;;  %v6094_v60 = vmax.f32 %v8404_v30, 0.0  ;;  %v11338_v57 = vpop.f32.mrb[124].mxu0 }
 0x618   :  { %v7219_v34 = vadd.f32 %v7218_v20, %v7087_v51  ;;  %v6093_v28 = vmax.f32 %v8255_v11, 0.0  ;;  %v6095_v15 = vmax.f32 %v8405_v14, 0.0  ;;  %v6096_v9 = vmax.f32 %v8256_v18, 0.0  ;;  %v11340_v39 = vpop.f32.mrb[124].mxu1  ;;  %v11349_v56 = vpop.f32.mrb[125].mxu0 }
 0x619   :  { %vm6692_vm10 = vcmp.lt.s32.totalorder %v6539_v10, %v10144_v45  ;;  %v8406_v54 = vadd.f32 %v11257_v0, %v10141_v41  ;;  %v8257_v49 = vadd.f32 %v4135_v7, %v10147_v46  ;;  %v7089_v4 = vsel %vm6691_vm9, %v6094_v60, 0.0  ;;  %v11351_v63 = vpop.f32.mrb[125].mxu1 }
 0x61a   :  { %v7088_v19 = vsel %vm6691_vm9, %v6093_v28, 0.0  ;;  %v7090_v3 = vsel %vm6691_vm9, %v6095_v15, 0.0  ;;  %v8407_v61 = vadd.f32 %v11260_v16, %v10150_v47  ;;  %v7367_v1 = vadd.f32 %v7366_v36, %v7089_v4  ;;  %v11363_v50 = vpop.f32.mrb[126].mxu1 }
 0x61b   :  { %v7293_v8 = vadd.f32 %v7292_v55, %v7088_v19  ;;  %v7441_v29 = vadd.f32 %v7440_v26, %v7090_v3  ;;  %v7091_v0 = vsel %vm6692_vm10, %v6096_v9, 0.0  ;;  %v6098_v7 = vmax.f32 %v8406_v54, 0.0  ;;  %v11367_v36 = vpop.f32.mrb[127].mxu1 }
 0x61c   :  { %v7220_v25 = vadd.f32 %v7219_v34, %v7091_v0  ;;  %v6097_v17 = vmax.f32 %v8257_v49, 0.0  ;;  %v6099_v53 = vmax.f32 %v8407_v61, 0.0  ;;  %v8258_v27 = vadd.f32 %v11266_v22, %v10138_v40 }
 0x61d   :  { %v6540_v32 = vadd.s32 472, %v10118_v6  ;;  %v8408_v16 = vadd.f32 %v11268_v48, %v10141_v41  ;;  %v8259_v31 = vadd.f32 %v11273_v35, %v10147_v46  ;;  %v7093_v62 = vsel %vm6692_vm10, %v6098_v7, 0.0  ;;  %v11361_v48 = vpop.f32.mrb[126].mxu0 }
 0x61e   :  { %v7092_v12 = vsel %vm6692_vm10, %v6097_v17, 0.0  ;;  %v7094_v22 = vsel %vm6692_vm10, %v6099_v53, 0.0  ;;  %v8409_v43 = vadd.f32 %v11275_v38, %v10150_v47  ;;  %v7368_v35 = vadd.f32 %v7367_v1, %v7093_v62  ;;  %v11365_v42 = vpop.f32.mrb[127].mxu0 }
 0x61f   :  { %v7294_v20 = vadd.f32 %v7293_v8, %v7092_v12  ;;  %v7442_v5 = vadd.f32 %v7441_v29, %v7094_v22  ;;  %v6100_v44 = vmax.f32 %v8258_v27, 0.0  ;;  %vm6693_vm11 = vcmp.lt.s32.totalorder %v6540_v32, %v10144_v45  ;;  %v11380_v49 = vpop.f32.mrb[128].mxu0 }
 0x620   :  { %v6102_v55 = vmax.f32 %v8408_v16, 0.0  ;;  %v6101_v23 = vmax.f32 %v8259_v31, 0.0  ;;  %v6103_v59 = vmax.f32 %v8409_v43, 0.0  ;;  %v8260_v38 = vadd.f32 %v11295_v33, %v10138_v40  ;;  %v11391_v1 = vpop.f32.mrb[129].mxu0 }
 0x621   :  { %v7095_v30 = vsel %vm6693_vm11, %v6100_v44, 0.0  ;;  %v6541_v11 = vadd.s32 480, %v10118_v6  ;;  %v8410_v14 = vadd.f32 %v11297_v21, %v10141_v41  ;;  %v8261_v54 = vadd.f32 %v11300_v2, %v10147_v46  ;;  %v11382_v21 = vpop.f32.mrb[128].mxu1 }
 0x622   :  { %v7221_v26 = vadd.f32 %v7220_v25, %v7095_v30  ;;  %v7097_v51 = vsel %vm6693_vm11, %v6102_v55, 0.0  ;;  %v7096_v18 = vsel %vm6693_vm11, %v6101_v23, 0.0  ;;  %v7098_v10 = vsel %vm6693_vm11, %v6103_v59, 0.0  ;;  %v11393_v2 = vpop.f32.mrb[129].mxu1  ;;  %v11397_v25 = vpop.f32.mrb[130].mxu0 }
 0x623   :  { %v7369_v34 = vadd.f32 %v7368_v35, %v7097_v51  ;;  %v7295_v60 = vadd.f32 %v7294_v20, %v7096_v18  ;;  %v7443_v28 = vadd.f32 %v7442_v5, %v7098_v10  ;;  %v6104_v15 = vmax.f32 %v8260_v38, 0.0  ;;  %v11399_v7 = vpop.f32.mrb[130].mxu1 }
 0x624   :  { %vm6694_vm12 = vcmp.lt.s32.totalorder %v6541_v11, %v10144_v45  ;;  %v6106_v9 = vmax.f32 %v8410_v14, 0.0  ;;  %v8411_v33 = vadd.f32 %v11302_v37, %v10150_v47  ;;  %v8262_v19 = vadd.f32 %v11312_v52, %v10138_v40  ;;  %v11404_v27 = vpop.f32.mrb[131].mxu1 }
 0x625   :  { %v7099_v4 = vsel %vm6694_vm12, %v6104_v15, 0.0  ;;  %v6542_v3 = vadd.s32 488, %v10118_v6  ;;  %v8412_v61 = vadd.f32 %v11314_v58, %v10141_v41  ;;  %v6105_v29 = vmax.f32 %v8261_v54, 0.0  ;;  %v11402_v58 = vpop.f32.mrb[131].mxu0 }
 0x626   :  { %v7222_v37 = vadd.f32 %v7221_v26, %v7099_v4  ;;  %v7101_v8 = vsel %vm6694_vm12, %v6106_v9, 0.0  ;;  %v6107_v0 = vmax.f32 %v8411_v33, 0.0  ;;  %v6108_v17 = vmax.f32 %v8262_v19, 0.0 }
 0x627   :  { %v7370_v52 = vadd.f32 %v7369_v34, %v7101_v8  ;;  %vm6695_vm13 = vcmp.lt.s32.totalorder %v6542_v3, %v10144_v45  ;;  %v6110_v53 = vmax.f32 %v8412_v61, 0.0  ;;  %v7100_v32 = vsel %vm6694_vm12, %v6105_v29, 0.0  ;;  %v11433_v14 = vpop.f32.mrb[132].mxu0 }
 0x628   :  { %v7102_v16 = vsel %vm6694_vm12, %v6107_v0, 0.0  ;;  %v8263_v31 = vadd.f32 %v11320_v13, %v10147_v46  ;;  %v8413_v62 = vadd.f32 %v11322_v24, %v10150_v47  ;;  %v7296_v12 = vadd.f32 %v7295_v60, %v7100_v32  ;;  %v11435_v26 = vpop.f32.mrb[132].mxu1 }
 0x629   :  { %v7444_v22 = vadd.f32 %v7443_v28, %v7102_v16  ;;  %v7103_v43 = vsel %vm6695_vm13, %v6108_v17, 0.0  ;;  %v7105_v35 = vsel %vm6695_vm13, %v6110_v53, 0.0  ;;  %v8264_v23 = vadd.f32 %v11338_v57, %v10138_v40  ;;  %v11440_v10 = vpop.f32.mrb[133].mxu1 }
 0x62a   :  { %v7223_v20 = vadd.f32 %v7222_v37, %v7103_v43  ;;  %v7371_v5 = vadd.f32 %v7370_v52, %v7105_v35  ;;  %v6109_v44 = vmax.f32 %v8263_v31, 0.0  ;;  %v6111_v55 = vmax.f32 %v8413_v62, 0.0 }
 0x62b   :  { %v6543_v13 = vadd.s32 496, %v10118_v6  ;;  %v8414_v24 = vadd.f32 %v11340_v39, %v10141_v41  ;;  %v8265_v59 = vadd.f32 %v11349_v56, %v10147_v46  ;;  %v8415_v11 = vadd.f32 %v11351_v63, %v10150_v47  ;;  %v11438_v56 = vpop.f32.mrb[133].mxu0 }
 0x62c   :  { %v7104_v30 = vsel %vm6695_vm13, %v6109_v44, 0.0  ;;  %v7106_v38 = vsel %vm6695_vm13, %v6111_v55, 0.0  ;;  %v8266_v57 = vadd.f32 %v11361_v48, %v10138_v40  ;;  %v6112_v18 = vmax.f32 %v8264_v23, 0.0  ;;  %v11442_v15 = vpop.f32.mrb[134].mxu0  ;;  %v11444_v48 = vpop.f32.mrb[134].mxu1 }
 0x62d   :  { %v7297_v39 = vadd.f32 %v7296_v12, %v7104_v30  ;;  %v7445_v51 = vadd.f32 %v7444_v22, %v7106_v38  ;;  %vm6696_vm14 = vcmp.lt.s32.totalorder %v6543_v13, %v10144_v45  ;;  %v6114_v34 = vmax.f32 %v8414_v24, 0.0  ;;  %v11453_v19 = vpop.f32.mrb[135].mxu0  ;;  %v11455_v3 = vpop.f32.mrb[135].mxu1 }
 0x62e   :  { %v6113_v60 = vmax.f32 %v8265_v59, 0.0  ;;  %v6115_v28 = vmax.f32 %v8415_v11, 0.0  ;;  %v6116_v63 = vmax.f32 %v8266_v57, 0.0  ;;  %v7107_v9 = vsel %vm6696_vm14, %v6112_v18, 0.0 }
 0x62f   :  { %v6544_v54 = vadd.s32 504, %v10118_v6  ;;  %v8416_v33 = vadd.f32 %v11363_v50, %v10141_v41  ;;  %v8267_v4 = vadd.f32 %v11365_v42, %v10147_v46  ;;  %v7224_v61 = vadd.f32 %v7223_v20, %v7107_v9 }
 0x630   :  { %v7109_v37 = vsel %vm6696_vm14, %v6114_v34, 0.0  ;;  %v7108_v8 = vsel %vm6696_vm14, %v6113_v60, 0.0  ;;  %v7110_v29 = vsel %vm6696_vm14, %v6115_v28, 0.0  ;;  %v8417_v32 = vadd.f32 %v11367_v36, %v10150_v47  ;;  %v11479_v36 = vpop.f32.mrb[136].mxu0 }
 0x631   :  { %v7372_v0 = vadd.f32 %v7371_v5, %v7109_v37  ;;  %v7298_v52 = vadd.f32 %v7297_v39, %v7108_v8  ;;  %v7446_v50 = vadd.f32 %v7445_v51, %v7110_v29  ;;  %vm6697_vm15 = vcmp.lt.s32.totalorder %v6544_v54, %v10144_v45  ;;  %v11481_v5 = vpop.f32.mrb[136].mxu1 }
 0x632   :  { %v7111_v42 = vsel %vm6697_vm15, %v6116_v63, 0.0  ;;  %v6118_v17 = vmax.f32 %v8416_v33, 0.0  ;;  %v6117_v53 = vmax.f32 %v8267_v4, 0.0  ;;  %v8268_v31 = vadd.f32 %v11380_v49, %v10138_v40  ;;  %v11486_v23 = vpop.f32.mrb[137].mxu1 }
 0x633   :  { %v7225_v16 = vadd.f32 %v7224_v61, %v7111_v42  ;;  %v6545_v62 = vadd.s32 512, %v10118_v6  ;;  %v8418_v12 = vadd.f32 %v11382_v21, %v10141_v41  ;;  %v6119_v35 = vmax.f32 %v8417_v32, 0.0  ;;  %v11484_v21 = vpop.f32.mrb[137].mxu0  ;;  %v11494_v38 = vpop.f32.mrb[138].mxu1 }
 0x634   :  { %v7113_v22 = vsel %vm6697_vm15, %v6118_v17, 0.0  ;;  %v7112_v43 = vsel %vm6697_vm15, %v6117_v53, 0.0  ;;  %v8269_v20 = vadd.f32 %v11391_v1, %v10147_v46  ;;  %v6120_v55 = vmax.f32 %v8268_v31, 0.0  ;;  %v11492_v30 = vpop.f32.mrb[138].mxu0  ;;  %v11503_v34 = vpop.f32.mrb[139].mxu1 }
 0x635   :  { %v7373_v49 = vadd.f32 %v7372_v0, %v7113_v22  ;;  %v7299_v44 = vadd.f32 %v7298_v52, %v7112_v43  ;;  %vm6698_vm0 = vcmp.lt.s32.totalorder %v6545_v62, %v10144_v45  ;;  %v7114_v13 = vsel %vm6697_vm15, %v6119_v35, 0.0  ;;  %v11501_v18 = vpop.f32.mrb[139].mxu0 }
 0x636   :  { %v6122_v24 = vmax.f32 %v8418_v12, 0.0  ;;  %v6121_v59 = vmax.f32 %v8269_v20, 0.0  ;;  %v8419_v1 = vadd.f32 %v11393_v2, %v10150_v47  ;;  %v7447_v11 = vadd.f32 %v7446_v50, %v7114_v13 }
 0x637   :  { %v7115_v57 = vsel %vm6698_vm0, %v6120_v55, 0.0  ;;  %v8270_v39 = vadd.f32 %v11397_v25, %v10138_v40  ;;  %v6546_v51 = vadd.s32 520, %v10118_v6  ;;  %v8420_v4 = vadd.f32 %v11399_v7, %v10141_v41  ;;  %v11523_v7 = vpop.f32.mrb[140].mxu0 }
 0x638   :  { %v7226_v60 = vadd.f32 %v7225_v16, %v7115_v57  ;;  %v7117_v2 = vsel %vm6698_vm0, %v6122_v24, 0.0  ;;  %v7116_v28 = vsel %vm6698_vm0, %v6121_v59, 0.0  ;;  %v6123_v63 = vmax.f32 %v8419_v1, 0.0  ;;  %v11525_v32 = vpop.f32.mrb[140].mxu1 }
 0x639   :  { %v7374_v9 = vadd.f32 %v7373_v49, %v7117_v2  ;;  %v7300_v54 = vadd.f32 %v7299_v44, %v7116_v28  ;;  %v6124_v33 = vmax.f32 %v8270_v39, 0.0  ;;  %vm6699_vm1 = vcmp.lt.s32.totalorder %v6546_v51, %v10144_v45  ;;  %v11534_v31 = vpop.f32.mrb[141].mxu1 }
 0x63a   :  { %v7118_v25 = vsel %vm6698_vm0, %v6123_v63, 0.0  ;;  %v8271_v61 = vadd.f32 %v11402_v58, %v10147_v46  ;;  %v8421_v37 = vadd.f32 %v11404_v27, %v10150_v47  ;;  %v8272_v0 = vadd.f32 %v11433_v14, %v10138_v40  ;;  %v11532_v14 = vpop.f32.mrb[141].mxu0  ;;  %v11546_v35 = vpop.f32.mrb[142].mxu1 }
 0x63b   :  { %v7448_v8 = vadd.f32 %v7447_v11, %v7118_v25  ;;  %v7119_v29 = vsel %vm6699_vm1, %v6124_v33, 0.0  ;;  %v6547_v52 = vadd.s32 528, %v10118_v6  ;;  %v6126_v42 = vmax.f32 %v8420_v4, 0.0  ;;  %v11552_v13 = vpop.f32.mrb[143].mxu1 }
 0x63c   :  { %v7227_v50 = vadd.f32 %v7226_v60, %v7119_v29  ;;  %v6125_v17 = vmax.f32 %v8271_v61, 0.0  ;;  %v6127_v53 = vmax.f32 %v8421_v37, 0.0  ;;  %v6128_v58 = vmax.f32 %v8272_v0, 0.0 }
 0x63d   :  { %vm6700_vm2 = vcmp.lt.s32.totalorder %v6547_v52, %v10144_v45  ;;  %v8422_v27 = vadd.f32 %v11435_v26, %v10141_v41  ;;  %v8273_v16 = vadd.f32 %v11438_v56, %v10147_v46  ;;  %v7121_v62 = vsel %vm6699_vm1, %v6126_v42, 0.0  ;;  %v11544_v26 = vpop.f32.mrb[142].mxu0 }
 0x63e   :  { %v7120_v12 = vsel %vm6699_vm1, %v6125_v17, 0.0  ;;  %v7122_v22 = vsel %vm6699_vm1, %v6127_v53, 0.0  ;;  %v8423_v43 = vadd.f32 %v11440_v10, %v10150_v47  ;;  %v7375_v56 = vadd.f32 %v7374_v9, %v7121_v62  ;;  %v11550_v55 = vpop.f32.mrb[143].mxu0 }
 0x63f   :  { %v7301_v20 = vadd.f32 %v7300_v54, %v7120_v12  ;;  %v7449_v49 = vadd.f32 %v7448_v8, %v7122_v22  ;;  %v7123_v44 = vsel %vm6700_vm2, %v6128_v58, 0.0  ;;  %v6130_v59 = vmax.f32 %v8422_v27, 0.0  ;;  %v11570_v4 = vpop.f32.mrb[144].mxu0 }
 0x640   :  { %v7228_v24 = vadd.f32 %v7227_v50, %v7123_v44  ;;  %v6129_v1 = vmax.f32 %v8273_v16, 0.0  ;;  %v6131_v11 = vmax.f32 %v8423_v43, 0.0  ;;  %v8274_v10 = vadd.f32 %v11442_v15, %v10138_v40  ;;  %v11572_v61 = vpop.f32.mrb[144].mxu1  ;;  %v11579_v0 = vpop.f32.mrb[145].mxu0 }
 0x641   :  { %v6548_v57 = vadd.s32 536, %v10118_v6  ;;  %v8424_v39 = vadd.f32 %v11444_v48, %v10141_v41  ;;  %v8275_v51 = vadd.f32 %v11453_v19, %v10147_v46  ;;  %v7125_v60 = vsel %vm6700_vm2, %v6130_v59, 0.0  ;;  %v11581_v52 = vpop.f32.mrb[145].mxu1  ;;  %v11583_v58 = vpop.f32.mrb[146].mxu0 }
 0x642   :  { %v7124_v2 = vsel %vm6700_vm2, %v6129_v1, 0.0  ;;  %v7126_v28 = vsel %vm6700_vm2, %v6131_v11, 0.0  ;;  %v8425_v15 = vadd.f32 %v11455_v3, %v10150_v47  ;;  %v7376_v63 = vadd.f32 %v7375_v56, %v7125_v60  ;;  %v11585_v27 = vpop.f32.mrb[146].mxu1  ;;  %v11587_v22 = vpop.f32.mrb[147].mxu0 }
 0x643   :  { %v7302_v9 = vadd.f32 %v7301_v20, %v7124_v2  ;;  %v7450_v54 = vadd.f32 %v7449_v49, %v7126_v28  ;;  %v6132_v33 = vmax.f32 %v8274_v10, 0.0  ;;  %vm6701_vm3 = vcmp.lt.s32.totalorder %v6548_v57, %v10144_v45  ;;  %v11589_v43 = vpop.f32.mrb[147].mxu1 }
 0x644   :  { %v6134_v48 = vmax.f32 %v8424_v39, 0.0  ;;  %v6133_v19 = vmax.f32 %v8275_v51, 0.0  ;;  %v6135_v25 = vmax.f32 %v8425_v15, 0.0  ;;  %v8276_v8 = vadd.f32 %v11479_v36, %v10138_v40 }
 0x645   :  { %v7127_v37 = vsel %vm6701_vm3, %v6132_v33, 0.0  ;;  %v6549_v29 = vadd.s32 544, %v10118_v6  ;;  %v8426_v3 = vadd.f32 %v11481_v5, %v10141_v41  ;;  %v8277_v56 = vadd.f32 %v11484_v21, %v10147_v46 }
 0x646   :  { %v7229_v50 = vadd.f32 %v7228_v24, %v7127_v37  ;;  %v7129_v42 = vsel %vm6701_vm3, %v6134_v48, 0.0  ;;  %v7128_v17 = vsel %vm6701_vm3, %v6133_v19, 0.0  ;;  %v7130_v53 = vsel %vm6701_vm3, %v6135_v25, 0.0 }
 0x647   :  { %v7377_v16 = vadd.f32 %v7376_v63, %v7129_v42  ;;  %v7303_v62 = vadd.f32 %v7302_v9, %v7128_v17  ;;  %v7451_v36 = vadd.f32 %v7450_v54, %v7130_v53  ;;  %v6136_v12 = vmax.f32 %v8276_v8, 0.0  ;;  %v11614_v2 = vpop.f32.mrb[148].mxu0 }
 0x648   :  { %vm6702_vm4 = vcmp.lt.s32.totalorder %v6549_v29, %v10144_v45  ;;  %v6138_v5 = vmax.f32 %v8426_v3, 0.0  ;;  %v8427_v20 = vadd.f32 %v11486_v23, %v10150_v47  ;;  %v8278_v44 = vadd.f32 %v11492_v30, %v10138_v40  ;;  %v11616_v28 = vpop.f32.mrb[148].mxu1  ;;  %v11622_v33 = vpop.f32.mrb[149].mxu0 }
 0x649   :  { %v7131_v49 = vsel %vm6702_vm4, %v6136_v12, 0.0  ;;  %v6550_v24 = vadd.s32 552, %v10118_v6  ;;  %v8428_v59 = vadd.f32 %v11494_v38, %v10141_v41  ;;  %v6137_v10 = vmax.f32 %v8277_v56, 0.0  ;;  %v11624_v48 = vpop.f32.mrb[149].mxu1  ;;  %v4217_v37 = vpop.f32.mrb[150].mxu0 }
 0x64a   :  { %v7230_v1 = vadd.f32 %v7229_v50, %v7131_v49  ;;  %v7133_v11 = vsel %vm6702_vm4, %v6138_v5, 0.0  ;;  %v6139_v21 = vmax.f32 %v8427_v20, 0.0  ;;  %v6140_v39 = vmax.f32 %v8278_v44, 0.0  ;;  %v5861_v8 = vpop.f32.mrb[150].mxu1  ;;  %v4218_v17 = vpop.f32.mrb[151].mxu0 }
 0x64b   :  { %v7378_v57 = vadd.f32 %v7377_v16, %v7133_v11  ;;  %vm6703_vm5 = vcmp.lt.s32.totalorder %v6550_v24, %v10144_v45  ;;  %v6142_v23 = vmax.f32 %v8428_v59, 0.0  ;;  %v7132_v51 = vsel %vm6702_vm4, %v6137_v10, 0.0  ;;  %v5862_v53 = vpop.f32.mrb[151].mxu1 }
 0x64c   :  { %v7134_v30 = vsel %vm6702_vm4, %v6139_v21, 0.0  ;;  %v8279_v38 = vadd.f32 %v11501_v18, %v10147_v46  ;;  %v8429_v60 = vadd.f32 %v11503_v34, %v10150_v47  ;;  %v7304_v15 = vadd.f32 %v7303_v62, %v7132_v51 }
 0x64d   :  { %v7452_v63 = vadd.f32 %v7451_v36, %v7134_v30  ;;  %v7135_v9 = vsel %vm6703_vm5, %v6140_v39, 0.0  ;;  %v7137_v54 = vsel %vm6703_vm5, %v6142_v23, 0.0  ;;  %v8280_v29 = vadd.f32 %v11523_v7, %v10138_v40 }
 0x64e   :  { %v7231_v18 = vadd.f32 %v7230_v1, %v7135_v9  ;;  %v7379_v19 = vadd.f32 %v7378_v57, %v7137_v54  ;;  %v6141_v25 = vmax.f32 %v8279_v38, 0.0  ;;  %v6143_v34 = vmax.f32 %v8429_v60, 0.0 }
 0x64f   :  { %v6551_v3 = vadd.s32 560, %v10118_v6  ;;  %v8430_v50 = vadd.f32 %v11525_v32, %v10141_v41  ;;  %v8281_v42 = vadd.f32 %v11532_v14, %v10147_v46  ;;  %v8431_v36 = vadd.f32 %v11534_v31, %v10150_v47 }
 0x650   :  { %v7136_v16 = vsel %vm6703_vm5, %v6141_v25, 0.0  ;;  %v7138_v62 = vsel %vm6703_vm5, %v6143_v34, 0.0  ;;  %v8282_v7 = vadd.f32 %v11544_v26, %v10138_v40  ;;  %v6144_v32 = vmax.f32 %v8280_v29, 0.0 }
 0x651   :  { %v7305_v12 = vadd.f32 %v7304_v15, %v7136_v16  ;;  %v7453_v5 = vadd.f32 %v7452_v63, %v7138_v62  ;;  %vm6704_vm6 = vcmp.lt.s32.totalorder %v6551_v3, %v10144_v45  ;;  %v6146_v14 = vmax.f32 %v8430_v50, 0.0 }
 0x652   :  { %v6145_v56 = vmax.f32 %v8281_v42, 0.0  ;;  %v6147_v20 = vmax.f32 %v8431_v36, 0.0  ;;  %v6148_v49 = vmax.f32 %v8282_v7, 0.0  ;;  %v7139_v44 = vsel %vm6704_vm6, %v6144_v32, 0.0 }
 0x653   :  { %v6552_v59 = vadd.s32 568, %v10118_v6  ;;  %v8432_v24 = vadd.f32 %v11546_v35, %v10141_v41  ;;  %v8283_v31 = vadd.f32 %v11550_v55, %v10147_v46  ;;  %v7232_v1 = vadd.f32 %v7231_v18, %v7139_v44 }
 0x654   :  { %v7141_v26 = vsel %vm6704_vm6, %v6146_v14, 0.0  ;;  %v7140_v11 = vsel %vm6704_vm6, %v6145_v56, 0.0  ;;  %v7142_v10 = vsel %vm6704_vm6, %v6147_v20, 0.0  ;;  %v8433_v35 = vadd.f32 %v11552_v13, %v10150_v47 }
 0x655   :  { %v7380_v21 = vadd.f32 %v7379_v19, %v7141_v26  ;;  %v7306_v57 = vadd.f32 %v7305_v12, %v7140_v11  ;;  %v7454_v39 = vadd.f32 %v7453_v5, %v7142_v10  ;;  %vm6705_vm7 = vcmp.lt.s32.totalorder %v6552_v59, %v10144_v45 }
 0x656   :  { %v7143_v23 = vsel %vm6705_vm7, %v6148_v49, 0.0  ;;  %v6150_v51 = vmax.f32 %v8432_v24, 0.0  ;;  %v6149_v30 = vmax.f32 %v8283_v31, 0.0  ;;  %v8284_v55 = vadd.f32 %v11570_v4, %v10138_v40 }
 0x657   :  { %v7233_v38 = vadd.f32 %v7232_v1, %v7143_v23  ;;  %v6553_v60 = vadd.s32 576, %v10118_v6  ;;  %v8434_v15 = vadd.f32 %v11572_v61, %v10141_v41  ;;  %v6151_v54 = vmax.f32 %v8433_v35, 0.0 }
 0x658   :  { %v7145_v63 = vsel %vm6705_vm7, %v6150_v51, 0.0  ;;  %v7144_v9 = vsel %vm6705_vm7, %v6149_v30, 0.0  ;;  %v8285_v18 = vadd.f32 %v11579_v0, %v10147_v46  ;;  %v6152_v25 = vmax.f32 %v8284_v55, 0.0 }
 0x659   :  { %v7381_v13 = vadd.f32 %v7380_v21, %v7145_v63  ;;  %v7307_v19 = vadd.f32 %v7306_v57, %v7144_v9  ;;  %vm6706_vm8 = vcmp.lt.s32.totalorder %v6553_v60, %v10144_v45  ;;  %v7146_v4 = vsel %vm6705_vm7, %v6151_v54, 0.0 }
 0x65a   :  { %v6154_v34 = vmax.f32 %v8434_v15, 0.0  ;;  %v6153_v61 = vmax.f32 %v8285_v18, 0.0  ;;  %v8435_v37 = vadd.f32 %v11581_v52, %v10150_v47  ;;  %v7455_v8 = vadd.f32 %v7454_v39, %v7146_v4 }
 0x65b   :  { %v7147_v29 = vsel %vm6706_vm8, %v6152_v25, 0.0  ;;  %v8286_v0 = vadd.f32 %v11583_v58, %v10138_v40  ;;  %v6554_v3 = vadd.s32 584, %v10118_v6  ;;  %v8436_v58 = vadd.f32 %v11585_v27, %v10141_v41 }
 0x65c   :  { %v7234_v50 = vadd.f32 %v7233_v38, %v7147_v29  ;;  %v7149_v42 = vsel %vm6706_vm8, %v6154_v34, 0.0  ;;  %v7148_v17 = vsel %vm6706_vm8, %v6153_v61, 0.0  ;;  %v6155_v53 = vmax.f32 %v8435_v37, 0.0 }
 0x65d   :  { %v7382_v16 = vadd.f32 %v7381_v13, %v7149_v42  ;;  %v7308_v62 = vadd.f32 %v7307_v19, %v7148_v17  ;;  %v6156_v52 = vmax.f32 %v8286_v0, 0.0  ;;  %vm6707_vm9 = vcmp.lt.s32.totalorder %v6554_v3, %v10144_v45 }
 0x65e   :  { %v7150_v36 = vsel %vm6706_vm8, %v6155_v53, 0.0  ;;  %v8287_v7 = vadd.f32 %v11587_v22, %v10147_v46  ;;  %v8437_v12 = vadd.f32 %v11589_v43, %v10150_v47  ;;  %v8288_v14 = vadd.f32 %v11614_v2, %v10138_v40 }
 0x65f   :  { %v7456_v5 = vadd.f32 %v7455_v8, %v7150_v36  ;;  %v7151_v32 = vsel %vm6707_vm9, %v6156_v52, 0.0  ;;  %v6555_v56 = vadd.s32 592, %v10118_v6  ;;  %v6158_v49 = vmax.f32 %v8436_v58, 0.0  ;;  %v7503_v36 = vld [vmem:[#allocation13] sm:$0x1] }
 0x660   :  { %v7235_v20 = vadd.f32 %v7234_v50, %v7151_v32  ;;  %v6157_v44 = vmax.f32 %v8287_v7, 0.0  ;;  %v6159_v59 = vmax.f32 %v8437_v12, 0.0  ;;  %v6160_v27 = vmax.f32 %v8288_v14, 0.0 }
 0x661   :  { %vm6708_vm10 = vcmp.lt.s32.totalorder %v6555_v56, %v10144_v45  ;;  %v8438_v22 = vadd.f32 %v11616_v28, %v10141_v41  ;;  %v8289_v43 = vadd.f32 %v11622_v33, %v10147_v46  ;;  %v7153_v24 = vsel %vm6707_vm9, %v6158_v49, 0.0  ;;  %v7673_v49 = vld [vmem:[#allocation14] sm:$0xf] (!%p8138_p9) }
 0x662   :  { %v7152_v40 = vsel %vm6707_vm9, %v6157_v44, 0.0  ;;  %v7154_v2 = vsel %vm6707_vm9, %v6159_v59, 0.0  ;;  %v8439_v31 = vadd.f32 %v11624_v48, %v10150_v47  ;;  %v7383_v1 = vadd.f32 %v7382_v16, %v7153_v24  ;;  %v11826_v44 = vld [vmem:[#allocation26_spill] sm:$0xff] (!%p8138_p9) }
 0x663   :  { %v7309_v26 = vadd.f32 %v7308_v62, %v7152_v40  ;;  %v7457_v11 = vadd.f32 %v7456_v5, %v7154_v2  ;;  %v7155_v41 = vsel %vm6708_vm10, %v6160_v27, 0.0  ;;  %v6162_v28 = vmax.f32 %v8438_v22, 0.0  ;;  %v11827_v27 = vld [vmem:[#allocation28_spill] sm:$0xff] (!%p8138_p9)  ;;  %v11829_v40 = vld [vmem:[#allocation29_spill] sm:$0xff] (!%p8138_p9) }
 0x664   :  { %v7236_v46 = vadd.f32 %v7235_v20, %v7155_v41  ;;  %v6161_v33 = vmax.f32 %v8289_v43, 0.0  ;;  %v6163_v10 = vmax.f32 %v8439_v31, 0.0  ;;  %v7496_v21 = vstv %s7467_s16  ;;  %v11828_v43 = vld [vmem:[#allocation27_spill] sm:$0xff] (!%p8138_p9) }
 0x665   :  { %v7157_v39 = vsel %vm6708_vm10, %v6162_v28, 0.0  ;;  %9755 = vrcp.f32 %v7496_v21  ;;  %vm7666_vm11 = vcmask 8192   ;;  %vm7695_vm12 = vcmask (!%p8138_p9), 1040384  }
 0x666   :  { %v7472_v57 = vrot.slane %v7236_v46, 4  ;;  %v7156_v23 = vsel %vm6708_vm10, %v6161_v33, 0.0  ;;  %v7158_v47 = vsel %vm6708_vm10, %v6163_v10, 0.0  ;;  %v7384_v48 = vadd.f32 %v7383_v1, %v7157_v39 }
 0x667   :  { %v7310_v51 = vadd.f32 %v7309_v26, %v7156_v23  ;;  %v7458_v30 = vadd.f32 %v7457_v11, %v7158_v47  ;;  %v7678_v59 = vrot.slane (!%p8138_p9), %v7673_v49, %v11826_v44  ;;  %v7682_v22 = vrot.slane (!%p8138_p9), %v7673_v49, %v11827_v27 }
 0x668   :  { %v7473_v35 = vadd.f32 %v7472_v57, %v7236_v46  ;;  %v7484_v38 = vrot.slane %v7384_v48, 4  ;;  %v7686_v24 = vrot.slane (!%p8138_p9), %v7673_v49, %v11828_v43  ;;  %v7690_v2 = vrot.slane (!%p8138_p9), %v7673_v49, %v11829_v40 }
 0x669   :  { %v7478_v55 = vrot.slane %v7310_v51, 4  ;;  %v7490_v60 = vrot.slane %v7458_v30, 4  ;;  %v7696_v1 = vsel (!%p8138_p9), %vm7695_vm12, %v7678_v59, -inf  ;;  %v7697_v26 = vsel (!%p8138_p9), %vm7695_vm12, %v7682_v22, -inf }
 0x66a   :  { %v7474_v15 = vrot.slane %v7473_v35, 2  ;;  %v7485_v63 = vadd.f32 %v7484_v38, %v7384_v48  ;;  %v7698_v11 = vsel (!%p8138_p9), %vm7695_vm12, %v7686_v24, -inf  ;;  %v7699_v41 = vsel (!%p8138_p9), %vm7695_vm12, %v7690_v2, -inf }
 0x66b   :  { %v7479_v9 = vadd.f32 %v7478_v55, %v7310_v51  ;;  %v7491_v54 = vadd.f32 %v7490_v60, %v7458_v30  ;;  %v7700_v46 = vmax.f32 (!%p8138_p9), %v7696_v1, %v7697_v26  ;;  %v7701_v28 = vmax.f32 (!%p8138_p9), %v7698_v11, %v7699_v41 }
 0x66c   :  { %v7475_v18 = vadd.f32 %v7474_v15, %v7473_v35  ;;  %v7486_v13 = vrot.slane %v7485_v63, 2  ;;  %vm7841_vm13 = vcmask (!%p8138_p9), 0  }
 0x66d   :  { %v7480_v19 = vrot.slane %v7479_v9, 2  ;;  %v7492_v25 = vrot.slane %v7491_v54, 2  ;;  %v7702_v33 = vmax.f32 (!%p8138_p9), %v7700_v46, %v7701_v28 }
 0x66e   :  { %v7476_v4 = vrot.slane %v7475_v18, 1  ;;  %v7487_v34 = vadd.f32 %v7486_v13, %v7485_v63 }
 0x66f   :  { %v7481_v45 = vadd.f32 %v7480_v19, %v7479_v9  ;;  %v7493_v61 = vadd.f32 %v7492_v25, %v7491_v54  ;;  %v9756_v0 = vpop.eup %9755 }
 0x670   :  { %v7488_v37 = vrot.slane %v7487_v34, 1  ;;  %v7477_v3 = vadd.f32 %v7476_v4, %v7475_v18 }
 0x671   :  { %v7482_v8 = vrot.slane %v7481_v45, 1  ;;  %v7494_v29 = vrot.slane %v7493_v61, 1 }
 0x672   :  { %v7489_v50 = vadd.f32 %v7488_v37, %v7487_v34  ;;  %v7498_v62 = vmul.f32 %v9756_v0, %v7477_v3 }
 0x673   :  { %v7483_v42 = vadd.f32 %v7482_v8, %v7481_v45  ;;  %v7495_v17 = vadd.f32 %v7494_v29, %v7493_v61 }
 0x674   :  { %v7500_v52 = vmul.f32 %v9756_v0, %v7489_v50 }
 0x675   :  { %v7499_v53 = vmul.f32 %v9756_v0, %v7483_v42  ;;  %v7501_v16 = vmul.f32 %v9756_v0, %v7495_v17 }
 0x677   :  { %7590 = vmatprep.mubr.f32.mxu1 %v7499_v53  ;;  %7660 = vmatprep.mubr.f32.mxu0 %v7501_v16  ;;  %v7752_v56 = vmax.f32 (!%p8138_p9), %v7498_v62, %v7499_v53  ;;  %v7753_v20 = vmax.f32 (!%p8138_p9), %v7500_v52, %v7501_v16 }
 0x678   :  { %7591 = vmatmul.mubr.f32.vlgmr.msra.gmra.mrb[152].mxu1 %v7498_v62  ;;  %7661 = vmatmul.mubr.f32.vlgmr.msra.gmra.mrb[152].mxu0 %v7500_v52 }
 0x679   :  { %v7754_v31 = vmax.f32 (!%p8138_p9), %v7752_v56, %v7753_v20 }
 0x67b   :  { %7755 = vmax.xlane.f32.xlu0 (!%p8138_p9), %v7754_v31 }
 0x67f   :  { %7703 = vmax.xlane.f32.xlu0 (!%p8138_p9), %v7702_v33 }
 0x708   :  { %v7756_v10 = vpop.xlane.xlu0 (!%p8138_p9), %7755 }
 0x709   :  { %v7757_v21 = vsub.f32 (!%p8138_p9), %v7498_v62, %v7756_v10  ;;  %v7758_v57 = vsub.f32 (!%p8138_p9), %v7499_v53, %v7756_v10  ;;  %v7759_v39 = vsub.f32 (!%p8138_p9), %v7500_v52, %v7756_v10  ;;  %v7760_v23 = vsub.f32 (!%p8138_p9), %v7501_v16, %v7756_v10 }
 0x70a   :  { %v9983_v53 = vmov (!%p8138_p9), 1966171168  }
 0x70b   :  { %v7761_v47 = vmul.f32 (!%p8138_p9), 1.442695, %v7757_v21  ;;  %v7763_v48 = vmul.f32 (!%p8138_p9), 1.442695, %v7758_v57  ;;  %v7765_v51 = vmul.f32 (!%p8138_p9), 1.442695, %v7759_v39  ;;  %v7788_v16 = vunpack.c.l.s4 (!%p8138_p9), %v9983_v53 }
 0x70c   :  { %v7704_v30 = vpop.xlane.xlu0 (!%p8138_p9), %7703  ;;  %v7767_v38 = vmul.f32 (!%p8138_p9), 1.442695, %v7760_v23 }
 0x70d   :  { %9757 = vpow2.f32 (!%p8138_p9), %v7761_v47  ;;  %v7709_v35 = vrot.slane (!%p8138_p9), %v7704_v30, %v11826_v44  ;;  %v7789_v52 = vunpack.c.0.s8 (!%p8138_p9), %v7788_v16 }
 0x70e   :  { %9759 = vpow2.f32 (!%p8138_p9), %v7763_v48 }
 0x70f   :  { %v7711_v55 = vsub.f32 (!%p8138_p9), %v7673_v49, %v7709_v35  ;;  %9761 = vpow2.f32 (!%p8138_p9), %v7765_v51 }
 0x710   :  { %9763 = vpow2.f32 (!%p8138_p9), %v7767_v38 }
 0x711   :  { %v7712_v60 = vmul.f32 (!%p8138_p9), 1.442695, %v7711_v55 }
 0x713   :  { %9765 = vpow2.f32 (!%p8138_p9), %v7712_v60 }
 0x717   :  { %v9758_v15 = vpop.eup (!%p8138_p9), %9757 }
 0x718   :  { %v9760_v63 = vpop.eup (!%p8138_p9), %9759 }
 0x719   :  { %v7769_v9 = vadd.f32 (!%p8138_p9), %v9760_v63, %v9758_v15  ;;  %v9762_v54 = vpop.eup (!%p8138_p9), %9761 }
 0x71a   :  { %v9764_v13 = vpop.eup (!%p8138_p9), %9763 }
 0x71b   :  { %v7770_v18 = vadd.f32 (!%p8138_p9), %v9762_v54, %v7769_v9 }
 0x71d   :  { %v9766_v19 = vpop.eup (!%p8138_p9), %9765  ;;  %v7771_v25 = vadd.f32 (!%p8138_p9), %v9764_v13, %v7770_v18 }
 0x71e   :  { %v7718_v4 = vrot.slane (!%p8138_p9), %v9766_v19, %v11826_v44  ;;  %v7722_v34 = vrot.slane (!%p8138_p9), %v9766_v19, %v11827_v27  ;;  %v7726_v45 = vrot.slane (!%p8138_p9), %v9766_v19, %v11828_v43  ;;  %v7730_v61 = vrot.slane (!%p8138_p9), %v9766_v19, %v11829_v40 }
 0x71f   :  { %7772 = vadd.xlane.f32.xlu1 (!%p8138_p9), %v7771_v25 }
 0x720   :  { %v7735_v37 = vsel (!%p8138_p9), %vm7695_vm12, %v7718_v4, 0.0  ;;  %v7736_v8 = vsel (!%p8138_p9), %vm7695_vm12, %v7722_v34, 0.0  ;;  %v7738_v0 = vsel (!%p8138_p9), %vm7695_vm12, %v7726_v45, 0.0  ;;  %v7740_v50 = vsel (!%p8138_p9), %vm7695_vm12, %v7730_v61, 0.0 }
 0x721   :  { %v7737_v29 = vadd.f32 (!%p8138_p9), %v7736_v8, %v7735_v37 }
 0x723   :  { %v7739_v3 = vadd.f32 (!%p8138_p9), %v7738_v0, %v7737_v29 }
 0x725   :  { %v7741_v42 = vadd.f32 (!%p8138_p9), %v7740_v50, %v7739_v3 }
 0x727   :  { %7742 = vadd.xlane.f32.xlu1 (!%p8138_p9), %v7741_v42 }
 0x74a   :  { %7672 = sbr.rel (%p8138_p9) target bundleno = 2144 (0x860), region = 65 }
 0x74b   :  { %v7592_v58 = vpop.f32.mrb[152].mxu1  ;;  %v7662_v7 = vpop.f32.mrb[152].mxu0 }
 0x74c   :  { %v7593_v12 = vadd.f32 %v7592_v58, %v7503_v36  ;;  %v7594_v5 = vpop.f32.mrb[153].mxu1  ;;  %v7664_v32 = vpop.f32.mrb[153].mxu0 }
 0x74e   :  { %v7663_v14 = vadd.f32 %v7662_v7, %v7593_v12  ;;  %v7792_v12 = vsub.s32 (!%p8138_p9), %v7789_v52, %v10118_v6 }
 0x750   :  { %7667 = vst.msk [vmem:[#allocation16] sm:$0x1] %vm7666_vm11, %v7663_v14 }
 0x7ac   :  { %v7773_v17 = vpop.xlane.xlu1 %7772 }
 0x7ad   :  { %9767 = vlog2.f32 %v7773_v17 }
 0x7b4   :  { %v7743_v62 = vpop.xlane.xlu1 %7742 }
 0x7b5   :  { %v7748_v36 = vrot.slane %v7743_v62, %v11826_v44 }
 0x7b7   :  { %v9768_v58 = vpop.eup %9767  ;;  %9769 = vrcp.f32 %v7748_v36 }
 0x7b8   :  { %v7775_v7 = vmul.f32 0.6931472, %v9768_v58 }
 0x7ba   :  { %v7776_v5 = vsub.f32 %v7757_v21, %v7775_v7  ;;  %v7777_v32 = vsub.f32 %v7758_v57, %v7775_v7  ;;  %v7778_v14 = vsub.f32 %v7759_v39, %v7775_v7  ;;  %v7779_v56 = vsub.f32 %v7760_v23, %v7775_v7 }
 0x7bc   :  { %v7785_v20 = vcombine.low %v7776_v5, %v7777_v32  ;;  %v7786_v49 = vcombine.low %v7778_v14, %v7779_v56 }
 0x7be   :  { %v7793_v59 = vrot.slane %v7785_v20, %v7792_v12  ;;  %v7800_v22 = vrot.slane %v7786_v49, %v7792_v12 }
 0x7c0   :  { %v7801_v24 = vcombine.low %v7793_v59, %v7800_v22 }
 0x7c1   :  { %v9770_v2 = vpop.eup %9769 }
 0x7c2   :  { %v7751_v31 = vmul.f32 %v9770_v2, %v9766_v19  ;;  %v7808_v26 = vrot.slane %v7801_v24, %v7792_v12 }
 0x7c4   :  { %v7780_v1 = vsub.f32 0.0, %v7751_v31 }
 0x7c6   :  { %v7810_v11 = vmul.f32 %v7808_v26, %v7780_v1 }
 0x7c8   :  { %v7815_v41 = vrot.slane %v7810_v11, %v11826_v44  ;;  %v7819_v46 = vrot.slane %v7810_v11, %v11827_v27  ;;  %v7823_v6 = vrot.slane %v7810_v11, %v11828_v43  ;;  %v7827_v28 = vrot.slane %v7810_v11, %v11829_v40 }
 0x7ca   :  { %v7832_v33 = vsel %vm7695_vm12, %v7815_v41, 0.0  ;;  %v7833_v10 = vsel %vm7695_vm12, %v7819_v46, 0.0  ;;  %v7835_v57 = vsel %vm7695_vm12, %v7823_v6, 0.0  ;;  %v7837_v23 = vsel %vm7695_vm12, %v7827_v28, 0.0 }
 0x7cb   :  { %v7834_v21 = vadd.f32 %v7833_v10, %v7832_v33 }
 0x7cd   :  { %v7836_v39 = vadd.f32 %v7835_v57, %v7834_v21 }
 0x7cf   :  { %v7838_v47 = vadd.f32 %v7837_v23, %v7836_v39 }
 0x7d1   :  { %7839 = vadd.xlane.f32.xlu0 %v7838_v47 }
 0x85e   :  { %v7840_v44 = vpop.xlane.xlu0 %7839 }
 0x85f   :  { %7842 = vst.msk [vmem:[#allocation17] sm:$0x1] %vm7841_vm13, %v7840_v44 }
 0x860 PF:  { %p8139_p10 = scmp.ne.s32.totalorder %s10116_s2, 0 }
 0x861   :  { %vm7847_vm14 = vcmask (!%p8139_p10), 0   ;;  %v9984_v27 = vmov (!%p8139_p10), 0.0  }
 0x862   :  { %7846 = sbr.rel (%p8139_p10) target bundleno = 2153 (0x869), region = 69  ;;  %7848 = vst.msk [vmem:[#allocation17] sm:$0x1] (!%p8139_p10), %vm7847_vm14, %v9984_v27 }
 0x869 PF:  { %s9985_s1 = smov [#allocation16]   ;;  %s9986_s18 = smov [#allocation17]  }
 0x86a   :  { %s7855_s9 = sshll.u32 %s9985_s1, 4  ;;  %s7865_s19 = sshll.u32 %s9986_s18, 4  ;;  %s7856_s9 = int_to_ptr.vmem [resolvable:$true] %s7855_s9  ;;  %s7866_s19 = int_to_ptr.vmem [resolvable:$true] %s7865_s19 }
 0x86b   :  { %s9913_s20 = scalar_lea.vmem %s7856_s9, 16  ;;  %s9917_s21 = scalar_lea.vmem %s7856_s9, 32 }
 0x86c   :  { %p9914_p11 = scmp.ne.s32.totalorder %s7856_s9, %s9913_s20  ;;  %p9918_p12 = scmp.lt.s32.totalorder %s7856_s9, %s7856_s9 }
 0x86d   :  { %p9919_p13 = scmp.lt.s32.totalorder %s9917_s21, %s9913_s20 }
 0x86f   :  { %p9920_p0 = por %p9919_p13, %p9918_p12 }
 0x871   :  { %p9921_p1 = pnand %p9920_p0, %p9914_p11 }
 0x873   :  { %9924 = shalt.err (!%p9921_p1)
}
 0x874   :  { %s9925_s23 = scalar_lea.hbm %s11773_s7, 16 }
 0x875   :  { %p9926_p2 = scmp.ne.s32.totalorder %s11773_s7, %s9925_s23  ;;  %p9929_p3 = scmp.lt.u32.totalorder %s9925_s23, %s11773_s7 }
 0x877   :  { %p9931_p4 = pnand %p9929_p3, %p9926_p2 }
 0x879   :  { %9934 = shalt.err (!%p9931_p4)
}
 0x87a   :  { %7858 = dma.vmem_to_hbm [thread:$0]  %s7856_s9, 16, %s11773_s7, [#allocation7]  }
 0x87b   :  { %s9935_s28 = scalar_lea.vmem %s7866_s19, 16  ;;  %s9939_s29 = scalar_lea.vmem %s7866_s19, 32 }
 0x87c   :  { %p9936_p5 = scmp.ne.s32.totalorder %s7866_s19, %s9935_s28  ;;  %p9940_p6 = scmp.lt.s32.totalorder %s7866_s19, %s7866_s19 }
 0x87d   :  { %p9941_p7 = scmp.lt.s32.totalorder %s9939_s29, %s9935_s28 }
 0x87f   :  { %p9942_p8 = por %p9941_p7, %p9940_p6 }
 0x881   :  { %p9943_p9 = pnand %p9942_p8, %p9936_p5 }
 0x883   :  { %9946 = shalt.err (!%p9943_p9)
}
 0x884   :  { %s9947_s12 = scalar_lea.hbm %s11774_s8, 16 }
 0x885   :  { %p9948_p10 = scmp.ne.s32.totalorder %s11774_s8, %s9947_s12  ;;  %p9951_p11 = scmp.lt.u32.totalorder %s9947_s12, %s11774_s8 }
 0x887   :  { %p9953_p12 = pnand %p9951_p11, %p9948_p10 }
 0x889   :  { %9956 = shalt.err (!%p9953_p12)
}
 0x88a   :  { %7868 = dma.vmem_to_hbm [thread:$0]  %s7866_s19, 16, %s11774_s8, [#allocation18]  }
 0x88b   :  { %9967 = dma.done.wait [#allocation7], 16  }
 0x88c   :  { %9968 = vsyncadd [#allocation7], 4294967280 }
 0x88d   :  { %9969 = dma.done.wait [#allocation18], 16  }
 0x88e   :  { %9970 = vsyncadd [#allocation18], 4294967280 }
 0x88f   :  { %7875 = vsyncpa [#allocation6], 1 }
 0x890   :  { %7876 = vsyncpa [#allocation9], 1 }
 0x891   :  { %7877 = vsyncpa [#allocation12], 1 }
 0x892   :  { %7878 = vsyncpa [#allocation15], 1 }
 0x893   :  { %7879 = vsyncpa [#allocation7], 1 }
 0x894   :  { %7880 = vsyncpa [#allocation18], 1 }

</bundles_post_ra>
